<compile_context>
chip_gen: v7x
topology: tpu7x:2x2x1
jax: 0.10.0
libtpu: 0.0.40
codegen_flags: <defaults>
</compile_context>

<pallas_src>
import functools

import jax
import jax.numpy as jnp
from jax.experimental import pallas as pl
from jax.experimental.pallas import tpu as pltpu

# ---------------- config (small, consistent with the module) ----------------
SEQ = 128                                # token batch per call (perf: M=128 rows)
HIDDEN = 512
NUM_HEADS = 4
NUM_KV_HEADS = 2
HEAD_DIM = HIDDEN // NUM_HEADS           # 128
INTER = 256
EPS = 1e-6
ROPE_THETA = 10000.0
Q_SIZE = NUM_HEADS * HEAD_DIM            # 512
KV_SIZE = NUM_KV_HEADS * HEAD_DIM        # 256
SCALE = HEAD_DIM ** -0.5
GROUP = NUM_HEADS // NUM_KV_HEADS        # 2


# ---------------- fused decoder-layer kernel ----------------
def _decoder_layer_kernel(*refs, has_residual, eps, num_heads, num_kv_heads,
                          head_dim):
    if has_residual:
        (x_ref, res_ref, anorm_ref, fnorm_ref, cos_ref, sin_ref,
         wqkv_ref, wo_ref, wgu_ref, w2_ref, out_ref, newres_ref) = refs
    else:
        (x_ref, anorm_ref, fnorm_ref, cos_ref, sin_ref,
         wqkv_ref, wo_ref, wgu_ref, w2_ref, out_ref, newres_ref) = refs
        res_ref = None

    t = x_ref.shape[0]
    group = num_heads // num_kv_heads
    q_size = num_heads * head_dim
    kv_size = num_kv_heads * head_dim
    half = head_dim // 2

    # ---- residual add + first RMSNorm (f32) ----
    x = x_ref[...].astype(jnp.float32)
    if has_residual:
        x = x + res_ref[...].astype(jnp.float32)          # residual1

    def rmsnorm(v, w):
        var = jnp.mean(v * v, axis=-1, keepdims=True)
        return v * jax.lax.rsqrt(var + eps) * w

    normed1 = rmsnorm(x, anorm_ref[...])                  # (T, H) f32

    # ---- wqkv projection (scale already folded into Q columns) ----
    qkv = jnp.dot(normed1.astype(wqkv_ref.dtype), wqkv_ref[...],
                  preferred_element_type=jnp.float32)     # (T, Q+2KV) f32

    # ---- RoPE: XLU lane-roll + signed sin table ----
    cos = cos_ref[...]                                    # (T, D) = [cos,  cos]
    sin_s = sin_ref[...]                                  # (T, D) = [-sin, sin]
    cos_q = jnp.concatenate([cos] * group, axis=0)        # (group*T, D)
    sin_q = jnp.concatenate([sin_s] * group, axis=0)
    if num_kv_heads == group:
        cos_k, sin_k = cos_q, sin_q
    else:
        cos_k = jnp.concatenate([cos] * num_kv_heads, axis=0)
        sin_k = jnp.concatenate([sin_s] * num_kv_heads, axis=0)

    def rope(h, c, s):
        # rotate_half(h) = roll(h, D/2) * [-1...,+1...]; sign lives in the sin table
        return h * c + pltpu.roll(h, half, 1) * s

    # K: stack all KV heads along rows, RoPE in one pass
    k_stack = jnp.concatenate(
        [qkv[:, q_size + g * head_dim:q_size + (g + 1) * head_dim]
         for g in range(num_kv_heads)], axis=0)           # (NKV*T, D)
    k_stack = rope(k_stack, cos_k, sin_k).astype(jnp.bfloat16)

    # causal mask for stacked (group*T, T) score blocks (no bool concat needed)
    row = jax.lax.broadcasted_iota(jnp.int32, (group, t, t), 1).reshape(group * t, t)
    col = jax.lax.broadcasted_iota(jnp.int32, (group, t, t), 2).reshape(group * t, t)
    causal_g = col <= row

    # ---- packed GQA attention: one QK^T + one PV matmul per KV head ----
    head_out = [None] * num_heads
    for g in range(num_kv_heads):
        q_stack = jnp.concatenate(
            [qkv[:, (g * group + i) * head_dim:(g * group + i + 1) * head_dim]
             for i in range(group)], axis=0)              # (group*T, D)
        q_stack = rope(q_stack, cos_q, sin_q).astype(jnp.bfloat16)

        kg = k_stack[g * t:(g + 1) * t]                   # (T, D) bf16
        vg = qkv[:, q_size + kv_size + g * head_dim:
                 q_size + kv_size + (g + 1) * head_dim].astype(jnp.bfloat16)

        s = jax.lax.dot_general(q_stack, kg, (((1,), (1,)), ((), ())),
                                preferred_element_type=jnp.float32)  # (group*T, T)
        s = jnp.where(causal_g, s, -1e30)                 # safe: scores stay f32
        m = jnp.max(s, axis=-1, keepdims=True)
        p = jnp.exp(s - m)
        p = p * pl.reciprocal(jnp.sum(p, axis=-1, keepdims=True), approx=True)
        o = jnp.dot(p.astype(jnp.bfloat16), vg,
                    preferred_element_type=jnp.float32).astype(jnp.bfloat16)
        for i in range(group):
            head_out[g * group + i] = o[i * t:(i + 1) * t]  # (T, D) bf16

    attn = jnp.concatenate(head_out, axis=-1)             # (T, NH*D) bf16, lane-dense

    # ---- wo projection ----
    attn_out = jnp.dot(attn, wo_ref[...],
                       preferred_element_type=jnp.float32)  # (T, H) f32

    # ---- second residual add + RMSNorm ----
    res2 = attn_out + x
    newres_ref[...] = res2.astype(newres_ref.dtype)
    normed2 = rmsnorm(res2, fnorm_ref[...])

    # ---- MLP: merged gate_up -> SiLU*up -> w2 ----
    gate_up = jnp.dot(normed2.astype(wgu_ref.dtype), wgu_ref[...],
                      preferred_element_type=jnp.float32)  # (T, 2I)
    inter = wgu_ref.shape[1] // 2
    gate = gate_up[:, :inter]
    up = gate_up[:, inter:]
    hmid = (gate * jax.nn.sigmoid(gate)) * up              # SiluAndMul, f32
    out_ref[...] = jnp.dot(hmid.astype(w2_ref.dtype), w2_ref[...],
                           preferred_element_type=jnp.float32
                           ).astype(out_ref.dtype)


def internlm2_decoder_layer(hidden_states, residual, cos, sin_signed, params):
    """Fused InternLM2 decoder layer. Returns (hidden_states, residual)."""
    T, H = hidden_states.shape
    has_residual = residual is not None
    kernel = functools.partial(
        _decoder_layer_kernel, has_residual=has_residual, eps=EPS,
        num_heads=NUM_HEADS, num_kv_heads=NUM_KV_HEADS, head_dim=HEAD_DIM)

    inputs = [hidden_states]
    if has_residual:
        inputs.append(residual)
    inputs += [params["attention_norm"], params["ffn_norm"], cos, sin_signed,
               params["wqkv_scaled"], params["wo"], params["w_gate_up"],
               params["w2"]]

    # advisory cost estimate so XLA schedules surrounding ops around this call
    flops = 2 * T * (H * (Q_SIZE + 2 * KV_SIZE)            # wqkv
                     + NUM_HEADS * T * HEAD_DIM * 2        # QK^T + PV
                     + Q_SIZE * H                          # wo
                     + H * 2 * INTER                       # gate_up
                     + INTER * H)                          # w2
    transcendentals = NUM_HEADS * T * T + T * INTER + 2 * T + NUM_HEADS * T
    bytes_accessed = (sum(int(a.size) * a.dtype.itemsize for a in inputs)
                      + 2 * T * H * 4)

    def vmem_spec():
        return pl.BlockSpec(memory_space=pltpu.MemorySpace.VMEM)

    out, new_residual = pl.pallas_call(
        kernel,
        out_shape=(jax.ShapeDtypeStruct((T, H), jnp.float32),
                   jax.ShapeDtypeStruct((T, H), jnp.float32)),
        in_specs=[vmem_spec() for _ in inputs],
        out_specs=(vmem_spec(), vmem_spec()),
        compiler_params=pltpu.CompilerParams(vmem_limit_bytes=32 * 1024 * 1024),
        cost_estimate=pl.CostEstimate(flops=flops,
                                      transcendentals=transcendentals,
                                      bytes_accessed=bytes_accessed),
    )(*inputs)
    return out, new_residual


# ---------------- RoPE tables (hoisted, computed once) ----------------
def rope_tables(positions, head_dim=HEAD_DIM, theta=ROPE_THETA):
    inv_freq = 1.0 / (theta ** (
        jnp.arange(0, head_dim, 2, dtype=jnp.float32) / head_dim))
    freqs = positions.astype(jnp.float32)[:, None] * inv_freq[None, :]  # (T, D/2)
    cos = jnp.cos(freqs)
    sin = jnp.sin(freqs)
    # signed sin table: rope(h) = h*[cos,cos] + roll(h, D/2)*[-sin, sin]
    return (jnp.concatenate([cos, cos], axis=-1),          # (T, D)
            jnp.concatenate([-sin, sin], axis=-1))         # (T, D)


# ---------------- pure-JAX reference (module semantics, for verification) ----
def _reference_layer(positions, hidden_states, params, residual=None):
    hp = jax.lax.Precision.HIGHEST
    wqkv = params["wqkv"].astype(jnp.float32)              # unscaled module weight
    wo = params["wo"].astype(jnp.float32)
    wgu = params["w_gate_up"].astype(jnp.float32)
    w2 = params["w2"].astype(jnp.float32)
    anorm = params["attention_norm"]
    fnorm = params["ffn_norm"]

    def rmsnorm(x, w):
        var = jnp.mean(x * x, axis=-1, keepdims=True)
        return x * jax.lax.rsqrt(var + EPS) * w

    if residual is None:
        residual = hidden_states
        x = rmsnorm(hidden_states, anorm)
    else:
        residual = hidden_states + residual
        x = rmsnorm(residual, anorm)

    T = x.shape[0]
    qkv = jnp.dot(x, wqkv, precision=hp)
    q = qkv[:, :Q_SIZE].reshape(T, NUM_HEADS, HEAD_DIM)
    k = qkv[:, Q_SIZE:Q_SIZE + KV_SIZE].reshape(T, NUM_KV_HEADS, HEAD_DIM)
    v = qkv[:, Q_SIZE + KV_SIZE:].reshape(T, NUM_KV_HEADS, HEAD_DIM)

    inv_freq = 1.0 / (ROPE_THETA ** (
        jnp.arange(0, HEAD_DIM, 2, dtype=jnp.float32) / HEAD_DIM))
    freqs = positions.astype(jnp.float32)[:, None] * inv_freq[None, :]
    cos = jnp.cos(freqs)[:, None, :]
    sin = jnp.sin(freqs)[:, None, :]

    def rope(x):
        x1, x2 = x[..., :HEAD_DIM // 2], x[..., HEAD_DIM // 2:]
        return jnp.concatenate([x1 * cos - x2 * sin, x2 * cos + x1 * sin], -1)

    q, k = rope(q), rope(k)
    group = NUM_HEADS // NUM_KV_HEADS
    k = jnp.repeat(k, group, axis=1)
    v = jnp.repeat(v, group, axis=1)
    s = jnp.einsum("tnd,snd->nts", q, k, precision=hp) * SCALE
    mask = jnp.tril(jnp.ones((T, T), dtype=bool))
    s = jnp.where(mask[None], s, -1e30)
    p = jax.nn.softmax(s, axis=-1)
    o = jnp.einsum("nts,snd->tnd", p, v, precision=hp).reshape(T, -1)
    attn_out = jnp.dot(o, wo, precision=hp)

    residual = attn_out + residual
    x = rmsnorm(residual, fnorm)
    gate_up = jnp.dot(x, wgu, precision=hp)
    gate, up = gate_up[:, :INTER], gate_up[:, INTER:]
    out = jnp.dot(jax.nn.silu(gate) * up, w2, precision=hp)
    return out, residual


# ---------------- params ----------------
def prepare_params(key):
    ks = jax.random.split(key, 8)
    w_gate = 0.02 * jax.random.normal(ks[4], (HIDDEN, INTER), jnp.float32)
    w_up = 0.02 * jax.random.normal(ks[5], (HIDDEN, INTER), jnp.float32)
    wqkv_f32 = 0.02 * jax.random.normal(
        ks[2], (HIDDEN, Q_SIZE + 2 * KV_SIZE), jnp.float32)
    # fold 1/sqrt(head_dim) into the Q columns (RoPE is linear -> scale commutes)
    col_scale = jnp.concatenate([jnp.full((Q_SIZE,), SCALE, jnp.float32),
                                 jnp.ones((2 * KV_SIZE,), jnp.float32)])
    params = {
        # norm weights stay f32, stored as (1, H) slabs
        "attention_norm": (jnp.ones((HIDDEN,), jnp.float32)
                           + 0.02 * jax.random.normal(ks[0], (HIDDEN,),
                                                      jnp.float32)
                           ).reshape(1, HIDDEN),
        "ffn_norm": (jnp.ones((HIDDEN,), jnp.float32)
                     + 0.02 * jax.random.normal(ks[1], (HIDDEN,), jnp.float32)
                     ).reshape(1, HIDDEN),
        # projection weights in bf16 (MXU native), f32 accumulation in-kernel
        "wqkv": wqkv_f32.astype(jnp.bfloat16),              # module weight (reference)
        "wqkv_scaled": (wqkv_f32 * col_scale[None, :]).astype(jnp.bfloat16),
        "wo": (0.02 * jax.random.normal(ks[3], (Q_SIZE, HIDDEN), jnp.float32)
               ).astype(jnp.bfloat16),
        "w_gate_up": jnp.concatenate([w_gate, w_up], axis=1).astype(jnp.bfloat16),
        "w2": (0.02 * jax.random.normal(ks[6], (INTER, HIDDEN), jnp.float32)
               ).astype(jnp.bfloat16),
    }
    return params, ks[7]


# ---------------- main ----------------
if __name__ == "__main__":
    params, xkey = prepare_params(jax.random.PRNGKey(0))
    positions = jnp.arange(SEQ, dtype=jnp.int32)
    cos, sin_signed = rope_tables(positions)               # precomputed once
    hidden_states = jax.random.normal(xkey, (SEQ, HIDDEN), jnp.float32)

    # first layer call (residual is None), second call reusing the residual
    out1, res1 = internlm2_decoder_layer(hidden_states, None, cos, sin_signed,
                                         params)
    out2, res2 = internlm2_decoder_layer(out1, res1, cos, sin_signed, params)
    jax.block_until_ready((out2, res2))

    # verify against pure-JAX reference (module semantics, unscaled wqkv + SCALE)
    ro1, rr1 = _reference_layer(positions, hidden_states, params, None)
    ro2, rr2 = _reference_layer(positions, ro1, params, rr1)
    for a, b in [(out1, ro1), (res1, rr1), (out2, ro2), (res2, rr2)]:
        err = float(jnp.max(jnp.abs(a - b)))
        assert jnp.allclose(a, b, atol=2e-2, rtol=2e-2), err

    print("KERNEL_OK")
</pallas_src>

<mosaic_0001>
module attributes {stable_mosaic.version = 11 : i64} {
  func.func @_decoder_layer_kernel(%arg0: memref<128x512xf32, #tpu.memory_space<vmem>>, %arg1: memref<1x512xf32, #tpu.memory_space<vmem>>, %arg2: memref<1x512xf32, #tpu.memory_space<vmem>>, %arg3: memref<128x128xf32, #tpu.memory_space<vmem>>, %arg4: memref<128x128xf32, #tpu.memory_space<vmem>>, %arg5: memref<512x1024xbf16, #tpu.memory_space<vmem>>, %arg6: memref<512x512xbf16, #tpu.memory_space<vmem>>, %arg7: memref<512x512xbf16, #tpu.memory_space<vmem>>, %arg8: memref<256x512xbf16, #tpu.memory_space<vmem>>, %arg9: memref<128x512xf32, #tpu.memory_space<vmem>>, %arg10: memref<128x512xf32, #tpu.memory_space<vmem>>) attributes {dimension_semantics = [], scalar_prefetch = 0 : i64, scratch_operands = 0 : i64, tpu.core_type = #tpu.core_type<tc>} {
    %c0 = arith.constant 0 : index
    %c0_0 = arith.constant 0 : index
    %0 = vector.load %arg0[%c0, %c0_0] : memref<128x512xf32, #tpu.memory_space<vmem>>, vector<128x512xf32>
    %c0_1 = arith.constant 0 : index
    %c0_2 = arith.constant 0 : index
    %1 = vector.load %arg1[%c0_1, %c0_2] : memref<1x512xf32, #tpu.memory_space<vmem>>, vector<1x512xf32>
    %2 = arith.mulf %0, %0 : vector<128x512xf32>
    %cst = arith.constant dense<0.000000e+00> : vector<128xf32>
    %3 = vector.multi_reduction <add>, %2, %cst [1] : vector<128x512xf32> to vector<128xf32>
    %4 = vector.shape_cast %3 : vector<128xf32> to vector<128x1xf32>
    %cst_3 = arith.constant 5.120000e+02 : f32
    %5 = vector.broadcast %cst_3 : f32 to vector<128x1xf32>
    %6 = arith.divf %4, %5 : vector<128x1xf32>
    %cst_4 = arith.constant 9.99999997E-7 : f32
    %7 = vector.broadcast %cst_4 : f32 to vector<128x1xf32>
    %8 = arith.addf %6, %7 : vector<128x1xf32>
    %9 = math.rsqrt %8 : vector<128x1xf32>
    %10 = vector.broadcast %9 : vector<128x1xf32> to vector<128x512xf32>
    %11 = arith.mulf %0, %10 : vector<128x512xf32>
    %12 = vector.broadcast %1 : vector<1x512xf32> to vector<128x512xf32>
    %13 = arith.mulf %11, %12 : vector<128x512xf32>
    %14 = arith.truncf %13 : vector<128x512xf32> to vector<128x512xbf16>
    %c0_5 = arith.constant 0 : index
    %c0_6 = arith.constant 0 : index
    %15 = vector.load %arg5[%c0_5, %c0_6] : memref<512x1024xbf16, #tpu.memory_space<vmem>>, vector<512x1024xbf16>
    %cst_7 = arith.constant dense<0.000000e+00> : vector<128x1024xf32>
    %16 = tpu.matmul %14, %15, %cst_7 {dimension_numbers = #tpu.dot_dimension_numbers<[1], [0], [0], [1], [0, 0, 1, 1], [], []>} : vector<128x512xbf16>, vector<512x1024xbf16>, vector<128x1024xf32> -> vector<128x1024xf32>
    %c0_8 = arith.constant 0 : index
    %c0_9 = arith.constant 0 : index
    %17 = vector.load %arg3[%c0_8, %c0_9] : memref<128x128xf32, #tpu.memory_space<vmem>>, vector<128x128xf32>
    %c0_10 = arith.constant 0 : index
    %c0_11 = arith.constant 0 : index
    %18 = vector.load %arg4[%c0_10, %c0_11] : memref<128x128xf32, #tpu.memory_space<vmem>>, vector<128x128xf32>
    %19 = tpu.concatenate %17, %17 in 0 : vector<128x128xf32>, vector<128x128xf32> -> vector<256x128xf32>
    %20 = tpu.concatenate %18, %18 in 0 : vector<128x128xf32>, vector<128x128xf32> -> vector<256x128xf32>
    %21 = vector.extract_strided_slice %16 {offsets = [0, 512], sizes = [128, 128], strides = [1, 1]} : vector<128x1024xf32> to vector<128x128xf32>
    %22 = vector.extract_strided_slice %16 {offsets = [0, 640], sizes = [128, 128], strides = [1, 1]} : vector<128x1024xf32> to vector<128x128xf32>
    %23 = tpu.concatenate %21, %22 in 0 : vector<128x128xf32>, vector<128x128xf32> -> vector<256x128xf32>
    %24 = arith.mulf %23, %19 : vector<256x128xf32>
    %c64_i32 = arith.constant 64 : i32
    %25 = tpu.dynamic_rotate %23 by %c64_i32 dim 1 : vector<256x128xf32>, i32 -> vector<256x128xf32>
    %26 = arith.mulf %25, %20 : vector<256x128xf32>
    %27 = arith.addf %24, %26 : vector<256x128xf32>
    %28 = arith.truncf %27 : vector<256x128xf32> to vector<256x128xbf16>
    %29 = tpu.iota {dimensions = array<i32: 1>} : vector<2x128x128xi32>
    %30 = vector.shape_cast %29 : vector<2x128x128xi32> to vector<256x128xi32>
    %31 = tpu.iota {dimensions = array<i32: 2>} : vector<2x128x128xi32>
    %32 = vector.shape_cast %31 : vector<2x128x128xi32> to vector<256x128xi32>
    %33 = arith.cmpi sle, %32, %30 : vector<256x128xi32>
    %34 = vector.extract_strided_slice %16 {offsets = [0, 0], sizes = [128, 128], strides = [1, 1]} : vector<128x1024xf32> to vector<128x128xf32>
    %35 = vector.extract_strided_slice %16 {offsets = [0, 128], sizes = [128, 128], strides = [1, 1]} : vector<128x1024xf32> to vector<128x128xf32>
    %36 = tpu.concatenate %34, %35 in 0 : vector<128x128xf32>, vector<128x128xf32> -> vector<256x128xf32>
    %37 = arith.mulf %36, %19 : vector<256x128xf32>
    %c64_i32_12 = arith.constant 64 : i32
    %38 = tpu.dynamic_rotate %36 by %c64_i32_12 dim 1 : vector<256x128xf32>, i32 -> vector<256x128xf32>
    %39 = arith.mulf %38, %20 : vector<256x128xf32>
    %40 = arith.addf %37, %39 : vector<256x128xf32>
    %41 = arith.truncf %40 : vector<256x128xf32> to vector<256x128xbf16>
    %42 = vector.extract_strided_slice %28 {offsets = [0, 0], sizes = [128, 128], strides = [1, 1]} : vector<256x128xbf16> to vector<128x128xbf16>
    %43 = vector.extract_strided_slice %16 {offsets = [0, 768], sizes = [128, 128], strides = [1, 1]} : vector<128x1024xf32> to vector<128x128xf32>
    %44 = arith.truncf %43 : vector<128x128xf32> to vector<128x128xbf16>
    %cst_13 = arith.constant dense<0.000000e+00> : vector<256x128xf32>
    %45 = tpu.matmul %41, %42, %cst_13 {dimension_numbers = #tpu.dot_dimension_numbers<[1], [1], [0], [0], [0, 0, 1, 0], [], []>} : vector<256x128xbf16>, vector<128x128xbf16>, vector<256x128xf32> -> vector<256x128xf32>
    %cst_14 = arith.constant -1.000000e+30 : f32
    %46 = vector.broadcast %cst_14 : f32 to vector<256x128xf32>
    %47 = arith.select %33, %45, %46 : vector<256x128xi1>, vector<256x128xf32>
    %cst_15 = arith.constant dense<0xFF800000> : vector<256xf32>
    %48 = vector.multi_reduction <maximumf>, %47, %cst_15 [1] : vector<256x128xf32> to vector<256xf32>
    %49 = vector.shape_cast %48 : vector<256xf32> to vector<256x1xf32>
    %50 = vector.broadcast %49 : vector<256x1xf32> to vector<256x128xf32>
    %51 = arith.subf %47, %50 : vector<256x128xf32>
    %52 = math.exp %51 : vector<256x128xf32>
    %cst_16 = arith.constant dense<0.000000e+00> : vector<256xf32>
    %53 = vector.multi_reduction <add>, %52, %cst_16 [1] : vector<256x128xf32> to vector<256xf32>
    %54 = vector.shape_cast %53 : vector<256xf32> to vector<256x1xf32>
    %55 = tpu.reciprocal %54 {approx = true} : vector<256x1xf32> -> vector<256x1xf32>
    %56 = vector.broadcast %55 : vector<256x1xf32> to vector<256x128xf32>
    %57 = arith.mulf %52, %56 : vector<256x128xf32>
    %58 = arith.truncf %57 : vector<256x128xf32> to vector<256x128xbf16>
    %cst_17 = arith.constant dense<0.000000e+00> : vector<256x128xf32>
    %59 = tpu.matmul %58, %44, %cst_17 {dimension_numbers = #tpu.dot_dimension_numbers<[1], [0], [0], [1], [0, 0, 1, 1], [], []>} : vector<256x128xbf16>, vector<128x128xbf16>, vector<256x128xf32> -> vector<256x128xf32>
    %60 = arith.truncf %59 : vector<256x128xf32> to vector<256x128xbf16>
    %61 = vector.extract_strided_slice %60 {offsets = [0, 0], sizes = [128, 128], strides = [1, 1]} : vector<256x128xbf16> to vector<128x128xbf16>
    %62 = vector.extract_strided_slice %60 {offsets = [128, 0], sizes = [128, 128], strides = [1, 1]} : vector<256x128xbf16> to vector<128x128xbf16>
    %63 = vector.extract_strided_slice %16 {offsets = [0, 256], sizes = [128, 128], strides = [1, 1]} : vector<128x1024xf32> to vector<128x128xf32>
    %64 = vector.extract_strided_slice %16 {offsets = [0, 384], sizes = [128, 128], strides = [1, 1]} : vector<128x1024xf32> to vector<128x128xf32>
    %65 = tpu.concatenate %63, %64 in 0 : vector<128x128xf32>, vector<128x128xf32> -> vector<256x128xf32>
    %66 = arith.mulf %65, %19 : vector<256x128xf32>
    %c64_i32_18 = arith.constant 64 : i32
    %67 = tpu.dynamic_rotate %65 by %c64_i32_18 dim 1 : vector<256x128xf32>, i32 -> vector<256x128xf32>
    %68 = arith.mulf %67, %20 : vector<256x128xf32>
    %69 = arith.addf %66, %68 : vector<256x128xf32>
    %70 = arith.truncf %69 : vector<256x128xf32> to vector<256x128xbf16>
    %71 = vector.extract_strided_slice %28 {offsets = [128, 0], sizes = [128, 128], strides = [1, 1]} : vector<256x128xbf16> to vector<128x128xbf16>
    %72 = vector.extract_strided_slice %16 {offsets = [0, 896], sizes = [128, 128], strides = [1, 1]} : vector<128x1024xf32> to vector<128x128xf32>
    %73 = arith.truncf %72 : vector<128x128xf32> to vector<128x128xbf16>
    %cst_19 = arith.constant dense<0.000000e+00> : vector<256x128xf32>
    %74 = tpu.matmul %70, %71, %cst_19 {dimension_numbers = #tpu.dot_dimension_numbers<[1], [1], [0], [0], [0, 0, 1, 0], [], []>} : vector<256x128xbf16>, vector<128x128xbf16>, vector<256x128xf32> -> vector<256x128xf32>
    %cst_20 = arith.constant -1.000000e+30 : f32
    %75 = vector.broadcast %cst_20 : f32 to vector<256x128xf32>
    %76 = arith.select %33, %74, %75 : vector<256x128xi1>, vector<256x128xf32>
    %cst_21 = arith.constant dense<0xFF800000> : vector<256xf32>
    %77 = vector.multi_reduction <maximumf>, %76, %cst_21 [1] : vector<256x128xf32> to vector<256xf32>
    %78 = vector.shape_cast %77 : vector<256xf32> to vector<256x1xf32>
    %79 = vector.broadcast %78 : vector<256x1xf32> to vector<256x128xf32>
    %80 = arith.subf %76, %79 : vector<256x128xf32>
    %81 = math.exp %80 : vector<256x128xf32>
    %cst_22 = arith.constant dense<0.000000e+00> : vector<256xf32>
    %82 = vector.multi_reduction <add>, %81, %cst_22 [1] : vector<256x128xf32> to vector<256xf32>
    %83 = vector.shape_cast %82 : vector<256xf32> to vector<256x1xf32>
    %84 = tpu.reciprocal %83 {approx = true} : vector<256x1xf32> -> vector<256x1xf32>
    %85 = vector.broadcast %84 : vector<256x1xf32> to vector<256x128xf32>
    %86 = arith.mulf %81, %85 : vector<256x128xf32>
    %87 = arith.truncf %86 : vector<256x128xf32> to vector<256x128xbf16>
    %cst_23 = arith.constant dense<0.000000e+00> : vector<256x128xf32>
    %88 = tpu.matmul %87, %73, %cst_23 {dimension_numbers = #tpu.dot_dimension_numbers<[1], [0], [0], [1], [0, 0, 1, 1], [], []>} : vector<256x128xbf16>, vector<128x128xbf16>, vector<256x128xf32> -> vector<256x128xf32>
    %89 = arith.truncf %88 : vector<256x128xf32> to vector<256x128xbf16>
    %90 = vector.extract_strided_slice %89 {offsets = [0, 0], sizes = [128, 128], strides = [1, 1]} : vector<256x128xbf16> to vector<128x128xbf16>
    %91 = vector.extract_strided_slice %89 {offsets = [128, 0], sizes = [128, 128], strides = [1, 1]} : vector<256x128xbf16> to vector<128x128xbf16>
    %92 = tpu.concatenate %61, %62, %90, %91 in 1 : vector<128x128xbf16>, vector<128x128xbf16>, vector<128x128xbf16>, vector<128x128xbf16> -> vector<128x512xbf16>
    %c0_24 = arith.constant 0 : index
    %c0_25 = arith.constant 0 : index
    %93 = vector.load %arg6[%c0_24, %c0_25] : memref<512x512xbf16, #tpu.memory_space<vmem>>, vector<512x512xbf16>
    %cst_26 = arith.constant dense<0.000000e+00> : vector<128x512xf32>
    %94 = tpu.matmul %92, %93, %cst_26 {dimension_numbers = #tpu.dot_dimension_numbers<[1], [0], [0], [1], [0, 0, 1, 1], [], []>} : vector<128x512xbf16>, vector<512x512xbf16>, vector<128x512xf32> -> vector<128x512xf32>
    %95 = arith.addf %94, %0 : vector<128x512xf32>
    %c0_27 = arith.constant 0 : index
    %c0_28 = arith.constant 0 : index
    %96 = vector.load %arg10[%c0_27, %c0_28] : memref<128x512xf32, #tpu.memory_space<vmem>>, vector<128x512xf32>
    tpu.vector_store %arg10[%c0_27, %c0_28], %95 {strides = array<i32>} : memref<128x512xf32, #tpu.memory_space<vmem>>, vector<128x512xf32>,
    %c0_29 = arith.constant 0 : index
    %c0_30 = arith.constant 0 : index
    %97 = vector.load %arg2[%c0_29, %c0_30] : memref<1x512xf32, #tpu.memory_space<vmem>>, vector<1x512xf32>
    %98 = arith.mulf %95, %95 : vector<128x512xf32>
    %cst_31 = arith.constant dense<0.000000e+00> : vector<128xf32>
    %99 = vector.multi_reduction <add>, %98, %cst_31 [1] : vector<128x512xf32> to vector<128xf32>
    %100 = vector.shape_cast %99 : vector<128xf32> to vector<128x1xf32>
    %cst_32 = arith.constant 5.120000e+02 : f32
    %101 = vector.broadcast %cst_32 : f32 to vector<128x1xf32>
    %102 = arith.divf %100, %101 : vector<128x1xf32>
    %cst_33 = arith.constant 9.99999997E-7 : f32
    %103 = vector.broadcast %cst_33 : f32 to vector<128x1xf32>
    %104 = arith.addf %102, %103 : vector<128x1xf32>
    %105 = math.rsqrt %104 : vector<128x1xf32>
    %106 = vector.broadcast %105 : vector<128x1xf32> to vector<128x512xf32>
    %107 = arith.mulf %95, %106 : vector<128x512xf32>
    %108 = vector.broadcast %97 : vector<1x512xf32> to vector<128x512xf32>
    %109 = arith.mulf %107, %108 : vector<128x512xf32>
    %110 = arith.truncf %109 : vector<128x512xf32> to vector<128x512xbf16>
    %c0_34 = arith.constant 0 : index
    %c0_35 = arith.constant 0 : index
    %111 = vector.load %arg7[%c0_34, %c0_35] : memref<512x512xbf16, #tpu.memory_space<vmem>>, vector<512x512xbf16>
    %cst_36 = arith.constant dense<0.000000e+00> : vector<128x512xf32>
    %112 = tpu.matmul %110, %111, %cst_36 {dimension_numbers = #tpu.dot_dimension_numbers<[1], [0], [0], [1], [0, 0, 1, 1], [], []>} : vector<128x512xbf16>, vector<512x512xbf16>, vector<128x512xf32> -> vector<128x512xf32>
    %113 = vector.extract_strided_slice %112 {offsets = [0, 0], sizes = [128, 256], strides = [1, 1]} : vector<128x512xf32> to vector<128x256xf32>
    %114 = vector.extract_strided_slice %112 {offsets = [0, 256], sizes = [128, 256], strides = [1, 1]} : vector<128x512xf32> to vector<128x256xf32>
    %115 = arith.negf %113 : vector<128x256xf32>
    %116 = math.exp %115 : vector<128x256xf32>
    %cst_37 = arith.constant 1.000000e+00 : f32
    %117 = vector.broadcast %cst_37 : f32 to vector<128x256xf32>
    %118 = arith.addf %117, %116 : vector<128x256xf32>
    %119 = arith.divf %117, %118 : vector<128x256xf32>
    %120 = arith.mulf %113, %119 : vector<128x256xf32>
    %121 = arith.mulf %120, %114 : vector<128x256xf32>
    %122 = arith.truncf %121 : vector<128x256xf32> to vector<128x256xbf16>
    %c0_38 = arith.constant 0 : index
    %c0_39 = arith.constant 0 : index
    %123 = vector.load %arg8[%c0_38, %c0_39] : memref<256x512xbf16, #tpu.memory_space<vmem>>, vector<256x512xbf16>
    %cst_40 = arith.constant dense<0.000000e+00> : vector<128x512xf32>
    %124 = tpu.matmul %122, %123, %cst_40 {dimension_numbers = #tpu.dot_dimension_numbers<[1], [0], [0], [1], [0, 0, 1, 1], [], []>} : vector<128x256xbf16>, vector<256x512xbf16>, vector<128x512xf32> -> vector<128x512xf32>
    %c0_41 = arith.constant 0 : index
    %c0_42 = arith.constant 0 : index
    %125 = vector.load %arg9[%c0_41, %c0_42] : memref<128x512xf32, #tpu.memory_space<vmem>>, vector<128x512xf32>
    tpu.vector_store %arg9[%c0_41, %c0_42], %124 {strides = array<i32>} : memref<128x512xf32, #tpu.memory_space<vmem>>, vector<128x512xf32>,
    return
  }
}

</mosaic_0001>

<bundles_post_ra>
// kernel: tpu_custom_call.1
= control target key start
LH: loop header
LB: loop body
LE: loop exit
PB: predicated region body
PF: predicated region fallthrough
CT: control target
= control target key end

     0   :  { %16 = vsyncpa [#allocation3], 0  ;;  %s14753_s0 = inlined_call_operand.hbm [shape: f32[128,512], index: 0, kind: input, shape index: {}]   ;;  %s14754_s1 = inlined_call_operand.hbm [shape: f32[1,512], index: 1, kind: input, shape index: {}]   ;;  %s14755_s2 = inlined_call_operand.vmem [shape: f32[1,512], index: 2, kind: input, shape index: {}]   ;;  %s14756_s3 = inlined_call_operand.hbm [shape: f32[128,128], index: 3, kind: input, shape index: {}]   ;;  %s14757_s4 = inlined_call_operand.hbm [shape: f32[128,128], index: 4, kind: input, shape index: {}]   ;;  %s14758_s5 = inlined_call_operand.hbm [shape: bf16[512,1024], index: 5, kind: input, shape index: {}]   ;;  %s14759_s6 = inlined_call_operand.hbm [shape: bf16[512,512], index: 6, kind: input, shape index: {}]   ;;  %s14760_s7 = inlined_call_operand.hbm [shape: bf16[512,512], index: 7, kind: input, shape index: {}]   ;;  %s14761_s8 = inlined_call_operand.hbm [shape: bf16[256,512], index: 8, kind: input, shape index: {}]   ;;  %s14762_s9 = inlined_call_operand.hbm [shape: f32[128,512], index: 9, kind: output, shape index: {0}]   ;;  %s14763_s10 = inlined_call_operand.hbm [shape: f32[128,512], index: 10, kind: output, shape index: {1}]  }
   0x1   :  { %17 = vsyncpa [#allocation6], 0 }
   0x2   :  { %18 = vsyncpa [#allocation9], 0 }
   0x3   :  { %19 = vsyncpa [#allocation12], 0 }
   0x4   :  { %20 = vsyncpa [#allocation15], 0 }
   0x5   :  { %21 = vsyncpa [#allocation4], 0 }
   0x6   :  { %22 = vsyncpa [#allocation18], 0  ;;  %s11366_s13 = smov [#allocation5]   ;;  %s11132_s17 = scalar_lea.hbm %s14754_s1, 64 }
   0x7   :  { %s41_s14 = sshll.u32 %s11366_s13, 4  ;;  %p11133_p0 = scmp.ne.s32.totalorder %s14754_s1, %s11132_s17  ;;  %s42_s14 = int_to_ptr.vmem [resolvable:$true] %s41_s14 }
   0x8   :  { %p11136_p1 = scmp.lt.u32.totalorder %s11132_s17, %s14754_s1 }
   0xa   :  { %p11138_p2 = pnand %p11136_p1, %p11133_p0 }
   0xc   :  { %11141 = shalt.err (!%p11138_p2)
}
   0xd   :  { %s11142_s22 = scalar_lea.vmem %s42_s14, 64  ;;  %p11147_p4 = scmp.lt.s32.totalorder %s42_s14, %s42_s14 }
   0xe   :  { %p11143_p3 = scmp.ne.s32.totalorder %s42_s14, %s11142_s22  ;;  %p11148_p5 = scmp.lt.s32.totalorder %s11142_s22, %s11142_s22 }
  0x10   :  { %p11149_p6 = por %p11148_p5, %p11147_p4 }
  0x12   :  { %p11150_p7 = pnand %p11149_p6, %p11143_p3 }
  0x14   :  { %11153 = shalt.err (!%p11150_p7)
}
  0x15   :  { %44 = dma.hbm_to_vmem [thread:$0]  %s14754_s1, 64, %s42_s14, [#allocation6]  }
  0x16   :  { %s11367_s25 = smov [#allocation8]   ;;  %s11368_s27 = smov [#allocation11]  }
  0x17   :  { %s64_s26 = sshll.u32 %s11367_s25, 4  ;;  %s88_s28 = sshll.u32 %s11368_s27, 4  ;;  %s65_s26 = int_to_ptr.vmem [resolvable:$true] %s64_s26  ;;  %s89_s28 = int_to_ptr.vmem [resolvable:$true] %s88_s28 }
  0x18   :  { %s11154_s11 = scalar_lea.hbm %s14757_s4, 2048 }
  0x19   :  { %p11155_p8 = scmp.ne.s32.totalorder %s14757_s4, %s11154_s11  ;;  %p11158_p9 = scmp.lt.u32.totalorder %s11154_s11, %s14757_s4 }
  0x1b   :  { %p11160_p10 = pnand %p11158_p9, %p11155_p8 }
  0x1d   :  { %11163 = shalt.err (!%p11160_p10)
}
  0x1e   :  { %s11164_s1 = scalar_lea.vmem %s65_s26, 2048  ;;  %p11169_p12 = scmp.lt.s32.totalorder %s65_s26, %s65_s26 }
  0x1f   :  { %p11165_p11 = scmp.ne.s32.totalorder %s65_s26, %s11164_s1  ;;  %p11170_p13 = scmp.lt.s32.totalorder %s11164_s1, %s11164_s1 }
  0x21   :  { %p11171_p0 = por %p11170_p13, %p11169_p12 }
  0x23   :  { %p11172_p1 = pnand %p11171_p0, %p11165_p11 }
  0x25   :  { %11175 = shalt.err (!%p11172_p1)
}
  0x26   :  { %s11369_s14 = smov 128   ;;  %s11370_s17 = smov 8  }
  0x27   :  { %70 = dma.hbm_to_vmem [thread:$0]  %s14757_s4, 2048, %s65_s26, [#allocation9], %s11369_s14, %s11369_s14, %s11370_s17  }
  0x28   :  { %s11176_s22 = scalar_lea.hbm %s14759_s6, 16384 }
  0x29   :  { %p11177_p2 = scmp.ne.s32.totalorder %s14759_s6, %s11176_s22  ;;  %p11180_p3 = scmp.lt.u32.totalorder %s11176_s22, %s14759_s6 }
  0x2b   :  { %p11182_p4 = pnand %p11180_p3, %p11177_p2 }
  0x2d   :  { %11185 = shalt.err (!%p11182_p4)
}
  0x2e   :  { %s11186_s29 = scalar_lea.vmem %s89_s28, 16384  ;;  %p11191_p6 = scmp.lt.s32.totalorder %s89_s28, %s89_s28 }
  0x2f   :  { %p11187_p5 = scmp.ne.s32.totalorder %s89_s28, %s11186_s29  ;;  %p11192_p7 = scmp.lt.s32.totalorder %s11186_s29, %s11186_s29 }
  0x31   :  { %p11193_p8 = por %p11192_p7, %p11191_p6 }
  0x33   :  { %p11194_p9 = pnand %p11193_p8, %p11187_p5 }
  0x35   :  { %11197 = shalt.err (!%p11194_p9)
}
  0x36   :  { %s11371_s4 = smov 256   ;;  %s11372_s26 = smov 16  }
  0x37   :  { %94 = dma.hbm_to_vmem [thread:$0]  %s14759_s6, 16384, %s89_s28, [#allocation12], %s11371_s4, %s11371_s4, %s11372_s26  }
  0x38   :  { %s11373_s12 = smov [#allocation2]   ;;  %s11198_s1 = scalar_lea.hbm %s14753_s0, 8192 }
  0x39   :  { %s28_s13 = sshll.u32 %s11373_s12, 4  ;;  %p11199_p10 = scmp.ne.s32.totalorder %s14753_s0, %s11198_s1  ;;  %s29_s13 = int_to_ptr.vmem [resolvable:$true] %s28_s13 }
  0x3a   :  { %p11202_p11 = scmp.lt.u32.totalorder %s11198_s1, %s14753_s0 }
  0x3c   :  { %p11204_p12 = pnand %p11202_p11, %p11199_p10 }
  0x3e   :  { %11207 = shalt.err (!%p11204_p12)
}
  0x3f   :  { %s11208_s22 = scalar_lea.vmem %s29_s13, 8192  ;;  %p11213_p0 = scmp.lt.s32.totalorder %s29_s13, %s29_s13 }
  0x40   :  { %p11209_p13 = scmp.ne.s32.totalorder %s29_s13, %s11208_s22  ;;  %p11214_p1 = scmp.lt.s32.totalorder %s11208_s22, %s11208_s22 }
  0x42   :  { %p11215_p2 = por %p11214_p1, %p11213_p0 }
  0x44   :  { %p11216_p3 = pnand %p11215_p2, %p11209_p13 }
  0x46   :  { %11219 = shalt.err (!%p11216_p3)
}
  0x47   :  { %s11374_s6 = smov 512   ;;  %s11375_s28 = smov 32  }
  0x48   :  { %34 = dma.hbm_to_vmem [thread:$0]  %s14753_s0, 8192, %s29_s13, [#allocation3], %s11374_s6, %s11374_s6, %s11375_s28  }
  0x49   :  { %s11376_s25 = smov [#allocation7]   ;;  %s11377_s29 = smov [#allocation10]  }
  0x4a   :  { %s52_s27 = sshll.u32 %s11376_s25, 4  ;;  %s76_s30 = sshll.u32 %s11377_s29, 4  ;;  %s53_s27 = int_to_ptr.vmem [resolvable:$true] %s52_s27  ;;  %s11495_s30 = int_to_ptr.vmem [resolvable:$true] %s76_s30 }
  0x4b   :  { %s11220_s15 = scalar_lea.hbm %s14756_s3, 2048 }
  0x4c   :  { %p11221_p4 = scmp.ne.s32.totalorder %s14756_s3, %s11220_s15  ;;  %p11224_p5 = scmp.lt.u32.totalorder %s11220_s15, %s14756_s3 }
  0x4e   :  { %p11226_p6 = pnand %p11224_p5, %p11221_p4 }
  0x50   :  { %11229 = shalt.err (!%p11226_p6)
}
  0x51   :  { %s11230_s0 = scalar_lea.vmem %s53_s27, 2048  ;;  %p11235_p8 = scmp.lt.s32.totalorder %s53_s27, %s53_s27 }
  0x52   :  { %p11231_p7 = scmp.ne.s32.totalorder %s53_s27, %s11230_s0  ;;  %p11236_p9 = scmp.lt.s32.totalorder %s11230_s0, %s11230_s0 }
  0x54   :  { %p11237_p10 = por %p11236_p9, %p11235_p8 }
  0x56   :  { %p11238_p11 = pnand %p11237_p10, %p11231_p7 }
  0x58   :  { %11241 = shalt.err (!%p11238_p11)
}
  0x59   :  { %58 = dma.hbm_to_vmem [thread:$0]  %s14756_s3, 2048, %s53_s27, [#allocation6], %s11369_s14, %s11369_s14, %s11370_s17  }
  0x5a   :  { %s11242_s23 = scalar_lea.hbm %s14758_s5, 32768 }
  0x5b   :  { %p11243_p12 = scmp.ne.s32.totalorder %s14758_s5, %s11242_s23  ;;  %p11246_p13 = scmp.lt.u32.totalorder %s11242_s23, %s14758_s5 }
  0x5d   :  { %p11248_p0 = pnand %p11246_p13, %p11243_p12 }
  0x5f   :  { %11251 = shalt.err (!%p11248_p0)
}
  0x60   :  { %s11252_s12 = scalar_lea.vmem %s11495_s30, 32768  ;;  %p11257_p2 = scmp.lt.s32.totalorder %s11495_s30, %s11495_s30 }
  0x61   :  { %p11253_p1 = scmp.ne.s32.totalorder %s11495_s30, %s11252_s12  ;;  %p11258_p3 = scmp.lt.s32.totalorder %s11252_s12, %s11252_s12 }
  0x63   :  { %p11259_p4 = por %p11258_p3, %p11257_p2 }
  0x65   :  { %p11260_p5 = pnand %p11259_p4, %p11253_p1 }
  0x67   :  { %11263 = shalt.err (!%p11260_p5)
}
  0x68   :  { %82 = dma.hbm_to_vmem [thread:$0]  %s14758_s5, 32768, %s11495_s30, [#allocation9], %s11374_s6, %s11374_s6, %s11375_s28  }
  0x69   :  { %s11378_s17 = smov [#allocation13]   ;;  %s11379_s15 = smov [#allocation14]  }
  0x6a   :  { %s100_s27 = sshll.u32 %s11378_s17, 4  ;;  %s112_s16 = sshll.u32 %s11379_s15, 4  ;;  %s101_s27 = int_to_ptr.vmem [resolvable:$true] %s100_s27  ;;  %s11532_s16 = int_to_ptr.vmem [resolvable:$true] %s112_s16 }
  0x6b   :  { %s11264_s19 = scalar_lea.hbm %s14760_s7, 16384 }
  0x6c   :  { %p11265_p6 = scmp.ne.s32.totalorder %s14760_s7, %s11264_s19  ;;  %p11268_p7 = scmp.lt.u32.totalorder %s11264_s19, %s14760_s7 }
  0x6e   :  { %p11270_p8 = pnand %p11268_p7, %p11265_p6 }
  0x70   :  { %11273 = shalt.err (!%p11270_p8)
}
  0x71   :  { %s11274_s5 = scalar_lea.vmem %s101_s27, 16384  ;;  %p11279_p10 = scmp.lt.s32.totalorder %s101_s27, %s101_s27 }
  0x72   :  { %p11275_p9 = scmp.ne.s32.totalorder %s101_s27, %s11274_s5  ;;  %p11280_p11 = scmp.lt.s32.totalorder %s11274_s5, %s11274_s5 }
  0x74   :  { %p11281_p12 = por %p11280_p11, %p11279_p10 }
  0x76   :  { %p11282_p13 = pnand %p11281_p12, %p11275_p9 }
  0x78   :  { %11285 = shalt.err (!%p11282_p13)
}
  0x79   :  { %106 = dma.hbm_to_vmem [thread:$0]  %s14760_s7, 16384, %s101_s27, [#allocation12], %s11371_s4, %s11371_s4, %s11372_s26  }
  0x7a   :  { %s11286_s25 = scalar_lea.hbm %s14761_s8, 8192 }
  0x7b   :  { %p11287_p0 = scmp.ne.s32.totalorder %s14761_s8, %s11286_s25  ;;  %p11290_p1 = scmp.lt.u32.totalorder %s11286_s25, %s14761_s8 }
  0x7d   :  { %p11292_p2 = pnand %p11290_p1, %p11287_p0 }
  0x7f   :  { %11295 = shalt.err (!%p11292_p2)
}
  0x80   :  { %s11296_s14 = scalar_lea.vmem %s11532_s16, 8192  ;;  %p11301_p4 = scmp.lt.s32.totalorder %s11532_s16, %s11532_s16 }
  0x81   :  { %p11297_p3 = scmp.ne.s32.totalorder %s11532_s16, %s11296_s14  ;;  %p11302_p5 = scmp.lt.s32.totalorder %s11296_s14, %s11296_s14 }
  0x83   :  { %p11303_p6 = por %p11302_p5, %p11301_p4 }
  0x85   :  { %p11304_p7 = pnand %p11303_p6, %p11297_p3 }
  0x87   :  { %11307 = shalt.err (!%p11304_p7)
}
  0x88   :  { %118 = dma.hbm_to_vmem [thread:$0]  %s14761_s8, 8192, %s11532_s16, [#allocation15], %s11371_s4, %s11371_s4, %s11372_s26  }
  0x89   :  { %11352 = dma.done.wait [#allocation3], 8192  }
  0x8a   :  { %11353 = vsyncadd [#allocation3], 4294959104 }
  0x8b   :  { %11354 = dma.done.wait [#allocation6], 2112  }
  0x8c   :  { %11355 = vsyncadd [#allocation6], 4294965184 }
  0x8d   :  { %11356 = dma.done.wait [#allocation9], 34816  }
  0x8e   :  { %11357 = vsyncadd [#allocation9], 4294932480 }
  0x8f   :  { %11358 = dma.done.wait [#allocation12], 32768  }
  0x90   :  { %11359 = vsyncadd [#allocation12], 4294934528 }
  0x91   :  { %11360 = dma.done.wait [#allocation15], 8192  }
  0x92   :  { %11361 = vsyncadd [#allocation15], 4294959104  ;;  %v144_v0 = vld [vmem:[#allocation2] sm:$0xff]  ;;  %v145_v1 = vld [vmem:[#allocation2 + $0x8] sm:$0xff]  ;;  %s11380_s8 = smov 64  }
  0x93   :  { %v146_v2 = vld [vmem:[#allocation2 + $0x10] sm:$0xff]  ;;  %v147_v3 = vld [vmem:[#allocation2 + $0x18] sm:$0xff]  ;;  %v209_v4 = vmul.f32 %v144_v0, %v144_v0  ;;  %v210_v5 = vmul.f32 %v145_v1, %v145_v1  ;;  %v152_v7 = vld [vmem:[#allocation2 + $0x40] sm:$0xff] }
  0x94   :  { %v211_v6 = vmul.f32 %v146_v2, %v146_v2  ;;  %v153_v8 = vld [vmem:[#allocation2 + $0x48] sm:$0xff]  ;;  %v212_v9 = vmul.f32 %v147_v3, %v147_v3  ;;  %v154_v10 = vld [vmem:[#allocation2 + $0x50] sm:$0xff]  ;;  %v155_v11 = vld [vmem:[#allocation2 + $0x58] sm:$0xff]  ;;  %v217_v12 = vmul.f32 %v152_v7, %v152_v7 }
  0x95   :  { %v218_v13 = vmul.f32 %v153_v8, %v153_v8  ;;  %v148_v14 = vld [vmem:[#allocation2 + $0x20] sm:$0xff]  ;;  %v273_v15 = vadd.f32 %v210_v5, %v209_v4  ;;  %v219_v16 = vmul.f32 %v154_v10, %v154_v10  ;;  %v220_v17 = vmul.f32 %v155_v11, %v155_v11  ;;  %v149_v18 = vld [vmem:[#allocation2 + $0x28] sm:$0xff]  ;;  %v150_v19 = vld [vmem:[#allocation2 + $0x30] sm:$0xff] }
  0x96   :  { %v151_v20 = vld [vmem:[#allocation2 + $0x38] sm:$0xff]  ;;  %v213_v21 = vmul.f32 %v148_v14, %v148_v14  ;;  %v214_v23 = vmul.f32 %v149_v18, %v149_v18  ;;  %v215_v24 = vmul.f32 %v150_v19, %v150_v19  ;;  %v156_v26 = vld [vmem:[#allocation2 + $0x60] sm:$0xff]  ;;  %v157_v27 = vld [vmem:[#allocation2 + $0x68] sm:$0xff] }
  0x97   :  { %v283_v22 = vadd.f32 %v218_v13, %v217_v12  ;;  %v216_v25 = vmul.f32 %v151_v20, %v151_v20  ;;  %v158_v28 = vld [vmem:[#allocation2 + $0x70] sm:$0xff]  ;;  %v274_v29 = vadd.f32 %v273_v15, %v211_v6  ;;  %v159_v30 = vld [vmem:[#allocation2 + $0x78] sm:$0xff]  ;;  %v221_v31 = vmul.f32 %v156_v26, %v156_v26  ;;  %v164_v34 = vld [vmem:[#allocation2 + $0xa0] sm:$0xff] }
  0x98   :  { %v222_v32 = vmul.f32 %v157_v27, %v157_v27  ;;  %v223_v33 = vmul.f32 %v158_v28, %v158_v28  ;;  %v165_v35 = vld [vmem:[#allocation2 + $0xa8] sm:$0xff]  ;;  %v278_v37 = vadd.f32 %v214_v23, %v213_v21  ;;  %v224_v38 = vmul.f32 %v159_v30, %v159_v30  ;;  %v166_v39 = vld [vmem:[#allocation2 + $0xb0] sm:$0xff]  ;;  %v167_v40 = vld [vmem:[#allocation2 + $0xb8] sm:$0xff] }
  0x99   :  { %v284_v36 = vadd.f32 %v283_v22, %v219_v16  ;;  %v229_v41 = vmul.f32 %v164_v34, %v164_v34  ;;  %v160_v42 = vld [vmem:[#allocation2 + $0x80] sm:$0xff]  ;;  %v275_v43 = vadd.f32 %v274_v29, %v212_v9  ;;  %v230_v45 = vmul.f32 %v165_v35, %v165_v35  ;;  %v161_v47 = vld [vmem:[#allocation2 + $0x88] sm:$0xff]  ;;  %v162_v48 = vld [vmem:[#allocation2 + $0x90] sm:$0xff] }
  0x9a   :  { %v288_v44 = vadd.f32 %v222_v32, %v221_v31  ;;  %v231_v46 = vmul.f32 %v166_v39, %v166_v39  ;;  %v163_v49 = vld [vmem:[#allocation2 + $0x98] sm:$0xff]  ;;  %v279_v51 = vadd.f32 %v278_v37, %v215_v24  ;;  %v232_v52 = vmul.f32 %v167_v40, %v167_v40  ;;  %v172_v54 = vld [vmem:[#allocation2 + $0xe0] sm:$0xff]  ;;  %v173_v55 = vld [vmem:[#allocation2 + $0xe8] sm:$0xff] }
  0x9b   :  { %v285_v50 = vadd.f32 %v284_v36, %v220_v17  ;;  %v225_v53 = vmul.f32 %v160_v42, %v160_v42  ;;  %v174_v56 = vld [vmem:[#allocation2 + $0xf0] sm:$0xff]  ;;  %276 = vadd.xlane.f32.xlu0 %v275_v43  ;;  %v298_v58 = vadd.f32 %v230_v45, %v229_v41  ;;  %v226_v59 = vmul.f32 %v161_v47, %v161_v47  ;;  %v175_v61 = vld [vmem:[#allocation2 + $0xf8] sm:$0xff]  ;;  %v168_v62 = vld [vmem:[#allocation2 + $0xc0] sm:$0xff] }
  0x9c   :  { %v289_v57 = vadd.f32 %v288_v44, %v223_v33  ;;  %v227_v60 = vmul.f32 %v162_v48, %v162_v48  ;;  %v169_v63 = vld [vmem:[#allocation2 + $0xc8] sm:$0xff]  ;;  %v280_v0 = vadd.f32 %v279_v51, %v216_v25  ;;  %v228_v1 = vmul.f32 %v163_v49, %v163_v49  ;;  %v170_v4 = vld [vmem:[#allocation2 + $0xd0] sm:$0xff]  ;;  %v171_v5 = vld [vmem:[#allocation2 + $0xd8] sm:$0xff] }
  0x9d   :  { %286 = vadd.xlane.f32.xlu1 %v285_v50  ;;  %v237_v2 = vmul.f32 %v172_v54, %v172_v54  ;;  %v238_v3 = vmul.f32 %v173_v55, %v173_v55  ;;  %v299_v7 = vadd.f32 %v298_v58, %v231_v46  ;;  %v293_v8 = vadd.f32 %v226_v59, %v225_v53  ;;  %v180_v10 = vld [vmem:[#allocation2 + $0x120] sm:$0xff]  ;;  %v181_v11 = vld [vmem:[#allocation2 + $0x128] sm:$0xff]  ;;  %v182_v16 = vld [vmem:[#allocation2 + $0x130] sm:$0xff] }
  0x9e   :  { %v290_v6 = vadd.f32 %v289_v57, %v224_v38  ;;  %v239_v9 = vmul.f32 %v174_v56, %v174_v56  ;;  %v240_v12 = vmul.f32 %v175_v61, %v175_v61  ;;  %v233_v14 = vmul.f32 %v168_v62, %v168_v62  ;;  %v183_v17 = vld [vmem:[#allocation2 + $0x138] sm:$0xff]  ;;  %v176_v18 = vld [vmem:[#allocation2 + $0x100] sm:$0xff]  ;;  %v177_v23 = vld [vmem:[#allocation2 + $0x108] sm:$0xff] }
  0x9f   :  { %v308_v13 = vadd.f32 %v238_v3, %v237_v2  ;;  %v234_v15 = vmul.f32 %v169_v63, %v169_v63  ;;  %281 = vadd.xlane.f32.xlu0 %v280_v0  ;;  %v300_v19 = vadd.f32 %v299_v7, %v232_v52  ;;  %v294_v20 = vadd.f32 %v293_v8, %v227_v60  ;;  %v178_v24 = vld [vmem:[#allocation2 + $0x110] sm:$0xff]  ;;  %v179_v29 = vld [vmem:[#allocation2 + $0x118] sm:$0xff]  ;;  %v188_v30 = vld [vmem:[#allocation2 + $0x160] sm:$0xff] }
  0xa0   :  { %v235_v21 = vmul.f32 %v170_v4, %v170_v4  ;;  %v236_v22 = vmul.f32 %v171_v5, %v171_v5  ;;  %v245_v27 = vmul.f32 %v180_v10, %v180_v10  ;;  %v246_v28 = vmul.f32 %v181_v11, %v181_v11  ;;  %v189_v31 = vld [vmem:[#allocation2 + $0x168] sm:$0xff]  ;;  %v190_v36 = vld [vmem:[#allocation2 + $0x170] sm:$0xff]  ;;  %v184_v41 = vld [vmem:[#allocation2 + $0x140] sm:$0xff] }
  0xa1   :  { %291 = vadd.xlane.f32.xlu1 %v290_v6  ;;  %v309_v25 = vadd.f32 %v308_v13, %v239_v9  ;;  %v303_v26 = vadd.f32 %v234_v15, %v233_v14  ;;  %v295_v32 = vadd.f32 %v294_v20, %v228_v1  ;;  %v247_v33 = vmul.f32 %v182_v16, %v182_v16  ;;  %v185_v42 = vld [vmem:[#allocation2 + $0x148] sm:$0xff]  ;;  %v191_v45 = vld [vmem:[#allocation2 + $0x178] sm:$0xff]  ;;  %v186_v48 = vld [vmem:[#allocation2 + $0x150] sm:$0xff] }
  0xa2   :  { %v248_v34 = vmul.f32 %v183_v17, %v183_v17  ;;  %v241_v35 = vmul.f32 %v176_v18, %v176_v18  ;;  %v318_v39 = vadd.f32 %v246_v28, %v245_v27  ;;  %v242_v40 = vmul.f32 %v177_v23, %v177_v23  ;;  %v187_v49 = vld [vmem:[#allocation2 + $0x158] sm:$0xff]  ;;  %v196_v54 = vld [vmem:[#allocation2 + $0x1a0] sm:$0xff]  ;;  %v197_v55 = vld [vmem:[#allocation2 + $0x1a8] sm:$0xff] }
  0xa3   :  { %v310_v37 = vadd.f32 %v309_v25, %v240_v12  ;;  %v304_v38 = vadd.f32 %v303_v26, %v235_v21  ;;  %296 = vadd.xlane.f32.xlu0 %v295_v32  ;;  %v243_v43 = vmul.f32 %v178_v24, %v178_v24  ;;  %v244_v44 = vmul.f32 %v179_v29, %v179_v29  ;;  %v198_v59 = vld [vmem:[#allocation2 + $0x1b0] sm:$0xff]  ;;  %v192_v60 = vld [vmem:[#allocation2 + $0x180] sm:$0xff]  ;;  %v199_v1 = vld [vmem:[#allocation2 + $0x1b8] sm:$0xff] }
  0xa4   :  { %v253_v46 = vmul.f32 %v188_v30, %v188_v30  ;;  %v254_v47 = vmul.f32 %v189_v31, %v189_v31  ;;  %v319_v51 = vadd.f32 %v318_v39, %v247_v33  ;;  %v313_v52 = vadd.f32 %v242_v40, %v241_v35  ;;  %v193_v2 = vld [vmem:[#allocation2 + $0x188] sm:$0xff]  ;;  %v194_v7 = vld [vmem:[#allocation2 + $0x190] sm:$0xff]  ;;  %v204_v8 = vld [vmem:[#allocation2 + $0x1e0] sm:$0xff] }
  0xa5   :  { %301 = vadd.xlane.f32.xlu1 %v300_v19  ;;  %v305_v50 = vadd.f32 %v304_v38, %v236_v22  ;;  %v255_v53 = vmul.f32 %v190_v36, %v190_v36  ;;  %v249_v57 = vmul.f32 %v184_v41, %v184_v41  ;;  %v250_v58 = vmul.f32 %v185_v42, %v185_v42  ;;  %v205_v9 = vld [vmem:[#allocation2 + $0x1e8] sm:$0xff]  ;;  %v195_v13 = vld [vmem:[#allocation2 + $0x198] sm:$0xff]  ;;  %v206_v15 = vld [vmem:[#allocation2 + $0x1f0] sm:$0xff] }
  0xa6   :  { %v328_v56 = vadd.f32 %v254_v47, %v253_v46  ;;  %v314_v61 = vadd.f32 %v313_v52, %v243_v43  ;;  %v256_v62 = vmul.f32 %v191_v45, %v191_v45  ;;  %v251_v63 = vmul.f32 %v186_v48, %v186_v48  ;;  %v207_v20 = vld [vmem:[#allocation2 + $0x1f8] sm:$0xff]  ;;  %v200_v21 = vld [vmem:[#allocation2 + $0x1c0] sm:$0xff]  ;;  %v201_v22 = vld [vmem:[#allocation2 + $0x1c8] sm:$0xff] }
  0xa7   :  { %v252_v0 = vmul.f32 %v187_v49, %v187_v49  ;;  %306 = vadd.xlane.f32.xlu0 %v305_v50  ;;  %v323_v4 = vadd.f32 %v250_v58, %v249_v57  ;;  %v261_v5 = vmul.f32 %v196_v54, %v196_v54  ;;  %v262_v6 = vmul.f32 %v197_v55, %v197_v55  ;;  %v202_v27 = vld [vmem:[#allocation2 + $0x1d0] sm:$0xff]  ;;  %v203_v28 = vld [vmem:[#allocation2 + $0x1d8] sm:$0xff]  ;;  %v583_v29 = vld [vmem:[#allocation10] sm:$0xff] }
  0xa8   :  { %v329_v3 = vadd.f32 %v328_v56, %v255_v53  ;;  %v320_v10 = vadd.f32 %v319_v51, %v248_v34  ;;  %v315_v11 = vadd.f32 %v314_v61, %v244_v44  ;;  %v263_v12 = vmul.f32 %v198_v59, %v198_v59  ;;  %v587_v34 = vld [vmem:[#allocation10 + $0x20] sm:$0xff]  ;;  %v584_v35 = vld [vmem:[#allocation10 + $0x8] sm:$0xff] }
  0xa9   :  { %311 = vadd.xlane.f32.xlu1 %v310_v37  ;;  %v257_v14 = vmul.f32 %v192_v60, %v192_v60  ;;  %v324_v16 = vadd.f32 %v323_v4, %v251_v63  ;;  %v264_v17 = vmul.f32 %v199_v1, %v199_v1  ;;  %v338_v18 = vadd.f32 %v262_v6, %v261_v5  ;;  %v588_v36 = vld [vmem:[#allocation10 + $0x28] sm:$0xff]  ;;  %v591_v41 = vld [vmem:[#allocation10 + $0x40] sm:$0xff] }
  0xaa   :  { %v258_v19 = vmul.f32 %v193_v2, %v193_v2  ;;  %v330_v23 = vadd.f32 %v329_v3, %v256_v62  ;;  %v259_v24 = vmul.f32 %v194_v7, %v194_v7  ;;  %v269_v25 = vmul.f32 %v204_v8, %v204_v8  ;;  %v595_v42 = vld [vmem:[#allocation10 + $0x60] sm:$0xff]  ;;  %v592_v47 = vld [vmem:[#allocation10 + $0x48] sm:$0xff] }
  0xab   :  { %v270_v26 = vmul.f32 %v205_v9, %v205_v9  ;;  %316 = vadd.xlane.f32.xlu0 %v315_v11  ;;  %v325_v30 = vadd.f32 %v324_v16, %v252_v0  ;;  %v339_v31 = vadd.f32 %v338_v18, %v263_v12  ;;  %v260_v32 = vmul.f32 %v195_v13, %v195_v13  ;;  %v596_v48 = vld [vmem:[#allocation10 + $0x68] sm:$0xff]  ;;  %v599_v57 = vld [vmem:[#allocation10 + $0x80] sm:$0xff] }
  0xac   :  { %v333_v33 = vadd.f32 %v258_v19, %v257_v14  ;;  %v271_v37 = vmul.f32 %v206_v15, %v206_v15  ;;  %v265_v39 = vmul.f32 %v200_v21, %v200_v21  ;;  %v266_v40 = vmul.f32 %v201_v22, %v201_v22  ;;  %v603_v58 = vld [vmem:[#allocation10 + $0xa0] sm:$0xff]  ;;  %v600_v62 = vld [vmem:[#allocation10 + $0x88] sm:$0xff] }
  0xad   :  { %321 = vadd.xlane.f32.xlu1 %v320_v10  ;;  %v348_v38 = vadd.f32 %v270_v26, %v269_v25  ;;  %v340_v43 = vadd.f32 %v339_v31, %v264_v17  ;;  %v272_v45 = vmul.f32 %v207_v20, %v207_v20  ;;  %v267_v46 = vmul.f32 %v202_v27, %v202_v27  ;;  %v604_v63 = vld [vmem:[#allocation10 + $0xa8] sm:$0xff]  ;;  %v607_v5 = vld [vmem:[#allocation10 + $0xc0] sm:$0xff] }
  0xae   :  { %v334_v44 = vadd.f32 %v333_v33, %v259_v24  ;;  %v268_v49 = vmul.f32 %v203_v28, %v203_v28  ;;  %v343_v50 = vadd.f32 %v266_v40, %v265_v39  ;;  %v8844_v51 = vcombine.high %v583_v29, %v587_v34  ;;  %v611_v6 = vld [vmem:[#allocation10 + $0xe0] sm:$0xff]  ;;  %v608_v8 = vld [vmem:[#allocation10 + $0xc8] sm:$0xff] }
  0xaf   :  { %v8846_v52 = vcombine.high %v584_v35, %v588_v36  ;;  %326 = vadd.xlane.f32.xlu0 %v325_v30  ;;  %v8843_v54 = vcombine.low %v583_v29, %v587_v34  ;;  %v8845_v55 = vcombine.low %v584_v35, %v588_v36  ;;  %v8852_v56 = vcombine.high %v591_v41, %v595_v42  ;;  %v612_v9 = vld [vmem:[#allocation10 + $0xe8] sm:$0xff]  ;;  %v615_v14 = vld [vmem:[#allocation10 + $0x100] sm:$0xff] }
  0xb0   :  { %v335_v53 = vadd.f32 %v334_v44, %v260_v32  ;;  %v349_v59 = vadd.f32 %v348_v38, %v271_v37  ;;  %v344_v60 = vadd.f32 %v343_v50, %v267_v46  ;;  %2119 = vmatprep.subr.bf16.mxu0 %v8844_v51  ;;  %v8854_v61 = vcombine.high %v592_v47, %v596_v48  ;;  %v619_v15 = vld [vmem:[#allocation10 + $0x120] sm:$0xff]  ;;  %v616_v16 = vld [vmem:[#allocation10 + $0x108] sm:$0xff] }
  0xb1   :  { %331 = vadd.xlane.f32.xlu1 %v330_v23  ;;  %2345 = vmatprep.subr.bf16.mxu1 %v8846_v52  ;;  %v8851_v0 = vcombine.low %v591_v41, %v595_v42  ;;  %v8853_v1 = vcombine.low %v592_v47, %v596_v48  ;;  %v8860_v2 = vcombine.high %v599_v57, %v603_v58  ;;  %v620_v17 = vld [vmem:[#allocation10 + $0x128] sm:$0xff]  ;;  %v623_v22 = vld [vmem:[#allocation10 + $0x140] sm:$0xff] }
  0xb2   :  { %2120 = vmatpush1.bf16.msra.mxu0 %v8843_v54  ;;  %2346 = vmatpush1.bf16.msra.mxu1 %v8845_v55  ;;  %v345_v3 = vadd.f32 %v344_v60, %v268_v49  ;;  %v8862_v4 = vcombine.high %v600_v62, %v604_v63  ;;  %v350_v7 = vadd.f32 %v349_v59, %v272_v45  ;;  %v627_v23 = vld [vmem:[#allocation10 + $0x160] sm:$0xff]  ;;  %v624_v24 = vld [vmem:[#allocation10 + $0x148] sm:$0xff] }
  0xb3   :  { %2121 = vmatprep.subr.bf16.mxu0 %v8852_v56  ;;  %336 = vadd.xlane.f32.xlu0 %v335_v53  ;;  %v8859_v10 = vcombine.low %v599_v57, %v603_v58  ;;  %v8861_v11 = vcombine.low %v600_v62, %v604_v63  ;;  %v8868_v12 = vcombine.high %v607_v5, %v611_v6  ;;  %v628_v25 = vld [vmem:[#allocation10 + $0x168] sm:$0xff]  ;;  %v631_v27 = vld [vmem:[#allocation10 + $0x180] sm:$0xff] }
  0xb4   :  { %2347 = vmatprep.subr.bf16.mxu1 %v8854_v61  ;;  %v8870_v13 = vcombine.high %v608_v8, %v612_v9  ;;  %v8867_v18 = vcombine.low %v607_v5, %v611_v6  ;;  %v8869_v19 = vcombine.low %v608_v8, %v612_v9  ;;  %v8876_v20 = vcombine.high %v615_v14, %v619_v15  ;;  %v635_v28 = vld [vmem:[#allocation10 + $0x1a0] sm:$0xff]  ;;  %v632_v31 = vld [vmem:[#allocation10 + $0x188] sm:$0xff] }
  0xb5   :  { %341 = vadd.xlane.f32.xlu1 %v340_v43  ;;  %v8878_v21 = vcombine.high %v616_v16, %v620_v17  ;;  %v8875_v26 = vcombine.low %v615_v14, %v619_v15  ;;  %v8877_v29 = vcombine.low %v616_v16, %v620_v17  ;;  %v8884_v30 = vcombine.high %v623_v22, %v627_v23  ;;  %v636_v32 = vld [vmem:[#allocation10 + $0x1a8] sm:$0xff]  ;;  %v11569_v34 = vld [vmem:[#allocation10 + $0x400] sm:$0xff]  ;;  %v11008_v43 = vld [vmem:[#allocation2 + $0x18] sm:$0xff] }
  0xb6   :  { %2122 = vmatpush1.bf16.msra.mxu0 %v8851_v0  ;;  %2348 = vmatpush1.bf16.msra.mxu1 %v8853_v1  ;;  %v8886_v33 = vcombine.high %v624_v24, %v628_v25  ;;  %v11571_v35 = vld [vmem:[#allocation10 + $0x420] sm:$0xff]  ;;  %v11573_v36 = vld [vmem:[#allocation10 + $0x408] sm:$0xff]  ;;  %v8883_v37 = vcombine.low %v623_v22, %v627_v23  ;;  %v8885_v38 = vcombine.low %v624_v24, %v628_v25 }
  0xb7   :  { %2123 = vmatprep.subr.bf16.mxu0 %v8860_v2  ;;  %346 = vadd.xlane.f32.xlu0 %v345_v3  ;;  %v639_v39 = vld [vmem:[#allocation10 + $0x1c0] sm:$0xff]  ;;  %v11575_v41 = vld [vmem:[#allocation10 + $0x428] sm:$0xff]  ;;  %v8892_v42 = vcombine.high %v631_v27, %v635_v28  ;;  %v8894_v45 = vcombine.high %v632_v31, %v636_v32  ;;  %v8891_v48 = vcombine.low %v631_v27, %v635_v28 }
  0xb8   :  { %2349 = vmatprep.subr.bf16.mxu1 %v8862_v4  ;;  %v643_v40 = vld [vmem:[#allocation10 + $0x1e0] sm:$0xff]  ;;  %v640_v46 = vld [vmem:[#allocation10 + $0x1c8] sm:$0xff]  ;;  %v8893_v51 = vcombine.low %v632_v31, %v636_v32 }
  0xb9   :  { %351 = vadd.xlane.f32.xlu1 %v350_v7  ;;  %v644_v47 = vld [vmem:[#allocation10 + $0x1e8] sm:$0xff]  ;;  %v647_v49 = vld [vmem:[#allocation10 + $0x200] sm:$0xff]  ;;  %v8900_v52 = vcombine.high %v639_v39, %v643_v40  ;;  %v8899_v56 = vcombine.low %v639_v39, %v643_v40 }
  0xba   :  { %2124 = vmatpush1.bf16.msra.mxu0 %v8859_v10  ;;  %2350 = vmatpush1.bf16.msra.mxu1 %v8861_v11  ;;  %v651_v50 = vld [vmem:[#allocation10 + $0x220] sm:$0xff]  ;;  %v8902_v53 = vcombine.high %v640_v46, %v644_v47  ;;  %v648_v54 = vld [vmem:[#allocation10 + $0x208] sm:$0xff]  ;;  %v8901_v59 = vcombine.low %v640_v46, %v644_v47 }
  0xbb   :  { %2125 = vmatprep.subr.bf16.mxu0 %v8868_v12  ;;  %2351 = vmatprep.subr.bf16.mxu1 %v8870_v13  ;;  %v652_v55 = vld [vmem:[#allocation10 + $0x228] sm:$0xff]  ;;  %v655_v57 = vld [vmem:[#allocation10 + $0x240] sm:$0xff]  ;;  %v8908_v60 = vcombine.high %v647_v49, %v651_v50  ;;  %v8907_v0 = vcombine.low %v647_v49, %v651_v50 }
  0xbc   :  { %v659_v58 = vld [vmem:[#allocation10 + $0x260] sm:$0xff]  ;;  %v8910_v61 = vcombine.high %v648_v54, %v652_v55  ;;  %v656_v62 = vld [vmem:[#allocation10 + $0x248] sm:$0xff]  ;;  %v8909_v3 = vcombine.low %v648_v54, %v652_v55 }
  0xbd   :  { %v660_v63 = vld [vmem:[#allocation10 + $0x268] sm:$0xff]  ;;  %v663_v1 = vld [vmem:[#allocation10 + $0x280] sm:$0xff]  ;;  %v8916_v4 = vcombine.high %v655_v57, %v659_v58  ;;  %v8915_v8 = vcombine.low %v655_v57, %v659_v58 }
  0xbe   :  { %2126 = vmatpush1.bf16.msra.mxu0 %v8867_v18  ;;  %2352 = vmatpush1.bf16.msra.mxu1 %v8869_v19  ;;  %v667_v2 = vld [vmem:[#allocation10 + $0x2a0] sm:$0xff]  ;;  %v8918_v5 = vcombine.high %v656_v62, %v660_v63  ;;  %v664_v6 = vld [vmem:[#allocation10 + $0x288] sm:$0xff]  ;;  %v8917_v11 = vcombine.low %v656_v62, %v660_v63  ;;  %v14768_v62 = vlaneseq }
  0xbf   :  { %2127 = vmatprep.subr.bf16.mxu0 %v8876_v20  ;;  %2353 = vmatprep.subr.bf16.mxu1 %v8878_v21  ;;  %v668_v7 = vld [vmem:[#allocation10 + $0x2a8] sm:$0xff]  ;;  %v671_v9 = vld [vmem:[#allocation10 + $0x2c0] sm:$0xff]  ;;  %v8924_v12 = vcombine.high %v663_v1, %v667_v2  ;;  %v8923_v16 = vcombine.low %v663_v1, %v667_v2 }
  0xc0   :  { %v675_v10 = vld [vmem:[#allocation10 + $0x2e0] sm:$0xff]  ;;  %v8926_v13 = vcombine.high %v664_v6, %v668_v7  ;;  %v672_v14 = vld [vmem:[#allocation10 + $0x2c8] sm:$0xff]  ;;  %v8925_v19 = vcombine.low %v664_v6, %v668_v7  ;;  %v11586_v63 = vshrl.u32 %v14768_v62, 7 }
  0xc1   :  { %v676_v15 = vld [vmem:[#allocation10 + $0x2e8] sm:$0xff]  ;;  %v679_v17 = vld [vmem:[#allocation10 + $0x300] sm:$0xff]  ;;  %v8932_v20 = vcombine.high %v671_v9, %v675_v10  ;;  %v8931_v24 = vcombine.low %v671_v9, %v675_v10 }
  0xc2   :  { %2128 = vmatpush1.bf16.msra.mxu0 %v8875_v26  ;;  %2354 = vmatpush1.bf16.msra.mxu1 %v8877_v29  ;;  %v683_v18 = vld [vmem:[#allocation10 + $0x320] sm:$0xff]  ;;  %v8934_v21 = vcombine.high %v672_v14, %v676_v15  ;;  %v680_v22 = vld [vmem:[#allocation10 + $0x308] sm:$0xff]  ;;  %v8933_v27 = vcombine.low %v672_v14, %v676_v15  ;;  %14950 = vst [vmem:[#allocation26_spill] sm:$0xff] %v11586_v63  ;;  %v14767_v1 = vsub.s32 1, %v11586_v63  ;;  %v14765_v2 = vsub.s32 0, %v11586_v63 }
  0xc3   :  { %2129 = vmatprep.subr.bf16.mxu0 %v8884_v30  ;;  %2355 = vmatprep.subr.bf16.mxu1 %v8886_v33  ;;  %v684_v23 = vld [vmem:[#allocation10 + $0x328] sm:$0xff]  ;;  %v687_v25 = vld [vmem:[#allocation10 + $0x340] sm:$0xff]  ;;  %v8940_v28 = vcombine.high %v679_v17, %v683_v18  ;;  %v8939_v32 = vcombine.low %v679_v17, %v683_v18  ;;  %v14766_v9 = vsub.s32 3, %v11586_v63 }
  0xc4   :  { %v691_v26 = vld [vmem:[#allocation10 + $0x360] sm:$0xff]  ;;  %v8942_v29 = vcombine.high %v680_v22, %v684_v23  ;;  %v688_v30 = vld [vmem:[#allocation10 + $0x348] sm:$0xff] }
  0xc5   :  { %v692_v31 = vld [vmem:[#allocation10 + $0x368] sm:$0xff]  ;;  %v695_v33 = vld [vmem:[#allocation10 + $0x380] sm:$0xff]  ;;  %v8948_v39 = vcombine.high %v687_v25, %v691_v26  ;;  %v8947_v46 = vcombine.low %v687_v25, %v691_v26 }
  0xc6   :  { %2130 = vmatpush1.bf16.msra.mxu0 %v8883_v37  ;;  %2356 = vmatpush1.bf16.msra.mxu1 %v8885_v38  ;;  %v699_v37 = vld [vmem:[#allocation10 + $0x3a0] sm:$0xff]  ;;  %v8941_v38 = vcombine.low %v680_v22, %v684_v23  ;;  %v8950_v40 = vcombine.high %v688_v30, %v692_v31  ;;  %v8949_v49 = vcombine.low %v688_v30, %v692_v31  ;;  %v11596_v6 = vld [vmem:[#allocation10 + $0x468] sm:$0xff]  ;;  %v14764_v22 = vsub.s32 2, %v11586_v63 }
  0xc7   :  { %2131 = vmatprep.subr.bf16.mxu0 %v8892_v42  ;;  %2357 = vmatprep.subr.bf16.mxu1 %v8894_v45  ;;  %v696_v42 = vld [vmem:[#allocation10 + $0x388] sm:$0xff]  ;;  %v703_v47 = vld [vmem:[#allocation10 + $0x3c0] sm:$0xff]  ;;  %v8956_v50 = vcombine.high %v695_v33, %v699_v37  ;;  %v8955_v54 = vcombine.low %v695_v33, %v699_v37 }
  0xc8   :  { %v700_v45 = vld [vmem:[#allocation10 + $0x3a8] sm:$0xff]  ;;  %v11598_v7 = vld [vmem:[#allocation10 + $0x480] sm:$0xff] }
  0xc9   :  { %v8957_v55 = vcombine.low %v696_v42, %v700_v45  ;;  %v11615_v18 = vld [vmem:[#allocation10 + $0x4c0] sm:$0xff]  ;;  %v11642_v37 = vld [vmem:[#allocation10 + $0x508] sm:$0xff] }
  0xca   :  { %2132 = vmatpush1.bf16.msra.mxu0 %v8891_v48  ;;  %2358 = vmatpush1.bf16.msra.mxu1 %v8893_v51  ;;  %v707_v48 = vld [vmem:[#allocation10 + $0x3e0] sm:$0xff]  ;;  %v8958_v51 = vcombine.high %v696_v42, %v700_v45 }
  0xcb   :  { %2133 = vmatprep.subr.bf16.mxu0 %v8900_v52  ;;  %2359 = vmatprep.subr.bf16.mxu1 %v8902_v53  ;;  %v704_v52 = vld [vmem:[#allocation10 + $0x3c8] sm:$0xff]  ;;  %v8963_v58 = vcombine.low %v703_v47, %v707_v48  ;;  %v11628_v26 = vld [vmem:[#allocation10 + $0x500] sm:$0xff] }
  0xcc   :  { %v708_v53 = vld [vmem:[#allocation10 + $0x3e8] sm:$0xff]  ;;  %v11640_v33 = vld [vmem:[#allocation10 + $0x520] sm:$0xff] }
  0xcd   :  { %v8966_v57 = vcombine.high %v704_v52, %v708_v53  ;;  %v11004_v45 = vld [vmem:[#allocation2 + $0x8] sm:$0xff]  ;;  %v11007_v44 = vld [vmem:[#allocation2 + $0x40] sm:$0xff] }
  0xce   :  { %2134 = vmatpush1.bf16.msra.mxu0 %v8899_v56  ;;  %2360 = vmatpush1.bf16.msra.mxu1 %v8901_v59  ;;  %v8964_v56 = vcombine.high %v703_v47, %v707_v48  ;;  %v8965_v59 = vcombine.low %v704_v52, %v708_v53  ;;  %v11652_v47 = vld [vmem:[#allocation10 + $0x560] sm:$0xff] }
  0xcf   :  { %2135 = vmatprep.subr.bf16.mxu0 %v8908_v60  ;;  %2361 = vmatprep.subr.bf16.mxu1 %v8910_v61  ;;  %v8972_v60 = vcombine.high %v11569_v34, %v11571_v35  ;;  %v8974_v61 = vcombine.high %v11573_v36, %v11575_v41  ;;  %v11660_v52 = vld [vmem:[#allocation10 + $0x580] sm:$0xff] }
  0xd0   :  { %v11662_v53 = vld [vmem:[#allocation10 + $0x5a0] sm:$0xff] }
  0xd2   :  { %2136 = vmatpush1.bf16.msra.mxu0 %v8907_v0  ;;  %2362 = vmatpush1.bf16.msra.mxu1 %v8909_v3  ;;  %v208_v0 = vld [vmem:[#allocation5] sm:$0xf]  ;;  %v11590_v3 = vld [vmem:[#allocation10 + $0x440] sm:$0xff] }
  0xd3   :  { %2137 = vmatprep.subr.bf16.mxu0 %v8916_v4  ;;  %2363 = vmatprep.subr.bf16.mxu1 %v8918_v5  ;;  %v11592_v4 = vld [vmem:[#allocation10 + $0x460] sm:$0xff]  ;;  %v11594_v5 = vld [vmem:[#allocation10 + $0x448] sm:$0xff]  ;;  %v11613_v17 = vrot.slane %v208_v0, %v14765_v2 }
  0xd6   :  { %2138 = vmatpush1.bf16.msra.mxu0 %v8915_v8  ;;  %2364 = vmatpush1.bf16.msra.mxu1 %v8917_v11  ;;  %v11600_v8 = vld [vmem:[#allocation10 + $0x4a0] sm:$0xff]  ;;  %v11603_v11 = vld [vmem:[#allocation10 + $0x488] sm:$0xff] }
  0xd7   :  { %2139 = vmatprep.subr.bf16.mxu0 %v8924_v12  ;;  %2365 = vmatprep.subr.bf16.mxu1 %v8926_v13  ;;  %v11605_v12 = vld [vmem:[#allocation10 + $0x4a8] sm:$0xff] }
  0xda   :  { %2140 = vmatpush1.bf16.msra.mxu0 %v8923_v16  ;;  %2366 = vmatpush1.bf16.msra.mxu1 %v8925_v19  ;;  %v11609_v16 = vrot.slane %v208_v0, %v14767_v1  ;;  %v11617_v19 = vld [vmem:[#allocation10 + $0x4e0] sm:$0xff] }
  0xdb   :  { %2141 = vmatprep.subr.bf16.mxu0 %v8932_v20  ;;  %2367 = vmatprep.subr.bf16.mxu1 %v8934_v21  ;;  %v11619_v20 = vld [vmem:[#allocation10 + $0x4c8] sm:$0xff]  ;;  %v11700_v1 = vld [vmem:[#allocation10 + $0x600] sm:$0xff] }
  0xdc   :  { %v11621_v21 = vld [vmem:[#allocation10 + $0x4e8] sm:$0xff]  ;;  %14956 = vst [vmem:[#allocation32_spill] sm:$0xff] %v11700_v1 }
  0xde   :  { %2142 = vmatpush1.bf16.msra.mxu0 %v8931_v24  ;;  %2368 = vmatpush1.bf16.msra.mxu1 %v8933_v27  ;;  %v11632_v27 = vrot.slane %v208_v0, %v14766_v9 }
  0xdf   :  { %2143 = vmatprep.subr.bf16.mxu0 %v8940_v28  ;;  %2369 = vmatprep.subr.bf16.mxu1 %v8942_v29 }
  0xe2   :  { %2144 = vmatpush1.bf16.msra.mxu0 %v8939_v32  ;;  %2370 = vmatpush1.bf16.msra.mxu1 %v8941_v38  ;;  %v11644_v38 = vld [vmem:[#allocation10 + $0x528] sm:$0xff]  ;;  %v11005_v32 = vld [vmem:[#allocation2] sm:$0xff] }
  0xe3   :  { %2145 = vmatprep.subr.bf16.mxu0 %v8948_v39  ;;  %2371 = vmatprep.subr.bf16.mxu1 %v8950_v40 }
  0xe6   :  { %2146 = vmatpush1.bf16.msra.mxu0 %v8947_v46  ;;  %2372 = vmatpush1.bf16.msra.mxu1 %v8949_v49  ;;  %v11650_v46 = vld [vmem:[#allocation10 + $0x540] sm:$0xff] }
  0xe7   :  { %2147 = vmatprep.subr.bf16.mxu0 %v8956_v50  ;;  %2373 = vmatprep.subr.bf16.mxu1 %v8958_v51  ;;  %v11656_v50 = vld [vmem:[#allocation10 + $0x548] sm:$0xff] }
  0xe8   :  { %v11658_v51 = vld [vmem:[#allocation10 + $0x568] sm:$0xff] }
  0xea   :  { %2148 = vmatpush1.bf16.msra.mxu0 %v8955_v54  ;;  %2374 = vmatpush1.bf16.msra.mxu1 %v8957_v55  ;;  %v11666_v54 = vrot.slane %v208_v0, %v14764_v22  ;;  %v11694_v22 = vld [vmem:[#allocation10 + $0x5e8] sm:$0xff] }
  0xeb   :  { %2149 = vmatprep.subr.bf16.mxu0 %v8964_v56  ;;  %2375 = vmatprep.subr.bf16.mxu1 %v8966_v57  ;;  %14955 = vst [vmem:[#allocation31_spill] sm:$0xff] %v11694_v22  ;;  %v11726_v56 = vld [vmem:[#allocation10 + $0x660] sm:$0xff]  ;;  %v11732_v57 = vld [vmem:[#allocation10 + $0x648] sm:$0xff] }
  0xec   :  { %14961 = vst [vmem:[#allocation37_spill] sm:$0xff] %v11726_v56 }
  0xee   :  { %2150 = vmatpush1.bf16.msra.mxu0 %v8963_v58  ;;  %2376 = vmatpush1.bf16.msra.mxu1 %v8965_v59  ;;  %v11674_v59 = vld [vmem:[#allocation10 + $0x588] sm:$0xff]  ;;  %v11720_v58 = vld [vmem:[#allocation10 + $0x640] sm:$0xff] }
  0xef   :  { %2232 = vmatprep.subr.bf16.mxu0 %v8972_v60  ;;  %2458 = vmatprep.subr.bf16.mxu1 %v8974_v61  ;;  %v11676_v60 = vld [vmem:[#allocation10 + $0x5a8] sm:$0xff]  ;;  %14960 = vst [vmem:[#allocation36_spill] sm:$0xff] %v11720_v58  ;;  %v11011_v58 = vld [vmem:[#allocation2 + $0x38] sm:$0xff] }
  0xf0   :  { %14951 = vst [vmem:[#allocation27_spill] sm:$0xff] %v11676_v60  ;;  %v11015_v60 = vld [vmem:[#allocation2 + $0x80] sm:$0xff] }
 0x128   :  { %v277_v10 = vpop.xlane.xlu0 %276 }
 0x129   :  { %v354_v13 = vmul.f32 0.001953125, %v277_v10 }
 0x12a   :  { %v287_v14 = vpop.xlane.xlu1 %286 }
 0x12b   :  { %v356_v15 = vmul.f32 0.001953125, %v287_v14  ;;  %v370_v23 = vadd.f32 1e-06, %v354_v13  ;;  %v11716_v14 = vld [vmem:[#allocation10 + $0x608] sm:$0xff] }
 0x12c   :  { %v282_v29 = vpop.xlane.xlu0 %281  ;;  %14958 = vst [vmem:[#allocation34_spill] sm:$0xff] %v11716_v14 }
 0x12d   :  { %v372_v28 = vadd.f32 1e-06, %v356_v15  ;;  %10556 = vrsqrt.f32 %v370_v23  ;;  %v355_v39 = vmul.f32 0.001953125, %v282_v29  ;;  %v11684_v15 = vld [vmem:[#allocation10 + $0x5c0] sm:$0xff] }
 0x12e   :  { %v292_v40 = vpop.xlane.xlu1 %291  ;;  %14952 = vst [vmem:[#allocation28_spill] sm:$0xff] %v11684_v15  ;;  %v11686_v23 = vld [vmem:[#allocation10 + $0x5e0] sm:$0xff] }
 0x12f   :  { %10558 = vrsqrt.f32 %v372_v28  ;;  %v357_v48 = vmul.f32 0.001953125, %v292_v40  ;;  %v371_v55 = vadd.f32 1e-06, %v355_v39  ;;  %14953 = vst [vmem:[#allocation29_spill] sm:$0xff] %v11686_v23  ;;  %v11718_v39 = vld [vmem:[#allocation10 + $0x628] sm:$0xff] }
 0x130   :  { %v297_v10 = vpop.xlane.xlu0 %296  ;;  %14959 = vst [vmem:[#allocation35_spill] sm:$0xff] %v11718_v39 }
 0x131   :  { %v373_v61 = vadd.f32 1e-06, %v357_v48  ;;  %10560 = vrsqrt.f32 %v371_v55  ;;  %v358_v29 = vmul.f32 0.001953125, %v297_v10  ;;  %v11692_v48 = vld [vmem:[#allocation10 + $0x5c8] sm:$0xff]  ;;  %v11702_v10 = vld [vmem:[#allocation10 + $0x620] sm:$0xff] }
 0x132   :  { %v302_v28 = vpop.xlane.xlu1 %301  ;;  %14954 = vst [vmem:[#allocation30_spill] sm:$0xff] %v11692_v48  ;;  %14957 = vst [vmem:[#allocation33_spill] sm:$0xff] %v11702_v10 }
 0x133   :  { %10562 = vrsqrt.f32 %v373_v61  ;;  %v359_v2 = vmul.f32 0.001953125, %v302_v28  ;;  %v374_v62 = vadd.f32 1e-06, %v358_v29 }
 0x134   :  { %v307_v40 = vpop.xlane.xlu0 %306 }
 0x135   :  { %v375_v28 = vadd.f32 1e-06, %v359_v2  ;;  %10564 = vrsqrt.f32 %v374_v62  ;;  %v360_v61 = vmul.f32 0.001953125, %v307_v40 }
 0x136   :  { %v312_v13 = vpop.xlane.xlu1 %311 }
 0x137   :  { %10566 = vrsqrt.f32 %v375_v28  ;;  %v361_v55 = vmul.f32 0.001953125, %v312_v13  ;;  %v11734_v62 = vpop.eup %10556  ;;  %v376_v40 = vadd.f32 1e-06, %v360_v61  ;;  %v11742_v28 = vld [vmem:[#allocation10 + $0x668] sm:$0xff] }
 0x138   :  { %14962 = vst [vmem:[#allocation38_spill] sm:$0xff] %v11742_v28  ;;  %v403_v0 = vmul.f32 %v11004_v45, %v11734_v62  ;;  %v317_v49 = vpop.xlane.xlu0 %316  ;;  %v402_v9 = vmul.f32 %v11005_v32, %v11734_v62  ;;  %v11006_v13 = vld [vmem:[#allocation2 + $0x48] sm:$0xff]  ;;  %v11010_v45 = vld [vmem:[#allocation2 + $0x20] sm:$0xff] }
 0x139   :  { %v11744_v29 = vpop.eup %10558  ;;  %v377_v42 = vadd.f32 1e-06, %v361_v55  ;;  %10568 = vrsqrt.f32 %v376_v40  ;;  %v362_v31 = vmul.f32 0.001953125, %v317_v49 }
 0x13a   :  { %v411_v30 = vmul.f32 %v11006_v13, %v11744_v29  ;;  %v322_v24 = vpop.xlane.xlu1 %321  ;;  %v488_v2 = vmul.f32 %v11609_v16, %v403_v0  ;;  %v410_v32 = vmul.f32 %v11007_v44, %v11744_v29  ;;  %v405_v13 = vmul.f32 %v11008_v43, %v11734_v62  ;;  %v11012_v44 = vld [vmem:[#allocation2 + $0x68] sm:$0xff] }
 0x13b   :  { %10570 = vrsqrt.f32 %v377_v42  ;;  %v363_v25 = vmul.f32 0.001953125, %v322_v24  ;;  %v11757_v61 = vpop.eup %10560  ;;  %v378_v40 = vadd.f32 1e-06, %v362_v31  ;;  %v11009_v24 = vld [vmem:[#allocation2 + $0x28] sm:$0xff]  ;;  %v487_v39 = vmul.f32 %v11613_v17, %v402_v9  ;;  %v11013_v9 = vld [vmem:[#allocation2 + $0x60] sm:$0xff] }
 0x13c   :  { %v407_v42 = vmul.f32 %v11009_v24, %v11757_v61  ;;  %v406_v63 = vmul.f32 %v11010_v45, %v11757_v61  ;;  %v327_v56 = vpop.xlane.xlu0 %326  ;;  %v409_v0 = vmul.f32 %v11011_v58, %v11757_v61  ;;  %v496_v43 = vmul.f32 %v11609_v16, %v411_v30  ;;  %v11778_v30 = vld [vmem:[#allocation10 + $0x6a0] sm:$0xff] }
 0x13d   :  { %v11762_v49 = vpop.eup %10562  ;;  %v379_v55 = vadd.f32 1e-06, %v363_v25  ;;  %v364_v10 = vmul.f32 0.001953125, %v327_v56  ;;  %10572 = vrsqrt.f32 %v378_v40  ;;  %v11772_v25 = vld [vmem:[#allocation10 + $0x680] sm:$0xff] }
 0x13e   :  { %v415_v31 = vmul.f32 %v11012_v44, %v11762_v49  ;;  %v332_v14 = vpop.xlane.xlu1 %331  ;;  %v492_v1 = vmul.f32 %v11609_v16, %v407_v42  ;;  %v491_v24 = vmul.f32 %v11613_v17, %v406_v63  ;;  %v414_v48 = vmul.f32 %v11013_v9, %v11762_v49  ;;  %v11020_v9 = vld [vmem:[#allocation2 + $0xc0] sm:$0xff] }
 0x13f   :  { %v365_v45 = vmul.f32 0.001953125, %v332_v14  ;;  %v11774_v22 = vpop.eup %10564  ;;  %10574 = vrsqrt.f32 %v379_v55  ;;  %v380_v44 = vadd.f32 1e-06, %v364_v10  ;;  %v11014_v14 = vld [vmem:[#allocation2 + $0x88] sm:$0xff]  ;;  %v494_v15 = vmul.f32 %v11632_v27, %v409_v0 }
 0x140   :  { %v500_v58 = vmul.f32 %v11609_v16, %v415_v31  ;;  %v11782_v42 = vpack.c.bf16 %v492_v1, %v488_v2  ;;  %v11784_v63 = vpack.c.bf16 %v491_v24, %v487_v39  ;;  %v419_v40 = vmul.f32 %v11014_v14, %v11774_v22  ;;  %v337_v23 = vpop.xlane.xlu0 %336  ;;  %v11016_v39 = vld [vmem:[#allocation2 + $0xa8] sm:$0xff]  ;;  %v11017_v24 = vld [vmem:[#allocation2 + $0xa0] sm:$0xff] }
 0x141   :  { %v11780_v56 = vpop.eup %10566  ;;  %v418_v55 = vmul.f32 %v11015_v60, %v11774_v22  ;;  %v490_v1 = vmul.f32 %v11632_v27, %v405_v13  ;;  %10576 = vrsqrt.f32 %v380_v44  ;;  %v495_v60 = vmul.f32 %v11613_v17, %v410_v32  ;;  %v11815_v32 = vld [vmem:[#allocation10 + $0x688] sm:$0xff] }
 0x142   :  { %14963 = vst [vmem:[#allocation39_spill] sm:$0xff] %v11782_v42  ;;  %14964 = vst [vmem:[#allocation40_spill] sm:$0xff] %v11784_v63  ;;  %v11788_v31 = vpack.c.bf16 %v500_v58, %v496_v43  ;;  %v342_v10 = vpop.xlane.xlu1 %341  ;;  %2151 = vmatprep.mubr.bf16.mxu0 %v11782_v42  ;;  %2377 = vmatprep.mubr.bf16.mxu1 %v11782_v42  ;;  %v423_v2 = vmul.f32 %v11016_v39, %v11780_v56  ;;  %v381_v43 = vadd.f32 1e-06, %v365_v45 }
 0x143   :  { %v422_v0 = vmul.f32 %v11017_v24, %v11780_v56  ;;  %v11798_v58 = vpop.eup %10568  ;;  %2152 = vmatmul.mubr.bf16.vlgmr.msra.gmra.mrb[0].mxu0 %v11784_v63  ;;  %2378 = vmatmul.mubr.bf16.vlgmr.msra.gmra.mrb[0].mxu1 %v11784_v63  ;;  %v367_v13 = vmul.f32 0.001953125, %v342_v10  ;;  %v366_v14 = vmul.f32 0.001953125, %v337_v23  ;;  %v14966_v39 = vcombine.low %v11569_v34, %v11571_v35  ;;  %v11817_v23 = vld [vmem:[#allocation10 + $0x6a8] sm:$0xff] }
 0x144   :  { %14965 = vst [vmem:[#allocation41_spill] sm:$0xff] %v11788_v31  ;;  %v14967_v45 = vcombine.low %v11573_v36, %v11575_v41  ;;  %v499_v44 = vmul.f32 %v11613_v17, %v414_v48  ;;  %v504_v24 = vmul.f32 %v11609_v16, %v419_v40  ;;  %10578 = vrsqrt.f32 %v381_v43  ;;  %2161 = vmatprep.mubr.bf16.mxu0 %v11788_v31  ;;  %v11018_v35 = vld [vmem:[#allocation2 + $0xc8] sm:$0xff] }
 0x145   :  { %v11805_v42 = vpop.eup %10570  ;;  %2233 = vmatpush1.bf16.msra.mxu0 %v14966_v39  ;;  %v11819_v10 = vpack.c.bf16 %v494_v15, %v490_v1  ;;  %2387 = vmatprep.mubr.bf16.mxu1 %v11788_v31  ;;  %v503_v34 = vmul.f32 %v11613_v17, %v418_v55  ;;  %v427_v36 = vmul.f32 %v11018_v35, %v11798_v58  ;;  %v11019_v41 = vld [vmem:[#allocation2 + $0xe8] sm:$0xff]  ;;  %v383_v40 = vadd.f32 1e-06, %v367_v13  ;;  %v11021_v31 = vld [vmem:[#allocation2 + $0xe0] sm:$0xff] }
 0x146   :  { %2459 = vmatpush1.bf16.msra.mxu1 %v14967_v45  ;;  %v431_v48 = vmul.f32 %v11019_v41, %v11805_v42  ;;  %v352_v43 = vpop.xlane.xlu1 %351  ;;  %v11826_v39 = vld [vmem:[#allocation10 + $0x6c0] sm:$0xff]  ;;  %v14969_v15 = vcombine.high %v11590_v3, %v11592_v4  ;;  %v14970_v1 = vcombine.high %v11594_v5, %v11596_v6  ;;  %v508_v55 = vmul.f32 %v11609_v16, %v423_v2 }
 0x147   :  { %14968 = vst [vmem:[#allocation42_spill] sm:$0xff] %v11819_v10  ;;  %v11828_v45 = vld [vmem:[#allocation10 + $0x6e0] sm:$0xff]  ;;  %v507_v35 = vmul.f32 %v11613_v17, %v422_v0  ;;  %v426_v13 = vmul.f32 %v11020_v9, %v11798_v58  ;;  %v382_v41 = vadd.f32 1e-06, %v366_v14  ;;  %v430_v63 = vmul.f32 %v11021_v31, %v11805_v42  ;;  %v11842_v28 = vpop.eup %10572 }
 0x148   :  { %2234 = vmatprep.subr.bf16.mxu0 %v14969_v15  ;;  %2460 = vmatprep.subr.bf16.mxu1 %v14970_v1  ;;  %10580 = vrsqrt.f32 %v383_v40  ;;  %v369_v10 = vmul.f32 0.001953125, %v352_v43  ;;  %v14971_v1 = vcombine.low %v11590_v3, %v11592_v4  ;;  %v14972_v2 = vcombine.low %v11594_v5, %v11596_v6 }
 0x149   :  { %10582 = vrsqrt.f32 %v382_v41  ;;  %v9054_v31 = vcombine.high %v11815_v32, %v11817_v23  ;;  %v11856_v14 = vpop.eup %10574  ;;  %v11858_v40 = vpack.c.bf16 %v499_v44, %v495_v60  ;;  %v14973_v3 = vcombine.high %v11598_v7, %v11600_v8 }
 0x14a   :  { %2235 = vmatpush1.bf16.msra.mxu0 %v14971_v1  ;;  %2461 = vmatpush1.bf16.msra.mxu1 %v14972_v2  ;;  %v14974_v4 = vcombine.high %v11603_v11, %v11605_v12  ;;  %v512_v5 = vmul.f32 %v11609_v16, %v427_v36  ;;  %v516_v6 = vmul.f32 %v11609_v16, %v431_v48  ;;  %v385_v60 = vadd.f32 1e-06, %v369_v10  ;;  %v11022_v2 = vld [vmem:[#allocation2 + $0x108] sm:$0xff] }
 0x14b   :  { %2236 = vmatprep.subr.bf16.mxu0 %v14973_v3  ;;  %v11868_v43 = vpack.c.bf16 %v508_v55, %v504_v24  ;;  %v11870_v41 = vpack.c.bf16 %v507_v35, %v503_v34  ;;  %v11873_v1 = vmul.f32 %v11613_v17, %v426_v13  ;;  %2162 = vmatmul.mubr.bf16.gmra.mrb[4].mxu0 %v11858_v40  ;;  %v11023_v3 = vld [vmem:[#allocation2 + $0x10] sm:$0xff]  ;;  %v11882_v48 = vpop.eup %10576  ;;  %v11025_v35 = vld [vmem:[#allocation2 + $0x58] sm:$0xff] }
 0x14c   :  { %2462 = vmatprep.subr.bf16.mxu1 %v14974_v4  ;;  %2388 = vmatmul.mubr.bf16.gmra.mrb[4].mxu1 %v11858_v40  ;;  %v11878_v44 = vmul.f32 %v11613_v17, %v430_v63  ;;  %v435_v36 = vmul.f32 %v11022_v2, %v11842_v28  ;;  %v404_v24 = vmul.f32 %v11023_v3, %v11734_v62  ;;  %v11024_v55 = vld [vmem:[#allocation2 + $0x30] sm:$0xff]  ;;  %v11026_v4 = vld [vmem:[#allocation2 + $0x78] sm:$0xff]  ;;  %10584 = vrsqrt.f32 %v385_v60 }
 0x14d   :  { %v14975_v34 = vcombine.low %v11598_v7, %v11600_v8  ;;  %v14976_v10 = vcombine.low %v11603_v11, %v11605_v12  ;;  %v408_v63 = vmul.f32 %v11024_v55, %v11757_v61  ;;  %v413_v13 = vmul.f32 %v11025_v35, %v11744_v29  ;;  %v11027_v11 = vld [vmem:[#allocation2 + $0x128] sm:$0xff]  ;;  %v11028_v61 = vld [vmem:[#allocation2 + $0x100] sm:$0xff]  ;;  %2171 = vmatprep.mubr.bf16.mxu0 %v11868_v43  ;;  %v347_v35 = vpop.xlane.xlu0 %346 }
 0x14e   :  { %v417_v2 = vmul.f32 %v11026_v4, %v11762_v49  ;;  %v14977_v62 = vcombine.high %v11615_v18, %v11617_v19  ;;  %v14978_v7 = vcombine.high %v11619_v20, %v11621_v21  ;;  %v11899_v8 = vpack.c.bf16 %v516_v6, %v512_v5  ;;  %2397 = vmatprep.mubr.bf16.mxu1 %v11868_v43  ;;  %v11030_v4 = vld [vmem:[#allocation2 + $0x148] sm:$0xff] }
 0x14f   :  { %2237 = vmatpush1.bf16.msra.mxu0 %v14975_v34  ;;  %2463 = vmatpush1.bf16.msra.mxu1 %v14976_v10  ;;  %v439_v12 = vmul.f32 %v11027_v11, %v11856_v14  ;;  %v434_v3 = vmul.f32 %v11028_v61, %v11842_v28  ;;  %v11903_v34 = vpop.eup %10578  ;;  %v11029_v10 = vld [vmem:[#allocation2 + $0x120] sm:$0xff]  ;;  %v489_v5 = vmul.f32 %v11666_v54, %v404_v24 }
 0x150   :  { %2238 = vmatprep.subr.bf16.mxu0 %v14977_v62  ;;  %2464 = vmatprep.subr.bf16.mxu1 %v14978_v7  ;;  %v438_v55 = vmul.f32 %v11029_v10, %v11856_v14  ;;  %v493_v6 = vmul.f32 %v11666_v54, %v408_v63  ;;  %v443_v62 = vmul.f32 %v11030_v4, %v11882_v48  ;;  %v11031_v7 = vld [vmem:[#allocation2 + $0x168] sm:$0xff]  ;;  %v11032_v61 = vld [vmem:[#allocation2 + $0x140] sm:$0xff] }
 0x151   :  { %v447_v11 = vmul.f32 %v11031_v7, %v11903_v34  ;;  %v442_v0 = vmul.f32 %v11032_v61, %v11882_v48  ;;  %v498_v9 = vmul.f32 %v11632_v27, %v413_v13  ;;  %v14979_v10 = vcombine.low %v11615_v18, %v11617_v19  ;;  %v11033_v24 = vld [vmem:[#allocation2 + $0x160] sm:$0xff]  ;;  %v11934_v61 = vld [vmem:[#allocation10 + $0x6c8] sm:$0xff] }
 0x152   :  { %v14980_v60 = vcombine.low %v11619_v20, %v11621_v21  ;;  %v446_v63 = vmul.f32 %v11033_v24, %v11903_v34  ;;  %v11921_v4 = vpack.c.bf16 %v493_v6, %v489_v5  ;;  %v502_v7 = vmul.f32 %v11632_v27, %v417_v2  ;;  %v11924_v15 = vpop.eup %10580  ;;  %v11936_v5 = vld [vmem:[#allocation10 + $0x6e8] sm:$0xff] }
 0x153   :  { %2239 = vmatpush1.bf16.msra.mxu0 %v14979_v10  ;;  %v14981_v13 = vcombine.high %v11628_v26, %v11640_v33  ;;  %v14982_v18 = vcombine.high %v11642_v37, %v11644_v38  ;;  %v520_v19 = vmul.f32 %v11609_v16, %v435_v36  ;;  %v519_v20 = vmul.f32 %v11613_v17, %v434_v3  ;;  %v11034_v2 = vld [vmem:[#allocation2 + $0x50] sm:$0xff]  ;;  %v11939_v10 = vpop.eup %10582 }
 0x154   :  { %2465 = vmatpush1.bf16.msra.mxu1 %v14980_v60  ;;  %v368_v21 = vmul.f32 0.001953125, %v347_v35  ;;  %v412_v6 = vmul.f32 %v11034_v2, %v11744_v29  ;;  %v524_v60 = vmul.f32 %v11609_v16, %v439_v12  ;;  %v523_v24 = vmul.f32 %v11613_v17, %v438_v55  ;;  %2172 = vmatmul.mubr.bf16.gmra.mrb[8].mxu0 %v11870_v41  ;;  %v11036_v55 = vld [vmem:[#allocation2 + $0x1a8] sm:$0xff]  ;;  %v11037_v2 = vld [vmem:[#allocation2 + $0x1a0] sm:$0xff] }
 0x155   :  { %2240 = vmatprep.subr.bf16.mxu0 %v14981_v13  ;;  %2466 = vmatprep.subr.bf16.mxu1 %v14982_v18  ;;  %v11943_v13 = vpack.c.bf16 %v502_v7, %v498_v9  ;;  %v11035_v18 = vld [vmem:[#allocation2 + $0x70] sm:$0xff]  ;;  %v528_v3 = vmul.f32 %v11609_v16, %v443_v62  ;;  %v532_v35 = vmul.f32 %v11609_v16, %v447_v11 }
 0x156   :  { %v416_v36 = vmul.f32 %v11035_v18, %v11762_v49  ;;  %2398 = vmatmul.mubr.bf16.gmra.mrb[8].mxu1 %v11870_v41  ;;  %v527_v29 = vmul.f32 %v11613_v17, %v442_v0  ;;  %v14983_v12 = vcombine.low %v11628_v26, %v11640_v33  ;;  %v14984_v9 = vcombine.low %v11642_v37, %v11644_v38  ;;  %v11038_v0 = vld [vmem:[#allocation2 + $0x188] sm:$0xff] }
 0x157   :  { %v531_v49 = vmul.f32 %v11613_v17, %v446_v63  ;;  %v455_v7 = vmul.f32 %v11036_v55, %v11924_v15  ;;  %v454_v62 = vmul.f32 %v11037_v2, %v11924_v15  ;;  %v14985_v11 = vcombine.high %v11650_v46, %v11652_v47  ;;  %2181 = vmatprep.mubr.bf16.mxu0 %v11899_v8 }
 0x158   :  { %2241 = vmatpush1.bf16.msra.mxu0 %v14983_v12  ;;  %2467 = vmatpush1.bf16.msra.mxu1 %v14984_v9  ;;  %v14986_v26 = vcombine.high %v11656_v50, %v11658_v51  ;;  %v384_v33 = vadd.f32 1e-06, %v368_v21  ;;  %v451_v37 = vmul.f32 %v11038_v0, %v11939_v10  ;;  %v497_v38 = vmul.f32 %v11666_v54, %v412_v6  ;;  %v11039_v6 = vld [vmem:[#allocation2 + $0x180] sm:$0xff] }
 0x159   :  { %2242 = vmatprep.subr.bf16.mxu0 %v14985_v11  ;;  %v501_v63 = vmul.f32 %v11666_v54, %v416_v36  ;;  %2407 = vmatprep.mubr.bf16.mxu1 %v11899_v8  ;;  %v11973_v18 = vpack.c.bf16 %v11878_v44, %v11873_v1  ;;  %v9060_v12 = vcombine.high %v11826_v39, %v11828_v45  ;;  %v11986_v11 = vpop.eup %10584 }
 0x15a   :  { %2468 = vmatprep.subr.bf16.mxu1 %v14986_v26  ;;  %v9062_v21 = vcombine.high %v11934_v61, %v11936_v5  ;;  %v11979_v9 = vpack.c.bf16 %v524_v60, %v520_v19  ;;  %v11981_v55 = vpack.c.bf16 %v523_v24, %v519_v20  ;;  %v450_v36 = vmul.f32 %v11039_v6, %v11939_v10  ;;  %v14990_v24 = vld [vmem:[#allocation27_spill] sm:$0xff] }
 0x15b   :  { %v11984_v2 = vpack.c.bf16 %v501_v63, %v497_v38  ;;  %v14987_v1 = vcombine.low %v11650_v46, %v11652_v47  ;;  %v14988_v44 = vcombine.low %v11656_v50, %v11658_v51  ;;  %v11994_v26 = vpack.c.bf16 %v532_v35, %v528_v3  ;;  %v11040_v50 = vld [vmem:[#allocation2 + $0x98] sm:$0xff] }
 0x15c   :  { %v11996_v19 = vpack.c.bf16 %v531_v49, %v527_v29  ;;  %v11999_v20 = vmul.f32 %v11609_v16, %v455_v7  ;;  %v14989_v60 = vcombine.high %v11660_v52, %v11662_v53  ;;  %v14991_v0 = vcombine.high %v11674_v59, %v14990_v24  ;;  %v11041_v3 = vld [vmem:[#allocation2 + $0xb8] sm:$0xff]  ;;  %v11042_v29 = vld [vmem:[#allocation2 + $0x90] sm:$0xff]  ;;  %2182 = vmatmul.mubr.bf16.gmra.mrb[12].mxu0 %v11973_v18 }
 0x15d   :  { %2243 = vmatpush1.bf16.msra.mxu0 %v14987_v1  ;;  %2469 = vmatpush1.bf16.msra.mxu1 %v14988_v44  ;;  %10586 = vrsqrt.f32 %v384_v33  ;;  %v12008_v46 = vmul.f32 %v11609_v16, %v451_v37  ;;  %v12011_v47 = vmul.f32 %v11613_v17, %v454_v62  ;;  %v421_v51 = vmul.f32 %v11040_v50, %v11774_v22  ;;  %v11043_v7 = vld [vmem:[#allocation2 + $0xb0] sm:$0xff]  ;;  %v11044_v63 = vld [vmem:[#allocation2 + $0xd8] sm:$0xff]  ;;  %v11045_v37 = vld [vmem:[#allocation2 + $0x1e8] sm:$0xff] }
 0x15e   :  { %2244 = vmatprep.subr.bf16.mxu0 %v14989_v60  ;;  %2470 = vmatprep.subr.bf16.mxu1 %v14991_v0  ;;  %v425_v35 = vmul.f32 %v11041_v3, %v11780_v56  ;;  %v420_v49 = vmul.f32 %v11042_v29, %v11774_v22  ;;  %v424_v38 = vmul.f32 %v11043_v7, %v11780_v56  ;;  %v14994_v0 = vld [vmem:[#allocation28_spill] sm:$0xff]  ;;  %v14995_v50 = vld [vmem:[#allocation29_spill] sm:$0xff]  ;;  %v14997_v29 = vld [vmem:[#allocation30_spill] sm:$0xff] }
 0x15f   :  { %v429_v33 = vmul.f32 %v11044_v63, %v11798_v58  ;;  %2408 = vmatmul.mubr.bf16.gmra.mrb[12].mxu1 %v11973_v18  ;;  %v12021_v62 = vmul.f32 %v11613_v17, %v450_v36  ;;  %v12024_v6 = vmul.f32 %v11045_v37, %v11986_v11  ;;  %v506_v1 = vmul.f32 %v11632_v27, %v421_v51  ;;  %v14998_v51 = vld [vmem:[#allocation31_spill] sm:$0xff] }
 0x160   :  { %v14992_v22 = vcombine.low %v11660_v52, %v11662_v53  ;;  %v14993_v56 = vcombine.low %v11674_v59, %v14990_v24  ;;  %v510_v44 = vmul.f32 %v11632_v27, %v425_v35  ;;  %v505_v60 = vmul.f32 %v11666_v54, %v420_v49  ;;  %v11046_v52 = vld [vmem:[#allocation2 + $0xf8] sm:$0xff]  ;;  %v11047_v24 = vld [vmem:[#allocation2 + $0xd0] sm:$0xff]  ;;  %2191 = vmatprep.mubr.bf16.mxu0 %v11979_v9 }
 0x161   :  { %v509_v36 = vmul.f32 %v11666_v54, %v424_v38  ;;  %v14996_v3 = vcombine.high %v14994_v0, %v14995_v50  ;;  %v14999_v7 = vcombine.high %v14997_v29, %v14998_v51  ;;  %v433_v53 = vmul.f32 %v11046_v52, %v11805_v42  ;;  %2417 = vmatprep.mubr.bf16.mxu1 %v11979_v9  ;;  %v11048_v63 = vld [vmem:[#allocation2 + $0xf0] sm:$0xff] }
 0x162   :  { %2245 = vmatpush1.bf16.msra.mxu0 %v14992_v22  ;;  %2471 = vmatpush1.bf16.msra.mxu1 %v14993_v56  ;;  %v514_v59 = vmul.f32 %v11632_v27, %v429_v33  ;;  %v428_v35 = vmul.f32 %v11047_v24, %v11798_v58  ;;  %v12047_v49 = vpack.c.bf16 %v510_v44, %v506_v1  ;;  %v11051_v44 = vld [vmem:[#allocation2 + $0x110] sm:$0xff] }
 0x163   :  { %2246 = vmatprep.subr.bf16.mxu0 %v14996_v3  ;;  %2472 = vmatprep.subr.bf16.mxu1 %v14999_v7  ;;  %v12049_v38 = vpack.c.bf16 %v509_v36, %v505_v60  ;;  %v432_v37 = vmul.f32 %v11048_v63, %v11805_v42  ;;  %v518_v22 = vmul.f32 %v11632_v27, %v433_v53  ;;  %v11049_v3 = vld [vmem:[#allocation2 + $0x118] sm:$0xff]  ;;  %v11052_v36 = vld [vmem:[#allocation2 + $0x130] sm:$0xff] }
 0x164   :  { %v513_v56 = vmul.f32 %v11666_v54, %v428_v35  ;;  %v437_v33 = vmul.f32 %v11049_v3, %v11842_v28  ;;  %v11050_v7 = vld [vmem:[#allocation2 + $0x138] sm:$0xff]  ;;  %v15000_v52 = vcombine.low %v14994_v0, %v14995_v50  ;;  %v15001_v1 = vcombine.low %v14997_v29, %v14998_v51  ;;  %v15005_v3 = vld [vmem:[#allocation34_spill] sm:$0xff]  ;;  %2192 = vmatmul.mubr.bf16.gmra.mrb[16].mxu0 %v11981_v55 }
 0x165   :  { %v441_v58 = vmul.f32 %v11050_v7, %v11856_v14  ;;  %v517_v42 = vmul.f32 %v11666_v54, %v432_v37  ;;  %v436_v60 = vmul.f32 %v11051_v44, %v11842_v28  ;;  %v440_v53 = vmul.f32 %v11052_v36, %v11856_v14  ;;  %v15002_v24 = vld [vmem:[#allocation32_spill] sm:$0xff]  ;;  %v15003_v35 = vld [vmem:[#allocation33_spill] sm:$0xff]  ;;  %v15006_v7 = vld [vmem:[#allocation35_spill] sm:$0xff]  ;;  %2201 = vmatprep.mubr.bf16.mxu0 %v11994_v26 }
 0x166   :  { %2247 = vmatpush1.bf16.msra.mxu0 %v15000_v52  ;;  %2473 = vmatpush1.bf16.msra.mxu1 %v15001_v1  ;;  %v15004_v63 = vcombine.high %v15002_v24, %v15003_v35  ;;  %v15007_v0 = vcombine.high %v15005_v3, %v15006_v7  ;;  %v12071_v50 = vpack.c.bf16 %v518_v22, %v514_v59  ;;  %v11053_v52 = vld [vmem:[#allocation2 + $0x158] sm:$0xff] }
 0x167   :  { %v522_v29 = vmul.f32 %v11632_v27, %v437_v33  ;;  %v526_v51 = vmul.f32 %v11632_v27, %v441_v58  ;;  %v12075_v37 = vpack.c.bf16 %v517_v42, %v513_v56  ;;  %v521_v28 = vmul.f32 %v11666_v54, %v436_v60  ;;  %v12080_v44 = vpop.eup %10586  ;;  %2418 = vmatmul.mubr.bf16.gmra.mrb[16].mxu1 %v11981_v55  ;;  %v11054_v22 = vld [vmem:[#allocation2 + $0x178] sm:$0xff]  ;;  %v11055_v56 = vld [vmem:[#allocation2 + $0x150] sm:$0xff] }
 0x168   :  { %2248 = vmatprep.subr.bf16.mxu0 %v15004_v63  ;;  %2474 = vmatprep.subr.bf16.mxu1 %v15007_v0  ;;  %v525_v14 = vmul.f32 %v11666_v54, %v440_v53  ;;  %v445_v1 = vmul.f32 %v11053_v52, %v11882_v48  ;;  %v449_v33 = vmul.f32 %v11054_v22, %v11903_v34  ;;  %v11056_v63 = vld [vmem:[#allocation2 + $0x170] sm:$0xff] }
 0x169   :  { %v12084_v59 = vpack.c.bf16 %v526_v51, %v522_v29  ;;  %v444_v58 = vmul.f32 %v11055_v56, %v11882_v48  ;;  %v15008_v42 = vcombine.low %v15002_v24, %v15003_v35  ;;  %v15009_v60 = vcombine.low %v15005_v3, %v15006_v7  ;;  %v15010_v29 = vld [vmem:[#allocation36_spill] sm:$0xff]  ;;  %v15011_v51 = vld [vmem:[#allocation37_spill] sm:$0xff]  ;;  %v15013_v48 = vld [vmem:[#allocation38_spill] sm:$0xff]  ;;  %2427 = vmatprep.mubr.bf16.mxu1 %v11994_v26 }
 0x16a   :  { %v12094_v36 = vpack.c.bf16 %v525_v14, %v521_v28  ;;  %v530_v53 = vmul.f32 %v11632_v27, %v445_v1  ;;  %v448_v0 = vmul.f32 %v11056_v63, %v11903_v34  ;;  %v15012_v52 = vcombine.high %v15010_v29, %v15011_v51  ;;  %v11057_v3 = vld [vmem:[#allocation2 + $0x198] sm:$0xff]  ;;  %v11059_v1 = vld [vmem:[#allocation2 + $0x190] sm:$0xff] }
 0x16b   :  { %2249 = vmatpush1.bf16.msra.mxu0 %v15008_v42  ;;  %2475 = vmatpush1.bf16.msra.mxu1 %v15009_v60  ;;  %v15014_v22 = vcombine.high %v11732_v57, %v15013_v48  ;;  %v534_v24 = vmul.f32 %v11632_v27, %v449_v33  ;;  %v529_v35 = vmul.f32 %v11666_v54, %v444_v58  ;;  %v11058_v28 = vld [vmem:[#allocation2 + $0x1b8] sm:$0xff]  ;;  %v11060_v58 = vld [vmem:[#allocation2 + $0x1b0] sm:$0xff] }
 0x16c   :  { %2250 = vmatprep.subr.bf16.mxu0 %v15012_v52  ;;  %v453_v7 = vmul.f32 %v11057_v3, %v11939_v10  ;;  %v533_v34 = vmul.f32 %v11666_v54, %v448_v0  ;;  %v457_v14 = vmul.f32 %v11058_v28, %v11924_v15  ;;  %v452_v56 = vmul.f32 %v11059_v1, %v11939_v10  ;;  %v11061_v63 = vld [vmem:[#allocation2 + $0x1d8] sm:$0xff]  ;;  %v812_v28 = vld [vmem:[#allocation10 + $0x728] sm:$0xff] }
 0x16d   :  { %2476 = vmatprep.subr.bf16.mxu1 %v15014_v22  ;;  %v12112_v42 = vpack.c.bf16 %v534_v24, %v530_v53  ;;  %v456_v60 = vmul.f32 %v11060_v58, %v11924_v15  ;;  %v461_v52 = vmul.f32 %v11061_v63, %v12080_v44  ;;  %v15015_v22 = vcombine.low %v15010_v29, %v15011_v51  ;;  %v807_v29 = vld [vmem:[#allocation10 + $0x700] sm:$0xff] }
 0x16e   :  { %v538_v33 = vmul.f32 %v11632_v27, %v453_v7  ;;  %v15016_v0 = vcombine.low %v11732_v57, %v15013_v48  ;;  %v12123_v3 = vpack.c.bf16 %v533_v34, %v529_v35  ;;  %v542_v10 = vmul.f32 %v11632_v27, %v457_v14  ;;  %v811_v51 = vld [vmem:[#allocation10 + $0x720] sm:$0xff]  ;;  %v11062_v57 = vld [vmem:[#allocation2 + $0x1f8] sm:$0xff]  ;;  %v808_v34 = vld [vmem:[#allocation10 + $0x708] sm:$0xff]  ;;  %2202 = vmatmul.mubr.bf16.gmra.mrb[20].mxu0 %v11996_v19 }
 0x16f   :  { %2251 = vmatpush1.bf16.msra.mxu0 %v15015_v22  ;;  %v537_v53 = vmul.f32 %v11666_v54, %v452_v56  ;;  %v15017_v15 = vcombine.high %v11772_v25, %v11778_v30  ;;  %v541_v24 = vmul.f32 %v11666_v54, %v456_v60  ;;  %v465_v48 = vmul.f32 %v11062_v57, %v11986_v11  ;;  %v11063_v14 = vld [vmem:[#allocation2 + $0x1c8] sm:$0xff] }
 0x170   :  { %2477 = vmatpush1.bf16.msra.mxu1 %v15016_v0  ;;  %v546_v35 = vmul.f32 %v11632_v27, %v461_v52  ;;  %v12138_v7 = vpack.c.bf16 %v11999_v20, %v12008_v46  ;;  %v459_v1 = vmul.f32 %v11063_v14, %v12080_v44  ;;  %v12141_v56 = vpack.c.bf16 %v542_v10, %v538_v33  ;;  %v11065_v20 = vld [vmem:[#allocation2 + $0x1f0] sm:$0xff] }
 0x171   :  { %2252 = vmatprep.subr.bf16.mxu0 %v15017_v15  ;;  %2478 = vmatprep.subr.bf16.mxu1 %v9054_v31  ;;  %v11064_v31 = vld [vmem:[#allocation2 + $0x1d0] sm:$0xff]  ;;  %v12146_v60 = vpack.c.bf16 %v541_v24, %v537_v53  ;;  %v550_v63 = vmul.f32 %v11632_v27, %v465_v48  ;;  %v464_v46 = vmul.f32 %v11065_v20, %v11986_v11  ;;  %v835_v20 = vld [vmem:[#allocation10 + $0x7e0] sm:$0xff] }
 0x172   :  { %v460_v58 = vmul.f32 %v11064_v31, %v12080_v44  ;;  %2428 = vmatmul.mubr.bf16.gmra.mrb[20].mxu1 %v11996_v19  ;;  %v15018_v52 = vcombine.low %v11772_v25, %v11778_v30  ;;  %v15019_v33 = vcombine.low %v11815_v32, %v11817_v23  ;;  %v9061_v22 = vcombine.low %v11934_v61, %v11936_v5  ;;  %v815_v25 = vld [vmem:[#allocation10 + $0x740] sm:$0xff]  ;;  %v816_v53 = vld [vmem:[#allocation10 + $0x748] sm:$0xff] }
 0x173   :  { %v9068_v0 = vcombine.high %v807_v29, %v811_v51  ;;  %v9070_v27 = vcombine.high %v808_v34, %v812_v28  ;;  %v12165_v30 = vpack.c.bf16 %v550_v63, %v546_v35  ;;  %v549_v32 = vmul.f32 %v11666_v54, %v464_v46  ;;  %2211 = vmatprep.mubr.bf16.mxu0 %v12138_v7  ;;  %v819_v23 = vld [vmem:[#allocation10 + $0x760] sm:$0xff]  ;;  %v820_v15 = vld [vmem:[#allocation10 + $0x768] sm:$0xff] }
 0x174   :  { %2253 = vmatpush1.bf16.msra.mxu0 %v15018_v52  ;;  %2479 = vmatpush1.bf16.msra.mxu1 %v15019_v33  ;;  %v545_v10 = vmul.f32 %v11666_v54, %v460_v58  ;;  %v544_v24 = vmul.f32 %v11609_v16, %v459_v1  ;;  %v12175_v61 = vpack.c.bf16 %v12011_v47, %v12021_v62  ;;  %v11066_v5 = vld [vmem:[#allocation2 + $0x1c0] sm:$0xff]  ;;  %v824_v31 = vld [vmem:[#allocation10 + $0x788] sm:$0xff] }
 0x175   :  { %2254 = vmatprep.subr.bf16.mxu0 %v9060_v12  ;;  %2480 = vmatprep.subr.bf16.mxu1 %v9062_v21  ;;  %v548_v12 = vmul.f32 %v11609_v16, %v12024_v6  ;;  %v458_v21 = vmul.f32 %v11066_v5, %v12080_v44  ;;  %v11067_v54 = vld [vmem:[#allocation2 + $0x1e0] sm:$0xff]  ;;  %v15020_v35 = vcombine.low %v11826_v39, %v11828_v45  ;;  %v828_v58 = vld [vmem:[#allocation10 + $0x7a8] sm:$0xff]  ;;  %v593_v5 = vld [vmem:[#allocation10 + $0x50] sm:$0xff] }
 0x176   :  { %2437 = vmatprep.mubr.bf16.mxu1 %v12138_v7  ;;  %v462_v57 = vmul.f32 %v11067_v54, %v11986_v11  ;;  %v12179_v48 = vpack.c.bf16 %v549_v32, %v545_v10  ;;  %v9067_v14 = vcombine.low %v807_v29, %v811_v51  ;;  %v9069_v1 = vcombine.low %v808_v34, %v812_v28  ;;  %v823_v62 = vld [vmem:[#allocation10 + $0x780] sm:$0xff]  ;;  %v832_v46 = vld [vmem:[#allocation10 + $0x7c8] sm:$0xff]  ;;  %v585_v10 = vld [vmem:[#allocation10 + $0x10] sm:$0xff] }
 0x177   :  { %v9076_v16 = vcombine.high %v815_v25, %v819_v23  ;;  %v9078_v47 = vcombine.high %v816_v53, %v820_v15  ;;  %v12184_v6 = vpack.c.bf16 %v548_v12, %v544_v24  ;;  %v827_v44 = vld [vmem:[#allocation10 + $0x7a0] sm:$0xff]  ;;  %2212 = vmatmul.mubr.bf16.gmra.mrb[24].mxu0 %v12175_v61  ;;  %v543_v39 = vmul.f32 %v11613_v17, %v458_v21  ;;  %v836_v52 = vld [vmem:[#allocation10 + $0x7e8] sm:$0xff]  ;;  %v590_v32 = vld [vmem:[#allocation10 + $0x38] sm:$0xff] }
 0x178   :  { %2255 = vmatpush1.bf16.msra.mxu0 %v15020_v35  ;;  %2481 = vmatpush1.bf16.msra.mxu1 %v9061_v22  ;;  %v547_v45 = vmul.f32 %v11613_v17, %v462_v57  ;;  %v9075_v11 = vcombine.low %v815_v25, %v819_v23  ;;  %v9077_v29 = vcombine.low %v816_v53, %v820_v15  ;;  %v831_v28 = vld [vmem:[#allocation10 + $0x7c0] sm:$0xff]  ;;  %v586_v25 = vld [vmem:[#allocation10 + $0x18] sm:$0xff]  ;;  %v597_v21 = vld [vmem:[#allocation10 + $0x70] sm:$0xff] }
 0x179   :  { %2256 = vmatprep.subr.bf16.mxu0 %v9068_v0  ;;  %2482 = vmatprep.subr.bf16.mxu1 %v9070_v27  ;;  %v9084_v51 = vcombine.high %v823_v62, %v827_v44  ;;  %v9086_v34 = vcombine.high %v824_v31, %v828_v58  ;;  %v9083_v17 = vcombine.low %v823_v62, %v827_v44  ;;  %v589_v27 = vld [vmem:[#allocation10 + $0x30] sm:$0xff]  ;;  %v15021_v23 = vld [vmem:[#allocation42_spill] sm:$0xff]  ;;  %v594_v54 = vld [vmem:[#allocation10 + $0x58] sm:$0xff] }
 0x17a   :  { %2438 = vmatmul.mubr.bf16.gmra.mrb[24].mxu1 %v12175_v61  ;;  %2221 = vmatprep.mubr.bf16.mxu0 %v12184_v6  ;;  %v12192_v63 = vpack.c.bf16 %v547_v45, %v543_v39  ;;  %v9085_v33 = vcombine.low %v824_v31, %v828_v58  ;;  %v9092_v22 = vcombine.high %v831_v28, %v835_v20  ;;  %v598_v57 = vld [vmem:[#allocation10 + $0x78] sm:$0xff]  ;;  %v605_v62 = vld [vmem:[#allocation10 + $0xb0] sm:$0xff] }
 0x17b   :  { %2447 = vmatprep.mubr.bf16.mxu1 %v12184_v6  ;;  %v9094_v0 = vcombine.high %v832_v46, %v836_v52  ;;  %v9091_v53 = vcombine.low %v831_v28, %v835_v20  ;;  %v9093_v15 = vcombine.low %v832_v46, %v836_v52  ;;  %v8848_v24 = vcombine.high %v585_v10, %v589_v27  ;;  %v602_v44 = vld [vmem:[#allocation10 + $0x98] sm:$0xff] }
 0x17c   :  { %2257 = vmatpush1.bf16.msra.mxu0 %v9067_v14  ;;  %2483 = vmatpush1.bf16.msra.mxu1 %v9069_v1  ;;  %v8850_v12 = vcombine.high %v586_v25, %v590_v32  ;;  %v8847_v35 = vcombine.low %v585_v10, %v589_v27  ;;  %v8849_v14 = vcombine.low %v586_v25, %v590_v32  ;;  %v606_v31 = vld [vmem:[#allocation10 + $0xb8] sm:$0xff] }
 0x17d   :  { %2258 = vmatprep.subr.bf16.mxu0 %v9076_v16  ;;  %2484 = vmatprep.subr.bf16.mxu1 %v9078_v47  ;;  %v8856_v1 = vcombine.high %v593_v5, %v597_v21  ;;  %v8858_v16 = vcombine.high %v594_v54, %v598_v57  ;;  %v601_v47 = vld [vmem:[#allocation10 + $0x90] sm:$0xff]  ;;  %v8855_v58 = vcombine.low %v593_v5, %v597_v21  ;;  %v614_v28 = vld [vmem:[#allocation10 + $0xf8] sm:$0xff] }
 0x17e   :  { %v8857_v39 = vcombine.low %v594_v54, %v598_v57  ;;  %v8864_v45 = vcombine.high %v601_v47, %v605_v62  ;;  %v8863_v20 = vcombine.low %v601_v47, %v605_v62  ;;  %v8865_v46 = vcombine.low %v602_v44, %v606_v31  ;;  %v622_v10 = vld [vmem:[#allocation10 + $0x138] sm:$0xff] }
 0x17f   :  { %2222 = vmatmul.mubr.bf16.gmra.mrb[28].mxu0 %v12192_v63  ;;  %v630_v5 = vld [vmem:[#allocation10 + $0x178] sm:$0xff] }
 0x180   :  { %2259 = vmatpush1.bf16.msra.mxu0 %v9075_v11  ;;  %2485 = vmatpush1.bf16.msra.mxu1 %v9077_v29  ;;  %v8866_v11 = vcombine.high %v602_v44, %v606_v31  ;;  %v609_v29 = vld [vmem:[#allocation10 + $0xd0] sm:$0xff]  ;;  %v638_v47 = vld [vmem:[#allocation10 + $0x1b8] sm:$0xff] }
 0x181   :  { %2260 = vmatprep.subr.bf16.mxu0 %v9084_v51  ;;  %2486 = vmatprep.subr.bf16.mxu1 %v9086_v34  ;;  %v613_v51 = vld [vmem:[#allocation10 + $0xf0] sm:$0xff]  ;;  %v610_v34 = vld [vmem:[#allocation10 + $0xd8] sm:$0xff] }
 0x182   :  { %2448 = vmatmul.mubr.bf16.gmra.mrb[28].mxu1 %v12192_v63  ;;  %2264 = vmatprep.mubr.bf16.mxu0 %v15021_v23  ;;  %v8872_v52 = vcombine.high %v609_v29, %v613_v51  ;;  %v8871_v27 = vcombine.low %v609_v29, %v613_v51  ;;  %v8873_v25 = vcombine.low %v610_v34, %v614_v28  ;;  %v646_v29 = vld [vmem:[#allocation10 + $0x1f8] sm:$0xff] }
 0x183   :  { %2490 = vmatprep.mubr.bf16.mxu1 %v15021_v23 }
 0x184   :  { %2261 = vmatpush1.bf16.msra.mxu0 %v9083_v17  ;;  %2487 = vmatpush1.bf16.msra.mxu1 %v9085_v33  ;;  %v8874_v17 = vcombine.high %v610_v34, %v614_v28  ;;  %v617_v33 = vld [vmem:[#allocation10 + $0x110] sm:$0xff] }
 0x185   :  { %2262 = vmatprep.subr.bf16.mxu0 %v9092_v22  ;;  %2488 = vmatprep.subr.bf16.mxu1 %v9094_v0  ;;  %v621_v22 = vld [vmem:[#allocation10 + $0x130] sm:$0xff]  ;;  %v618_v0 = vld [vmem:[#allocation10 + $0x118] sm:$0xff] }
 0x186   :  { %v8880_v32 = vcombine.high %v617_v33, %v621_v22  ;;  %v8879_v21 = vcombine.low %v617_v33, %v621_v22  ;;  %v8881_v54 = vcombine.low %v618_v0, %v622_v10  ;;  %v654_v33 = vld [vmem:[#allocation10 + $0x238] sm:$0xff] }
 0x188   :  { %2263 = vmatpush1.bf16.msra.mxu0 %v9091_v53  ;;  %2489 = vmatpush1.bf16.msra.mxu1 %v9093_v15  ;;  %v8882_v53 = vcombine.high %v618_v0, %v622_v10  ;;  %v625_v15 = vld [vmem:[#allocation10 + $0x150] sm:$0xff] }
 0x189   :  { %2571 = vmatprep.subr.bf16.mxu0 %v8848_v24  ;;  %2797 = vmatprep.subr.bf16.mxu1 %v8850_v12  ;;  %v629_v24 = vld [vmem:[#allocation10 + $0x170] sm:$0xff]  ;;  %v626_v12 = vld [vmem:[#allocation10 + $0x158] sm:$0xff] }
 0x18a   :  { %v8888_v57 = vcombine.high %v625_v15, %v629_v24  ;;  %v8887_v62 = vcombine.low %v625_v15, %v629_v24  ;;  %v8889_v44 = vcombine.low %v626_v12, %v630_v5  ;;  %v662_v15 = vld [vmem:[#allocation10 + $0x278] sm:$0xff] }
 0x18b   :  { %2265 = vmatmul.mubr.bf16.vlgmr.msra.gmra.mrb[0].mxu0 %v11921_v4  ;;  %2491 = vmatmul.mubr.bf16.vlgmr.msra.gmra.mrb[0].mxu1 %v11921_v4 }
 0x18c   :  { %2274 = vmatprep.mubr.bf16.mxu0 %v11943_v13  ;;  %2500 = vmatprep.mubr.bf16.mxu1 %v11943_v13 }
 0x18d   :  { %2572 = vmatpush1.bf16.msra.mxu0 %v8847_v35  ;;  %2798 = vmatpush1.bf16.msra.mxu1 %v8849_v14  ;;  %v8890_v35 = vcombine.high %v626_v12, %v630_v5  ;;  %v633_v14 = vld [vmem:[#allocation10 + $0x190] sm:$0xff] }
 0x18e   :  { %2573 = vmatprep.subr.bf16.mxu0 %v8856_v1  ;;  %2799 = vmatprep.subr.bf16.mxu1 %v8858_v16  ;;  %v637_v1 = vld [vmem:[#allocation10 + $0x1b0] sm:$0xff]  ;;  %v634_v16 = vld [vmem:[#allocation10 + $0x198] sm:$0xff] }
 0x18f   :  { %v8896_v31 = vcombine.high %v633_v14, %v637_v1  ;;  %v8895_v51 = vcombine.low %v633_v14, %v637_v1  ;;  %v8897_v34 = vcombine.low %v634_v16, %v638_v47  ;;  %v670_v14 = vld [vmem:[#allocation10 + $0x2b8] sm:$0xff] }
 0x191   :  { %2574 = vmatpush1.bf16.msra.mxu0 %v8855_v58  ;;  %2800 = vmatpush1.bf16.msra.mxu1 %v8857_v39  ;;  %v8898_v58 = vcombine.high %v634_v16, %v638_v47  ;;  %v641_v39 = vld [vmem:[#allocation10 + $0x1d0] sm:$0xff] }
 0x192   :  { %2575 = vmatprep.subr.bf16.mxu0 %v8864_v45  ;;  %2801 = vmatprep.subr.bf16.mxu1 %v8866_v11  ;;  %v645_v45 = vld [vmem:[#allocation10 + $0x1f0] sm:$0xff]  ;;  %v642_v11 = vld [vmem:[#allocation10 + $0x1d8] sm:$0xff] }
 0x193   :  { %2275 = vmatmul.mubr.bf16.gmra.mrb[4].mxu0 %v11984_v2  ;;  %2501 = vmatmul.mubr.bf16.gmra.mrb[4].mxu1 %v11984_v2  ;;  %v8904_v28 = vcombine.high %v641_v39, %v645_v45  ;;  %v8903_v22 = vcombine.low %v641_v39, %v645_v45  ;;  %v8905_v0 = vcombine.low %v642_v11, %v646_v29  ;;  %v678_v39 = vld [vmem:[#allocation10 + $0x2f8] sm:$0xff] }
 0x194   :  { %2284 = vmatprep.mubr.bf16.mxu0 %v12047_v49  ;;  %2510 = vmatprep.mubr.bf16.mxu1 %v12047_v49 }
 0x195   :  { %2576 = vmatpush1.bf16.msra.mxu0 %v8863_v20  ;;  %2802 = vmatpush1.bf16.msra.mxu1 %v8865_v46  ;;  %v8906_v20 = vcombine.high %v642_v11, %v646_v29  ;;  %v649_v46 = vld [vmem:[#allocation10 + $0x210] sm:$0xff] }
 0x196   :  { %2577 = vmatprep.subr.bf16.mxu0 %v8872_v52  ;;  %2803 = vmatprep.subr.bf16.mxu1 %v8874_v17  ;;  %v653_v52 = vld [vmem:[#allocation10 + $0x230] sm:$0xff]  ;;  %v650_v17 = vld [vmem:[#allocation10 + $0x218] sm:$0xff] }
 0x197   :  { %v8912_v10 = vcombine.high %v649_v46, %v653_v52  ;;  %v8911_v24 = vcombine.low %v649_v46, %v653_v52  ;;  %v8913_v12 = vcombine.low %v650_v17, %v654_v33  ;;  %v686_v46 = vld [vmem:[#allocation10 + $0x338] sm:$0xff] }
 0x199   :  { %2578 = vmatpush1.bf16.msra.mxu0 %v8871_v27  ;;  %2804 = vmatpush1.bf16.msra.mxu1 %v8873_v25  ;;  %v8914_v27 = vcombine.high %v650_v17, %v654_v33  ;;  %v657_v25 = vld [vmem:[#allocation10 + $0x250] sm:$0xff] }
 0x19a   :  { %2579 = vmatprep.subr.bf16.mxu0 %v8880_v32  ;;  %2805 = vmatprep.subr.bf16.mxu1 %v8882_v53  ;;  %v661_v32 = vld [vmem:[#allocation10 + $0x270] sm:$0xff]  ;;  %v658_v53 = vld [vmem:[#allocation10 + $0x258] sm:$0xff] }
 0x19b   :  { %2285 = vmatmul.mubr.bf16.gmra.mrb[8].mxu0 %v12049_v38  ;;  %2511 = vmatmul.mubr.bf16.gmra.mrb[8].mxu1 %v12049_v38  ;;  %v8920_v5 = vcombine.high %v657_v25, %v661_v32  ;;  %v8919_v1 = vcombine.low %v657_v25, %v661_v32  ;;  %v8921_v16 = vcombine.low %v658_v53, %v662_v15  ;;  %v694_v25 = vld [vmem:[#allocation10 + $0x378] sm:$0xff] }
 0x19c   :  { %2294 = vmatprep.mubr.bf16.mxu0 %v12071_v50  ;;  %2520 = vmatprep.mubr.bf16.mxu1 %v12071_v50 }
 0x19d   :  { %2580 = vmatpush1.bf16.msra.mxu0 %v8879_v21  ;;  %2806 = vmatpush1.bf16.msra.mxu1 %v8881_v54  ;;  %v8922_v21 = vcombine.high %v658_v53, %v662_v15  ;;  %v665_v54 = vld [vmem:[#allocation10 + $0x290] sm:$0xff] }
 0x19e   :  { %2581 = vmatprep.subr.bf16.mxu0 %v8888_v57  ;;  %2807 = vmatprep.subr.bf16.mxu1 %v8890_v35  ;;  %v669_v57 = vld [vmem:[#allocation10 + $0x2b0] sm:$0xff]  ;;  %v666_v35 = vld [vmem:[#allocation10 + $0x298] sm:$0xff] }
 0x19f   :  { %v8928_v47 = vcombine.high %v665_v54, %v669_v57  ;;  %v8927_v45 = vcombine.low %v665_v54, %v669_v57  ;;  %v8929_v11 = vcombine.low %v666_v35, %v670_v14  ;;  %v702_v54 = vld [vmem:[#allocation10 + $0x3b8] sm:$0xff] }
 0x1a1   :  { %2582 = vmatpush1.bf16.msra.mxu0 %v8887_v62  ;;  %2808 = vmatpush1.bf16.msra.mxu1 %v8889_v44  ;;  %v8930_v62 = vcombine.high %v666_v35, %v670_v14  ;;  %v673_v44 = vld [vmem:[#allocation10 + $0x2d0] sm:$0xff] }
 0x1a2   :  { %2583 = vmatprep.subr.bf16.mxu0 %v8896_v31  ;;  %2809 = vmatprep.subr.bf16.mxu1 %v8898_v58  ;;  %v677_v31 = vld [vmem:[#allocation10 + $0x2f0] sm:$0xff]  ;;  %v674_v58 = vld [vmem:[#allocation10 + $0x2d8] sm:$0xff] }
 0x1a3   :  { %2295 = vmatmul.mubr.bf16.gmra.mrb[12].mxu0 %v12075_v37  ;;  %2521 = vmatmul.mubr.bf16.gmra.mrb[12].mxu1 %v12075_v37  ;;  %v8936_v29 = vcombine.high %v673_v44, %v677_v31  ;;  %v8935_v52 = vcombine.low %v673_v44, %v677_v31  ;;  %v8937_v17 = vcombine.low %v674_v58, %v678_v39  ;;  %v710_v44 = vld [vmem:[#allocation10 + $0x3f8] sm:$0xff] }
 0x1a4   :  { %2304 = vmatprep.mubr.bf16.mxu0 %v12084_v59  ;;  %2530 = vmatprep.mubr.bf16.mxu1 %v12084_v59 }
 0x1a5   :  { %2584 = vmatpush1.bf16.msra.mxu0 %v8895_v51  ;;  %2810 = vmatpush1.bf16.msra.mxu1 %v8897_v34  ;;  %v8938_v51 = vcombine.high %v674_v58, %v678_v39  ;;  %v681_v34 = vld [vmem:[#allocation10 + $0x310] sm:$0xff] }
 0x1a6   :  { %2585 = vmatprep.subr.bf16.mxu0 %v8904_v28  ;;  %2811 = vmatprep.subr.bf16.mxu1 %v8906_v20  ;;  %v685_v28 = vld [vmem:[#allocation10 + $0x330] sm:$0xff]  ;;  %v682_v20 = vld [vmem:[#allocation10 + $0x318] sm:$0xff] }
 0x1a7   :  { %v8944_v33 = vcombine.high %v681_v34, %v685_v28  ;;  %v8943_v32 = vcombine.low %v681_v34, %v685_v28  ;;  %v8945_v53 = vcombine.low %v682_v20, %v686_v46  ;;  %v714_v34 = vld [vmem:[#allocation10 + $0x418] sm:$0xff] }
 0x1a8   :  { %v718_v28 = vld [vmem:[#allocation10 + $0x438] sm:$0xff] }
 0x1a9   :  { %2586 = vmatpush1.bf16.msra.mxu0 %v8903_v22  ;;  %2812 = vmatpush1.bf16.msra.mxu1 %v8905_v0  ;;  %v8946_v22 = vcombine.high %v682_v20, %v686_v46  ;;  %v689_v0 = vld [vmem:[#allocation10 + $0x350] sm:$0xff] }
 0x1aa   :  { %2587 = vmatprep.subr.bf16.mxu0 %v8912_v10  ;;  %2813 = vmatprep.subr.bf16.mxu1 %v8914_v27  ;;  %v693_v10 = vld [vmem:[#allocation10 + $0x370] sm:$0xff]  ;;  %v690_v27 = vld [vmem:[#allocation10 + $0x358] sm:$0xff] }
 0x1ab   :  { %2305 = vmatmul.mubr.bf16.gmra.mrb[16].mxu0 %v12094_v36  ;;  %2531 = vmatmul.mubr.bf16.gmra.mrb[16].mxu1 %v12094_v36  ;;  %v8952_v15 = vcombine.high %v689_v0, %v693_v10  ;;  %v8951_v57 = vcombine.low %v689_v0, %v693_v10  ;;  %v8953_v35 = vcombine.low %v690_v27, %v694_v25  ;;  %v722_v0 = vld [vmem:[#allocation10 + $0x458] sm:$0xff] }
 0x1ac   :  { %2314 = vmatprep.mubr.bf16.mxu0 %v12112_v42  ;;  %2540 = vmatprep.mubr.bf16.mxu1 %v12112_v42  ;;  %v726_v10 = vld [vmem:[#allocation10 + $0x478] sm:$0xff] }
 0x1ad   :  { %2588 = vmatpush1.bf16.msra.mxu0 %v8911_v24  ;;  %2814 = vmatpush1.bf16.msra.mxu1 %v8913_v12  ;;  %v8954_v24 = vcombine.high %v690_v27, %v694_v25  ;;  %v697_v12 = vld [vmem:[#allocation10 + $0x390] sm:$0xff]  ;;  %v8977_v25 = vcombine.low %v714_v34, %v718_v28 }
 0x1ae   :  { %2589 = vmatprep.subr.bf16.mxu0 %v8920_v5  ;;  %2815 = vmatprep.subr.bf16.mxu1 %v8922_v21  ;;  %v701_v5 = vld [vmem:[#allocation10 + $0x3b0] sm:$0xff]  ;;  %v698_v21 = vld [vmem:[#allocation10 + $0x398] sm:$0xff] }
 0x1af   :  { %v8960_v14 = vcombine.high %v697_v12, %v701_v5  ;;  %v8959_v31 = vcombine.low %v697_v12, %v701_v5  ;;  %v8961_v58 = vcombine.low %v698_v21, %v702_v54  ;;  %v733_v12 = vld [vmem:[#allocation10 + $0x4b0] sm:$0xff]  ;;  %v15024_v5 = vld [vmem:[#allocation41_spill] sm:$0xff] }
 0x1b1   :  { %2590 = vmatpush1.bf16.msra.mxu0 %v8919_v1  ;;  %2816 = vmatpush1.bf16.msra.mxu1 %v8921_v16  ;;  %v8962_v1 = vcombine.high %v698_v21, %v702_v54  ;;  %v705_v16 = vld [vmem:[#allocation10 + $0x3d0] sm:$0xff]  ;;  %v730_v21 = vld [vmem:[#allocation10 + $0x498] sm:$0xff] }
 0x1b2   :  { %2591 = vmatprep.subr.bf16.mxu0 %v8928_v47  ;;  %2817 = vmatprep.subr.bf16.mxu1 %v8930_v62  ;;  %v709_v47 = vld [vmem:[#allocation10 + $0x3f0] sm:$0xff]  ;;  %v706_v62 = vld [vmem:[#allocation10 + $0x3d8] sm:$0xff] }
 0x1b3   :  { %2315 = vmatmul.mubr.bf16.gmra.mrb[20].mxu0 %v12123_v3  ;;  %2541 = vmatmul.mubr.bf16.gmra.mrb[20].mxu1 %v12123_v3  ;;  %v8968_v39 = vcombine.high %v705_v16, %v709_v47  ;;  %v8967_v20 = vcombine.low %v705_v16, %v709_v47  ;;  %v8969_v46 = vcombine.low %v706_v62, %v710_v44  ;;  %v734_v54 = vld [vmem:[#allocation10 + $0x4b8] sm:$0xff]  ;;  %v737_v16 = vld [vmem:[#allocation10 + $0x4d0] sm:$0xff] }
 0x1b4   :  { %2324 = vmatprep.mubr.bf16.mxu0 %v12141_v56  ;;  %2550 = vmatprep.mubr.bf16.mxu1 %v12141_v56  ;;  %v741_v47 = vld [vmem:[#allocation10 + $0x4f0] sm:$0xff] }
 0x1b5   :  { %2592 = vmatpush1.bf16.msra.mxu0 %v8927_v45  ;;  %2818 = vmatpush1.bf16.msra.mxu1 %v8929_v11  ;;  %v8970_v45 = vcombine.high %v706_v62, %v710_v44  ;;  %v713_v11 = vld [vmem:[#allocation10 + $0x410] sm:$0xff]  ;;  %v738_v62 = vld [vmem:[#allocation10 + $0x4d8] sm:$0xff] }
 0x1b6   :  { %2593 = vmatprep.subr.bf16.mxu0 %v8936_v29  ;;  %2819 = vmatprep.subr.bf16.mxu1 %v8938_v51  ;;  %v717_v29 = vld [vmem:[#allocation10 + $0x430] sm:$0xff]  ;;  %v15022_v51 = vld [vmem:[#allocation39_spill] sm:$0xff]  ;;  %v742_v44 = vld [vmem:[#allocation10 + $0x4f8] sm:$0xff] }
 0x1b7   :  { %v8975_v27 = vcombine.low %v713_v11, %v717_v29 }
 0x1b9   :  { %2594 = vmatpush1.bf16.msra.mxu0 %v8935_v52  ;;  %2820 = vmatpush1.bf16.msra.mxu1 %v8937_v17  ;;  %v8976_v52 = vcombine.high %v713_v11, %v717_v29  ;;  %v8978_v17 = vcombine.high %v714_v34, %v718_v28  ;;  %v745_v11 = vld [vmem:[#allocation10 + $0x510] sm:$0xff]  ;;  %v750_v34 = vld [vmem:[#allocation10 + $0x538] sm:$0xff]  ;;  %v8999_v28 = vcombine.low %v737_v16, %v741_v47 }
 0x1ba   :  { %2595 = vmatprep.subr.bf16.mxu0 %v8944_v33  ;;  %2821 = vmatprep.subr.bf16.mxu1 %v8946_v22  ;;  %v721_v33 = vld [vmem:[#allocation10 + $0x450] sm:$0xff] }
 0x1bb   :  { %2325 = vmatmul.mubr.bf16.gmra.mrb[24].mxu0 %v12146_v60  ;;  %2551 = vmatmul.mubr.bf16.gmra.mrb[24].mxu1 %v12146_v60  ;;  %v725_v22 = vld [vmem:[#allocation10 + $0x470] sm:$0xff] }
 0x1bc   :  { %2334 = vmatprep.mubr.bf16.mxu0 %v12165_v30  ;;  %2560 = vmatprep.mubr.bf16.mxu1 %v12165_v30  ;;  %v749_v29 = vld [vmem:[#allocation10 + $0x530] sm:$0xff] }
 0x1bd   :  { %2596 = vmatpush1.bf16.msra.mxu0 %v8943_v32  ;;  %2822 = vmatpush1.bf16.msra.mxu1 %v8945_v53  ;;  %v8984_v32 = vcombine.high %v721_v33, %v725_v22  ;;  %v15023_v53 = vld [vmem:[#allocation40_spill] sm:$0xff] }
 0x1be   :  { %2597 = vmatprep.subr.bf16.mxu0 %v8952_v15  ;;  %2823 = vmatprep.subr.bf16.mxu1 %v8954_v24  ;;  %v8986_v15 = vcombine.high %v722_v0, %v726_v10  ;;  %v729_v24 = vld [vmem:[#allocation10 + $0x490] sm:$0xff] }
 0x1c1   :  { %2598 = vmatpush1.bf16.msra.mxu0 %v8951_v57  ;;  %2824 = vmatpush1.bf16.msra.mxu1 %v8953_v35  ;;  %v8983_v57 = vcombine.low %v721_v33, %v725_v22  ;;  %v8985_v35 = vcombine.low %v722_v0, %v726_v10  ;;  %v757_v33 = vld [vmem:[#allocation10 + $0x570] sm:$0xff]  ;;  %v754_v22 = vld [vmem:[#allocation10 + $0x558] sm:$0xff] }
 0x1c2   :  { %2599 = vmatprep.subr.bf16.mxu0 %v8960_v14  ;;  %2825 = vmatprep.subr.bf16.mxu1 %v8962_v1  ;;  %v8992_v14 = vcombine.high %v729_v24, %v733_v12  ;;  %v8994_v1 = vcombine.high %v730_v21, %v734_v54  ;;  %v758_v0 = vld [vmem:[#allocation10 + $0x578] sm:$0xff] }
 0x1c3   :  { %2335 = vmatmul.mubr.bf16.gmra.mrb[28].mxu0 %v12179_v48  ;;  %2561 = vmatmul.mubr.bf16.gmra.mrb[28].mxu1 %v12179_v48 }
 0x1c4   :  { %2603 = vmatprep.mubr.bf16.mxu0 %v15022_v51  ;;  %2829 = vmatprep.mubr.bf16.mxu1 %v15022_v51  ;;  %v746_v51 = vld [vmem:[#allocation10 + $0x518] sm:$0xff] }
 0x1c5   :  { %2600 = vmatpush1.bf16.msra.mxu0 %v8959_v31  ;;  %2826 = vmatpush1.bf16.msra.mxu1 %v8961_v58  ;;  %v8991_v31 = vcombine.low %v729_v24, %v733_v12  ;;  %v8993_v58 = vcombine.low %v730_v21, %v734_v54  ;;  %v9009_v10 = vcombine.low %v746_v51, %v750_v34  ;;  %v769_v54 = vld [vmem:[#allocation10 + $0x5d0] sm:$0xff] }
 0x1c6   :  { %2601 = vmatprep.subr.bf16.mxu0 %v8968_v39  ;;  %2827 = vmatprep.subr.bf16.mxu1 %v8970_v45  ;;  %v9000_v39 = vcombine.high %v737_v16, %v741_v47  ;;  %v9002_v45 = vcombine.high %v738_v62, %v742_v44  ;;  %v9017_v12 = vcombine.low %v754_v22, %v758_v0  ;;  %v777_v47 = vld [vmem:[#allocation10 + $0x610] sm:$0xff] }
 0x1c9   :  { %2602 = vmatpush1.bf16.msra.mxu0 %v8967_v20  ;;  %2828 = vmatpush1.bf16.msra.mxu1 %v8969_v46  ;;  %v9001_v20 = vcombine.low %v738_v62, %v742_v44  ;;  %v9008_v46 = vcombine.high %v745_v11, %v749_v29  ;;  %v781_v62 = vld [vmem:[#allocation10 + $0x630] sm:$0xff]  ;;  %v778_v44 = vld [vmem:[#allocation10 + $0x618] sm:$0xff] }
 0x1ca   :  { %2684 = vmatprep.subr.bf16.mxu0 %v8976_v52  ;;  %2910 = vmatprep.subr.bf16.mxu1 %v8978_v17  ;;  %v9010_v52 = vcombine.high %v746_v51, %v750_v34  ;;  %v753_v17 = vld [vmem:[#allocation10 + $0x550] sm:$0xff]  ;;  %v786_v34 = vld [vmem:[#allocation10 + $0x658] sm:$0xff] }
 0x1cb   :  { %v9015_v24 = vcombine.low %v753_v17, %v757_v33  ;;  %v789_v51 = vld [vmem:[#allocation10 + $0x670] sm:$0xff] }
 0x1cc   :  { %2604 = vmatmul.mubr.bf16.vlgmr.msra.gmra.mrb[32].mxu0 %v15023_v53  ;;  %2830 = vmatmul.mubr.bf16.vlgmr.msra.gmra.mrb[32].mxu1 %v15023_v53  ;;  %v762_v53 = vld [vmem:[#allocation10 + $0x598] sm:$0xff] }
 0x1cd   :  { %2613 = vmatprep.mubr.bf16.mxu0 %v15024_v5  ;;  %2685 = vmatpush1.bf16.msra.mxu0 %v8975_v27  ;;  %v9016_v27 = vcombine.high %v753_v17, %v757_v33  ;;  %v797_v17 = vld [vmem:[#allocation10 + $0x6b0] sm:$0xff]  ;;  %v794_v33 = vld [vmem:[#allocation10 + $0x698] sm:$0xff] }
 0x1ce   :  { %2839 = vmatprep.mubr.bf16.mxu1 %v15024_v5  ;;  %2911 = vmatpush1.bf16.msra.mxu1 %v8977_v25  ;;  %v761_v25 = vld [vmem:[#allocation10 + $0x590] sm:$0xff] }
 0x1cf   :  { %2686 = vmatprep.subr.bf16.mxu0 %v8984_v32  ;;  %2912 = vmatprep.subr.bf16.mxu1 %v8986_v15  ;;  %v765_v32 = vld [vmem:[#allocation10 + $0x5b0] sm:$0xff]  ;;  %v766_v15 = vld [vmem:[#allocation10 + $0x5b8] sm:$0xff] }
 0x1d0   :  { %v9024_v5 = vcombine.high %v761_v25, %v765_v32  ;;  %v9026_v21 = vcombine.high %v762_v53, %v766_v15 }
 0x1d1   :  { %2687 = vmatpush1.bf16.msra.mxu0 %v8983_v57  ;;  %v773_v57 = vld [vmem:[#allocation10 + $0x5f0] sm:$0xff] }
 0x1d2   :  { %2913 = vmatpush1.bf16.msra.mxu1 %v8985_v35  ;;  %2688 = vmatprep.subr.bf16.mxu0 %v8992_v14  ;;  %v770_v35 = vld [vmem:[#allocation10 + $0x5d8] sm:$0xff]  ;;  %v9032_v16 = vcombine.high %v769_v54, %v773_v57 }
 0x1d3   :  { %2914 = vmatprep.subr.bf16.mxu1 %v8994_v1  ;;  %v774_v14 = vld [vmem:[#allocation10 + $0x5f8] sm:$0xff]  ;;  %v9025_v1 = vcombine.low %v762_v53, %v766_v15 }
 0x1d4   :  { %2614 = vmatmul.mubr.bf16.gmra.mrb[36].mxu0 %v11858_v40  ;;  %2840 = vmatmul.mubr.bf16.gmra.mrb[36].mxu1 %v11858_v40  ;;  %v9007_v40 = vcombine.low %v745_v11, %v749_v29  ;;  %v785_v29 = vld [vmem:[#allocation10 + $0x650] sm:$0xff]  ;;  %v806_v53 = vld [vmem:[#allocation10 + $0x6f8] sm:$0xff] }
 0x1d5   :  { %2623 = vmatprep.mubr.bf16.mxu0 %v11868_v43  ;;  %2689 = vmatpush1.bf16.msra.mxu0 %v8991_v31  ;;  %v782_v31 = vld [vmem:[#allocation10 + $0x638] sm:$0xff] }
 0x1d6   :  { %2849 = vmatprep.mubr.bf16.mxu1 %v11868_v43  ;;  %2915 = vmatpush1.bf16.msra.mxu1 %v8993_v58  ;;  %v9018_v43 = vcombine.high %v754_v22, %v758_v0  ;;  %v9031_v58 = vcombine.low %v769_v54, %v773_v57  ;;  %v9042_v11 = vcombine.high %v778_v44, %v782_v31  ;;  %v798_v22 = vld [vmem:[#allocation10 + $0x6b8] sm:$0xff] }
 0x1d7   :  { %2690 = vmatprep.subr.bf16.mxu0 %v9000_v39  ;;  %2916 = vmatprep.subr.bf16.mxu1 %v9002_v45  ;;  %v9033_v39 = vcombine.low %v770_v35, %v774_v14  ;;  %v9040_v45 = vcombine.high %v777_v47, %v781_v62  ;;  %v9047_v0 = vcombine.low %v785_v29, %v789_v51  ;;  %v814_v54 = vld [vmem:[#allocation10 + $0x738] sm:$0xff] }
 0x1d8   :  { %v9057_v15 = vcombine.low %v794_v33, %v798_v22 }
 0x1d9   :  { %2691 = vmatpush1.bf16.msra.mxu0 %v8999_v28  ;;  %v790_v28 = vld [vmem:[#allocation10 + $0x678] sm:$0xff] }
 0x1da   :  { %2917 = vmatpush1.bf16.msra.mxu1 %v9001_v20  ;;  %2692 = vmatprep.subr.bf16.mxu0 %v9008_v46  ;;  %v9041_v20 = vcombine.low %v778_v44, %v782_v31  ;;  %v9048_v46 = vcombine.high %v785_v29, %v789_v51  ;;  %v825_v31 = vld [vmem:[#allocation10 + $0x790] sm:$0xff] }
 0x1db   :  { %2918 = vmatprep.subr.bf16.mxu1 %v9010_v52  ;;  %v793_v52 = vld [vmem:[#allocation10 + $0x690] sm:$0xff] }
 0x1dc   :  { %2624 = vmatmul.mubr.bf16.gmra.mrb[40].mxu0 %v11870_v41  ;;  %2850 = vmatmul.mubr.bf16.gmra.mrb[40].mxu1 %v11870_v41  ;;  %v9023_v41 = vcombine.low %v761_v25, %v765_v32  ;;  %v805_v25 = vld [vmem:[#allocation10 + $0x6f0] sm:$0xff]  ;;  %v802_v32 = vld [vmem:[#allocation10 + $0x6d8] sm:$0xff] }
 0x1dd   :  { %2633 = vmatprep.mubr.bf16.mxu0 %v11899_v8  ;;  %2693 = vmatpush1.bf16.msra.mxu0 %v9007_v40  ;;  %v9049_v40 = vcombine.low %v786_v34, %v790_v28 }
 0x1de   :  { %2859 = vmatprep.mubr.bf16.mxu1 %v11899_v8  ;;  %2919 = vmatpush1.bf16.msra.mxu1 %v9009_v10  ;;  %v9034_v8 = vcombine.high %v770_v35, %v774_v14  ;;  %v9056_v10 = vcombine.high %v793_v52, %v797_v17  ;;  %v9065_v35 = vcombine.low %v802_v32, %v806_v53 }
 0x1df   :  { %2694 = vmatprep.subr.bf16.mxu0 %v9016_v27  ;;  %2920 = vmatprep.subr.bf16.mxu1 %v9018_v43  ;;  %v9058_v27 = vcombine.high %v794_v33, %v798_v22  ;;  %v801_v43 = vld [vmem:[#allocation10 + $0x6d0] sm:$0xff] }
 0x1e0   :  { %v9063_v57 = vcombine.low %v801_v43, %v805_v25 }
 0x1e1   :  { %2695 = vmatpush1.bf16.msra.mxu0 %v9015_v24  ;;  %v9064_v24 = vcombine.high %v801_v43, %v805_v25 }
 0x1e2   :  { %2921 = vmatpush1.bf16.msra.mxu1 %v9017_v12  ;;  %2696 = vmatprep.subr.bf16.mxu0 %v9024_v5  ;;  %v809_v12 = vld [vmem:[#allocation10 + $0x710] sm:$0xff] }
 0x1e3   :  { %2922 = vmatprep.subr.bf16.mxu1 %v9026_v21  ;;  %v813_v5 = vld [vmem:[#allocation10 + $0x730] sm:$0xff]  ;;  %v810_v21 = vld [vmem:[#allocation10 + $0x718] sm:$0xff] }
 0x1e4   :  { %2634 = vmatmul.mubr.bf16.gmra.mrb[44].mxu0 %v11973_v18  ;;  %2860 = vmatmul.mubr.bf16.gmra.mrb[44].mxu1 %v11973_v18  ;;  %v9039_v18 = vcombine.low %v777_v47, %v781_v62  ;;  %v9072_v14 = vcombine.high %v809_v12, %v813_v5  ;;  %v822_v47 = vld [vmem:[#allocation10 + $0x778] sm:$0xff]  ;;  %v9073_v62 = vcombine.low %v810_v21, %v814_v54 }
 0x1e5   :  { %2643 = vmatprep.mubr.bf16.mxu0 %v11979_v9  ;;  %2697 = vmatpush1.bf16.msra.mxu0 %v9023_v41  ;;  %v9074_v41 = vcombine.high %v810_v21, %v814_v54 }
 0x1e6   :  { %2869 = vmatprep.mubr.bf16.mxu1 %v11979_v9  ;;  %2923 = vmatpush1.bf16.msra.mxu1 %v9025_v1  ;;  %v9050_v9 = vcombine.high %v786_v34, %v790_v28  ;;  %v817_v1 = vld [vmem:[#allocation10 + $0x750] sm:$0xff] }
 0x1e7   :  { %2698 = vmatprep.subr.bf16.mxu0 %v9032_v16  ;;  %2924 = vmatprep.subr.bf16.mxu1 %v9034_v8  ;;  %v821_v16 = vld [vmem:[#allocation10 + $0x770] sm:$0xff]  ;;  %v818_v8 = vld [vmem:[#allocation10 + $0x758] sm:$0xff] }
 0x1e8   :  { %v9080_v44 = vcombine.high %v817_v1, %v821_v16  ;;  %v9081_v29 = vcombine.low %v818_v8, %v822_v47  ;;  %v833_v28 = vld [vmem:[#allocation10 + $0x7d0] sm:$0xff] }
 0x1e9   :  { %2699 = vmatpush1.bf16.msra.mxu0 %v9031_v58  ;;  %v829_v58 = vld [vmem:[#allocation10 + $0x7b0] sm:$0xff] }
 0x1ea   :  { %2925 = vmatpush1.bf16.msra.mxu1 %v9033_v39  ;;  %2700 = vmatprep.subr.bf16.mxu0 %v9040_v45  ;;  %v826_v39 = vld [vmem:[#allocation10 + $0x798] sm:$0xff]  ;;  %v9088_v51 = vcombine.high %v825_v31, %v829_v58 }
 0x1eb   :  { %2926 = vmatprep.subr.bf16.mxu1 %v9042_v11  ;;  %v830_v45 = vld [vmem:[#allocation10 + $0x7b8] sm:$0xff]  ;;  %v9079_v11 = vcombine.low %v817_v1, %v821_v16 }
 0x1ec   :  { %2644 = vmatmul.mubr.bf16.gmra.mrb[48].mxu0 %v11981_v55  ;;  %2870 = vmatmul.mubr.bf16.gmra.mrb[48].mxu1 %v11981_v55  ;;  %v9055_v55 = vcombine.low %v793_v52, %v797_v17  ;;  %v9090_v34 = vcombine.high %v826_v39, %v830_v45 }
 0x1ed   :  { %2653 = vmatprep.mubr.bf16.mxu0 %v11994_v26  ;;  %2701 = vmatpush1.bf16.msra.mxu0 %v9039_v18  ;;  %v837_v18 = vld [vmem:[#allocation10 + $0x7f0] sm:$0xff] }
 0x1ee   :  { %2879 = vmatprep.mubr.bf16.mxu1 %v11994_v26  ;;  %2927 = vmatpush1.bf16.msra.mxu1 %v9041_v20  ;;  %v9066_v26 = vcombine.high %v802_v32, %v806_v53  ;;  %v834_v20 = vld [vmem:[#allocation10 + $0x7d8] sm:$0xff]  ;;  %v9096_v52 = vcombine.high %v833_v28, %v837_v18  ;;  %v9095_v17 = vcombine.low %v833_v28, %v837_v18 }
 0x1ef   :  { %2702 = vmatprep.subr.bf16.mxu0 %v9048_v46  ;;  %2928 = vmatprep.subr.bf16.mxu1 %v9050_v9  ;;  %v838_v46 = vld [vmem:[#allocation10 + $0x7f8] sm:$0xff]  ;;  %v9089_v9 = vcombine.low %v826_v39, %v830_v45 }
 0x1f0   :  { %v9097_v33 = vcombine.low %v834_v20, %v838_v46 }
 0x1f1   :  { %2703 = vmatpush1.bf16.msra.mxu0 %v9047_v0 }
 0x1f2   :  { %2929 = vmatpush1.bf16.msra.mxu1 %v9049_v40  ;;  %2704 = vmatprep.subr.bf16.mxu0 %v9056_v10 }
 0x1f3   :  { %2930 = vmatprep.subr.bf16.mxu1 %v9058_v27 }
 0x1f4   :  { %2654 = vmatmul.mubr.bf16.gmra.mrb[52].mxu0 %v11996_v19  ;;  %2880 = vmatmul.mubr.bf16.gmra.mrb[52].mxu1 %v11996_v19  ;;  %v9071_v19 = vcombine.low %v809_v12, %v813_v5 }
 0x1f5   :  { %2663 = vmatprep.mubr.bf16.mxu0 %v12138_v7  ;;  %2705 = vmatpush1.bf16.msra.mxu0 %v9055_v55 }
 0x1f6   :  { %2889 = vmatprep.mubr.bf16.mxu1 %v12138_v7  ;;  %2931 = vmatpush1.bf16.msra.mxu1 %v9057_v15  ;;  %v9082_v7 = vcombine.high %v818_v8, %v822_v47 }
 0x1f7   :  { %2706 = vmatprep.subr.bf16.mxu0 %v9064_v24  ;;  %2932 = vmatprep.subr.bf16.mxu1 %v9066_v26 }
 0x1f9   :  { %2707 = vmatpush1.bf16.msra.mxu0 %v9063_v57 }
 0x1fa   :  { %2933 = vmatpush1.bf16.msra.mxu1 %v9065_v35  ;;  %2708 = vmatprep.subr.bf16.mxu0 %v9072_v14 }
 0x1fb   :  { %2934 = vmatprep.subr.bf16.mxu1 %v9074_v41 }
 0x1fc   :  { %2664 = vmatmul.mubr.bf16.gmra.mrb[56].mxu0 %v12175_v61  ;;  %2890 = vmatmul.mubr.bf16.gmra.mrb[56].mxu1 %v12175_v61  ;;  %v9087_v61 = vcombine.low %v825_v31, %v829_v58 }
 0x1fd   :  { %2673 = vmatprep.mubr.bf16.mxu0 %v12184_v6  ;;  %2709 = vmatpush1.bf16.msra.mxu0 %v9071_v19 }
 0x1fe   :  { %2899 = vmatprep.mubr.bf16.mxu1 %v12184_v6  ;;  %2935 = vmatpush1.bf16.msra.mxu1 %v9073_v62  ;;  %v9098_v6 = vcombine.high %v834_v20, %v838_v46 }
 0x1ff   :  { %2710 = vmatprep.subr.bf16.mxu0 %v9080_v44  ;;  %2936 = vmatprep.subr.bf16.mxu1 %v9082_v7 }
 0x201   :  { %2711 = vmatpush1.bf16.msra.mxu0 %v9079_v11 }
 0x202   :  { %2937 = vmatpush1.bf16.msra.mxu1 %v9081_v29  ;;  %2712 = vmatprep.subr.bf16.mxu0 %v9088_v51 }
 0x203   :  { %2938 = vmatprep.subr.bf16.mxu1 %v9090_v34 }
 0x204   :  { %2674 = vmatmul.mubr.bf16.gmra.mrb[60].mxu0 %v12192_v63  ;;  %2900 = vmatmul.mubr.bf16.gmra.mrb[60].mxu1 %v12192_v63 }
 0x205   :  { %2716 = vmatprep.mubr.bf16.mxu0 %v15021_v23  ;;  %2713 = vmatpush1.bf16.msra.mxu0 %v9087_v61 }
 0x206   :  { %2942 = vmatprep.mubr.bf16.mxu1 %v15021_v23  ;;  %2939 = vmatpush1.bf16.msra.mxu1 %v9089_v9 }
 0x207   :  { %2714 = vmatprep.subr.bf16.mxu0 %v9096_v52  ;;  %2940 = vmatprep.subr.bf16.mxu1 %v9098_v6 }
 0x209   :  { %2715 = vmatpush1.bf16.msra.mxu0 %v9095_v17 }
 0x20a   :  { %2941 = vmatpush1.bf16.msra.mxu1 %v9097_v33 }
 0x20c   :  { %2717 = vmatmul.mubr.bf16.vlgmr.msra.gmra.mrb[32].mxu0 %v11921_v4 }
 0x20d   :  { %2943 = vmatmul.mubr.bf16.vlgmr.msra.gmra.mrb[32].mxu1 %v11921_v4  ;;  %2726 = vmatprep.mubr.bf16.mxu0 %v11943_v13 }
 0x20e   :  { %2952 = vmatprep.mubr.bf16.mxu1 %v11943_v13 }
 0x214   :  { %2727 = vmatmul.mubr.bf16.gmra.mrb[36].mxu0 %v11984_v2 }
 0x215   :  { %2953 = vmatmul.mubr.bf16.gmra.mrb[36].mxu1 %v11984_v2  ;;  %2736 = vmatprep.mubr.bf16.mxu0 %v12047_v49 }
 0x216   :  { %2962 = vmatprep.mubr.bf16.mxu1 %v12047_v49 }
 0x21c   :  { %2737 = vmatmul.mubr.bf16.gmra.mrb[40].mxu0 %v12049_v38 }
 0x21d   :  { %2963 = vmatmul.mubr.bf16.gmra.mrb[40].mxu1 %v12049_v38  ;;  %2746 = vmatprep.mubr.bf16.mxu0 %v12071_v50 }
 0x21e   :  { %2972 = vmatprep.mubr.bf16.mxu1 %v12071_v50 }
 0x224   :  { %2747 = vmatmul.mubr.bf16.gmra.mrb[44].mxu0 %v12075_v37 }
 0x225   :  { %2973 = vmatmul.mubr.bf16.gmra.mrb[44].mxu1 %v12075_v37  ;;  %2756 = vmatprep.mubr.bf16.mxu0 %v12084_v59 }
 0x226   :  { %2982 = vmatprep.mubr.bf16.mxu1 %v12084_v59 }
 0x22c   :  { %2757 = vmatmul.mubr.bf16.gmra.mrb[48].mxu0 %v12094_v36 }
 0x22d   :  { %2983 = vmatmul.mubr.bf16.gmra.mrb[48].mxu1 %v12094_v36  ;;  %2766 = vmatprep.mubr.bf16.mxu0 %v12112_v42 }
 0x22e   :  { %2992 = vmatprep.mubr.bf16.mxu1 %v12112_v42 }
 0x234   :  { %2767 = vmatmul.mubr.bf16.gmra.mrb[52].mxu0 %v12123_v3 }
 0x235   :  { %2993 = vmatmul.mubr.bf16.gmra.mrb[52].mxu1 %v12123_v3  ;;  %2776 = vmatprep.mubr.bf16.mxu0 %v12141_v56 }
 0x236   :  { %3002 = vmatprep.mubr.bf16.mxu1 %v12141_v56 }
 0x23c   :  { %2777 = vmatmul.mubr.bf16.gmra.mrb[56].mxu0 %v12146_v60 }
 0x23d   :  { %3003 = vmatmul.mubr.bf16.gmra.mrb[56].mxu1 %v12146_v60  ;;  %2786 = vmatprep.mubr.bf16.mxu0 %v12165_v30 }
 0x23e   :  { %3012 = vmatprep.mubr.bf16.mxu1 %v12165_v30 }
 0x244   :  { %2787 = vmatmul.mubr.bf16.gmra.mrb[60].mxu0 %v12179_v48 }
 0x245   :  { %3013 = vmatmul.mubr.bf16.gmra.mrb[60].mxu1 %v12179_v48 }
 0x25e   :  { %v12292_v4 = vpop.f32.mrb[0].mxu0  ;;  %v12294_v13 = vpop.f32.mrb[0].mxu1 }
 0x25f   :  { %15025 = vst [vmem:[#allocation27_spill] sm:$0xff] %v12294_v13  ;;  %v12296_v2 = vpop.f32.mrb[1].mxu0  ;;  %v12298_v49 = vpop.f32.mrb[1].mxu1 }
 0x260   :  { %15026 = vst [vmem:[#allocation28_spill] sm:$0xff] %v12298_v49  ;;  %v12300_v38 = vpop.f32.mrb[2].mxu0  ;;  %v12302_v50 = vpop.f32.mrb[2].mxu1 }
 0x261   :  { %15027 = vst [vmem:[#allocation29_spill] sm:$0xff] %v12302_v50  ;;  %3300 = vrot.lane.b32.xlu1 %v12300_v38, %s11380_s8  ;;  %v12306_v37 = vpop.f32.mrb[3].mxu0  ;;  %v12308_v59 = vpop.f32.mrb[3].mxu1 }
 0x262   :  { %15028 = vst [vmem:[#allocation30_spill] sm:$0xff] %v12308_v59 }
 0x266   :  { %v12310_v36 = vpop.f32.mrb[4].mxu0  ;;  %v12312_v42 = vpop.f32.mrb[4].mxu1 }
 0x267   :  { %15029 = vst [vmem:[#allocation31_spill] sm:$0xff] %v12312_v42  ;;  %v12314_v3 = vpop.f32.mrb[5].mxu0  ;;  %v12316_v56 = vpop.f32.mrb[5].mxu1 }
 0x268   :  { %15030 = vst [vmem:[#allocation32_spill] sm:$0xff] %v12314_v3  ;;  %15031 = vst [vmem:[#allocation33_spill] sm:$0xff] %v12316_v56  ;;  %v12318_v60 = vpop.f32.mrb[6].mxu0  ;;  %v12320_v30 = vpop.f32.mrb[6].mxu1 }
 0x269   :  { %15032 = vst [vmem:[#allocation34_spill] sm:$0xff] %v12320_v30  ;;  %v12322_v48 = vpop.f32.mrb[7].mxu0  ;;  %v12324_v63 = vpop.f32.mrb[7].mxu1 }
 0x26a   :  { %15033 = vst [vmem:[#allocation35_spill] sm:$0xff] %v12322_v48  ;;  %15034 = vst [vmem:[#allocation36_spill] sm:$0xff] %v12324_v63 }
 0x26e   :  { %v12326_v23 = vpop.f32.mrb[8].mxu0  ;;  %v12328_v22 = vpop.f32.mrb[8].mxu1 }
 0x26f   :  { %15035 = vst [vmem:[#allocation37_spill] sm:$0xff] %v12328_v22  ;;  %v12330_v0 = vpop.f32.mrb[9].mxu0  ;;  %v12332_v40 = vpop.f32.mrb[9].mxu1 }
 0x270   :  { %15036 = vst [vmem:[#allocation38_spill] sm:$0xff] %v12330_v0  ;;  %15037 = vst [vmem:[#allocation42_spill] sm:$0xff] %v12332_v40  ;;  %v12334_v10 = vpop.f32.mrb[10].mxu0  ;;  %v12336_v27 = vpop.f32.mrb[10].mxu1 }
 0x271   :  { %15038 = vst [vmem:[#allocation39_spill] sm:$0xff] %v12334_v10  ;;  %15039 = vst [vmem:[#allocation40_spill] sm:$0xff] %v12336_v27  ;;  %v12338_v43 = vpop.f32.mrb[11].mxu0  ;;  %v12340_v25 = vpop.f32.mrb[11].mxu1 }
 0x272   :  { %15040 = vst [vmem:[#allocation41_spill] sm:$0xff] %v12338_v43  ;;  %15041 = vst [vmem:[#allocation43_spill] sm:$0xff] %v12340_v25 }
 0x276   :  { %v12342_v32 = vpop.f32.mrb[12].mxu0  ;;  %v12344_v53 = vpop.f32.mrb[12].mxu1 }
 0x277   :  { %15042 = vst [vmem:[#allocation44_spill] sm:$0xff] %v12342_v32  ;;  %15043 = vst [vmem:[#allocation45_spill] sm:$0xff] %v12344_v53  ;;  %v12346_v55 = vpop.f32.mrb[13].mxu0  ;;  %v12348_v15 = vpop.f32.mrb[13].mxu1 }
 0x278   :  { %15044 = vst [vmem:[#allocation46_spill] sm:$0xff] %v12346_v55  ;;  %15045 = vst [vmem:[#allocation47_spill] sm:$0xff] %v12348_v15  ;;  %v12350_v24 = vpop.f32.mrb[14].mxu0  ;;  %v12352_v26 = vpop.f32.mrb[14].mxu1 }
 0x279   :  { %15046 = vst [vmem:[#allocation48_spill] sm:$0xff] %v12350_v24  ;;  %15047 = vst [vmem:[#allocation49_spill] sm:$0xff] %v12352_v26  ;;  %v12354_v12 = vpop.f32.mrb[15].mxu0  ;;  %v12356_v5 = vpop.f32.mrb[15].mxu1 }
 0x27a   :  { %15048 = vst [vmem:[#allocation50_spill] sm:$0xff] %v12354_v12  ;;  %15049 = vst [vmem:[#allocation51_spill] sm:$0xff] %v12356_v5 }
 0x27e   :  { %v12358_v21 = vpop.f32.mrb[16].mxu0  ;;  %v12360_v54 = vpop.f32.mrb[16].mxu1 }
 0x27f   :  { %15050 = vst [vmem:[#allocation52_spill] sm:$0xff] %v12358_v21  ;;  %15051 = vst [vmem:[#allocation53_spill] sm:$0xff] %v12360_v54  ;;  %v12362_v57 = vpop.f32.mrb[17].mxu0  ;;  %v12364_v35 = vpop.f32.mrb[17].mxu1 }
 0x280   :  { %15052 = vst [vmem:[#allocation54_spill] sm:$0xff] %v12362_v57  ;;  %15053 = vst [vmem:[#allocation55_spill] sm:$0xff] %v12364_v35  ;;  %v12366_v14 = vpop.f32.mrb[18].mxu0  ;;  %v12368_v41 = vpop.f32.mrb[18].mxu1 }
 0x281   :  { %15054 = vst [vmem:[#allocation56_spill] sm:$0xff] %v12366_v14  ;;  %15055 = vst [vmem:[#allocation57_spill] sm:$0xff] %v12368_v41  ;;  %v12370_v1 = vpop.f32.mrb[19].mxu0  ;;  %v12372_v16 = vpop.f32.mrb[19].mxu1 }
 0x282   :  { %15056 = vst [vmem:[#allocation58_spill] sm:$0xff] %v12370_v1  ;;  %15057 = vst [vmem:[#allocation59_spill] sm:$0xff] %v12372_v16 }
 0x286   :  { %v12374_v8 = vpop.f32.mrb[20].mxu0  ;;  %v12376_v47 = vpop.f32.mrb[20].mxu1 }
 0x287   :  { %15058 = vst [vmem:[#allocation60_spill] sm:$0xff] %v12376_v47  ;;  %v12378_v19 = vpop.f32.mrb[21].mxu0  ;;  %v12380_v62 = vpop.f32.mrb[21].mxu1 }
 0x288   :  { %15059 = vst [vmem:[#allocation61_spill] sm:$0xff] %v12378_v19  ;;  %15060 = vst [vmem:[#allocation62_spill] sm:$0xff] %v12380_v62  ;;  %v12382_v44 = vpop.f32.mrb[22].mxu0  ;;  %v12384_v7 = vpop.f32.mrb[22].mxu1 }
 0x289   :  { %15061 = vst [vmem:[#allocation63_spill] sm:$0xff] %v12384_v7  ;;  %v12386_v31 = vpop.f32.mrb[23].mxu0  ;;  %v12388_v58 = vpop.f32.mrb[23].mxu1 }
 0x28a   :  { %15062 = vst [vmem:[#allocation64_spill] sm:$0xff] %v12386_v31  ;;  %15063 = vst [vmem:[#allocation65_spill] sm:$0xff] %v12388_v58 }
 0x28e   :  { %v12390_v39 = vpop.f32.mrb[24].mxu0  ;;  %v12392_v45 = vpop.f32.mrb[24].mxu1 }
 0x28f   :  { %15064 = vst [vmem:[#allocation66_spill] sm:$0xff] %v12392_v45  ;;  %v12394_v11 = vpop.f32.mrb[25].mxu0  ;;  %v12396_v29 = vpop.f32.mrb[25].mxu1 }
 0x290   :  { %15065 = vst [vmem:[#allocation67_spill] sm:$0xff] %v12394_v11  ;;  %15066 = vst [vmem:[#allocation68_spill] sm:$0xff] %v12396_v29  ;;  %v12398_v51 = vpop.f32.mrb[26].mxu0  ;;  %v12400_v34 = vpop.f32.mrb[26].mxu1 }
 0x291   :  { %15067 = vst [vmem:[#allocation69_spill] sm:$0xff] %v12400_v34  ;;  %v12402_v28 = vpop.f32.mrb[27].mxu0  ;;  %v12404_v18 = vpop.f32.mrb[27].mxu1 }
 0x292   :  { %15068 = vst [vmem:[#allocation70_spill] sm:$0xff] %v12402_v28  ;;  %15069 = vst [vmem:[#allocation71_spill] sm:$0xff] %v12404_v18 }
 0x296   :  { %v12406_v20 = vpop.f32.mrb[28].mxu0  ;;  %v12408_v46 = vpop.f32.mrb[28].mxu1 }
 0x297   :  { %15070 = vst [vmem:[#allocation72_spill] sm:$0xff] %v12408_v46  ;;  %v12410_v61 = vpop.f32.mrb[29].mxu0  ;;  %v12412_v9 = vpop.f32.mrb[29].mxu1 }
 0x298   :  { %15071 = vst [vmem:[#allocation73_spill] sm:$0xff] %v12410_v61  ;;  %15072 = vst [vmem:[#allocation74_spill] sm:$0xff] %v12412_v9  ;;  %v12414_v52 = vpop.f32.mrb[30].mxu0  ;;  %v12416_v6 = vpop.f32.mrb[30].mxu1 }
 0x299   :  { %15073 = vst [vmem:[#allocation75_spill] sm:$0xff] %v12416_v6  ;;  %v12418_v17 = vpop.f32.mrb[31].mxu0  ;;  %v12420_v33 = vpop.f32.mrb[31].mxu1 }
 0x29a   :  { %15074 = vst [vmem:[#allocation76_spill] sm:$0xff] %v12418_v17  ;;  %15075 = vst [vmem:[#allocation77_spill] sm:$0xff] %v12420_v33 }
 0x2df   :  { %v12422_v58 = vpop.f32.mrb[32].mxu0 }
 0x2e0   :  { %v2944_v29 = vpop.f32.mrb[32].mxu1  ;;  %3087 = vrot.lane.b32.xlu0 %v12422_v58, %s11380_s8  ;;  %v12426_v18 = vpop.f32.mrb[33].mxu0 }
 0x2e1   :  { %v2946_v16 = vpop.f32.mrb[33].mxu1  ;;  %v12428_v62 = vpop.f32.mrb[34].mxu0 }
 0x2e2   :  { %v2948_v9 = vpop.f32.mrb[34].mxu1  ;;  %3089 = vrot.lane.b32.xlu1 %v12428_v62, %s11380_s8  ;;  %v12432_v5 = vpop.f32.mrb[35].mxu0 }
 0x2e3   :  { %v3442_v35 = vpack.c.bf16 %v2948_v9, %v2944_v29  ;;  %v2950_v25 = vpop.f32.mrb[35].mxu1 }
 0x2e4   :  { %v12434_v33 = vpack.c.bf16 %v2950_v25, %v2946_v16  ;;  %3298 = vrot.lane.b32.xlu0 %v12292_v4, %s11380_s8 }
 0x2e5   :  { %9595 = vmatprep.subr.bf16.mxu1 %v3442_v35 }
 0x2e6   :  { %15076 = vst [vmem:[#allocation78_spill] sm:$0xff] %v12434_v33  ;;  %9596 = vmatpush3.bf16.msra.mxu1 %v3442_v35  ;;  %3121 = vrot.lane.b32.xlu1 %v12432_v5, %s11380_s8 }
 0x2e7   :  { %v12440_v15 = vpop.f32.mrb[36].mxu0 }
 0x2e8   :  { %v2954_v63 = vpop.f32.mrb[36].mxu1  ;;  %3302 = vrot.lane.b32.xlu0 %v12310_v36, %s11380_s8  ;;  %v12444_v40 = vpop.f32.mrb[37].mxu0 }
 0x2e9   :  { %15077 = vst [vmem:[#allocation79_spill] sm:$0xff] %v12444_v40  ;;  %v2956_v29 = vpop.f32.mrb[37].mxu1  ;;  %v12446_v9 = vpop.f32.mrb[38].mxu0 }
 0x2ea   :  { %v2958_v25 = vpop.f32.mrb[38].mxu1  ;;  %3091 = vrot.lane.b32.xlu1 %v12440_v15, %s11380_s8  ;;  %v12450_v16 = vpop.f32.mrb[39].mxu0 }
 0x2eb   :  { %15078 = vst [vmem:[#allocation80_spill] sm:$0xff] %v12450_v16  ;;  %v3443_v35 = vpack.c.bf16 %v2958_v25, %v2954_v63  ;;  %v2960_v59 = vpop.f32.mrb[39].mxu1 }
 0x2ec   :  { %v12452_v56 = vpack.c.bf16 %v2960_v59, %v2956_v29  ;;  %3119 = vrot.lane.b32.xlu0 %v12426_v18, %s11380_s8 }
 0x2ed   :  { %9597 = vmatprep.subr.bf16.mxu1 %v3443_v35 }
 0x2ee   :  { %15079 = vst [vmem:[#allocation81_spill] sm:$0xff] %v12452_v56  ;;  %9598 = vmatpush3.bf16.msra.mxu1 %v3443_v35  ;;  %3093 = vrot.lane.b32.xlu1 %v12446_v9, %s11380_s8 }
 0x2ef   :  { %v12458_v6 = vpop.f32.mrb[40].mxu0 }
 0x2f0   :  { %v2964_v49 = vpop.f32.mrb[40].mxu1  ;;  %3095 = vrot.lane.b32.xlu0 %v12458_v6, %s11380_s8  ;;  %v12462_v34 = vpop.f32.mrb[41].mxu0 }
 0x2f1   :  { %15080 = vst [vmem:[#allocation82_spill] sm:$0xff] %v12462_v34  ;;  %v2966_v63 = vpop.f32.mrb[41].mxu1  ;;  %v12464_v25 = vpop.f32.mrb[42].mxu0 }
 0x2f2   :  { %v2968_v59 = vpop.f32.mrb[42].mxu1  ;;  %3304 = vrot.lane.b32.xlu1 %v12318_v60, %s11380_s8  ;;  %v12468_v29 = vpop.f32.mrb[43].mxu0 }
 0x2f3   :  { %v3444_v35 = vpack.c.bf16 %v2968_v59, %v2964_v49  ;;  %v2970_v56 = vpop.f32.mrb[43].mxu1 }
 0x2f4   :  { %v12470_v46 = vpack.c.bf16 %v2970_v56, %v2966_v63  ;;  %3306 = vrot.lane.b32.xlu0 %v12326_v23, %s11380_s8 }
 0x2f5   :  { %9599 = vmatprep.subr.bf16.mxu1 %v3444_v35 }
 0x2f6   :  { %15081 = vst [vmem:[#allocation83_spill] sm:$0xff] %v12470_v46  ;;  %9600 = vmatpush3.bf16.msra.mxu1 %v3444_v35  ;;  %3097 = vrot.lane.b32.xlu1 %v12464_v25, %s11380_s8 }
 0x2f7   :  { %v12476_v7 = vpop.f32.mrb[44].mxu0 }
 0x2f8   :  { %15082 = vst [vmem:[#allocation84_spill] sm:$0xff] %v12476_v7  ;;  %v2974_v45 = vpop.f32.mrb[44].mxu1  ;;  %3099 = vrot.lane.b32.xlu0 %v12476_v7, %s11380_s8  ;;  %v12480_v41 = vpop.f32.mrb[45].mxu0 }
 0x2f9   :  { %v2976_v49 = vpop.f32.mrb[45].mxu1  ;;  %v12482_v59 = vpop.f32.mrb[46].mxu0 }
 0x2fa   :  { %15083 = vst [vmem:[#allocation85_spill] sm:$0xff] %v12482_v59  ;;  %v2978_v56 = vpop.f32.mrb[46].mxu1  ;;  %3308 = vrot.lane.b32.xlu1 %v12334_v10, %s11380_s8  ;;  %v12486_v63 = vpop.f32.mrb[47].mxu0 }
 0x2fb   :  { %v3445_v35 = vpack.c.bf16 %v2978_v56, %v2974_v45  ;;  %v2980_v46 = vpop.f32.mrb[47].mxu1 }
 0x2fc   :  { %v12488_v47 = vpack.c.bf16 %v2980_v46, %v2976_v49  ;;  %3123 = vrot.lane.b32.xlu0 %v12444_v40, %s11380_s8 }
 0x2fd   :  { %9601 = vmatprep.subr.bf16.mxu1 %v3445_v35 }
 0x2fe   :  { %15084 = vst [vmem:[#allocation86_spill] sm:$0xff] %v12488_v47  ;;  %9602 = vmatpush3.bf16.msra.mxu1 %v3445_v35  ;;  %3101 = vrot.lane.b32.xlu1 %v12482_v59, %s11380_s8 }
 0x2ff   :  { %v12494_v7 = vpop.f32.mrb[48].mxu0 }
 0x300   :  { %15085 = vst [vmem:[#allocation87_spill] sm:$0xff] %v12494_v7  ;;  %v2984_v26 = vpop.f32.mrb[48].mxu1  ;;  %3103 = vrot.lane.b32.xlu0 %v12494_v7, %s11380_s8  ;;  %v12498_v10 = vpop.f32.mrb[49].mxu0 }
 0x301   :  { %v2986_v45 = vpop.f32.mrb[49].mxu1  ;;  %v12500_v56 = vpop.f32.mrb[50].mxu0 }
 0x302   :  { %15086 = vst [vmem:[#allocation88_spill] sm:$0xff] %v12500_v56  ;;  %v2988_v46 = vpop.f32.mrb[50].mxu1  ;;  %3125 = vrot.lane.b32.xlu1 %v12450_v16, %s11380_s8  ;;  %v12504_v49 = vpop.f32.mrb[51].mxu0 }
 0x303   :  { %15087 = vst [vmem:[#allocation89_spill] sm:$0xff] %v12504_v49  ;;  %v3446_v35 = vpack.c.bf16 %v2988_v46, %v2984_v26  ;;  %v2990_v47 = vpop.f32.mrb[51].mxu1 }
 0x304   :  { %v12506_v40 = vpack.c.bf16 %v2990_v47, %v2986_v45  ;;  %3310 = vrot.lane.b32.xlu0 %v12342_v32, %s11380_s8 }
 0x305   :  { %9603 = vmatprep.subr.bf16.mxu1 %v3446_v35 }
 0x306   :  { %15088 = vst [vmem:[#allocation90_spill] sm:$0xff] %v12506_v40  ;;  %9604 = vmatpush3.bf16.msra.mxu1 %v3446_v35  ;;  %3105 = vrot.lane.b32.xlu1 %v12500_v56, %s11380_s8 }
 0x307   :  { %v12512_v7 = vpop.f32.mrb[52].mxu0 }
 0x308   :  { %15089 = vst [vmem:[#allocation91_spill] sm:$0xff] %v12512_v7  ;;  %v2994_v59 = vpop.f32.mrb[52].mxu1  ;;  %3107 = vrot.lane.b32.xlu0 %v12512_v7, %s11380_s8  ;;  %v12516_v16 = vpop.f32.mrb[53].mxu0 }
 0x309   :  { %15090 = vst [vmem:[#allocation92_spill] sm:$0xff] %v12516_v16  ;;  %v2996_v26 = vpop.f32.mrb[53].mxu1  ;;  %v12518_v46 = vpop.f32.mrb[54].mxu0 }
 0x30a   :  { %15091 = vst [vmem:[#allocation93_spill] sm:$0xff] %v12518_v46  ;;  %v2998_v47 = vpop.f32.mrb[54].mxu1  ;;  %3312 = vrot.lane.b32.xlu1 %v12350_v24, %s11380_s8  ;;  %v12522_v45 = vpop.f32.mrb[55].mxu0 }
 0x30b   :  { %15092 = vst [vmem:[#allocation94_spill] sm:$0xff] %v12522_v45  ;;  %v3447_v35 = vpack.c.bf16 %v2998_v47, %v2994_v59  ;;  %v3000_v40 = vpop.f32.mrb[55].mxu1 }
 0x30c   :  { %v12524_v32 = vpack.c.bf16 %v3000_v40, %v2996_v26  ;;  %3314 = vrot.lane.b32.xlu0 %v12358_v21, %s11380_s8 }
 0x30d   :  { %9605 = vmatprep.subr.bf16.mxu1 %v3447_v35 }
 0x30e   :  { %15093 = vst [vmem:[#allocation95_spill] sm:$0xff] %v12524_v32  ;;  %9606 = vmatpush3.bf16.msra.mxu1 %v3447_v35  ;;  %3109 = vrot.lane.b32.xlu1 %v12518_v46, %s11380_s8 }
 0x30f   :  { %v12530_v7 = vpop.f32.mrb[56].mxu0 }
 0x310   :  { %15094 = vst [vmem:[#allocation96_spill] sm:$0xff] %v12530_v7  ;;  %v3004_v56 = vpop.f32.mrb[56].mxu1  ;;  %3111 = vrot.lane.b32.xlu0 %v12530_v7, %s11380_s8  ;;  %v12534_v24 = vpop.f32.mrb[57].mxu0 }
 0x311   :  { %15095 = vst [vmem:[#allocation97_spill] sm:$0xff] %v12534_v24  ;;  %v3006_v59 = vpop.f32.mrb[57].mxu1  ;;  %v12536_v47 = vpop.f32.mrb[58].mxu0 }
 0x312   :  { %v3008_v40 = vpop.f32.mrb[58].mxu1  ;;  %3316 = vrot.lane.b32.xlu1 %v12366_v14, %s11380_s8  ;;  %v12540_v26 = vpop.f32.mrb[59].mxu0 }
 0x313   :  { %15096 = vst [vmem:[#allocation98_spill] sm:$0xff] %v12540_v26  ;;  %v3448_v35 = vpack.c.bf16 %v3008_v40, %v3004_v56  ;;  %v3010_v32 = vpop.f32.mrb[59].mxu1 }
 0x314   :  { %v12542_v21 = vpack.c.bf16 %v3010_v32, %v3006_v59  ;;  %3127 = vrot.lane.b32.xlu0 %v12462_v34, %s11380_s8 }
 0x315   :  { %9607 = vmatprep.subr.bf16.mxu1 %v3448_v35 }
 0x316   :  { %15097 = vst [vmem:[#allocation99_spill] sm:$0xff] %v12542_v21  ;;  %9608 = vmatpush3.bf16.msra.mxu1 %v3448_v35  ;;  %3113 = vrot.lane.b32.xlu1 %v12536_v47, %s11380_s8 }
 0x317   :  { %v12548_v7 = vpop.f32.mrb[60].mxu0 }
 0x318   :  { %v3014_v46 = vpop.f32.mrb[60].mxu1  ;;  %3115 = vrot.lane.b32.xlu0 %v12548_v7, %s11380_s8  ;;  %v12552_v14 = vpop.f32.mrb[61].mxu0 }
 0x319   :  { %15098 = vst [vmem:[#allocation100_spill] sm:$0xff] %v12552_v14  ;;  %v3016_v56 = vpop.f32.mrb[61].mxu1  ;;  %v12554_v40 = vpop.f32.mrb[62].mxu0 }
 0x31a   :  { %v3018_v32 = vpop.f32.mrb[62].mxu1  ;;  %3129 = vrot.lane.b32.xlu1 %v12468_v29, %s11380_s8  ;;  %v12558_v59 = vpop.f32.mrb[63].mxu0 }
 0x31b   :  { %15099 = vst [vmem:[#allocation101_spill] sm:$0xff] %v12558_v59  ;;  %v3449_v35 = vpack.c.bf16 %v3018_v32, %v3014_v46  ;;  %v3020_v21 = vpop.f32.mrb[63].mxu1  ;;  %v12617_v46 = vld [vmem:[#allocation8] sm:$0xff] }
 0x31c   :  { %v12560_v34 = vpack.c.bf16 %v3020_v21, %v3016_v56  ;;  %3318 = vrot.lane.b32.xlu0 %v12374_v8, %s11380_s8  ;;  %v3301_v21 = vpop.permute.xlu1 %3300  ;;  %v12619_v56 = vld [vmem:[#allocation8 + $0x8] sm:$0xff] }
 0x31d   :  { %9609 = vmatprep.subr.bf16.mxu1 %v3449_v35 }
 0x31e   :  { %15100 = vst [vmem:[#allocation102_spill] sm:$0xff] %v12560_v34  ;;  %9610 = vmatpush3.bf16.msra.mxu1 %v3449_v35  ;;  %3117 = vrot.lane.b32.xlu1 %v12554_v40, %s11380_s8  ;;  %v12623_v35 = vld [vmem:[#allocation7] sm:$0xff] }
 0x31f   :  { %9691 = vmatprep.subr.bf16.mxu1 %v12434_v33  ;;  %v12626_v33 = vld [vmem:[#allocation7 + $0x8] sm:$0xff] }
 0x320   :  { %3322 = vrot.lane.b32.xlu0 %v12390_v39, %s11380_s8 }
 0x322   :  { %3320 = vrot.lane.b32.xlu1 %v12382_v44, %s11380_s8 }
 0x324   :  { %3131 = vrot.lane.b32.xlu0 %v12480_v41, %s11380_s8 }
 0x326   :  { %3324 = vrot.lane.b32.xlu1 %v12398_v51, %s11380_s8 }
 0x328   :  { %3326 = vrot.lane.b32.xlu0 %v12406_v20, %s11380_s8 }
 0x32a   :  { %3133 = vrot.lane.b32.xlu1 %v12486_v63, %s11380_s8 }
 0x32c   :  { %3330 = vrot.lane.b32.xlu0 %v12296_v2, %s11380_s8 }
 0x32e   :  { %3328 = vrot.lane.b32.xlu1 %v12414_v52, %s11380_s8 }
 0x330   :  { %3135 = vrot.lane.b32.xlu0 %v12498_v10, %s11380_s8 }
 0x332   :  { %3332 = vrot.lane.b32.xlu1 %v12306_v37, %s11380_s8 }
 0x334   :  { %3334 = vrot.lane.b32.xlu0 %v12314_v3, %s11380_s8 }
 0x336   :  { %3137 = vrot.lane.b32.xlu1 %v12504_v49, %s11380_s8 }
 0x338   :  { %3338 = vrot.lane.b32.xlu0 %v12330_v0, %s11380_s8 }
 0x33a   :  { %3336 = vrot.lane.b32.xlu1 %v12322_v48, %s11380_s8  ;;  %v15132_v48 = vld [vmem:[#allocation56_spill] sm:$0xff] }
 0x33c   :  { %3139 = vrot.lane.b32.xlu0 %v12516_v16, %s11380_s8  ;;  %v15123_v16 = vld [vmem:[#allocation44_spill] sm:$0xff] }
 0x33e   :  { %3340 = vrot.lane.b32.xlu1 %v12338_v43, %s11380_s8 }
 0x340   :  { %3342 = vrot.lane.b32.xlu0 %v12346_v55, %s11380_s8 }
 0x342   :  { %3141 = vrot.lane.b32.xlu1 %v12522_v45, %s11380_s8 }
 0x344   :  { %3346 = vrot.lane.b32.xlu0 %v12362_v57, %s11380_s8 }
 0x346   :  { %3344 = vrot.lane.b32.xlu1 %v12354_v12, %s11380_s8 }
 0x348   :  { %3143 = vrot.lane.b32.xlu0 %v12534_v24, %s11380_s8  ;;  %v3056_v24 = vmul.f32 %v12626_v33, %v12428_v62 }
 0x34a   :  { %3348 = vrot.lane.b32.xlu1 %v12370_v1, %s11380_s8  ;;  %v3266_v1 = vmul.f32 %v12623_v35, %v12292_v4 }
 0x34c   :  { %3350 = vrot.lane.b32.xlu0 %v12378_v19, %s11380_s8 }
 0x34e   :  { %3145 = vrot.lane.b32.xlu1 %v12540_v26, %s11380_s8  ;;  %v3055_v26 = vmul.f32 %v12623_v35, %v12422_v58 }
 0x350   :  { %3354 = vrot.lane.b32.xlu0 %v12394_v11, %s11380_s8  ;;  %v3363_v11 = vmul.f32 %v3301_v21, %v12619_v56 }
 0x352   :  { %v3088_v32 = vpop.permute.xlu0 %3087  ;;  %3352 = vrot.lane.b32.xlu1 %v12386_v31, %s11380_s8 }
 0x353   :  { %v3151_v34 = vmul.f32 %v3088_v32, %v12617_v46 }
 0x354   :  { %v3090_v19 = vpop.permute.xlu1 %3089  ;;  %3147 = vrot.lane.b32.xlu0 %v12552_v14, %s11380_s8  ;;  %v3267_v14 = vmul.f32 %v12626_v33, %v12300_v38 }
 0x355   :  { %v3152_v31 = vmul.f32 %v3090_v19, %v12619_v56  ;;  %v3183_v57 = vadd.f32 %v3151_v34, %v3055_v26  ;;  %v12664_v34 = vld [vmem:[#allocation7 + $0x18] sm:$0xff] }
 0x356   :  { %v3299_v32 = vpop.permute.xlu0 %3298  ;;  %3356 = vrot.lane.b32.xlu1 %v12402_v28, %s11380_s8  ;;  %v3395_v62 = vadd.f32 %v3363_v11, %v3267_v14  ;;  %v3072_v14 = vmul.f32 %v12626_v33, %v12432_v5  ;;  %15104 = vst [vmem:[#allocation106_spill] sm:$0xff] %v12664_v34 }
 0x357   :  { %v3184_v21 = vadd.f32 %v3152_v31, %v3056_v24  ;;  %v3362_v12 = vmul.f32 %v3299_v32, %v12617_v46  ;;  %v12650_v24 = vld [vmem:[#allocation8 + $0x10] sm:$0xff] }
 0x358   :  { %v3122_v58 = vpop.permute.xlu1 %3121  ;;  %3358 = vrot.lane.b32.xlu0 %v12410_v61, %s11380_s8  ;;  %15101 = vst [vmem:[#allocation103_spill] sm:$0xff] %v12650_v24  ;;  %v12776_v61 = vld [vmem:[#allocation8 + $0x50] sm:$0xff] }
 0x359   :  { %v3394_v19 = vadd.f32 %v3362_v12, %v3266_v1  ;;  %v3215_v55 = vpack.c.bf16 %v3184_v21, %v3183_v57  ;;  %v3168_v38 = vmul.f32 %v3122_v58, %v12619_v56  ;;  %v12654_v12 = vld [vmem:[#allocation8 + $0x18] sm:$0xff]  ;;  %v12656_v57 = vld [vmem:[#allocation7 + $0x10] sm:$0xff]  ;;  %v3058_v21 = vmul.f32 %v12664_v34, %v12446_v9 }
 0x35a   :  { %v3303_v45 = vpop.permute.xlu0 %3302  ;;  %3360 = vrot.lane.b32.xlu1 %v12418_v17, %s11380_s8  ;;  %15102 = vst [vmem:[#allocation104_spill] sm:$0xff] %v12654_v12  ;;  %15103 = vst [vmem:[#allocation105_spill] sm:$0xff] %v12656_v57  ;;  %v3057_v26 = vmul.f32 %v12656_v57, %v12440_v15  ;;  %v3268_v9 = vmul.f32 %v12656_v57, %v12310_v36  ;;  %v12696_v36 = vld [vmem:[#allocation7 + $0x20] sm:$0xff] }
 0x35b   :  { %9547 = vmatprep.subr.bf16.mxu0 %v3215_v55  ;;  %v3426_v4 = vpack.c.bf16 %v3395_v62, %v3394_v19 }
 0x35c   :  { %9548 = vmatpush3.bf16.xpose.msra.mxu0 %v3215_v55  ;;  %v3092_v28 = vpop.permute.xlu1 %3091  ;;  %4156 = vrot.lane.b32.xlu0 %v12294_v13, %s11380_s8  ;;  %v3071_v55 = vmul.f32 %v12623_v35, %v12426_v18  ;;  %v3200_v18 = vadd.f32 %v3168_v38, %v3072_v14  ;;  %v3269_v38 = vmul.f32 %v12664_v34, %v12318_v60 }
 0x35d   :  { %9563 = vmatprep.mubr.bf16.mxu0 %v3426_v4  ;;  %v3153_v1 = vmul.f32 %v3092_v28, %v12650_v24  ;;  %v3364_v28 = vmul.f32 %v3303_v45, %v12650_v24  ;;  %v3059_v60 = vmul.f32 %v12696_v36, %v12458_v6  ;;  %v3270_v6 = vmul.f32 %v12696_v36, %v12326_v23  ;;  %v12730_v23 = vld [vmem:[#allocation7 + $0x30] sm:$0xff] }
 0x35e   :  { %v3120_v31 = vpop.permute.xlu0 %3119  ;;  %3149 = vrot.lane.b32.xlu1 %v12558_v59, %s11380_s8 }
 0x35f   :  { %v3167_v11 = vmul.f32 %v3120_v31, %v12617_v46  ;;  %v3185_v19 = vadd.f32 %v3153_v1, %v3057_v26  ;;  %v12678_v31 = vld [vmem:[#allocation8 + $0x20] sm:$0xff]  ;;  %v12689_v1 = vld [vmem:[#allocation8 + $0x28] sm:$0xff] }
 0x360   :  { %v3094_v32 = vpop.permute.xlu1 %3093  ;;  %4160 = vrot.lane.b32.xlu0 %v12312_v42, %s11380_s8  ;;  %15105 = vst [vmem:[#allocation107_spill] sm:$0xff] %v12689_v1 }
 0x361   :  { %v3199_v58 = vadd.f32 %v3167_v11, %v3071_v55  ;;  %v3154_v5 = vmul.f32 %v3094_v32, %v12654_v12  ;;  %v12691_v11 = vadd.f32 %v3364_v28, %v3268_v9  ;;  %v12712_v9 = vld [vmem:[#allocation8 + $0x30] sm:$0xff] }
 0x362   :  { %v3096_v62 = vpop.permute.xlu0 %3095  ;;  %4158 = vrot.lane.b32.xlu1 %v12302_v50, %s11380_s8 }
 0x363   :  { %v3186_v4 = vadd.f32 %v3154_v5, %v3058_v21  ;;  %v12676_v15 = vpack.c.bf16 %v3200_v18, %v3199_v58  ;;  %v3155_v26 = vmul.f32 %v3096_v62, %v12678_v31  ;;  %v12698_v21 = vld [vmem:[#allocation7 + $0x28] sm:$0xff] }
 0x364   :  { %v3305_v42 = vpop.permute.xlu1 %3304  ;;  %4164 = vrot.lane.b32.xlu0 %v12328_v22, %s11380_s8  ;;  %v3060_v18 = vmul.f32 %v12698_v21, %v12464_v25  ;;  %v15106_v25 = vld [vmem:[#allocation39_spill] sm:$0xff] }
 0x365   :  { %v3365_v55 = vmul.f32 %v3305_v42, %v12654_v12  ;;  %v3216_v14 = vpack.c.bf16 %v3186_v4, %v3185_v19  ;;  %v3187_v28 = vadd.f32 %v3155_v26, %v3059_v60  ;;  %v15107_v26 = vld [vmem:[#allocation49_spill] sm:$0xff] }
 0x366   :  { %v3307_v45 = vpop.permute.xlu0 %3306  ;;  %4162 = vrot.lane.b32.xlu1 %v12320_v30, %s11380_s8  ;;  %v15114_v30 = vld [vmem:[#allocation80_spill] sm:$0xff] }
 0x367   :  { %v12694_v32 = vadd.f32 %v3365_v55, %v3269_v38  ;;  %9549 = vmatprep.subr.bf16.mxu0 %v3216_v14  ;;  %v3366_v19 = vmul.f32 %v3307_v45, %v12678_v31  ;;  %v3271_v55 = vmul.f32 %v12698_v21, %v15106_v25  ;;  %v12723_v45 = vld [vmem:[#allocation8 + $0x38] sm:$0xff] }
 0x368   :  { %9550 = vmatpush3.bf16.xpose.msra.mxu0 %v3216_v14  ;;  %v3098_v42 = vpop.permute.xlu1 %3097  ;;  %4168 = vrot.lane.b32.xlu0 %v12344_v53, %s11380_s8 }
 0x369   :  { %v3156_v5 = vmul.f32 %v3098_v42, %v12689_v1  ;;  %v12725_v60 = vadd.f32 %v3366_v19, %v3270_v6  ;;  %v3074_v6 = vmul.f32 %v12664_v34, %v15114_v30 }
 0x36a   :  { %v3100_v62 = vpop.permute.xlu0 %3099  ;;  %4166 = vrot.lane.b32.xlu1 %v12336_v27, %s11380_s8 }
 0x36b   :  { %v3188_v4 = vadd.f32 %v3156_v5, %v3060_v18  ;;  %v3157_v18 = vmul.f32 %v3100_v62, %v12712_v9 }
 0x36c   :  { %v3309_v38 = vpop.permute.xlu1 %3308  ;;  %4172 = vrot.lane.b32.xlu0 %v12360_v54, %s11380_s8  ;;  %v12732_v54 = vld [vmem:[#allocation7 + $0x38] sm:$0xff] }
 0x36d   :  { %v3367_v14 = vmul.f32 %v3309_v38, %v12689_v1  ;;  %v3217_v42 = vpack.c.bf16 %v3188_v4, %v3187_v28  ;;  %v15108_v28 = vld [vmem:[#allocation60_spill] sm:$0xff] }
 0x36e   :  { %v3124_v58 = vpop.permute.xlu0 %3123  ;;  %4170 = vrot.lane.b32.xlu1 %v15107_v26, %s11380_s8  ;;  %v15109_v4 = vld [vmem:[#allocation84_spill] sm:$0xff]  ;;  %v15110_v26 = vld [vmem:[#allocation85_spill] sm:$0xff] }
 0x36f   :  { %v12728_v5 = vadd.f32 %v3367_v14, %v3271_v55  ;;  %9551 = vmatprep.subr.bf16.mxu0 %v3217_v42  ;;  %v3061_v25 = vmul.f32 %v12730_v23, %v15109_v4  ;;  %v3062_v19 = vmul.f32 %v12732_v54, %v15110_v26  ;;  %v15111_v14 = vld [vmem:[#allocation57_spill] sm:$0xff]  ;;  %v3169_v53 = vmul.f32 %v3124_v58, %v12650_v24  ;;  %v15112_v4 = vld [vmem:[#allocation66_spill] sm:$0xff]  ;;  %v15113_v26 = vld [vmem:[#allocation79_spill] sm:$0xff] }
 0x370   :  { %9552 = vmatpush3.bf16.xpose.msra.mxu0 %v3217_v42  ;;  %v3102_v38 = vpop.permute.xlu1 %3101  ;;  %4176 = vrot.lane.b32.xlu0 %v15108_v28, %s11380_s8  ;;  %v12746_v28 = vld [vmem:[#allocation8 + $0x40] sm:$0xff]  ;;  %v12757_v58 = vld [vmem:[#allocation8 + $0x48] sm:$0xff] }
 0x371   :  { %v3158_v62 = vmul.f32 %v3102_v38, %v12723_v45  ;;  %v3189_v42 = vadd.f32 %v3157_v18, %v3061_v25  ;;  %v3073_v38 = vmul.f32 %v12656_v57, %v15113_v26  ;;  %v15115_v18 = vld [vmem:[#allocation63_spill] sm:$0xff]  ;;  %15116 = vst [vmem:[#allocation39_spill] sm:$0xff] %v12757_v58 }
 0x372   :  { %v3104_v55 = vpop.permute.xlu0 %3103  ;;  %4174 = vrot.lane.b32.xlu1 %v15111_v14, %s11380_s8  ;;  %v12762_v26 = vld [vmem:[#allocation7 + $0x48] sm:$0xff] }
 0x373   :  { %v3190_v27 = vadd.f32 %v3158_v62, %v3062_v19  ;;  %v3201_v25 = vadd.f32 %v3169_v53, %v3073_v38  ;;  %v3159_v19 = vmul.f32 %v3104_v55, %v12746_v28  ;;  %15117 = vst [vmem:[#allocation84_spill] sm:$0xff] %v12762_v26 }
 0x374   :  { %v3126_v22 = vpop.permute.xlu1 %3125  ;;  %4180 = vrot.lane.b32.xlu0 %v15112_v4, %s11380_s8  ;;  %v12760_v4 = vld [vmem:[#allocation7 + $0x40] sm:$0xff] }
 0x375   :  { %v3170_v50 = vmul.f32 %v3126_v22, %v12654_v12  ;;  %v3218_v13 = vpack.c.bf16 %v3190_v27, %v3189_v42  ;;  %v15118_v22 = vld [vmem:[#allocation72_spill] sm:$0xff]  ;;  %v15119_v27 = vld [vmem:[#allocation87_spill] sm:$0xff] }
 0x376   :  { %v3311_v14 = vpop.permute.xlu0 %3310  ;;  %4178 = vrot.lane.b32.xlu1 %v15115_v18, %s11380_s8  ;;  %v3063_v42 = vmul.f32 %v12760_v4, %v15119_v27  ;;  %v15120_v18 = vld [vmem:[#allocation88_spill] sm:$0xff] }
 0x377   :  { %v3202_v62 = vadd.f32 %v3170_v50, %v3074_v6  ;;  %9553 = vmatprep.subr.bf16.mxu0 %v3218_v13  ;;  %v3064_v59 = vmul.f32 %v12762_v26, %v15120_v18  ;;  %v15121_v6 = vld [vmem:[#allocation69_spill] sm:$0xff]  ;;  %v15122_v27 = vld [vmem:[#allocation28_spill] sm:$0xff]  ;;  %v3272_v18 = vmul.f32 %v12730_v23, %v15123_v16 }
 0x378   :  { %9554 = vmatpush3.bf16.xpose.msra.mxu0 %v3218_v13  ;;  %v3106_v30 = vpop.permute.xlu1 %3105  ;;  %4184 = vrot.lane.b32.xlu0 %v15118_v22, %s11380_s8  ;;  %v3191_v38 = vadd.f32 %v3159_v19, %v3063_v42  ;;  %v3368_v13 = vmul.f32 %v3311_v14, %v12712_v9  ;;  %v15125_v19 = vld [vmem:[#allocation75_spill] sm:$0xff]  ;;  %v12794_v16 = vld [vmem:[#allocation7 + $0x50] sm:$0xff] }
 0x379   :  { %v3160_v53 = vmul.f32 %v3106_v30, %v12757_v58  ;;  %v12771_v55 = vpack.c.bf16 %v3202_v62, %v3201_v25  ;;  %v15124_v30 = vld [vmem:[#allocation48_spill] sm:$0xff] }
 0x37a   :  { %v3108_v50 = vpop.permute.xlu0 %3107  ;;  %4182 = vrot.lane.b32.xlu1 %v15121_v6, %s11380_s8  ;;  %v3273_v25 = vmul.f32 %v12732_v54, %v15124_v30  ;;  %v12789_v14 = vadd.f32 %v3368_v13, %v3272_v18  ;;  %v3275_v18 = vmul.f32 %v12762_v26, %v15132_v48 }
 0x37b   :  { %v3192_v17 = vadd.f32 %v3160_v53, %v3064_v59  ;;  %v12787_v59 = vld [vmem:[#allocation8 + $0x58] sm:$0xff]  ;;  %v3161_v42 = vmul.f32 %v3108_v50, %v12776_v61 }
 0x37c   :  { %v3313_v22 = vpop.permute.xlu1 %3312  ;;  %4188 = vrot.lane.b32.xlu0 %v15122_v27, %s11380_s8  ;;  %v12796_v27 = vld [vmem:[#allocation7 + $0x58] sm:$0xff] }
 0x37d   :  { %v3369_v62 = vmul.f32 %v3313_v22, %v12723_v45  ;;  %v3219_v43 = vpack.c.bf16 %v3192_v17, %v3191_v38  ;;  %v15126_v17 = vld [vmem:[#allocation33_spill] sm:$0xff]  ;;  %v15127_v38 = vld [vmem:[#allocation91_spill] sm:$0xff] }
 0x37e   :  { %v3315_v6 = vpop.permute.xlu0 %3314  ;;  %4186 = vrot.lane.b32.xlu1 %v15125_v19, %s11380_s8  ;;  %v3065_v30 = vmul.f32 %v12794_v16, %v15127_v38  ;;  %v15128_v19 = vld [vmem:[#allocation93_spill] sm:$0xff]  ;;  %v15130_v38 = vld [vmem:[#allocation42_spill] sm:$0xff] }
 0x37f   :  { %v12792_v53 = vadd.f32 %v3369_v62, %v3273_v25  ;;  %9555 = vmatprep.subr.bf16.mxu0 %v3219_v43  ;;  %v3066_v13 = vmul.f32 %v12796_v27, %v15128_v19  ;;  %v15129_v62 = vld [vmem:[#allocation30_spill] sm:$0xff]  ;;  %v3370_v0 = vmul.f32 %v3315_v6, %v12746_v28  ;;  %v15131_v19 = vld [vmem:[#allocation52_spill] sm:$0xff]  ;;  %v12821_v6 = vld [vmem:[#allocation8 + $0x68] sm:$0xff] }
 0x380   :  { %9556 = vmatpush3.bf16.xpose.msra.mxu0 %v3219_v43  ;;  %v3110_v22 = vpop.permute.xlu1 %3109  ;;  %4192 = vrot.lane.b32.xlu0 %v15126_v17, %s11380_s8  ;;  %v3193_v43 = vadd.f32 %v3161_v42, %v3065_v30  ;;  %v12810_v17 = vld [vmem:[#allocation8 + $0x60] sm:$0xff]  ;;  %v15133_v42 = vld [vmem:[#allocation36_spill] sm:$0xff] }
 0x381   :  { %v3162_v50 = vmul.f32 %v3110_v22, %v12787_v59  ;;  %v3274_v22 = vmul.f32 %v12760_v4, %v15131_v19  ;;  %v12828_v19 = vld [vmem:[#allocation7 + $0x60] sm:$0xff] }
 0x382   :  { %v3112_v25 = vpop.permute.xlu0 %3111  ;;  %4190 = vrot.lane.b32.xlu1 %v15129_v62, %s11380_s8 }
 0x383   :  { %v3194_v12 = vadd.f32 %v3162_v50, %v3066_v13  ;;  %v12823_v30 = vadd.f32 %v3370_v0, %v3274_v22  ;;  %v3163_v13 = vmul.f32 %v3112_v25, %v12810_v17  ;;  %v15136_v22 = vld [vmem:[#allocation43_spill] sm:$0xff] }
 0x384   :  { %v3317_v34 = vpop.permute.xlu1 %3316  ;;  %4196 = vrot.lane.b32.xlu0 %v15130_v38, %s11380_s8  ;;  %v12830_v38 = vld [vmem:[#allocation7 + $0x68] sm:$0xff] }
 0x385   :  { %v3371_v57 = vmul.f32 %v3317_v34, %v12757_v58  ;;  %v3220_v3 = vpack.c.bf16 %v3194_v12, %v3193_v43  ;;  %v15134_v12 = vld [vmem:[#allocation47_spill] sm:$0xff]  ;;  %v15135_v34 = vld [vmem:[#allocation96_spill] sm:$0xff]  ;;  %v3068_v0 = vmul.f32 %v12830_v38, %v12536_v47  ;;  %v15138_v47 = vld [vmem:[#allocation82_spill] sm:$0xff] }
 0x386   :  { %v3128_v62 = vpop.permute.xlu0 %3127  ;;  %4194 = vrot.lane.b32.xlu1 %v15133_v42, %s11380_s8  ;;  %v3067_v43 = vmul.f32 %v12828_v19, %v15135_v34  ;;  %v15137_v34 = vld [vmem:[#allocation55_spill] sm:$0xff] }
 0x387   :  { %v12826_v50 = vadd.f32 %v3371_v57, %v3275_v18  ;;  %9557 = vmatprep.subr.bf16.mxu0 %v3220_v3  ;;  %v3171_v42 = vmul.f32 %v3128_v62, %v12678_v31  ;;  %v3076_v57 = vmul.f32 %v12698_v21, %v12468_v29  ;;  %v12855_v62 = vld [vmem:[#allocation8 + $0x78] sm:$0xff]  ;;  %v15140_v29 = vld [vmem:[#allocation62_spill] sm:$0xff] }
 0x388   :  { %9558 = vmatpush3.bf16.xpose.msra.mxu0 %v3220_v3  ;;  %v3114_v48 = vpop.permute.xlu1 %3113  ;;  %4200 = vrot.lane.b32.xlu0 %v15134_v12, %s11380_s8  ;;  %v3195_v3 = vadd.f32 %v3163_v13, %v3067_v43  ;;  %v12844_v12 = vld [vmem:[#allocation8 + $0x70] sm:$0xff]  ;;  %v15139_v13 = vld [vmem:[#allocation51_spill] sm:$0xff] }
 0x389   :  { %v3164_v25 = vmul.f32 %v3114_v48, %v12821_v6  ;;  %v3075_v48 = vmul.f32 %v12696_v36, %v15138_v47  ;;  %v12860_v47 = vld [vmem:[#allocation7 + $0x78] sm:$0xff] }
 0x38a   :  { %v3116_v18 = vpop.permute.xlu0 %3115  ;;  %4198 = vrot.lane.b32.xlu1 %v15136_v22, %s11380_s8 }
 0x38b   :  { %v3196_v24 = vadd.f32 %v3164_v25, %v3068_v0  ;;  %v3203_v43 = vadd.f32 %v3171_v42, %v3075_v48  ;;  %v3165_v0 = vmul.f32 %v3116_v18, %v12844_v12 }
 0x38c   :  { %v3130_v58 = vpop.permute.xlu1 %3129  ;;  %4204 = vrot.lane.b32.xlu0 %v15137_v34, %s11380_s8  ;;  %v12858_v34 = vld [vmem:[#allocation7 + $0x70] sm:$0xff] }
 0x38d   :  { %v3172_v26 = vmul.f32 %v3130_v58, %v12689_v1  ;;  %v3221_v49 = vpack.c.bf16 %v3196_v24, %v3195_v3  ;;  %v3069_v58 = vmul.f32 %v12858_v34, %v12548_v7  ;;  %v3070_v3 = vmul.f32 %v12860_v47, %v12554_v40 }
 0x38e   :  { %v3319_v22 = vpop.permute.xlu0 %3318  ;;  %4202 = vrot.lane.b32.xlu1 %v15139_v13, %s11380_s8  ;;  %v3276_v7 = vmul.f32 %v12794_v16, %v12374_v8  ;;  %v3277_v40 = vmul.f32 %v12796_v27, %v12382_v44  ;;  %v3278_v44 = vmul.f32 %v12828_v19, %v12390_v39  ;;  %v3077_v39 = vmul.f32 %v12730_v23, %v12480_v41 }
 0x38f   :  { %v3204_v25 = vadd.f32 %v3172_v26, %v3076_v57  ;;  %9559 = vmatprep.subr.bf16.mxu0 %v3221_v49  ;;  %v15141_v57 = vld [vmem:[#allocation59_spill] sm:$0xff]  ;;  %v3197_v48 = vadd.f32 %v3165_v0, %v3069_v58  ;;  %v15148_v41 = vpack.c.bf16 %v12728_v5, %v12725_v60 }
 0x390   :  { %9560 = vmatpush3.bf16.xpose.msra.mxu0 %v3221_v49  ;;  %4208 = vrot.lane.b32.xlu0 %v15140_v29, %s11380_s8  ;;  %v3118_v24 = vpop.permute.xlu1 %3117  ;;  %v3372_v49 = vmul.f32 %v3319_v22, %v12776_v61  ;;  %v15142_v29 = vld [vmem:[#allocation68_spill] sm:$0xff] }
 0x391   :  { %v3166_v42 = vmul.f32 %v3118_v24, %v12855_v62  ;;  %v12869_v18 = vpack.c.bf16 %v3204_v25, %v3203_v43 }
 0x392   :  { %v3323_v26 = vpop.permute.xlu0 %3322  ;;  %4206 = vrot.lane.b32.xlu1 %v15141_v57, %s11380_s8  ;;  %v15143_v57 = vld [vmem:[#allocation65_spill] sm:$0xff]  ;;  %v12883_v0 = vadd.f32 %v3372_v49, %v3276_v7 }
 0x393   :  { %v3198_v13 = vadd.f32 %v3166_v42, %v3070_v3  ;;  %v3374_v22 = vmul.f32 %v3323_v26, %v12810_v17  ;;  %v15144_v3 = vld [vmem:[#allocation74_spill] sm:$0xff] }
 0x394   :  { %4212 = vrot.lane.b32.xlu0 %v15142_v29, %s11380_s8  ;;  %v3321_v1 = vpop.permute.xlu1 %3320 }
 0x395   :  { %v3373_v43 = vmul.f32 %v3321_v1, %v12787_v59  ;;  %v3222_v25 = vpack.c.bf16 %v3198_v13, %v3197_v48  ;;  %v3279_v1 = vmul.f32 %v12830_v38, %v12398_v51  ;;  %v15145_v48 = vld [vmem:[#allocation71_spill] sm:$0xff]  ;;  %v3406_v49 = vadd.f32 %v3374_v22, %v3278_v44 }
 0x396   :  { %v3132_v24 = vpop.permute.xlu0 %3131  ;;  %4210 = vrot.lane.b32.xlu1 %v15143_v57, %s11380_s8  ;;  %v3078_v51 = vmul.f32 %v12732_v54, %v12486_v63  ;;  %v3280_v63 = vmul.f32 %v12858_v34, %v12406_v20  ;;  %v3283_v20 = vmul.f32 %v12626_v33, %v12306_v37  ;;  %v15151_v37 = vld [vmem:[#allocation89_spill] sm:$0xff] }
 0x397   :  { %v12886_v58 = vadd.f32 %v3373_v43, %v3277_v40  ;;  %9561 = vmatprep.subr.bf16.mxu0 %v3222_v25  ;;  %v3173_v7 = vmul.f32 %v3132_v24, %v12712_v9  ;;  %v15147_v24 = vpack.c.bf16 %v12694_v32, %v12691_v11 }
 0x398   :  { %4216 = vrot.lane.b32.xlu0 %v15144_v3, %s11380_s8  ;;  %v3325_v8 = vpop.permute.xlu1 %3324  ;;  %9562 = vmatpush3.bf16.xpose.msra.mxu0 %v3222_v25 }
 0x399   :  { %v3375_v13 = vmul.f32 %v3325_v8, %v12821_v6  ;;  %9643 = vmatprep.subr.bf16.mxu0 %v12676_v15  ;;  %v3431_v42 = vpack.c.bf16 %v12886_v58, %v12883_v0  ;;  %v15146_v0 = vld [vmem:[#allocation77_spill] sm:$0xff]  ;;  %v3205_v58 = vadd.f32 %v3173_v7, %v3077_v39 }
 0x39a   :  { %v3327_v26 = vpop.permute.xlu0 %3326  ;;  %4214 = vrot.lane.b32.xlu1 %v15145_v48, %s11380_s8 }
 0x39b   :  { %v3407_v40 = vadd.f32 %v3375_v13, %v3279_v1  ;;  %v3376_v22 = vmul.f32 %v3327_v26, %v12844_v12  ;;  %v3281_v13 = vmul.f32 %v12860_v47, %v12414_v52 }
 0x39c   :  { %v3134_v43 = vpop.permute.xlu1 %3133 }
 0x39d   :  { %v3174_v25 = vmul.f32 %v3134_v43, %v12723_v45  ;;  %v3432_v8 = vpack.c.bf16 %v3407_v40, %v3406_v49  ;;  %v3408_v32 = vadd.f32 %v3376_v22, %v3280_v63  ;;  %v15150_v22 = vpack.c.bf16 %v12826_v50, %v12823_v30  ;;  %v15155_v50 = vld [vmem:[#allocation32_spill] sm:$0xff] }
 0x39e   :  { %v3331_v3 = vpop.permute.xlu0 %3330  ;;  %4218 = vrot.lane.b32.xlu1 %v15146_v0, %s11380_s8 }
 0x39f   :  { %v3206_v44 = vadd.f32 %v3174_v25, %v3078_v51  ;;  %9564 = vmatmul.mubr.bf16.vlgmr.msra.gmra.mrb[64].mxu0 %v15147_v24  ;;  %v3378_v7 = vmul.f32 %v3331_v3, %v12617_v46 }
 0x3a0   :  { %v3329_v1 = vpop.permute.xlu1 %3328  ;;  %9567 = vmatprep.mubr.bf16.mxu0 %v15148_v41  ;;  %9644 = vmatpush3.bf16.xpose.msra.mxu0 %v12676_v15  ;;  %v3282_v15 = vmul.f32 %v12623_v35, %v12296_v2  ;;  %v3079_v2 = vmul.f32 %v12760_v4, %v12498_v10 }
 0x3a1   :  { %v3377_v26 = vmul.f32 %v3329_v1, %v12855_v62  ;;  %9645 = vmatprep.subr.bf16.mxu0 %v12771_v55  ;;  %v3226_v49 = vpack.c.bf16 %v3206_v44, %v3205_v58  ;;  %v15149_v58 = vpack.c.bf16 %v12792_v53, %v12789_v14  ;;  %v15152_v44 = vld [vmem:[#allocation84_spill] sm:$0xff]  ;;  %v15153_v1 = vld [vmem:[#allocation39_spill] sm:$0xff] }
 0x3a2   :  { %v3136_v11 = vpop.permute.xlu0 %3135  ;;  %v3410_v39 = vadd.f32 %v3378_v7, %v3282_v15  ;;  %v3080_v24 = vmul.f32 %v15152_v44, %v15151_v37  ;;  %v15157_v7 = vld [vmem:[#allocation35_spill] sm:$0xff] }
 0x3a3   :  { %v3409_v40 = vadd.f32 %v3377_v26, %v3281_v13  ;;  %v3175_v51 = vmul.f32 %v3136_v11, %v12746_v28  ;;  %v15154_v13 = vld [vmem:[#allocation103_spill] sm:$0xff] }
 0x3a4   :  { %v3333_v60 = vpop.permute.xlu1 %3332  ;;  %v15162_v37 = vld [vmem:[#allocation107_spill] sm:$0xff] }
 0x3a5   :  { %v3379_v5 = vmul.f32 %v3333_v60, %v12619_v56  ;;  %v3433_v52 = vpack.c.bf16 %v3409_v40, %v3408_v32  ;;  %v3207_v53 = vadd.f32 %v3175_v51, %v3079_v2  ;;  %v15156_v32 = vld [vmem:[#allocation105_spill] sm:$0xff]  ;;  %v15158_v40 = vld [vmem:[#allocation106_spill] sm:$0xff]  ;;  %v15159_v60 = vld [vmem:[#allocation104_spill] sm:$0xff] }
 0x3a6   :  { %v3335_v43 = vpop.permute.xlu0 %3334  ;;  %v3285_v10 = vmul.f32 %v15158_v40, %v15157_v7 }
 0x3a7   :  { %v3411_v25 = vadd.f32 %v3379_v5, %v3283_v20  ;;  %9568 = vmatmul.mubr.bf16.gmra.mrb[68].mxu0 %v15149_v58  ;;  %v3380_v26 = vmul.f32 %v3335_v43, %v15154_v13  ;;  %v15160_v43 = vld [vmem:[#allocation38_spill] sm:$0xff] }
 0x3a8   :  { %v3138_v3 = vpop.permute.xlu1 %3137  ;;  %9571 = vmatprep.mubr.bf16.mxu0 %v15150_v22  ;;  %9646 = vmatpush3.bf16.xpose.msra.mxu0 %v12771_v55  ;;  %v3284_v55 = vmul.f32 %v15156_v32, %v15155_v50  ;;  %v15161_v22 = vld [vmem:[#allocation41_spill] sm:$0xff] }
 0x3a9   :  { %v3176_v41 = vmul.f32 %v3138_v3, %v15153_v1  ;;  %9647 = vmatprep.subr.bf16.mxu0 %v12869_v18  ;;  %v3434_v63 = vpack.c.bf16 %v3411_v25, %v3410_v39  ;;  %v3286_v25 = vmul.f32 %v12696_v36, %v15160_v43  ;;  %v3287_v2 = vmul.f32 %v12698_v21, %v15161_v22  ;;  %v15166_v43 = vld [vmem:[#allocation50_spill] sm:$0xff] }
 0x3aa   :  { %v3339_v14 = vpop.permute.xlu0 %3338  ;;  %v3412_v58 = vadd.f32 %v3380_v26, %v3284_v55 }
 0x3ab   :  { %v3208_v11 = vadd.f32 %v3176_v41, %v3080_v24  ;;  %v3382_v3 = vmul.f32 %v3339_v14, %v12678_v31 }
 0x3ac   :  { %v3337_v30 = vpop.permute.xlu1 %3336 }
 0x3ad   :  { %v3381_v15 = vmul.f32 %v3337_v30, %v15159_v60  ;;  %v3227_v20 = vpack.c.bf16 %v3208_v11, %v3207_v53  ;;  %v3414_v26 = vadd.f32 %v3382_v3, %v3286_v25  ;;  %v15163_v30 = vld [vmem:[#allocation92_spill] sm:$0xff]  ;;  %v3289_v25 = vmul.f32 %v12732_v54, %v15166_v43 }
 0x3ae   :  { %v3140_v5 = vpop.permute.xlu0 %3139 }
 0x3af   :  { %v3413_v39 = vadd.f32 %v3381_v15, %v3285_v10  ;;  %9572 = vmatmul.mubr.bf16.gmra.mrb[72].mxu0 %v3431_v42  ;;  %v3177_v14 = vmul.f32 %v3140_v5, %v12776_v61  ;;  %v15165_v5 = vld [vmem:[#allocation46_spill] sm:$0xff] }
 0x3b0   :  { %v3341_v51 = vpop.permute.xlu1 %3340  ;;  %9575 = vmatprep.mubr.bf16.mxu0 %v3432_v8  ;;  %9648 = vmatpush3.bf16.xpose.msra.mxu0 %v12869_v18  ;;  %v3081_v8 = vmul.f32 %v12794_v16, %v15163_v30  ;;  %v15164_v18 = vld [vmem:[#allocation94_spill] sm:$0xff] }
 0x3b1   :  { %v3383_v24 = vmul.f32 %v3341_v51, %v15162_v37  ;;  %9649 = vmatprep.subr.bf16.mxu0 %v3226_v49  ;;  %v3435_v41 = vpack.c.bf16 %v3413_v39, %v3412_v58  ;;  %v3082_v50 = vmul.f32 %v12796_v27, %v15164_v18  ;;  %v3288_v39 = vmul.f32 %v12730_v23, %v15165_v5 }
 0x3b2   :  { %v3343_v53 = vpop.permute.xlu0 %3342  ;;  %v3209_v15 = vadd.f32 %v3177_v14, %v3081_v8 }
 0x3b3   :  { %v3415_v11 = vadd.f32 %v3383_v24, %v3287_v2  ;;  %v3384_v51 = vmul.f32 %v3343_v53, %v12712_v9 }
 0x3b4   :  { %v3142_v42 = vpop.permute.xlu1 %3141 }
 0x3b5   :  { %v3178_v55 = vmul.f32 %v3142_v42, %v12787_v59  ;;  %v3436_v7 = vpack.c.bf16 %v3415_v11, %v3414_v26  ;;  %v3416_v26 = vadd.f32 %v3384_v51, %v3288_v39 }
 0x3b6   :  { %v3347_v10 = vpop.permute.xlu0 %3346 }
 0x3b7   :  { %v3210_v58 = vadd.f32 %v3178_v55, %v3082_v50  ;;  %9576 = vmatmul.mubr.bf16.gmra.mrb[76].mxu0 %v3433_v52  ;;  %v3386_v14 = vmul.f32 %v3347_v10, %v12746_v28  ;;  %v15167_v52 = vld [vmem:[#allocation54_spill] sm:$0xff]  ;;  %v15169_v10 = vld [vmem:[#allocation97_spill] sm:$0xff] }
 0x3b8   :  { %v3345_v3 = vpop.permute.xlu1 %3344  ;;  %9579 = vmatprep.mubr.bf16.mxu0 %v3434_v63  ;;  %9650 = vmatpush3.bf16.xpose.msra.mxu0 %v3226_v49  ;;  %v3290_v63 = vmul.f32 %v12760_v4, %v15167_v52  ;;  %v15168_v49 = vld [vmem:[#allocation58_spill] sm:$0xff] }
 0x3b9   :  { %v3385_v22 = vmul.f32 %v3345_v3, %v12723_v45  ;;  %9651 = vmatprep.subr.bf16.mxu0 %v3227_v20  ;;  %v3228_v2 = vpack.c.bf16 %v3210_v58, %v3209_v15  ;;  %v3291_v42 = vmul.f32 %v15152_v44, %v15168_v49  ;;  %v3083_v58 = vmul.f32 %v12828_v19, %v15169_v10  ;;  %v15170_v3 = vld [vmem:[#allocation98_spill] sm:$0xff] }
 0x3ba   :  { %v3144_v24 = vpop.permute.xlu0 %3143  ;;  %v3418_v50 = vadd.f32 %v3386_v14, %v3290_v63  ;;  %v3084_v5 = vmul.f32 %v12830_v38, %v15170_v3 }
 0x3bb   :  { %v3417_v53 = vadd.f32 %v3385_v22, %v3289_v25  ;;  %v3179_v55 = vmul.f32 %v3144_v24, %v12810_v17 }
 0x3bc   :  { %v3349_v11 = vpop.permute.xlu1 %3348 }
 0x3bd   :  { %v3387_v30 = vmul.f32 %v3349_v11, %v15153_v1  ;;  %v3437_v8 = vpack.c.bf16 %v3417_v53, %v3416_v26  ;;  %v3211_v22 = vadd.f32 %v3179_v55, %v3083_v58 }
 0x3be   :  { %v3351_v18 = vpop.permute.xlu0 %3350 }
 0x3bf   :  { %v3419_v15 = vadd.f32 %v3387_v30, %v3291_v42  ;;  %9580 = vmatmul.mubr.bf16.gmra.mrb[80].mxu0 %v3435_v41  ;;  %v3388_v26 = vmul.f32 %v3351_v18, %v12776_v61  ;;  %v15171_v41 = vld [vmem:[#allocation61_spill] sm:$0xff]  ;;  %v15173_v18 = vld [vmem:[#allocation67_spill] sm:$0xff] }
 0x3c0   :  { %v3146_v51 = vpop.permute.xlu1 %3145  ;;  %9583 = vmatprep.mubr.bf16.mxu0 %v3436_v7  ;;  %9652 = vmatpush3.bf16.xpose.msra.mxu0 %v3227_v20  ;;  %v3292_v7 = vmul.f32 %v12794_v16, %v15171_v41  ;;  %v15172_v20 = vld [vmem:[#allocation64_spill] sm:$0xff]  ;;  %v3294_v55 = vmul.f32 %v12828_v19, %v15173_v18 }
 0x3c1   :  { %v3180_v39 = vmul.f32 %v3146_v51, %v12821_v6  ;;  %9653 = vmatprep.subr.bf16.mxu0 %v3228_v2  ;;  %v3438_v43 = vpack.c.bf16 %v3419_v15, %v3418_v50  ;;  %v3293_v53 = vmul.f32 %v12796_v27, %v15172_v20  ;;  %v15174_v15 = vld [vmem:[#allocation70_spill] sm:$0xff] }
 0x3c2   :  { %v3355_v25 = vpop.permute.xlu0 %3354  ;;  %v3420_v49 = vadd.f32 %v3388_v26, %v3292_v7  ;;  %v3295_v51 = vmul.f32 %v12830_v38, %v15174_v15 }
 0x3c3   :  { %v3212_v24 = vadd.f32 %v3180_v39, %v3084_v5  ;;  %v3390_v42 = vmul.f32 %v3355_v25, %v12810_v17 }
 0x3c4   :  { %v3353_v14 = vpop.permute.xlu1 %3352 }
 0x3c5   :  { %v3389_v11 = vmul.f32 %v3353_v14, %v12787_v59  ;;  %v3229_v52 = vpack.c.bf16 %v3212_v24, %v3211_v22  ;;  %v3422_v5 = vadd.f32 %v3390_v42, %v3294_v55 }
 0x3c6   :  { %v3148_v63 = vpop.permute.xlu0 %3147 }
 0x3c7   :  { %v3421_v30 = vadd.f32 %v3389_v11, %v3293_v53  ;;  %9584 = vmatmul.mubr.bf16.gmra.mrb[84].mxu0 %v3437_v8  ;;  %v15175_v8 = vld [vmem:[#allocation73_spill] sm:$0xff]  ;;  %v3181_v7 = vmul.f32 %v3148_v63, %v12844_v12 }
 0x3c8   :  { %v3357_v50 = vpop.permute.xlu1 %3356  ;;  %9587 = vmatprep.mubr.bf16.mxu0 %v3438_v43  ;;  %9654 = vmatpush3.bf16.xpose.msra.mxu0 %v3228_v2  ;;  %v3296_v43 = vmul.f32 %v12858_v34, %v15175_v8  ;;  %v15176_v2 = vld [vmem:[#allocation76_spill] sm:$0xff] }
 0x3c9   :  { %v3391_v10 = vmul.f32 %v3357_v50, %v12821_v6  ;;  %9655 = vmatprep.subr.bf16.mxu0 %v3229_v52  ;;  %v3439_v58 = vpack.c.bf16 %v3421_v30, %v3420_v49  ;;  %v3297_v26 = vmul.f32 %v12860_v47, %v15176_v2  ;;  %v15177_v49 = vld [vmem:[#allocation100_spill] sm:$0xff]  ;;  %v15178_v30 = vld [vmem:[#allocation101_spill] sm:$0xff] }
 0x3ca   :  { %v3359_v3 = vpop.permute.xlu0 %3358  ;;  %v3085_v42 = vmul.f32 %v12858_v34, %v15177_v49  ;;  %v3086_v50 = vmul.f32 %v12860_v47, %v15178_v30 }
 0x3cb   :  { %v3423_v39 = vadd.f32 %v3391_v10, %v3295_v51  ;;  %v3392_v25 = vmul.f32 %v3359_v3, %v12844_v12 }
 0x3cc   :  { %v3361_v22 = vpop.permute.xlu1 %3360  ;;  %v3213_v51 = vadd.f32 %v3181_v7, %v3085_v42  ;;  %v15182_v7 = vld [vmem:[#allocation34_spill] sm:$0xff] }
 0x3cd   :  { %v3393_v24 = vmul.f32 %v3361_v22, %v12855_v62  ;;  %v3440_v14 = vpack.c.bf16 %v3423_v39, %v3422_v5  ;;  %v3424_v20 = vadd.f32 %v3392_v25, %v3296_v43  ;;  %v15179_v5 = vld [vmem:[#allocation27_spill] sm:$0xff] }
 0x3ce   :  { %v4157_v41 = vpop.permute.xlu0 %4156 }
 0x3cf   :  { %v3425_v53 = vadd.f32 %v3393_v24, %v3297_v26  ;;  %9588 = vmatmul.mubr.bf16.gmra.mrb[88].mxu0 %v3439_v58  ;;  %v4220_v10 = vmul.f32 %v4157_v41, %v12617_v46  ;;  %v4124_v58 = vmul.f32 %v12623_v35, %v15179_v5 }
 0x3d0   :  { %9591 = vmatprep.mubr.bf16.mxu0 %v3440_v14  ;;  %9656 = vmatpush3.bf16.xpose.msra.mxu0 %v3229_v52  ;;  %v3150_v11 = vpop.permute.xlu1 %3149  ;;  %v15180_v52 = vld [vmem:[#allocation29_spill] sm:$0xff]  ;;  %v15181_v14 = vld [vmem:[#allocation31_spill] sm:$0xff] }
 0x3d1   :  { %v3182_v18 = vmul.f32 %v3150_v11, %v12855_v62  ;;  %v3441_v55 = vpack.c.bf16 %v3425_v53, %v3424_v20  ;;  %v4125_v39 = vmul.f32 %v12626_v33, %v15180_v52  ;;  %v4252_v43 = vadd.f32 %v4220_v10, %v4124_v58 }
 0x3d2   :  { %v4161_v15 = vpop.permute.xlu0 %4160  ;;  %v4126_v41 = vmul.f32 %v15156_v32, %v15181_v14  ;;  %v4127_v20 = vmul.f32 %v15158_v40, %v15182_v7 }
 0x3d3   :  { %v3214_v63 = vadd.f32 %v3182_v18, %v3086_v50  ;;  %v4222_v2 = vmul.f32 %v4161_v15, %v15154_v13 }
 0x3d4   :  { %v4159_v3 = vpop.permute.xlu1 %4158 }
 0x3d5   :  { %v4221_v25 = vmul.f32 %v4159_v3, %v12619_v56  ;;  %v3230_v22 = vpack.c.bf16 %v3214_v63, %v3213_v51  ;;  %v4254_v42 = vadd.f32 %v4222_v2, %v4126_v41  ;;  %v15184_v51 = vld [vmem:[#allocation40_spill] sm:$0xff] }
 0x3d6   :  { %v4165_v8 = vpop.permute.xlu0 %4164  ;;  %v4129_v10 = vmul.f32 %v12698_v21, %v15184_v51 }
 0x3d7   :  { %v4253_v26 = vadd.f32 %v4221_v25, %v4125_v39  ;;  %9592 = vmatmul.mubr.bf16.gmra.mrb[92].mxu0 %v3441_v55  ;;  %9657 = vmatprep.subr.bf16.mxu0 %v3230_v22  ;;  %v4224_v30 = vmul.f32 %v4165_v8, %v12678_v31  ;;  %v15183_v55 = vld [vmem:[#allocation37_spill] sm:$0xff] }
 0x3d8   :  { %v4163_v24 = vpop.permute.xlu1 %4162  ;;  %9658 = vmatpush3.bf16.xpose.msra.mxu0 %v3230_v22  ;;  %v4128_v15 = vmul.f32 %v12696_v36, %v15183_v55  ;;  %v15185_v22 = vld [vmem:[#allocation45_spill] sm:$0xff] }
 0x3d9   :  { %v4223_v53 = vmul.f32 %v4163_v24, %v15159_v60  ;;  %v4284_v11 = vpack.c.bf16 %v4253_v26, %v4252_v43  ;;  %v4130_v8 = vmul.f32 %v12730_v23, %v15185_v22  ;;  %v15186_v43 = vld [vmem:[#allocation49_spill] sm:$0xff] }
 0x3da   :  { %v4169_v49 = vpop.permute.xlu0 %4168  ;;  %v4256_v58 = vadd.f32 %v4224_v30, %v4128_v15  ;;  %v4131_v2 = vmul.f32 %v12732_v54, %v15186_v43 }
 0x3db   :  { %v4255_v50 = vadd.f32 %v4223_v53, %v4127_v20  ;;  %9659 = vmatprep.mubr.bf16.mxu0 %v4284_v11  ;;  %v4226_v52 = vmul.f32 %v4169_v49, %v12712_v9  ;;  %v15187_v11 = vld [vmem:[#allocation53_spill] sm:$0xff] }
 0x3dc   :  { %v4167_v18 = vpop.permute.xlu1 %4166  ;;  %v4132_v49 = vmul.f32 %v12760_v4, %v15187_v11 }
 0x3dd   :  { %v4285_v63 = vpack.c.bf16 %v4255_v50, %v4254_v42  ;;  %v4225_v3 = vmul.f32 %v4167_v18, %v15162_v37  ;;  %v4258_v41 = vadd.f32 %v4226_v52, %v4130_v8  ;;  %v15188_v42 = vld [vmem:[#allocation57_spill] sm:$0xff] }
 0x3de   :  { %v4173_v5 = vpop.permute.xlu0 %4172  ;;  %v4133_v30 = vmul.f32 %v15152_v44, %v15188_v42 }
 0x3df   :  { %v4257_v39 = vadd.f32 %v4225_v3, %v4129_v10  ;;  %9660 = vmatmul.mubr.bf16.vlgmr.msra.gmra.mrb[96].mxu0 %v4285_v63  ;;  %v4228_v7 = vmul.f32 %v4173_v5, %v12746_v28  ;;  %v15189_v3 = vld [vmem:[#allocation60_spill] sm:$0xff] }
 0x3e0   :  { %v4171_v25 = vpop.permute.xlu1 %4170  ;;  %v4134_v5 = vmul.f32 %v12794_v16, %v15189_v3 }
 0x3e1   :  { %v4227_v26 = vmul.f32 %v4171_v25, %v12723_v45  ;;  %v4286_v24 = vpack.c.bf16 %v4257_v39, %v4256_v58  ;;  %v4260_v15 = vadd.f32 %v4228_v7, %v4132_v49  ;;  %v15190_v58 = vld [vmem:[#allocation63_spill] sm:$0xff] }
 0x3e2   :  { %v4177_v14 = vpop.permute.xlu0 %4176  ;;  %v4135_v52 = vmul.f32 %v12796_v27, %v15190_v58 }
 0x3e3   :  { %v4259_v20 = vadd.f32 %v4227_v26, %v4131_v2  ;;  %9663 = vmatprep.mubr.bf16.mxu0 %v4286_v24  ;;  %v4230_v51 = vmul.f32 %v4177_v14, %v12776_v61  ;;  %v15191_v24 = vld [vmem:[#allocation66_spill] sm:$0xff] }
 0x3e4   :  { %v4175_v53 = vpop.permute.xlu1 %4174  ;;  %v4136_v14 = vmul.f32 %v12828_v19, %v15191_v24 }
 0x3e5   :  { %v4229_v50 = vmul.f32 %v4175_v53, %v15153_v1  ;;  %v4287_v18 = vpack.c.bf16 %v4259_v20, %v4258_v41  ;;  %v4262_v8 = vadd.f32 %v4230_v51, %v4134_v5  ;;  %v15192_v41 = vld [vmem:[#allocation69_spill] sm:$0xff] }
 0x3e6   :  { %v4181_v55 = vpop.permute.xlu0 %4180  ;;  %v4137_v7 = vmul.f32 %v12830_v38, %v15192_v41 }
 0x3e7   :  { %v4261_v10 = vadd.f32 %v4229_v50, %v4133_v30  ;;  %9664 = vmatmul.mubr.bf16.gmra.mrb[100].mxu0 %v4287_v18  ;;  %v4232_v43 = vmul.f32 %v4181_v55, %v12810_v17  ;;  %v15193_v18 = vld [vmem:[#allocation72_spill] sm:$0xff] }
 0x3e8   :  { %v4179_v63 = vpop.permute.xlu1 %4178  ;;  %v4138_v55 = vmul.f32 %v12858_v34, %v15193_v18 }
 0x3e9   :  { %v4231_v39 = vmul.f32 %v4179_v63, %v12787_v59  ;;  %v4288_v25 = vpack.c.bf16 %v4261_v10, %v4260_v15  ;;  %v4264_v49 = vadd.f32 %v4232_v43, %v4136_v14  ;;  %v15194_v15 = vld [vmem:[#allocation75_spill] sm:$0xff] }
 0x3ea   :  { %v4185_v22 = vpop.permute.xlu0 %4184  ;;  %v4139_v51 = vmul.f32 %v12860_v47, %v15194_v15  ;;  %v15200_v15 = vld [vmem:[#allocation43_spill] sm:$0xff] }
 0x3eb   :  { %v4263_v2 = vadd.f32 %v4231_v39, %v4135_v52  ;;  %9667 = vmatprep.mubr.bf16.mxu0 %v4288_v25  ;;  %v4234_v42 = vmul.f32 %v4185_v22, %v12844_v12  ;;  %v15195_v25 = vld [vmem:[#allocation28_spill] sm:$0xff] }
 0x3ec   :  { %v4183_v26 = vpop.permute.xlu1 %4182  ;;  %v4140_v22 = vmul.f32 %v12623_v35, %v15195_v25 }
 0x3ed   :  { %v4233_v20 = vmul.f32 %v4183_v26, %v12821_v6  ;;  %v4289_v53 = vpack.c.bf16 %v4263_v2, %v4262_v8  ;;  %v4266_v5 = vadd.f32 %v4234_v42, %v4138_v55  ;;  %v15196_v8 = vld [vmem:[#allocation30_spill] sm:$0xff] }
 0x3ee   :  { %v4189_v11 = vpop.permute.xlu0 %4188  ;;  %v4141_v43 = vmul.f32 %v12626_v33, %v15196_v8 }
 0x3ef   :  { %v4265_v30 = vadd.f32 %v4233_v20, %v4137_v7  ;;  %9668 = vmatmul.mubr.bf16.gmra.mrb[104].mxu0 %v4289_v53  ;;  %v4236_v58 = vmul.f32 %v4189_v11, %v12617_v46  ;;  %v15197_v46 = vld [vmem:[#allocation33_spill] sm:$0xff]  ;;  %v15198_v11 = vld [vmem:[#allocation36_spill] sm:$0xff] }
 0x3f0   :  { %v4187_v50 = vpop.permute.xlu1 %4186  ;;  %v4142_v53 = vmul.f32 %v15156_v32, %v15197_v46 }
 0x3f1   :  { %v4235_v10 = vmul.f32 %v4187_v50, %v12855_v62  ;;  %v4290_v63 = vpack.c.bf16 %v4265_v30, %v4264_v49  ;;  %v4268_v14 = vadd.f32 %v4236_v58, %v4140_v22  ;;  %v4143_v49 = vmul.f32 %v15158_v40, %v15198_v11 }
 0x3f2   :  { %v4193_v3 = vpop.permute.xlu0 %4192 }
 0x3f3   :  { %v4267_v52 = vadd.f32 %v4235_v10, %v4139_v51  ;;  %9671 = vmatprep.mubr.bf16.mxu0 %v4290_v63  ;;  %v4238_v41 = vmul.f32 %v4193_v3, %v15154_v13  ;;  %v15199_v13 = vld [vmem:[#allocation42_spill] sm:$0xff]  ;;  %v4145_v51 = vmul.f32 %v12698_v21, %v15200_v15 }
 0x3f4   :  { %v4191_v39 = vpop.permute.xlu1 %4190  ;;  %v4144_v55 = vmul.f32 %v12696_v36, %v15199_v13 }
 0x3f5   :  { %v4237_v2 = vmul.f32 %v4191_v39, %v12619_v56  ;;  %v4291_v26 = vpack.c.bf16 %v4267_v52, %v4266_v5  ;;  %v4270_v30 = vadd.f32 %v4238_v41, %v4142_v53  ;;  %v15202_v52 = vld [vmem:[#allocation51_spill] sm:$0xff]  ;;  %v4151_v53 = vmul.f32 %v12796_v27, %v15143_v57 }
 0x3f6   :  { %v4197_v24 = vpop.permute.xlu0 %4196  ;;  %v4147_v39 = vmul.f32 %v12732_v54, %v15202_v52 }
 0x3f7   :  { %v4269_v7 = vadd.f32 %v4237_v2, %v4141_v43  ;;  %9672 = vmatmul.mubr.bf16.gmra.mrb[108].mxu0 %v4291_v26  ;;  %v4240_v56 = vmul.f32 %v4197_v24, %v12678_v31  ;;  %v15201_v31 = vld [vmem:[#allocation47_spill] sm:$0xff] }
 0x3f8   :  { %v4195_v20 = vpop.permute.xlu1 %4194  ;;  %v4146_v58 = vmul.f32 %v12730_v23, %v15201_v31  ;;  %v15204_v26 = vld [vmem:[#allocation59_spill] sm:$0xff] }
 0x3f9   :  { %v4239_v35 = vmul.f32 %v4195_v20, %v15159_v60  ;;  %v4292_v42 = vpack.c.bf16 %v4269_v7, %v4268_v14  ;;  %v4272_v63 = vadd.f32 %v4240_v56, %v4144_v55  ;;  %v4149_v24 = vmul.f32 %v15152_v44, %v15204_v26 }
 0x3fa   :  { %v4201_v33 = vpop.permute.xlu0 %4200 }
 0x3fb   :  { %v4271_v50 = vadd.f32 %v4239_v35, %v4143_v49  ;;  %9675 = vmatprep.mubr.bf16.mxu0 %v4292_v42  ;;  %v4242_v60 = vmul.f32 %v4201_v33, %v12712_v9  ;;  %v15203_v9 = vld [vmem:[#allocation55_spill] sm:$0xff]  ;;  %v4153_v33 = vmul.f32 %v12830_v38, %v15145_v48  ;;  %v15207_v48 = vld [vmem:[#allocation26_spill] sm:$0xff] }
 0x3fc   :  { %v4199_v18 = vpop.permute.xlu1 %4198  ;;  %v4148_v2 = vmul.f32 %v12760_v4, %v15203_v9  ;;  %v13100_v55 = vadd.s32 16, %v15207_v48  ;;  %v13146_v31 = vadd.s32 40, %v15207_v48 }
 0x3fd   :  { %v4241_v32 = vmul.f32 %v4199_v18, %v15162_v37  ;;  %v4293_v10 = vpack.c.bf16 %v4271_v50, %v4270_v30  ;;  %v4274_v22 = vadd.f32 %v4242_v60, %v4146_v58  ;;  %v4155_v18 = vmul.f32 %v12860_v47, %v15146_v0 }
 0x3fe   :  { %v4205_v40 = vpop.permute.xlu0 %4204  ;;  %v13121_v0 = vadd.s32 24, %v15207_v48 }
 0x3ff   :  { %v4273_v3 = vadd.f32 %v4241_v32, %v4145_v51  ;;  %9676 = vmatmul.mubr.bf16.gmra.mrb[112].mxu0 %v4293_v10  ;;  %v4244_v37 = vmul.f32 %v4205_v40, %v12746_v28  ;;  %v15205_v28 = vld [vmem:[#allocation62_spill] sm:$0xff]  ;;  %v13106_v51 = vadd.s32 8, %v15207_v48 }
 0x400   :  { %v4203_v5 = vpop.permute.xlu1 %4202  ;;  %v4150_v46 = vmul.f32 %v12794_v16, %v15205_v28 }
 0x401   :  { %v4243_v36 = vmul.f32 %v4203_v5, %v12723_v45  ;;  %v4294_v25 = vpack.c.bf16 %v4273_v3, %v4272_v63  ;;  %v4276_v41 = vadd.f32 %v4244_v37, %v4148_v2  ;;  %v13129_v63 = vadd.s32 56, %v15207_v48 }
 0x402   :  { %v4209_v21 = vpop.permute.xlu0 %4208  ;;  %v13141_v3 = vadd.s32 48, %v15207_v48  ;;  %v13190_v2 = vadd.s32 72, %v15207_v48 }
 0x403   :  { %v4275_v8 = vadd.f32 %v4243_v36, %v4147_v39  ;;  %9679 = vmatprep.mubr.bf16.mxu0 %v4294_v25  ;;  %v4246_v45 = vmul.f32 %v4209_v21, %v12776_v61  ;;  %v4152_v61 = vmul.f32 %v12828_v19, %v15142_v29  ;;  %v13156_v39 = vadd.s32 32, %v15207_v48 }
 0x404   :  { %v4207_v43 = vpop.permute.xlu1 %4206 }
 0x405   :  { %v4245_v23 = vmul.f32 %v4207_v43, %v15153_v1  ;;  %v4295_v14 = vpack.c.bf16 %v4275_v8, %v4274_v22  ;;  %v4278_v44 = vadd.f32 %v4246_v45, %v4150_v46  ;;  %v13168_v22 = vadd.s32 88, %v15207_v48 }
 0x406   :  { %v4213_v54 = vpop.permute.xlu0 %4212  ;;  %v13179_v8 = vadd.s32 80, %v15207_v48  ;;  %v13212_v45 = vadd.s32 120, %v15207_v48 }
 0x407   :  { %v4277_v7 = vadd.f32 %v4245_v23, %v4149_v24  ;;  %9680 = vmatmul.mubr.bf16.gmra.mrb[116].mxu0 %v4295_v14  ;;  %v4248_v1 = vmul.f32 %v4213_v54, %v12810_v17  ;;  %v15206_v17 = vld [vmem:[#allocation74_spill] sm:$0xff]  ;;  %v13200_v23 = vadd.s32 64, %v15207_v48 }
 0x408   :  { %v4211_v20 = vpop.permute.xlu1 %4210  ;;  %v4154_v50 = vmul.f32 %v12858_v34, %v15206_v17 }
 0x409   :  { %v4247_v4 = vmul.f32 %v4211_v20, %v12787_v59  ;;  %v4296_v11 = vpack.c.bf16 %v4277_v7, %v4276_v41  ;;  %v4280_v27 = vadd.f32 %v4248_v1, %v4152_v61  ;;  %v13223_v20 = vadd.s32 112, %v15207_v48 }
 0x40a   :  { %v4217_v35 = vpop.permute.xlu0 %4216 }
 0x40b   :  { %v4279_v49 = vadd.f32 %v4247_v4, %v4151_v53  ;;  %9683 = vmatprep.mubr.bf16.mxu0 %v4296_v11  ;;  %v4250_v59 = vmul.f32 %v4217_v35, %v12844_v12  ;;  %v15208_v12 = vlaneseq  ;;  %v13234_v53 = vadd.s32 104, %v15207_v48 }
 0x40c   :  { %v4215_v42 = vpop.permute.xlu1 %4214 }
 0x40d   :  { %v4249_v16 = vmul.f32 %v4215_v42, %v12821_v6  ;;  %v4297_v30 = vpack.c.bf16 %v4279_v49, %v4278_v44  ;;  %v4282_v13 = vadd.f32 %v4250_v59, %v4154_v50  ;;  %v13103_v15 = vand.u32 127, %v15208_v12 }
 0x40e   :  { %v13244_v44 = vadd.s32 96, %v15207_v48 }
 0x40f   :  { %v4281_v57 = vadd.f32 %v4249_v16, %v4153_v33  ;;  %9684 = vmatmul.mubr.bf16.gmra.mrb[120].mxu0 %v4297_v30  ;;  %vm3252_vm0 = vcmp.le.s32.totalorder %v13103_v15, %v13100_v55  ;;  %vm3251_vm1 = vcmp.le.s32.totalorder %v13103_v15, %v13106_v51  ;;  %vm3250_vm2 = vcmp.le.s32.totalorder %v13103_v15, %v15207_v48 }
 0x410   :  { %v4219_v56 = vpop.permute.xlu1 %4218  ;;  %vm3253_vm3 = vcmp.le.s32.totalorder %v13103_v15, %v13121_v0  ;;  %vm3257_vm4 = vcmp.le.s32.totalorder %v13103_v15, %v13129_v63  ;;  %vm3256_vm5 = vcmp.le.s32.totalorder %v13103_v15, %v13141_v3  ;;  %vm3255_vm6 = vcmp.le.s32.totalorder %v13103_v15, %v13146_v31 }
 0x411   :  { %v4251_v19 = vmul.f32 %v4219_v56, %v12855_v62  ;;  %v4298_v29 = vpack.c.bf16 %v4281_v57, %v4280_v27  ;;  %vm3254_vm7 = vcmp.le.s32.totalorder %v13103_v15, %v13156_v39  ;;  %vm3261_vm8 = vcmp.le.s32.totalorder %v13103_v15, %v13168_v22 }
 0x412   :  { %vm3260_vm9 = vcmp.le.s32.totalorder %v13103_v15, %v13179_v8  ;;  %vm3259_vm10 = vcmp.le.s32.totalorder %v13103_v15, %v13190_v2  ;;  %vm3258_vm11 = vcmp.le.s32.totalorder %v13103_v15, %v13200_v23  ;;  %vm3265_vm12 = vcmp.le.s32.totalorder %v13103_v15, %v13212_v45 }
 0x413   :  { %v4283_v38 = vadd.f32 %v4251_v19, %v4155_v18  ;;  %9687 = vmatprep.mubr.bf16.mxu0 %v4298_v29  ;;  %vm3264_vm13 = vcmp.le.s32.totalorder %v13103_v15, %v13223_v20  ;;  %vm3263_vm14 = vcmp.le.s32.totalorder %v13103_v15, %v13234_v53  ;;  %vm3262_vm15 = vcmp.le.s32.totalorder %v13103_v15, %v13244_v44 }
 0x415   :  { %v4299_v6 = vpack.c.bf16 %v4283_v38, %v4282_v13 }
 0x417   :  { %9688 = vmatmul.mubr.bf16.gmra.mrb[124].mxu0 %v4299_v6 }
 0x472   :  { %v9565_v34 = vpop.f32.mrb[64].mxu0 }
 0x473   :  { %v13113_v62 = vsel %vm3252_vm0, %v9565_v34, -1e+30  ;;  %v3484_v47 = vpop.f32.mrb[65].mxu0 }
 0x474   :  { %3647 = vmax.xlane.f32.xlu0 %v13113_v62  ;;  %v9566_v32 = vpop.f32.mrb[66].mxu0  ;;  %v13134_v60 = vsel %vm3250_vm2, %v3484_v47, -1e+30 }
 0x475   :  { %v3487_v10 = vpop.f32.mrb[67].mxu0  ;;  %v13151_v58 = vsel %vm3253_vm3, %v9566_v32, -1e+30 }
 0x476   :  { %v13126_v40 = vsel %vm3251_vm1, %v3487_v10, -1e+30 }
 0x477   :  { %3645 = vmax.xlane.f32.xlu1 %v13126_v40 }
 0x478   :  { %3643 = vmax.xlane.f32.xlu0 %v13134_v60 }
 0x47a   :  { %v9569_v5 = vpop.f32.mrb[68].mxu0 }
 0x47b   :  { %v3500_v52 = vpop.f32.mrb[69].mxu0  ;;  %v13173_v37 = vsel %vm3256_vm5, %v9569_v5, -1e+30 }
 0x47c   :  { %3649 = vmax.xlane.f32.xlu0 %v13151_v58  ;;  %v9570_v36 = vpop.f32.mrb[70].mxu0  ;;  %v13195_v26 = vsel %vm3254_vm7, %v3500_v52, -1e+30 }
 0x47d   :  { %v13162_v25 = vsel %vm3257_vm4, %v9570_v36, -1e+30  ;;  %v3503_v21 = vpop.f32.mrb[71].mxu0 }
 0x47e   :  { %3657 = vmax.xlane.f32.xlu1 %v13162_v25  ;;  %v13184_v43 = vsel %vm3255_vm6, %v3503_v21, -1e+30 }
 0x480   :  { %3655 = vmax.xlane.f32.xlu0 %v13173_v37 }
 0x482   :  { %3653 = vmax.xlane.f32.xlu1 %v13184_v43  ;;  %v9573_v9 = vpop.f32.mrb[72].mxu0 }
 0x483   :  { %v3516_v24 = vpop.f32.mrb[73].mxu0  ;;  %v13217_v7 = vsel %vm3260_vm9, %v9573_v9, -1e+30 }
 0x484   :  { %3651 = vmax.xlane.f32.xlu0 %v13195_v26  ;;  %v9574_v14 = vpop.f32.mrb[74].mxu0  ;;  %v13239_v4 = vsel %vm3258_vm11, %v3516_v24, -1e+30 }
 0x485   :  { %v13206_v54 = vsel %vm3261_vm8, %v9574_v14, -1e+30  ;;  %v3519_v41 = vpop.f32.mrb[75].mxu0 }
 0x486   :  { %3665 = vmax.xlane.f32.xlu1 %v13206_v54  ;;  %v13228_v28 = vsel %vm3259_vm10, %v3519_v41, -1e+30 }
 0x488   :  { %3663 = vmax.xlane.f32.xlu0 %v13217_v7 }
 0x48a   :  { %3661 = vmax.xlane.f32.xlu1 %v13228_v28  ;;  %v9577_v46 = vpop.f32.mrb[76].mxu0 }
 0x48b   :  { %v3532_v11 = vpop.f32.mrb[77].mxu0  ;;  %v13258_v42 = vsel %vm3264_vm13, %v9577_v46, -1e+30 }
 0x48c   :  { %3659 = vmax.xlane.f32.xlu0 %v13239_v4  ;;  %v9578_v1 = vpop.f32.mrb[78].mxu0  ;;  %v13272_v16 = vsel %vm3262_vm15, %v3532_v11, -1e+30 }
 0x48d   :  { %v13250_v49 = vsel %vm3265_vm12, %v9578_v1, -1e+30  ;;  %v3535_v35 = vpop.f32.mrb[79].mxu0 }
 0x48e   :  { %3673 = vmax.xlane.f32.xlu1 %v13250_v49  ;;  %v13266_v61 = vsel %vm3263_vm14, %v3535_v35, -1e+30 }
 0x490   :  { %3671 = vmax.xlane.f32.xlu0 %v13258_v42 }
 0x492   :  { %3669 = vmax.xlane.f32.xlu1 %v13266_v61  ;;  %v9581_v33 = vpop.f32.mrb[80].mxu0 }
 0x493   :  { %v3548_v30 = vpop.f32.mrb[81].mxu0  ;;  %v13284_v56 = vsel %vm3252_vm0, %v9581_v33, -1e+30 }
 0x494   :  { %3667 = vmax.xlane.f32.xlu0 %v13272_v16  ;;  %v9582_v27 = vpop.f32.mrb[82].mxu0  ;;  %v13296_v18 = vsel %vm3250_vm2, %v3548_v30, -1e+30 }
 0x495   :  { %v13278_v59 = vsel %vm3253_vm3, %v9582_v27, -1e+30  ;;  %v3551_v57 = vpop.f32.mrb[83].mxu0 }
 0x496   :  { %3681 = vmax.xlane.f32.xlu1 %v13278_v59  ;;  %v13290_v17 = vsel %vm3251_vm1, %v3551_v57, -1e+30 }
 0x498   :  { %3679 = vmax.xlane.f32.xlu0 %v13284_v56 }
 0x49a   :  { %3677 = vmax.xlane.f32.xlu1 %v13290_v17  ;;  %v9585_v50 = vpop.f32.mrb[84].mxu0 }
 0x49b   :  { %v3564_v19 = vpop.f32.mrb[85].mxu0  ;;  %v13308_v6 = vsel %vm3256_vm5, %v9585_v50, -1e+30 }
 0x49c   :  { %3675 = vmax.xlane.f32.xlu0 %v13296_v18  ;;  %v9586_v29 = vpop.f32.mrb[86].mxu0  ;;  %v13320_v47 = vsel %vm3254_vm7, %v3564_v19, -1e+30 }
 0x49d   :  { %v13302_v13 = vsel %vm3257_vm4, %v9586_v29, -1e+30  ;;  %v3567_v38 = vpop.f32.mrb[87].mxu0 }
 0x49e   :  { %3689 = vmax.xlane.f32.xlu1 %v13302_v13  ;;  %v13314_v12 = vsel %vm3255_vm6, %v3567_v38, -1e+30 }
 0x4a0   :  { %3687 = vmax.xlane.f32.xlu0 %v13308_v6 }
 0x4a2   :  { %3685 = vmax.xlane.f32.xlu1 %v13314_v12  ;;  %v9589_v34 = vpop.f32.mrb[88].mxu0 }
 0x4a3   :  { %v3580_v32 = vpop.f32.mrb[89].mxu0  ;;  %v13332_v36 = vsel %vm3260_vm9, %v9589_v34, -1e+30 }
 0x4a4   :  { %3683 = vmax.xlane.f32.xlu0 %v13320_v47  ;;  %v9590_v10 = vpop.f32.mrb[90].mxu0  ;;  %v13344_v24 = vsel %vm3258_vm11, %v3580_v32, -1e+30 }
 0x4a5   :  { %v13326_v5 = vsel %vm3261_vm8, %v9590_v10, -1e+30  ;;  %v3583_v52 = vpop.f32.mrb[91].mxu0 }
 0x4a6   :  { %3697 = vmax.xlane.f32.xlu1 %v13326_v5  ;;  %v13338_v21 = vsel %vm3259_vm10, %v3583_v52, -1e+30 }
 0x4a8   :  { %3695 = vmax.xlane.f32.xlu0 %v13332_v36 }
 0x4aa   :  { %3693 = vmax.xlane.f32.xlu1 %v13338_v21  ;;  %v9593_v9 = vpop.f32.mrb[92].mxu0 }
 0x4ab   :  { %v3596_v14 = vpop.f32.mrb[93].mxu0  ;;  %v13356_v1 = vsel %vm3264_vm13, %v9593_v9, -1e+30 }
 0x4ac   :  { %3691 = vmax.xlane.f32.xlu0 %v13344_v24  ;;  %v9594_v41 = vpop.f32.mrb[94].mxu0  ;;  %v13368_v30 = vsel %vm3262_vm15, %v3596_v14, -1e+30 }
 0x4ad   :  { %v13350_v46 = vsel %vm3265_vm12, %v9594_v41, -1e+30  ;;  %v3599_v11 = vpop.f32.mrb[95].mxu0 }
 0x4ae   :  { %3705 = vmax.xlane.f32.xlu1 %v13350_v46  ;;  %v13362_v35 = vsel %vm3263_vm14, %v3599_v11, -1e+30 }
 0x4b0   :  { %3703 = vmax.xlane.f32.xlu0 %v13356_v1 }
 0x4b2   :  { %3701 = vmax.xlane.f32.xlu1 %v13362_v35  ;;  %v9661_v33 = vpop.f32.mrb[96].mxu0 }
 0x4b3   :  { %v4342_v27 = vpop.f32.mrb[97].mxu0  ;;  %v13380_v29 = vsel %vm3252_vm0, %v9661_v33, -1e+30 }
 0x4b4   :  { %3699 = vmax.xlane.f32.xlu0 %v13368_v30  ;;  %v9662_v57 = vpop.f32.mrb[98].mxu0  ;;  %v13392_v32 = vsel %vm3250_vm2, %v4342_v27, -1e+30 }
 0x4b5   :  { %v13374_v50 = vsel %vm3253_vm3, %v9662_v57, -1e+30  ;;  %v4345_v19 = vpop.f32.mrb[99].mxu0 }
 0x4b6   :  { %4507 = vmax.xlane.f32.xlu1 %v13374_v50  ;;  %v13386_v38 = vsel %vm3251_vm1, %v4345_v19, -1e+30 }
 0x4b8   :  { %4505 = vmax.xlane.f32.xlu0 %v13380_v29 }
 0x4ba   :  { %4503 = vmax.xlane.f32.xlu1 %v13386_v38  ;;  %v9665_v34 = vpop.f32.mrb[100].mxu0 }
 0x4bb   :  { %v4358_v10 = vpop.f32.mrb[101].mxu0  ;;  %v13404_v41 = vsel %vm3256_vm5, %v9665_v34, -1e+30 }
 0x4bc   :  { %4501 = vmax.xlane.f32.xlu0 %v13392_v32  ;;  %v9666_v52 = vpop.f32.mrb[102].mxu0  ;;  %v13416_v27 = vsel %vm3254_vm7, %v4358_v10, -1e+30 }
 0x4bd   :  { %v13398_v9 = vsel %vm3257_vm4, %v9666_v52, -1e+30  ;;  %v4361_v14 = vpop.f32.mrb[103].mxu0  ;;  %15210 = vst [vmem:[#allocation79_spill] sm:$0xff] %v13416_v27 }
 0x4be   :  { %15209 = vst [vmem:[#allocation85_spill] sm:$0xff] %v13398_v9  ;;  %4515 = vmax.xlane.f32.xlu1 %v13398_v9  ;;  %v13410_v11 = vsel %vm3255_vm6, %v4361_v14, -1e+30 }
 0x4c0   :  { %4513 = vmax.xlane.f32.xlu0 %v13404_v41 }
 0x4c2   :  { %4511 = vmax.xlane.f32.xlu1 %v13410_v11  ;;  %v9669_v33 = vpop.f32.mrb[104].mxu0 }
 0x4c3   :  { %v4374_v57 = vpop.f32.mrb[105].mxu0  ;;  %v13428_v14 = vsel %vm3260_vm9, %v9669_v33, -1e+30 }
 0x4c4   :  { %4509 = vmax.xlane.f32.xlu0 %v13416_v27  ;;  %v9670_v19 = vpop.f32.mrb[106].mxu0  ;;  %15212 = vst [vmem:[#allocation87_spill] sm:$0xff] %v13428_v14 }
 0x4c5   :  { %v13422_v34 = vsel %vm3261_vm8, %v9670_v19, -1e+30  ;;  %v4377_v52 = vpop.f32.mrb[107].mxu0  ;;  %v13440_v19 = vsel %vm3258_vm11, %v4374_v57, -1e+30 }
 0x4c6   :  { %15211 = vst [vmem:[#allocation80_spill] sm:$0xff] %v13422_v34  ;;  %4523 = vmax.xlane.f32.xlu1 %v13422_v34  ;;  %v13434_v10 = vsel %vm3259_vm10, %v4377_v52, -1e+30  ;;  %15214 = vst [vmem:[#allocation44_spill] sm:$0xff] %v13440_v19 }
 0x4c7   :  { %15213 = vst [vmem:[#allocation88_spill] sm:$0xff] %v13434_v10 }
 0x4c8   :  { %4521 = vmax.xlane.f32.xlu0 %v13428_v14 }
 0x4ca   :  { %4519 = vmax.xlane.f32.xlu1 %v13434_v10  ;;  %v9673_v9 = vpop.f32.mrb[108].mxu0 }
 0x4cb   :  { %v4390_v34 = vpop.f32.mrb[109].mxu0  ;;  %v13452_v52 = vsel %vm3264_vm13, %v9673_v9, -1e+30 }
 0x4cc   :  { %4517 = vmax.xlane.f32.xlu0 %v13440_v19  ;;  %v9674_v33 = vpop.f32.mrb[110].mxu0  ;;  %15216 = vst [vmem:[#allocation91_spill] sm:$0xff] %v13452_v52 }
 0x4cd   :  { %v13446_v14 = vsel %vm3265_vm12, %v9674_v33, -1e+30  ;;  %v4393_v27 = vpop.f32.mrb[111].mxu0  ;;  %v13464_v33 = vsel %vm3262_vm15, %v4390_v34, -1e+30 }
 0x4ce   :  { %15215 = vst [vmem:[#allocation48_spill] sm:$0xff] %v13446_v14  ;;  %4531 = vmax.xlane.f32.xlu1 %v13446_v14  ;;  %v13458_v57 = vsel %vm3263_vm14, %v4393_v27, -1e+30 }
 0x4d0   :  { %4529 = vmax.xlane.f32.xlu0 %v13452_v52 }
 0x4d2   :  { %4527 = vmax.xlane.f32.xlu1 %v13458_v57  ;;  %v9677_v19 = vpop.f32.mrb[112].mxu0 }
 0x4d3   :  { %v4406_v14 = vpop.f32.mrb[113].mxu0  ;;  %v13476_v27 = vsel %vm3252_vm0, %v9677_v19, -1e+30 }
 0x4d4   :  { %4525 = vmax.xlane.f32.xlu0 %v13464_v33  ;;  %v9678_v9 = vpop.f32.mrb[114].mxu0 }
 0x4d5   :  { %v13470_v52 = vsel %vm3253_vm3, %v9678_v9, -1e+30  ;;  %v4409_v10 = vpop.f32.mrb[115].mxu0  ;;  %v13488_v9 = vsel %vm3250_vm2, %v4406_v14, -1e+30 }
 0x4d6   :  { %15217 = vst [vmem:[#allocation93_spill] sm:$0xff] %v13470_v52  ;;  %4539 = vmax.xlane.f32.xlu1 %v13470_v52  ;;  %v13482_v34 = vsel %vm3251_vm1, %v4409_v10, -1e+30 }
 0x4d8   :  { %4537 = vmax.xlane.f32.xlu0 %v13476_v27 }
 0x4da   :  { %4535 = vmax.xlane.f32.xlu1 %v13482_v34  ;;  %v9681_v0 = vpop.f32.mrb[116].mxu0 }
 0x4db   :  { %v4422_v52 = vpop.f32.mrb[117].mxu0  ;;  %v13500_v10 = vsel %vm3256_vm5, %v9681_v0, -1e+30 }
 0x4dc   :  { %4533 = vmax.xlane.f32.xlu0 %v13488_v9  ;;  %v9682_v55 = vpop.f32.mrb[118].mxu0 }
 0x4dd   :  { %v13494_v19 = vsel %vm3257_vm4, %v9682_v55, -1e+30  ;;  %v4425_v51 = vpop.f32.mrb[119].mxu0  ;;  %v13512_v55 = vsel %vm3254_vm7, %v4422_v52, -1e+30 }
 0x4de   :  { %15218 = vst [vmem:[#allocation52_spill] sm:$0xff] %v13494_v19  ;;  %4547 = vmax.xlane.f32.xlu1 %v13494_v19  ;;  %v13506_v14 = vsel %vm3255_vm6, %v4425_v51, -1e+30  ;;  %15220 = vst [vmem:[#allocation96_spill] sm:$0xff] %v13512_v55 }
 0x4df   :  { %15219 = vst [vmem:[#allocation56_spill] sm:$0xff] %v13506_v14 }
 0x4e0   :  { %4545 = vmax.xlane.f32.xlu0 %v13500_v10 }
 0x4e2   :  { %4543 = vmax.xlane.f32.xlu1 %v13506_v14  ;;  %v9685_v63 = vpop.f32.mrb[120].mxu0 }
 0x4e3   :  { %v4438_v48 = vpop.f32.mrb[121].mxu0  ;;  %v13524_v51 = vsel %vm3260_vm9, %v9685_v63, -1e+30 }
 0x4e4   :  { %4541 = vmax.xlane.f32.xlu0 %v13512_v55  ;;  %v9686_v3 = vpop.f32.mrb[122].mxu0  ;;  %15222 = vst [vmem:[#allocation68_spill] sm:$0xff] %v13524_v51  ;;  %v13538_v52 = vsel %vm3258_vm11, %v4438_v48, -1e+30 }
 0x4e5   :  { %v13518_v0 = vsel %vm3261_vm8, %v9686_v3, -1e+30  ;;  %v4441_v31 = vpop.f32.mrb[123].mxu0  ;;  %15224 = vst [vmem:[#allocation71_spill] sm:$0xff] %v13538_v52 }
 0x4e6   :  { %15221 = vst [vmem:[#allocation82_spill] sm:$0xff] %v13518_v0  ;;  %4555 = vmax.xlane.f32.xlu1 %v13518_v0  ;;  %v13530_v39 = vsel %vm3259_vm10, %v4441_v31, -1e+30 }
 0x4e7   :  { %15223 = vst [vmem:[#allocation65_spill] sm:$0xff] %v13530_v39 }
 0x4e8   :  { %4553 = vmax.xlane.f32.xlu0 %v13524_v51 }
 0x4ea   :  { %4551 = vmax.xlane.f32.xlu1 %v13530_v39  ;;  %v13533_v22 = vpop.f32.mrb[124].mxu0 }
 0x4eb   :  { %v4454_v3 = vpop.f32.mrb[125].mxu0 }
 0x4ec   :  { %4549 = vmax.xlane.f32.xlu0 %v13538_v52  ;;  %v13541_v8 = vpop.f32.mrb[126].mxu0  ;;  %v13551_v31 = vsel %vm3262_vm15, %v4454_v3, -1e+30 }
 0x4ed   :  { %v4457_v63 = vpop.f32.mrb[127].mxu0  ;;  %15226 = vst [vmem:[#allocation89_spill] sm:$0xff] %v13551_v31  ;;  %v13704_v20 = vsel %vm3265_vm12, %v13541_v8, -1e+30  ;;  %v15232_v8 = vld [vmem:[#allocation80_spill] sm:$0xff] }
 0x4ee   :  { %v13546_v2 = vsel %vm3263_vm14, %v4457_v63, -1e+30 }
 0x4ef   :  { %15225 = vst [vmem:[#allocation77_spill] sm:$0xff] %v13546_v2  ;;  %4559 = vmax.xlane.f32.xlu1 %v13546_v2 }
 0x4f0   :  { %4557 = vmax.xlane.f32.xlu0 %v13551_v31 }
 0x501   :  { %v3648_v48 = vpop.xlane.xlu0 %3647 }
 0x502   :  { %v3709_v23 = vsub.f32 %v13113_v62, %v3648_v48 }
 0x504   :  { %v3743_v0 = vmul.f32 1.442695, %v3709_v23  ;;  %v3646_v39 = vpop.xlane.xlu1 %3645 }
 0x505   :  { %v3644_v52 = vpop.xlane.xlu0 %3643  ;;  %v3708_v51 = vsub.f32 %v13126_v40, %v3646_v39 }
 0x506   :  { %10588 = vpow2.f32 %v3743_v0  ;;  %v3707_v53 = vsub.f32 %v13134_v60, %v3644_v52 }
 0x507   :  { %v3741_v55 = vmul.f32 1.442695, %v3708_v51 }
 0x508   :  { %v3739_v63 = vmul.f32 1.442695, %v3707_v53 }
 0x509   :  { %v3650_v19 = vpop.xlane.xlu0 %3649 }
 0x50a   :  { %10590 = vpow2.f32 %v3739_v63  ;;  %v3710_v44 = vsub.f32 %v13151_v58, %v3650_v19 }
 0x50b   :  { %v3658_v3 = vpop.xlane.xlu1 %3657 }
 0x50c   :  { %v3745_v2 = vmul.f32 1.442695, %v3710_v44  ;;  %v3714_v31 = vsub.f32 %v13162_v25, %v3658_v3 }
 0x50d   :  { %v3656_v14 = vpop.xlane.xlu0 %3655 }
 0x50e   :  { %10592 = vpow2.f32 %v3745_v2  ;;  %v3713_v62 = vsub.f32 %v13173_v37, %v3656_v14  ;;  %v3753_v52 = vmul.f32 1.442695, %v3714_v31 }
 0x50f   :  { %v3654_v0 = vpop.xlane.xlu1 %3653  ;;  %10594 = vpow2.f32 %v3741_v55 }
 0x510   :  { %v13561_v48 = vpop.eup %10588  ;;  %v3751_v60 = vmul.f32 1.442695, %v3713_v62  ;;  %v3712_v40 = vsub.f32 %v13184_v43, %v3654_v0 }
 0x511   :  { %v3652_v39 = vpop.xlane.xlu0 %3651  ;;  %3807 = vadd.xlane.f32.xlu0 %v13561_v48 }
 0x512   :  { %10596 = vpow2.f32 %v3751_v60  ;;  %v3711_v58 = vsub.f32 %v13195_v26, %v3652_v39  ;;  %v3749_v37 = vmul.f32 1.442695, %v3712_v40 }
 0x513   :  { %v3666_v19 = vpop.xlane.xlu1 %3665  ;;  %10598 = vpow2.f32 %v3753_v52 }
 0x514   :  { %v13566_v25 = vpop.eup %10590  ;;  %v3747_v51 = vmul.f32 1.442695, %v3711_v58  ;;  %v3718_v14 = vsub.f32 %v13206_v54, %v3666_v19 }
 0x515   :  { %v3664_v2 = vpop.xlane.xlu0 %3663  ;;  %3803 = vadd.xlane.f32.xlu0 %v13566_v25 }
 0x516   :  { %10600 = vpow2.f32 %v3747_v51  ;;  %v3717_v43 = vsub.f32 %v13217_v7, %v3664_v2  ;;  %v3761_v26 = vmul.f32 1.442695, %v3718_v14 }
 0x517   :  { %v3662_v55 = vpop.xlane.xlu1 %3661  ;;  %10602 = vpow2.f32 %v3749_v37 }
 0x518   :  { %v13571_v31 = vpop.eup %10592  ;;  %v3759_v23 = vmul.f32 1.442695, %v3717_v43  ;;  %v3716_v53 = vsub.f32 %v13228_v28, %v3662_v55 }
 0x519   :  { %v3660_v63 = vpop.xlane.xlu0 %3659  ;;  %3809 = vadd.xlane.f32.xlu1 %v13571_v31  ;;  %v13576_v44 = vpop.eup %10594 }
 0x51a   :  { %10604 = vpow2.f32 %v3759_v23  ;;  %v3715_v54 = vsub.f32 %v13239_v4, %v3660_v63  ;;  %v3757_v0 = vmul.f32 1.442695, %v3716_v53 }
 0x51b   :  { %v3674_v3 = vpop.xlane.xlu1 %3673  ;;  %10606 = vpow2.f32 %v3761_v26 }
 0x51c   :  { %v13578_v62 = vpop.eup %10596  ;;  %v3755_v7 = vmul.f32 1.442695, %v3715_v54  ;;  %v3722_v60 = vsub.f32 %v13250_v49, %v3674_v3 }
 0x51d   :  { %v3672_v52 = vpop.xlane.xlu0 %3671  ;;  %3815 = vadd.xlane.f32.xlu0 %v13578_v62  ;;  %3805 = vadd.xlane.f32.xlu1 %v13576_v44  ;;  %v13584_v40 = vpop.eup %10598 }
 0x51e   :  { %10608 = vpow2.f32 %v3755_v7  ;;  %v3721_v28 = vsub.f32 %v13258_v42, %v3672_v52  ;;  %v3769_v19 = vmul.f32 1.442695, %v3722_v60 }
 0x51f   :  { %v3670_v4 = vpop.xlane.xlu1 %3669  ;;  %10610 = vpow2.f32 %v3757_v0 }
 0x520   :  { %v13586_v39 = vpop.eup %10600  ;;  %v3767_v58 = vmul.f32 1.442695, %v3721_v28  ;;  %v3720_v51 = vsub.f32 %v13266_v61, %v3670_v4 }
 0x521   :  { %v3668_v37 = vpop.xlane.xlu0 %3667  ;;  %3811 = vadd.xlane.f32.xlu0 %v13586_v39  ;;  %3817 = vadd.xlane.f32.xlu1 %v13584_v40  ;;  %v13592_v14 = vpop.eup %10602 }
 0x522   :  { %10612 = vpow2.f32 %v3767_v58  ;;  %v3719_v49 = vsub.f32 %v13272_v16, %v3668_v37  ;;  %v3765_v55 = vmul.f32 1.442695, %v3720_v51 }
 0x523   :  { %v3682_v42 = vpop.xlane.xlu1 %3681  ;;  %10614 = vpow2.f32 %v3769_v19 }
 0x524   :  { %v13594_v2 = vpop.eup %10604  ;;  %v3763_v43 = vmul.f32 1.442695, %v3719_v49  ;;  %v3726_v23 = vsub.f32 %v13278_v59, %v3682_v42 }
 0x525   :  { %v3680_v26 = vpop.xlane.xlu0 %3679  ;;  %3823 = vadd.xlane.f32.xlu0 %v13594_v2  ;;  %3813 = vadd.xlane.f32.xlu1 %v13592_v14  ;;  %v13600_v53 = vpop.eup %10606 }
 0x526   :  { %10616 = vpow2.f32 %v3763_v43  ;;  %v3725_v61 = vsub.f32 %v13284_v56, %v3680_v26  ;;  %v3777_v3 = vmul.f32 1.442695, %v3726_v23 }
 0x527   :  { %v3678_v16 = vpop.xlane.xlu1 %3677  ;;  %10618 = vpow2.f32 %v3765_v55 }
 0x528   :  { %v13602_v63 = vpop.eup %10608  ;;  %v3775_v54 = vmul.f32 1.442695, %v3725_v61  ;;  %v3724_v7 = vsub.f32 %v13290_v17, %v3678_v16 }
 0x529   :  { %v3676_v0 = vpop.xlane.xlu0 %3675  ;;  %3819 = vadd.xlane.f32.xlu0 %v13602_v63  ;;  %3825 = vadd.xlane.f32.xlu1 %v13600_v53  ;;  %v13608_v60 = vpop.eup %10610 }
 0x52a   :  { %10620 = vpow2.f32 %v3775_v54  ;;  %v3723_v59 = vsub.f32 %v13296_v18, %v3676_v0  ;;  %v3773_v4 = vmul.f32 1.442695, %v3724_v7 }
 0x52b   :  { %v3690_v56 = vpop.xlane.xlu1 %3689  ;;  %10622 = vpow2.f32 %v3777_v3 }
 0x52c   :  { %v13610_v52 = vpop.eup %10612  ;;  %v3771_v28 = vmul.f32 1.442695, %v3723_v59  ;;  %v3730_v58 = vsub.f32 %v13302_v13, %v3690_v56 }
 0x52d   :  { %v3688_v19 = vpop.xlane.xlu0 %3687  ;;  %3831 = vadd.xlane.f32.xlu0 %v13610_v52  ;;  %3821 = vadd.xlane.f32.xlu1 %v13608_v60  ;;  %v13616_v51 = vpop.eup %10614 }
 0x52e   :  { %10624 = vpow2.f32 %v3771_v28  ;;  %v3729_v17 = vsub.f32 %v13308_v6, %v3688_v19  ;;  %v3785_v42 = vmul.f32 1.442695, %v3730_v58 }
 0x52f   :  { %v3686_v18 = vpop.xlane.xlu1 %3685  ;;  %10626 = vpow2.f32 %v3773_v4 }
 0x530   :  { %v13618_v37 = vpop.eup %10616  ;;  %v3783_v49 = vmul.f32 1.442695, %v3729_v17  ;;  %v3728_v43 = vsub.f32 %v13314_v12, %v3686_v18 }
 0x531   :  { %v3684_v55 = vpop.xlane.xlu0 %3683  ;;  %3827 = vadd.xlane.f32.xlu0 %v13618_v37  ;;  %3833 = vadd.xlane.f32.xlu1 %v13616_v51  ;;  %v13624_v23 = vpop.eup %10618 }
 0x532   :  { %10628 = vpow2.f32 %v3783_v49  ;;  %v3727_v13 = vsub.f32 %v13320_v47, %v3684_v55  ;;  %v3781_v16 = vmul.f32 1.442695, %v3728_v43 }
 0x533   :  { %v3698_v6 = vpop.xlane.xlu1 %3697  ;;  %10630 = vpow2.f32 %v3785_v42 }
 0x534   :  { %v13626_v26 = vpop.eup %10620  ;;  %v3779_v61 = vmul.f32 1.442695, %v3727_v13  ;;  %v3734_v54 = vsub.f32 %v13326_v5, %v3698_v6 }
 0x535   :  { %v3696_v3 = vpop.xlane.xlu0 %3695  ;;  %3839 = vadd.xlane.f32.xlu0 %v13626_v26  ;;  %3829 = vadd.xlane.f32.xlu1 %v13624_v23  ;;  %v13632_v7 = vpop.eup %10622 }
 0x536   :  { %10632 = vpow2.f32 %v3779_v61  ;;  %v3733_v12 = vsub.f32 %v13332_v36, %v3696_v3  ;;  %v3793_v56 = vmul.f32 1.442695, %v3734_v54 }
 0x537   :  { %v3694_v47 = vpop.xlane.xlu1 %3693  ;;  %10634 = vpow2.f32 %v3781_v16 }
 0x538   :  { %v13634_v0 = vpop.eup %10624  ;;  %v3791_v59 = vmul.f32 1.442695, %v3733_v12  ;;  %v3732_v28 = vsub.f32 %v13338_v21, %v3694_v47 }
 0x539   :  { %v3692_v4 = vpop.xlane.xlu0 %3691  ;;  %3835 = vadd.xlane.f32.xlu0 %v13634_v0  ;;  %3841 = vadd.xlane.f32.xlu1 %v13632_v7  ;;  %v13640_v58 = vpop.eup %10626 }
 0x53a   :  { %10636 = vpow2.f32 %v3791_v59  ;;  %v3731_v5 = vsub.f32 %v13344_v24, %v3692_v4  ;;  %v3789_v18 = vmul.f32 1.442695, %v3732_v28 }
 0x53b   :  { %v3706_v36 = vpop.xlane.xlu1 %3705  ;;  %10638 = vpow2.f32 %v3793_v56 }
 0x53c   :  { %v13642_v19 = vpop.eup %10628  ;;  %v3787_v17 = vmul.f32 1.442695, %v3731_v5  ;;  %v3738_v49 = vsub.f32 %v13350_v46, %v3706_v36 }
 0x53d   :  { %v3704_v42 = vpop.xlane.xlu0 %3703  ;;  %3847 = vadd.xlane.f32.xlu0 %v13642_v19  ;;  %3837 = vadd.xlane.f32.xlu1 %v13640_v58  ;;  %v13648_v43 = vpop.eup %10630 }
 0x53e   :  { %10640 = vpow2.f32 %v3787_v17  ;;  %v3737_v21 = vsub.f32 %v13356_v1, %v3704_v42  ;;  %v3801_v6 = vmul.f32 1.442695, %v3738_v49 }
 0x53f   :  { %v3702_v24 = vpop.xlane.xlu1 %3701  ;;  %10642 = vpow2.f32 %v3789_v18 }
 0x540   :  { %v13650_v55 = vpop.eup %10632  ;;  %v3799_v13 = vmul.f32 1.442695, %v3737_v21  ;;  %v3736_v46 = vsub.f32 %v13362_v35, %v3702_v24 }
 0x541   :  { %v3700_v61 = vpop.xlane.xlu0 %3699  ;;  %3843 = vadd.xlane.f32.xlu0 %v13650_v55  ;;  %3849 = vadd.xlane.f32.xlu1 %v13648_v43  ;;  %v13656_v54 = vpop.eup %10634 }
 0x542   :  { %10644 = vpow2.f32 %v3799_v13  ;;  %v3735_v16 = vsub.f32 %v13368_v30, %v3700_v61  ;;  %v3797_v59 = vmul.f32 1.442695, %v3736_v46 }
 0x543   :  { %v4508_v1 = vpop.xlane.xlu1 %4507  ;;  %10646 = vpow2.f32 %v3801_v6 }
 0x544   :  { %v13658_v3 = vpop.eup %10636  ;;  %v3795_v12 = vmul.f32 1.442695, %v3735_v16  ;;  %v4568_v21 = vsub.f32 %v13374_v50, %v4508_v1  ;;  %v15227_v1 = vld [vmem:[#allocation79_spill] sm:$0xff] }
 0x545   :  { %v4506_v47 = vpop.xlane.xlu0 %4505  ;;  %3855 = vadd.xlane.f32.xlu0 %v13658_v3  ;;  %3845 = vadd.xlane.f32.xlu1 %v13656_v54  ;;  %v13662_v56 = vpop.eup %10638 }
 0x546   :  { %10648 = vpow2.f32 %v3795_v12  ;;  %v4567_v30 = vsub.f32 %v13380_v29, %v4506_v47  ;;  %v4603_v61 = vmul.f32 1.442695, %v4568_v21 }
 0x547   :  { %v4504_v28 = vpop.xlane.xlu1 %4503  ;;  %10650 = vpow2.f32 %v3797_v59 }
 0x548   :  { %v13664_v35 = vpop.eup %10640  ;;  %v4566_v5 = vsub.f32 %v13386_v38, %v4504_v28  ;;  %v4601_v24 = vmul.f32 1.442695, %v4567_v30  ;;  %v13693_v28 = vsel %vm3264_vm13, %v13533_v22, -1e+30  ;;  %v15228_v30 = vld [vmem:[#allocation85_spill] sm:$0xff] }
 0x549   :  { %v4502_v4 = vpop.xlane.xlu0 %4501  ;;  %3851 = vadd.xlane.f32.xlu0 %v13664_v35  ;;  %3857 = vadd.xlane.f32.xlu1 %v13662_v56  ;;  %v13671_v17 = vpop.eup %10642 }
 0x54a   :  { %v4565_v36 = vsub.f32 %v13392_v32, %v4502_v4  ;;  %v4599_v13 = vmul.f32 1.442695, %v4566_v5 }
 0x54b   :  { %v4516_v18 = vpop.xlane.xlu1 %4515 }
 0x54c   :  { %v13673_v49 = vpop.eup %10644  ;;  %v4597_v42 = vmul.f32 1.442695, %v4565_v36  ;;  %v4572_v4 = vsub.f32 %v15228_v30, %v4516_v18  ;;  %v15229_v18 = vld [vmem:[#allocation87_spill] sm:$0xff] }
 0x54d   :  { %v4514_v29 = vpop.xlane.xlu0 %4513  ;;  %3863 = vadd.xlane.f32.xlu0 %v13673_v49  ;;  %3853 = vadd.xlane.f32.xlu1 %v13671_v17  ;;  %v13678_v6 = vpop.eup %10646 }
 0x54e   :  { %10652 = vpow2.f32 %v4597_v42  ;;  %v4571_v46 = vsub.f32 %v13404_v41, %v4514_v29  ;;  %v4611_v22 = vmul.f32 1.442695, %v4572_v4 }
 0x54f   :  { %v4512_v38 = vpop.xlane.xlu1 %4511  ;;  %10654 = vpow2.f32 %v4601_v24 }
 0x550   :  { %v13680_v32 = vpop.eup %10648  ;;  %10656 = vpow2.f32 %v4599_v13  ;;  %v4570_v50 = vsub.f32 %v13410_v11, %v4512_v38  ;;  %v4609_v5 = vmul.f32 1.442695, %v4571_v46  ;;  %v15230_v13 = vld [vmem:[#allocation88_spill] sm:$0xff] }
 0x551   :  { %v4510_v16 = vpop.xlane.xlu0 %4509  ;;  %3859 = vadd.xlane.f32.xlu0 %v13680_v32  ;;  %3865 = vadd.xlane.f32.xlu1 %v13678_v6  ;;  %v13687_v59 = vpop.eup %10650  ;;  %10658 = vpow2.f32 %v4603_v61  ;;  %v15231_v61 = vld [vmem:[#allocation44_spill] sm:$0xff] }
 0x552   :  { %v4569_v12 = vsub.f32 %v15227_v1, %v4510_v16  ;;  %v4607_v11 = vmul.f32 1.442695, %v4570_v50 }
 0x553   :  { %v4524_v47 = vpop.xlane.xlu1 %4523 }
 0x554   :  { %v4605_v41 = vmul.f32 1.442695, %v4569_v12  ;;  %v4576_v1 = vsub.f32 %v15232_v8, %v4524_v47 }
 0x555   :  { %v4522_v36 = vpop.xlane.xlu0 %4521  ;;  %4561 = vmax.xlane.f32.xlu0 %v13693_v28  ;;  %3861 = vadd.xlane.f32.xlu1 %v13687_v59 }
 0x556   :  { %10660 = vpow2.f32 %v4605_v41  ;;  %v4575_v24 = vsub.f32 %v15229_v18, %v4522_v36 }
 0x557   :  { %v4520_v42 = vpop.xlane.xlu1 %4519  ;;  %10662 = vpow2.f32 %v4609_v5 }
 0x558   :  { %v13698_v21 = vpop.eup %10652  ;;  %10664 = vpow2.f32 %v4607_v11  ;;  %v4574_v38 = vsub.f32 %v15230_v13, %v4520_v42  ;;  %v4617_v12 = vmul.f32 1.442695, %v4575_v24  ;;  %v4619_v11 = vmul.f32 1.442695, %v4576_v1  ;;  %v15233_v42 = vld [vmem:[#allocation91_spill] sm:$0xff] }
 0x559   :  { %v4518_v29 = vpop.xlane.xlu0 %4517  ;;  %4661 = vadd.xlane.f32.xlu0 %v13698_v21  ;;  %4563 = vmax.xlane.f32.xlu1 %v13704_v20  ;;  %v13711_v16 = vpop.eup %10654  ;;  %10666 = vpow2.f32 %v4611_v22 }
 0x55a   :  { %v4573_v46 = vsub.f32 %v15231_v61, %v4518_v29  ;;  %v13713_v15 = vpop.eup %10656  ;;  %v4615_v30 = vmul.f32 1.442695, %v4574_v38 }
 0x55b   :  { %v4532_v50 = vpop.xlane.xlu1 %4531  ;;  %v13718_v4 = vpop.eup %10658 }
 0x55c   :  { %v4613_v45 = vmul.f32 1.442695, %v4573_v46  ;;  %v15234_v46 = vld [vmem:[#allocation48_spill] sm:$0xff] }
 0x55d   :  { %v4530_v41 = vpop.xlane.xlu0 %4529  ;;  %4665 = vadd.xlane.f32.xlu0 %v13711_v16  ;;  %4663 = vadd.xlane.f32.xlu1 %v13713_v15 }
 0x55e   :  { %10668 = vpow2.f32 %v4613_v45  ;;  %v4579_v18 = vsub.f32 %v15233_v42, %v4530_v41  ;;  %v4580_v45 = vsub.f32 %v15234_v46, %v4532_v50 }
 0x55f   :  { %v4528_v5 = vpop.xlane.xlu1 %4527  ;;  %10670 = vpow2.f32 %v4617_v12 }
 0x560   :  { %v13720_v36 = vpop.eup %10660  ;;  %10672 = vpow2.f32 %v4615_v30  ;;  %v4578_v47 = vsub.f32 %v13458_v57, %v4528_v5  ;;  %v4625_v8 = vmul.f32 1.442695, %v4579_v18  ;;  %v4627_v30 = vmul.f32 1.442695, %v4580_v45 }
 0x561   :  { %v4526_v22 = vpop.xlane.xlu0 %4525  ;;  %4669 = vadd.xlane.f32.xlu0 %v13720_v36  ;;  %4667 = vadd.xlane.f32.xlu1 %v13718_v4  ;;  %v13727_v29 = vpop.eup %10662  ;;  %10674 = vpow2.f32 %v4619_v11 }
 0x562   :  { %v4577_v24 = vsub.f32 %v13464_v33, %v4526_v22  ;;  %v13729_v38 = vpop.eup %10664  ;;  %v4623_v12 = vmul.f32 1.442695, %v4578_v47 }
 0x563   :  { %v4540_v13 = vpop.xlane.xlu1 %4539  ;;  %v13734_v57 = vpop.eup %10666 }
 0x564   :  { %v4621_v61 = vmul.f32 1.442695, %v4577_v24 }
 0x565   :  { %v4538_v1 = vpop.xlane.xlu0 %4537  ;;  %4673 = vadd.xlane.f32.xlu0 %v13727_v29  ;;  %4671 = vadd.xlane.f32.xlu1 %v13729_v38 }
 0x566   :  { %10676 = vpow2.f32 %v4621_v61  ;;  %v4583_v5 = vsub.f32 %v13476_v27, %v4538_v1  ;;  %v15236_v61 = vld [vmem:[#allocation93_spill] sm:$0xff] }
 0x567   :  { %v4536_v33 = vpop.xlane.xlu1 %4535  ;;  %10678 = vpow2.f32 %v4625_v8  ;;  %v4584_v46 = vsub.f32 %v15236_v61, %v4540_v13  ;;  %v15239_v13 = vld [vmem:[#allocation56_spill] sm:$0xff] }
 0x568   :  { %v13736_v41 = vpop.eup %10668  ;;  %10680 = vpow2.f32 %v4623_v12  ;;  %v4582_v50 = vsub.f32 %v13482_v34, %v4536_v33  ;;  %v4633_v27 = vmul.f32 1.442695, %v4583_v5 }
 0x569   :  { %v4534_v11 = vpop.xlane.xlu0 %4533  ;;  %4677 = vadd.xlane.f32.xlu0 %v13736_v41  ;;  %4675 = vadd.xlane.f32.xlu1 %v13734_v57  ;;  %v13743_v18 = vpop.eup %10670  ;;  %10682 = vpow2.f32 %v4627_v30  ;;  %v4635_v12 = vmul.f32 1.442695, %v4584_v46  ;;  %v15243_v46 = vld [vmem:[#allocation52_spill] sm:$0xff] }
 0x56a   :  { %v4581_v42 = vsub.f32 %v13488_v9, %v4534_v11  ;;  %15235 = vst [vmem:[#allocation84_spill] sm:$0xff] %v13743_v18  ;;  %v13745_v47 = vpop.eup %10672  ;;  %v4631_v8 = vmul.f32 1.442695, %v4582_v50  ;;  %v15240_v11 = vld [vmem:[#allocation96_spill] sm:$0xff] }
 0x56b   :  { %v4548_v22 = vpop.xlane.xlu1 %4547  ;;  %v13750_v34 = vpop.eup %10674 }
 0x56c   :  { %v4629_v24 = vmul.f32 1.442695, %v4581_v42  ;;  %15237 = vst [vmem:[#allocation39_spill] sm:$0xff] %v13750_v34 }
 0x56d   :  { %v4546_v45 = vpop.xlane.xlu0 %4545  ;;  %4681 = vadd.xlane.f32.xlu0 %v13743_v18  ;;  %4679 = vadd.xlane.f32.xlu1 %v13745_v47 }
 0x56e   :  { %10684 = vpow2.f32 %v4629_v24  ;;  %v4587_v33 = vsub.f32 %v13500_v10, %v4546_v45 }
 0x56f   :  { %v4544_v9 = vpop.xlane.xlu1 %4543  ;;  %10686 = vpow2.f32 %v4633_v27  ;;  %v4588_v27 = vsub.f32 %v15243_v46, %v4548_v22  ;;  %v15246_v22 = vld [vmem:[#allocation65_spill] sm:$0xff]  ;;  %v15247_v46 = vld [vmem:[#allocation71_spill] sm:$0xff] }
 0x570   :  { %v13752_v1 = vpop.eup %10676  ;;  %10688 = vpow2.f32 %v4631_v8  ;;  %v4586_v5 = vsub.f32 %v15239_v13, %v4544_v9  ;;  %v4641_v10 = vmul.f32 1.442695, %v4587_v33 }
 0x571   :  { %15238 = vst [vmem:[#allocation103_spill] sm:$0xff] %v13752_v1  ;;  %v4542_v30 = vpop.xlane.xlu0 %4541  ;;  %4685 = vadd.xlane.f32.xlu0 %v13752_v1  ;;  %4683 = vadd.xlane.f32.xlu1 %v13750_v34  ;;  %v13759_v42 = vpop.eup %10678  ;;  %10690 = vpow2.f32 %v4635_v12  ;;  %v15245_v1 = vld [vmem:[#allocation68_spill] sm:$0xff] }
 0x572   :  { %v4585_v50 = vsub.f32 %v15240_v11, %v4542_v30  ;;  %15241 = vst [vmem:[#allocation32_spill] sm:$0xff] %v13759_v42  ;;  %v13761_v61 = vpop.eup %10680  ;;  %v4639_v8 = vmul.f32 1.442695, %v4586_v5  ;;  %v4643_v11 = vmul.f32 1.442695, %v4588_v27  ;;  %v15250_v27 = vld [vmem:[#allocation82_spill] sm:$0xff] }
 0x573   :  { %v4556_v24 = vpop.xlane.xlu1 %4555  ;;  %15242 = vst [vmem:[#allocation105_spill] sm:$0xff] %v13761_v61  ;;  %v13766_v9 = vpop.eup %10682 }
 0x574   :  { %v4637_v18 = vmul.f32 1.442695, %v4585_v50 }
 0x575   :  { %v4554_v45 = vpop.xlane.xlu0 %4553  ;;  %4689 = vadd.xlane.f32.xlu0 %v13759_v42  ;;  %4687 = vadd.xlane.f32.xlu1 %v13761_v61 }
 0x576   :  { %10692 = vpow2.f32 %v4637_v18  ;;  %v4591_v50 = vsub.f32 %v15245_v1, %v4554_v45 }
 0x577   :  { %v4552_v30 = vpop.xlane.xlu1 %4551  ;;  %10694 = vpow2.f32 %v4641_v10  ;;  %v4592_v10 = vsub.f32 %v15250_v27, %v4556_v24  ;;  %v15254_v24 = vld [vmem:[#allocation77_spill] sm:$0xff] }
 0x578   :  { %v13768_v13 = vpop.eup %10684  ;;  %10696 = vpow2.f32 %v4639_v8  ;;  %v4590_v33 = vsub.f32 %v15246_v22, %v4552_v30  ;;  %v4649_v34 = vmul.f32 1.442695, %v4591_v50  ;;  %v15251_v8 = vld [vmem:[#allocation89_spill] sm:$0xff] }
 0x579   :  { %15244 = vst [vmem:[#allocation35_spill] sm:$0xff] %v13768_v13  ;;  %v4550_v12 = vpop.xlane.xlu0 %4549  ;;  %4693 = vadd.xlane.f32.xlu0 %v13768_v13  ;;  %4691 = vadd.xlane.f32.xlu1 %v13766_v9  ;;  %v13775_v18 = vpop.eup %10686  ;;  %10698 = vpow2.f32 %v4643_v11  ;;  %v4651_v13 = vmul.f32 1.442695, %v4592_v10 }
 0x57a   :  { %v4589_v5 = vsub.f32 %v15247_v46, %v4550_v12  ;;  %15248 = vst [vmem:[#allocation106_spill] sm:$0xff] %v13775_v18  ;;  %v13777_v42 = vpop.eup %10688  ;;  %v4647_v45 = vmul.f32 1.442695, %v4590_v33 }
 0x57b   :  { %15249 = vst [vmem:[#allocation104_spill] sm:$0xff] %v13777_v42  ;;  %v13783_v22 = vpop.eup %10690 }
 0x57c   :  { %v4645_v61 = vmul.f32 1.442695, %v4589_v5  ;;  %15252 = vst [vmem:[#allocation38_spill] sm:$0xff] %v13783_v22  ;;  %v4560_v12 = vpop.xlane.xlu1 %4559 }
 0x57d   :  { %4697 = vadd.xlane.f32.xlu0 %v13775_v18  ;;  %v4558_v1 = vpop.xlane.xlu0 %4557  ;;  %4695 = vadd.xlane.f32.xlu1 %v13777_v42  ;;  %v4594_v11 = vsub.f32 %v15254_v24, %v4560_v12 }
 0x57e   :  { %10700 = vpow2.f32 %v4645_v61  ;;  %v4593_v30 = vsub.f32 %v15251_v8, %v4558_v1 }
 0x57f   :  { %10702 = vpow2.f32 %v4649_v34  ;;  %v4655_v33 = vmul.f32 1.442695, %v4594_v11 }
 0x580   :  { %v13785_v46 = vpop.eup %10692  ;;  %10704 = vpow2.f32 %v4647_v45  ;;  %v4653_v50 = vmul.f32 1.442695, %v4593_v30 }
 0x581   :  { %15253 = vst [vmem:[#allocation41_spill] sm:$0xff] %v13785_v46  ;;  %4701 = vadd.xlane.f32.xlu0 %v13785_v46  ;;  %4699 = vadd.xlane.f32.xlu1 %v13783_v22  ;;  %v13790_v5 = vpop.eup %10694  ;;  %10706 = vpow2.f32 %v4651_v13 }
 0x582   :  { %15255 = vst [vmem:[#allocation107_spill] sm:$0xff] %v13790_v5  ;;  %v13792_v61 = vpop.eup %10696  ;;  %10708 = vpow2.f32 %v4653_v50 }
 0x583   :  { %15256 = vst [vmem:[#allocation92_spill] sm:$0xff] %v13792_v61  ;;  %v13796_v34 = vpop.eup %10698  ;;  %10710 = vpow2.f32 %v4655_v33 }
 0x584   :  { %15257 = vst [vmem:[#allocation94_spill] sm:$0xff] %v13796_v34 }
 0x585   :  { %4705 = vadd.xlane.f32.xlu0 %v13790_v5  ;;  %4703 = vadd.xlane.f32.xlu1 %v13792_v61 }
 0x588   :  { %v13798_v27 = vpop.eup %10700 }
 0x589   :  { %15258 = vst [vmem:[#allocation46_spill] sm:$0xff] %v13798_v27  ;;  %4709 = vadd.xlane.f32.xlu0 %v13798_v27  ;;  %4707 = vadd.xlane.f32.xlu1 %v13796_v34  ;;  %v13802_v10 = vpop.eup %10702  ;;  %v10078_v27 = vld [vmem:[#allocation11 + $0x4] ss:$16 sps:$4 sm:$0xff]  }
 0x58a   :  { %15259 = vst [vmem:[#allocation50_spill] sm:$0xff] %v13802_v10  ;;  %v13804_v1 = vpop.eup %10704  ;;  %5750 = vmatprep.subr.bf16.mxu0 %v10078_v27  ;;  %v10088_v27 = vld [vmem:[#allocation11 + $0x40] ss:$16 sps:$4 sm:$0xff]  }
 0x58b   :  { %15260 = vst [vmem:[#allocation54_spill] sm:$0xff] %v13804_v1  ;;  %v13808_v13 = vpop.eup %10706 }
 0x58c   :  { %15261 = vst [vmem:[#allocation58_spill] sm:$0xff] %v13808_v13  ;;  %v13810_v45 = vpop.eup %10708 }
 0x58d   :  { %4713 = vadd.xlane.f32.xlu0 %v13802_v10  ;;  %4711 = vadd.xlane.f32.xlu1 %v13804_v1  ;;  %15262 = vst [vmem:[#allocation97_spill] sm:$0xff] %v13810_v45  ;;  %v13814_v8 = vpop.eup %10710 }
 0x58e   :  { %15263 = vst [vmem:[#allocation98_spill] sm:$0xff] %v13814_v8 }
 0x591   :  { %4717 = vadd.xlane.f32.xlu0 %v13810_v45  ;;  %4715 = vadd.xlane.f32.xlu1 %v13808_v13  ;;  %v10076_v13 = vld [vmem:[#allocation11] ss:$16 sps:$4 sm:$0xff]  }
 0x592   :  { %5751 = vmatpush1.bf16.msra.mxu0 %v10076_v13 }
 0x595   :  { %4719 = vadd.xlane.f32.xlu1 %v13814_v8  ;;  %v10084_v8 = vld [vmem:[#allocation11 + $0x24] ss:$16 sps:$4 sm:$0xff]  }
 0x596   :  { %5752 = vmatprep.subr.bf16.mxu0 %v10084_v8 }
 0x59e   :  { %v3808_v30 = vpop.xlane.xlu0 %3807 }
 0x5a2   :  { %v3804_v12 = vpop.xlane.xlu0 %3803 }
 0x5a6   :  { %v3810_v24 = vpop.xlane.xlu1 %3809 }
 0x5a7   :  { %10712 = vrcp.f32 %v3810_v24 }
 0x5a8   :  { %10714 = vrcp.f32 %v3804_v12  ;;  %v10082_v12 = vld [vmem:[#allocation11 + $0x20] ss:$16 sps:$4 sm:$0xff]  }
 0x5a9   :  { %10716 = vrcp.f32 %v3808_v30  ;;  %5753 = vmatpush1.bf16.msra.mxu0 %v10082_v12 }
 0x5aa   :  { %v3816_v11 = vpop.xlane.xlu0 %3815  ;;  %v3806_v50 = vpop.xlane.xlu1 %3805 }
 0x5ab   :  { %10718 = vrcp.f32 %v3806_v50 }
 0x5ae   :  { %v3812_v33 = vpop.xlane.xlu0 %3811  ;;  %v3818_v10 = vpop.xlane.xlu1 %3817 }
 0x5af   :  { %10720 = vrcp.f32 %v3818_v10  ;;  %v10090_v10 = vld [vmem:[#allocation11 + $0x44] ss:$16 sps:$4 sm:$0xff]  }
 0x5b0   :  { %10722 = vrcp.f32 %v3812_v33  ;;  %5754 = vmatprep.subr.bf16.mxu0 %v10090_v10 }
 0x5b1   :  { %v10713_v34 = vpop.eup %10712  ;;  %10724 = vrcp.f32 %v3816_v11  ;;  %5755 = vmatpush1.bf16.msra.mxu0 %v10088_v27 }
 0x5b2   :  { %v3824_v45 = vpop.xlane.xlu0 %3823  ;;  %v3814_v1 = vpop.xlane.xlu1 %3813  ;;  %v3902_v30 = vmul.f32 %v10713_v34, %v13571_v31 }
 0x5b3   :  { %v10715_v5 = vpop.eup %10714  ;;  %10726 = vrcp.f32 %v3814_v1 }
 0x5b4   :  { %v10717_v24 = vpop.eup %10716  ;;  %v3899_v33 = vmul.f32 %v10715_v5, %v13566_v25  ;;  %v15264_v5 = vld [vmem:[#allocation78_spill] sm:$0xff] }
 0x5b5   :  { %v10719_v61 = vpop.eup %10718  ;;  %v3901_v11 = vmul.f32 %v10717_v24, %v13561_v48 }
 0x5b6   :  { %v3820_v50 = vpop.xlane.xlu0 %3819  ;;  %v3826_v46 = vpop.xlane.xlu1 %3825  ;;  %v3900_v22 = vmul.f32 %v10719_v61, %v13576_v44  ;;  %v15265_v44 = vld [vmem:[#allocation81_spill] sm:$0xff] }
 0x5b7   :  { %10728 = vrcp.f32 %v3826_v46  ;;  %v3932_v42 = vpack.c.bf16 %v3902_v30, %v3901_v11 }
 0x5b8   :  { %v3931_v18 = vpack.c.bf16 %v3900_v22, %v3899_v33  ;;  %10730 = vrcp.f32 %v3820_v50 }
 0x5b9   :  { %v10721_v31 = vpop.eup %10720  ;;  %10732 = vrcp.f32 %v3824_v45  ;;  %v15266_v45 = vld [vmem:[#allocation83_spill] sm:$0xff] }
 0x5ba   :  { %v3832_v1 = vpop.xlane.xlu0 %3831  ;;  %v3822_v13 = vpop.xlane.xlu1 %3821  ;;  %9611 = vmatprep.mubr.bf16.mxu1 %v3931_v18  ;;  %v3906_v61 = vmul.f32 %v10721_v31, %v13584_v40 }
 0x5bb   :  { %v10723_v34 = vpop.eup %10722  ;;  %10734 = vrcp.f32 %v3822_v13  ;;  %9612 = vmatmul.mubr.bf16.vlgmr.msra.gmra.mrb[64].mxu1 %v3932_v42 }
 0x5bc   :  { %v10725_v25 = vpop.eup %10724  ;;  %9692 = vmatpush3.bf16.msra.mxu1 %v15264_v5  ;;  %v3903_v8 = vmul.f32 %v10723_v34, %v13586_v39 }
 0x5bd   :  { %v10727_v48 = vpop.eup %10726  ;;  %9693 = vmatprep.subr.bf16.mxu1 %v15265_v44  ;;  %v3905_v18 = vmul.f32 %v10725_v25, %v13578_v62  ;;  %v15268_v25 = vld [vmem:[#allocation90_spill] sm:$0xff] }
 0x5be   :  { %v3828_v22 = vpop.xlane.xlu0 %3827  ;;  %v3834_v46 = vpop.xlane.xlu1 %3833  ;;  %v3904_v24 = vmul.f32 %v10727_v48, %v13592_v14  ;;  %v15267_v14 = vld [vmem:[#allocation86_spill] sm:$0xff] }
 0x5bf   :  { %10736 = vrcp.f32 %v3834_v46  ;;  %v3934_v50 = vpack.c.bf16 %v3906_v61, %v3905_v18 }
 0x5c0   :  { %9694 = vmatpush3.bf16.msra.mxu1 %v15265_v44  ;;  %v3933_v42 = vpack.c.bf16 %v3904_v24, %v3903_v8  ;;  %10738 = vrcp.f32 %v3828_v22 }
 0x5c1   :  { %9695 = vmatprep.subr.bf16.mxu1 %v15266_v45  ;;  %v10729_v10 = vpop.eup %10728  ;;  %10740 = vrcp.f32 %v3832_v1 }
 0x5c2   :  { %v3840_v12 = vpop.xlane.xlu0 %3839  ;;  %v3830_v30 = vpop.xlane.xlu1 %3829  ;;  %9615 = vmatprep.mubr.bf16.mxu1 %v3933_v42  ;;  %v3910_v27 = vmul.f32 %v10729_v10, %v13600_v53 }
 0x5c3   :  { %v10731_v40 = vpop.eup %10730  ;;  %10742 = vrcp.f32 %v3830_v30  ;;  %9616 = vmatmul.mubr.bf16.gmra.mrb[68].mxu1 %v3934_v50 }
 0x5c4   :  { %v10733_v39 = vpop.eup %10732  ;;  %9696 = vmatpush3.bf16.msra.mxu1 %v15266_v45  ;;  %v3907_v13 = vmul.f32 %v10731_v40, %v13602_v63 }
 0x5c5   :  { %v10735_v62 = vpop.eup %10734  ;;  %9697 = vmatprep.subr.bf16.mxu1 %v15267_v14  ;;  %v3909_v1 = vmul.f32 %v10733_v39, %v13594_v2 }
 0x5c6   :  { %v3836_v33 = vpop.xlane.xlu0 %3835  ;;  %v3842_v11 = vpop.xlane.xlu1 %3841  ;;  %v3908_v31 = vmul.f32 %v10735_v62, %v13608_v60  ;;  %v15269_v60 = vld [vmem:[#allocation95_spill] sm:$0xff] }
 0x5c7   :  { %10744 = vrcp.f32 %v3842_v11  ;;  %v3936_v44 = vpack.c.bf16 %v3910_v27, %v3909_v1 }
 0x5c8   :  { %9698 = vmatpush3.bf16.msra.mxu1 %v15267_v14  ;;  %v3935_v34 = vpack.c.bf16 %v3908_v31, %v3907_v13  ;;  %10746 = vrcp.f32 %v3836_v33  ;;  %v10081_v33 = vld [vmem:[#allocation11 + $0xc] ss:$16 sps:$4 sm:$0xff]  }
 0x5c9   :  { %9699 = vmatprep.subr.bf16.mxu1 %v15268_v25  ;;  %v10737_v22 = vpop.eup %10736  ;;  %10748 = vrcp.f32 %v3840_v12  ;;  %v15270_v12 = vld [vmem:[#allocation99_spill] sm:$0xff] }
 0x5ca   :  { %v3848_v5 = vpop.xlane.xlu0 %3847  ;;  %v3838_v48 = vpop.xlane.xlu1 %3837  ;;  %9619 = vmatprep.mubr.bf16.mxu1 %v3935_v34  ;;  %v3914_v8 = vmul.f32 %v10737_v22, %v13616_v51 }
 0x5cb   :  { %v10739_v53 = vpop.eup %10738  ;;  %10750 = vrcp.f32 %v3838_v48  ;;  %9620 = vmatmul.mubr.bf16.gmra.mrb[72].mxu1 %v3936_v44 }
 0x5cc   :  { %v10741_v63 = vpop.eup %10740  ;;  %9700 = vmatpush3.bf16.msra.mxu1 %v15268_v25  ;;  %v3911_v24 = vmul.f32 %v10739_v53, %v13618_v37 }
 0x5cd   :  { %v10743_v2 = vpop.eup %10742  ;;  %9701 = vmatprep.subr.bf16.mxu1 %v15269_v60  ;;  %v3913_v42 = vmul.f32 %v10741_v63, %v13610_v52 }
 0x5ce   :  { %v3844_v46 = vpop.xlane.xlu0 %3843  ;;  %v3850_v61 = vpop.xlane.xlu1 %3849  ;;  %v3912_v18 = vmul.f32 %v10743_v2, %v13624_v23  ;;  %v15271_v23 = vld [vmem:[#allocation102_spill] sm:$0xff] }
 0x5cf   :  { %10752 = vrcp.f32 %v3850_v61  ;;  %v3938_v10 = vpack.c.bf16 %v3914_v8, %v3913_v42 }
 0x5d0   :  { %9702 = vmatpush3.bf16.msra.mxu1 %v15269_v60  ;;  %v3937_v45 = vpack.c.bf16 %v3912_v18, %v3911_v24  ;;  %10754 = vrcp.f32 %v3844_v46 }
 0x5d1   :  { %9703 = vmatprep.subr.bf16.mxu1 %v15270_v12  ;;  %v10745_v40 = vpop.eup %10744  ;;  %10756 = vrcp.f32 %v3848_v5 }
 0x5d2   :  { %v3856_v30 = vpop.xlane.xlu0 %3855  ;;  %v3846_v50 = vpop.xlane.xlu1 %3845  ;;  %9623 = vmatprep.mubr.bf16.mxu1 %v3937_v45  ;;  %v3918_v14 = vmul.f32 %v10745_v40, %v13632_v7 }
 0x5d3   :  { %v10747_v51 = vpop.eup %10746  ;;  %10758 = vrcp.f32 %v3846_v50  ;;  %9624 = vmatmul.mubr.bf16.gmra.mrb[76].mxu1 %v3938_v10 }
 0x5d4   :  { %v10749_v37 = vpop.eup %10748  ;;  %9704 = vmatpush3.bf16.msra.mxu1 %v15270_v12  ;;  %v3915_v11 = vmul.f32 %v10747_v51, %v13634_v0 }
 0x5d5   :  { %v10751_v52 = vpop.eup %10750  ;;  %9705 = vmatprep.subr.bf16.mxu1 %v15271_v23  ;;  %v3917_v13 = vmul.f32 %v10749_v37, %v13626_v26 }
 0x5d6   :  { %v3852_v39 = vpop.xlane.xlu0 %3851  ;;  %v3858_v62 = vpop.xlane.xlu1 %3857  ;;  %v3916_v27 = vmul.f32 %v10751_v52, %v13640_v58 }
 0x5d7   :  { %10760 = vrcp.f32 %v3858_v62  ;;  %v3940_v25 = vpack.c.bf16 %v3918_v14, %v3917_v13 }
 0x5d8   :  { %9706 = vmatpush3.bf16.msra.mxu1 %v15271_v23  ;;  %v3939_v31 = vpack.c.bf16 %v3916_v27, %v3915_v11  ;;  %10762 = vrcp.f32 %v3852_v39 }
 0x5d9   :  { %5976 = vmatprep.subr.bf16.mxu1 %v10081_v33  ;;  %v10753_v5 = vpop.eup %10752  ;;  %10764 = vrcp.f32 %v3856_v30 }
 0x5da   :  { %v3864_v1 = vpop.xlane.xlu0 %3863  ;;  %v3854_v34 = vpop.xlane.xlu1 %3853  ;;  %9627 = vmatprep.mubr.bf16.mxu1 %v3939_v31  ;;  %v3922_v26 = vmul.f32 %v10753_v5, %v13648_v43 }
 0x5db   :  { %v10755_v7 = vpop.eup %10754  ;;  %10766 = vrcp.f32 %v3854_v34  ;;  %9628 = vmatmul.mubr.bf16.gmra.mrb[80].mxu1 %v3940_v25 }
 0x5dc   :  { %v10757_v0 = vpop.eup %10756  ;;  %v3919_v22 = vmul.f32 %v10755_v7, %v13650_v55 }
 0x5dd   :  { %v10759_v48 = vpop.eup %10758  ;;  %v3921_v63 = vmul.f32 %v10757_v0, %v13642_v19 }
 0x5de   :  { %v3860_v58 = vpop.xlane.xlu0 %3859  ;;  %v3866_v44 = vpop.xlane.xlu1 %3865  ;;  %v3920_v53 = vmul.f32 %v10759_v48, %v13656_v54 }
 0x5df   :  { %10768 = vrcp.f32 %v3860_v58  ;;  %v3942_v61 = vpack.c.bf16 %v3922_v26, %v3921_v63  ;;  %v10079_v63 = vld [vmem:[#allocation11 + $0x8] ss:$16 sps:$4 sm:$0xff]  }
 0x5e0   :  { %10770 = vrcp.f32 %v3866_v44  ;;  %v3941_v2 = vpack.c.bf16 %v3920_v53, %v3919_v22 }
 0x5e1   :  { %10772 = vrcp.f32 %v3864_v1  ;;  %v10761_v8 = vpop.eup %10760 }
 0x5e2   :  { %v4562_v60 = vpop.xlane.xlu0 %4561  ;;  %v3862_v46 = vpop.xlane.xlu1 %3861  ;;  %9631 = vmatprep.mubr.bf16.mxu1 %v3941_v2  ;;  %v3926_v19 = vmul.f32 %v10761_v8, %v13662_v56 }
 0x5e3   :  { %v4595_v24 = vsub.f32 %v13693_v28, %v4562_v60  ;;  %10774 = vrcp.f32 %v3862_v46  ;;  %v10763_v18 = vpop.eup %10762  ;;  %9632 = vmatmul.mubr.bf16.gmra.mrb[84].mxu1 %v3942_v61  ;;  %v10087_v60 = vld [vmem:[#allocation11 + $0x2c] ss:$16 sps:$4 sm:$0xff]  }
 0x5e4   :  { %v10765_v43 = vpop.eup %10764  ;;  %v3923_v30 = vmul.f32 %v10763_v18, %v13664_v35  ;;  %v10096_v18 = vld [vmem:[#allocation11 + $0x64] ss:$16 sps:$4 sm:$0xff]  }
 0x5e5   :  { %v4657_v55 = vmul.f32 1.442695, %v4595_v24  ;;  %v10767_v42 = vpop.eup %10766  ;;  %v3925_v28 = vmul.f32 %v10765_v43, %v13658_v3  ;;  %5756 = vmatprep.subr.bf16.mxu0 %v10096_v18  ;;  %v10123_v18 = vld [vmem:[#allocation11 + $0xec] ss:$16 sps:$4 sm:$0xff]  }
 0x5e6   :  { %v4662_v54 = vpop.xlane.xlu0 %4661  ;;  %v4564_v45 = vpop.xlane.xlu1 %4563  ;;  %v3924_v50 = vmul.f32 %v10767_v42, %v13671_v17 }
 0x5e7   :  { %10776 = vpow2.f32 %v4657_v55  ;;  %v4596_v12 = vsub.f32 %v13704_v20, %v4564_v45  ;;  %v3944_v23 = vpack.c.bf16 %v3926_v19, %v3925_v28  ;;  %v10093_v55 = vld [vmem:[#allocation11 + $0x4c] ss:$16 sps:$4 sm:$0xff]  }
 0x5e8   :  { %v3943_v40 = vpack.c.bf16 %v3924_v50, %v3923_v30  ;;  %10778 = vrcp.f32 %v4662_v54  ;;  %v10100_v30 = vld [vmem:[#allocation11 + $0x80] ss:$16 sps:$4 sm:$0xff]   ;;  %v10102_v50 = vld [vmem:[#allocation11 + $0x84] ss:$16 sps:$4 sm:$0xff]  }
 0x5e9   :  { %v4659_v10 = vmul.f32 1.442695, %v4596_v12  ;;  %v10769_v51 = vpop.eup %10768  ;;  %v10091_v12 = vld [vmem:[#allocation11 + $0x48] ss:$16 sps:$4 sm:$0xff]  }
 0x5ea   :  { %v4666_v37 = vpop.xlane.xlu0 %4665  ;;  %v4664_v52 = vpop.xlane.xlu1 %4663  ;;  %9635 = vmatprep.mubr.bf16.mxu1 %v3943_v40  ;;  %v3927_v17 = vmul.f32 %v10769_v51, %v13680_v32  ;;  %v10108_v40 = vld [vmem:[#allocation11 + $0xa4] ss:$16 sps:$4 sm:$0xff]  }
 0x5eb   :  { %v10771_v39 = vpop.eup %10770  ;;  %10780 = vpow2.f32 %v4659_v10  ;;  %9636 = vmatmul.mubr.bf16.gmra.mrb[88].mxu1 %v3944_v23  ;;  %v10099_v10 = vld [vmem:[#allocation11 + $0x6c] ss:$16 sps:$4 sm:$0xff]   ;;  %v10106_v23 = vld [vmem:[#allocation11 + $0xa0] ss:$16 sps:$4 sm:$0xff]  }
 0x5ec   :  { %v10773_v56 = vpop.eup %10772  ;;  %10782 = vrcp.f32 %v4664_v52  ;;  %v3930_v14 = vmul.f32 %v10771_v39, %v13678_v6 }
 0x5ed   :  { %v10775_v62 = vpop.eup %10774  ;;  %10784 = vrcp.f32 %v4666_v37  ;;  %v3929_v11 = vmul.f32 %v10773_v56, %v13673_v49  ;;  %v10097_v56 = vld [vmem:[#allocation11 + $0x68] ss:$16 sps:$4 sm:$0xff]  }
 0x5ee   :  { %v4670_v35 = vpop.xlane.xlu0 %4669  ;;  %v4668_v20 = vpop.xlane.xlu1 %4667  ;;  %v3928_v3 = vmul.f32 %v10775_v62, %v13687_v59  ;;  %v10114_v62 = vld [vmem:[#allocation11 + $0xc4] ss:$16 sps:$4 sm:$0xff]  }
 0x5ef   :  { %10786 = vrcp.f32 %v4668_v20  ;;  %v3946_v1 = vpack.c.bf16 %v3930_v14, %v3929_v11  ;;  %v10105_v20 = vld [vmem:[#allocation11 + $0x8c] ss:$16 sps:$4 sm:$0xff]  }
 0x5f0   :  { %v3945_v33 = vpack.c.bf16 %v3928_v3, %v3927_v17  ;;  %10788 = vrcp.f32 %v4670_v35  ;;  %v15273_v11 = vld [vmem:[#allocation39_spill] sm:$0xff] }
 0x5f1   :  { %v13866_v27 = vpop.eup %10776 }
 0x5f2   :  { %4721 = vadd.xlane.f32.xlu0 %v13866_v27  ;;  %v4674_v13 = vpop.xlane.xlu0 %4673  ;;  %9639 = vmatprep.mubr.bf16.mxu1 %v3945_v33  ;;  %v4672_v31 = vpop.xlane.xlu1 %4671  ;;  %v15272_v33 = vld [vmem:[#allocation84_spill] sm:$0xff] }
 0x5f3   :  { %v10779_v34 = vpop.eup %10778  ;;  %10790 = vrcp.f32 %v4672_v31  ;;  %9640 = vmatmul.mubr.bf16.gmra.mrb[92].mxu1 %v3946_v1  ;;  %v10103_v1 = vld [vmem:[#allocation11 + $0x88] ss:$16 sps:$4 sm:$0xff]  }
 0x5f4   :  { %10792 = vrcp.f32 %v4674_v13  ;;  %v4757_v5 = vmul.f32 %v10779_v34, %v13698_v21  ;;  %v10112_v13 = vld [vmem:[#allocation11 + $0xc0] ss:$16 sps:$4 sm:$0xff]  }
 0x5f5   :  { %v13869_v32 = vpop.eup %10780 }
 0x5f6   :  { %v4678_v6 = vpop.xlane.xlu0 %4677  ;;  %4723 = vadd.xlane.f32.xlu1 %v13869_v32  ;;  %v4676_v59 = vpop.xlane.xlu1 %4675 }
 0x5f7   :  { %v10783_v49 = vpop.eup %10782  ;;  %10794 = vrcp.f32 %v4676_v59 }
 0x5f8   :  { %v10785_v25 = vpop.eup %10784  ;;  %v4758_v7 = vmul.f32 %v10783_v49, %v13713_v15  ;;  %10796 = vrcp.f32 %v4678_v6  ;;  %v10111_v6 = vld [vmem:[#allocation11 + $0xac] ss:$16 sps:$4 sm:$0xff]  }
 0x5f9   :  { %v10787_v0 = vpop.eup %10786  ;;  %v4759_v26 = vmul.f32 %v10785_v25, %v13711_v16  ;;  %v10085_v16 = vld [vmem:[#allocation11 + $0x28] ss:$16 sps:$4 sm:$0xff]  }
 0x5fa   :  { %v4682_v48 = vpop.xlane.xlu0 %4681  ;;  %v4789_v58 = vpack.c.bf16 %v4758_v7, %v4757_v5  ;;  %v4680_v44 = vpop.xlane.xlu1 %4679  ;;  %v4760_v22 = vmul.f32 %v10787_v0, %v13718_v4  ;;  %v10094_v4 = vld [vmem:[#allocation11 + $0x60] ss:$16 sps:$4 sm:$0xff]   ;;  %v15274_v5 = vld [vmem:[#allocation103_spill] sm:$0xff]  ;;  %v15275_v0 = vld [vmem:[#allocation105_spill] sm:$0xff] }
 0x5fb   :  { %v10789_v53 = vpop.eup %10788  ;;  %10798 = vrcp.f32 %v4680_v44  ;;  %5757 = vmatpush1.bf16.msra.mxu0 %v10094_v4  ;;  %v10109_v44 = vld [vmem:[#allocation11 + $0xa8] ss:$16 sps:$4 sm:$0xff]  }
 0x5fc   :  { %9707 = vmatprep.mubr.bf16.mxu1 %v4789_v58  ;;  %v4790_v2 = vpack.c.bf16 %v4760_v22, %v4759_v26  ;;  %10800 = vrcp.f32 %v4682_v48  ;;  %v4761_v15 = vmul.f32 %v10789_v53, %v13720_v36  ;;  %5758 = vmatprep.subr.bf16.mxu0 %v10102_v50  ;;  %v10117_v22 = vld [vmem:[#allocation11 + $0xcc] ss:$16 sps:$4 sm:$0xff]  }
 0x5fd   :  { %v10791_v46 = vpop.eup %10790  ;;  %v10129_v50 = vld [vmem:[#allocation11 + $0x10c] ss:$16 sps:$4 sm:$0xff]  }
 0x5fe   :  { %v4686_v21 = vpop.xlane.xlu0 %4685  ;;  %v4684_v61 = vpop.xlane.xlu1 %4683  ;;  %9708 = vmatmul.mubr.bf16.vlgmr.msra.gmra.mrb[96].mxu1 %v4790_v2  ;;  %v4762_v8 = vmul.f32 %v10791_v46, %v13729_v38 }
 0x5ff   :  { %v10793_v24 = vpop.eup %10792  ;;  %10802 = vrcp.f32 %v4684_v61  ;;  %5977 = vmatpush1.bf16.msra.mxu1 %v10079_v63  ;;  %5759 = vmatpush1.bf16.msra.mxu0 %v10100_v30  ;;  %v10118_v61 = vld [vmem:[#allocation11 + $0xe0] ss:$16 sps:$4 sm:$0xff]  }
 0x600   :  { %v4791_v43 = vpack.c.bf16 %v4762_v8, %v4761_v15  ;;  %5978 = vmatprep.subr.bf16.mxu1 %v10087_v60  ;;  %10804 = vrcp.f32 %v4686_v21  ;;  %v4763_v19 = vmul.f32 %v10793_v24, %v13727_v29  ;;  %5760 = vmatprep.subr.bf16.mxu0 %v10108_v40  ;;  %v15276_v60 = vld [vmem:[#allocation32_spill] sm:$0xff]  ;;  %v10115_v24 = vld [vmem:[#allocation11 + $0xc8] ss:$16 sps:$4 sm:$0xff]  }
 0x601   :  { %v10795_v42 = vpop.eup %10794  ;;  %v10120_v15 = vld [vmem:[#allocation11 + $0xe4] ss:$16 sps:$4 sm:$0xff]  }
 0x602   :  { %v4690_v54 = vpop.xlane.xlu0 %4689  ;;  %v4688_v45 = vpop.xlane.xlu1 %4687  ;;  %9711 = vmatprep.mubr.bf16.mxu1 %v4791_v43  ;;  %v4764_v36 = vmul.f32 %v10795_v42, %v13734_v57 }
 0x603   :  { %v10797_v38 = vpop.eup %10796  ;;  %10806 = vrcp.f32 %v4688_v45  ;;  %5979 = vmatpush1.bf16.msra.mxu1 %v10085_v16  ;;  %5761 = vmatpush1.bf16.msra.mxu0 %v10106_v23  ;;  %v10126_v16 = vld [vmem:[#allocation11 + $0x104] ss:$16 sps:$4 sm:$0xff]   ;;  %v15277_v45 = vld [vmem:[#allocation35_spill] sm:$0xff] }
 0x604   :  { %v4792_v28 = vpack.c.bf16 %v4764_v36, %v4763_v19  ;;  %5980 = vmatprep.subr.bf16.mxu1 %v10093_v55  ;;  %10808 = vrcp.f32 %v4690_v54  ;;  %v4765_v29 = vmul.f32 %v10797_v38, %v13736_v41  ;;  %5762 = vmatprep.subr.bf16.mxu0 %v10114_v62  ;;  %v10124_v54 = vld [vmem:[#allocation11 + $0x100] ss:$16 sps:$4 sm:$0xff]   ;;  %v10132_v23 = vld [vmem:[#allocation11 + $0x124] ss:$16 sps:$4 sm:$0xff]  }
 0x605   :  { %v10799_v51 = vpop.eup %10798  ;;  %v15278_v19 = vld [vmem:[#allocation104_spill] sm:$0xff] }
 0x606   :  { %v4694_v37 = vpop.xlane.xlu0 %4693  ;;  %v4692_v52 = vpop.xlane.xlu1 %4691  ;;  %9712 = vmatmul.mubr.bf16.gmra.mrb[100].mxu1 %v4792_v28  ;;  %v4766_v57 = vmul.f32 %v10799_v51, %v13745_v47  ;;  %v15279_v51 = vld [vmem:[#allocation106_spill] sm:$0xff] }
 0x607   :  { %v10801_v39 = vpop.eup %10800  ;;  %10810 = vrcp.f32 %v4692_v52  ;;  %5981 = vmatpush1.bf16.msra.mxu1 %v10091_v12  ;;  %5763 = vmatpush1.bf16.msra.mxu0 %v10112_v13  ;;  %v10121_v12 = vld [vmem:[#allocation11 + $0xe8] ss:$16 sps:$4 sm:$0xff]   ;;  %v15280_v52 = vld [vmem:[#allocation38_spill] sm:$0xff] }
 0x608   :  { %v4793_v35 = vpack.c.bf16 %v4766_v57, %v4765_v29  ;;  %5982 = vmatprep.subr.bf16.mxu1 %v10099_v10  ;;  %10812 = vrcp.f32 %v4694_v37  ;;  %v4767_v41 = vmul.f32 %v10801_v39, %v15272_v33  ;;  %5764 = vmatprep.subr.bf16.mxu0 %v10120_v15  ;;  %v10130_v57 = vld [vmem:[#allocation11 + $0x120] ss:$16 sps:$4 sm:$0xff]   ;;  %v10138_v62 = vld [vmem:[#allocation11 + $0x144] ss:$16 sps:$4 sm:$0xff]  }
 0x609   :  { %v10803_v17 = vpop.eup %10802  ;;  %v10136_v33 = vld [vmem:[#allocation11 + $0x140] ss:$16 sps:$4 sm:$0xff]  }
 0x60a   :  { %v4698_v3 = vpop.xlane.xlu0 %4697  ;;  %v4696_v14 = vpop.xlane.xlu1 %4695  ;;  %9715 = vmatprep.mubr.bf16.mxu1 %v4793_v35  ;;  %v4768_v47 = vmul.f32 %v10803_v17, %v15273_v11 }
 0x60b   :  { %v10805_v31 = vpop.eup %10804  ;;  %10814 = vrcp.f32 %v4696_v14  ;;  %5983 = vmatpush1.bf16.msra.mxu1 %v10097_v56  ;;  %5765 = vmatpush1.bf16.msra.mxu0 %v10118_v61  ;;  %v10127_v56 = vld [vmem:[#allocation11 + $0x108] ss:$16 sps:$4 sm:$0xff]   ;;  %v15286_v61 = vld [vmem:[#allocation54_spill] sm:$0xff] }
 0x60c   :  { %v4794_v34 = vpack.c.bf16 %v4768_v47, %v4767_v41  ;;  %5984 = vmatprep.subr.bf16.mxu1 %v10105_v20  ;;  %10816 = vrcp.f32 %v4698_v3  ;;  %v4769_v7 = vmul.f32 %v10805_v31, %v15274_v5  ;;  %5766 = vmatprep.subr.bf16.mxu0 %v10126_v16  ;;  %v10135_v20 = vld [vmem:[#allocation11 + $0x12c] ss:$16 sps:$4 sm:$0xff]   ;;  %v15282_v47 = vld [vmem:[#allocation92_spill] sm:$0xff] }
 0x60d   :  { %v10807_v59 = vpop.eup %10806  ;;  %v15281_v41 = vld [vmem:[#allocation41_spill] sm:$0xff] }
 0x60e   :  { %v4702_v49 = vpop.xlane.xlu0 %4701  ;;  %v4700_v25 = vpop.xlane.xlu1 %4699  ;;  %9716 = vmatmul.mubr.bf16.gmra.mrb[104].mxu1 %v4794_v34  ;;  %v4770_v48 = vmul.f32 %v10807_v59, %v15275_v0 }
 0x60f   :  { %v10809_v58 = vpop.eup %10808  ;;  %10818 = vrcp.f32 %v4700_v25  ;;  %5985 = vmatpush1.bf16.msra.mxu1 %v10103_v1  ;;  %5767 = vmatpush1.bf16.msra.mxu0 %v10124_v54  ;;  %v10133_v1 = vld [vmem:[#allocation11 + $0x128] ss:$16 sps:$4 sm:$0xff]   ;;  %v15288_v54 = vld [vmem:[#allocation58_spill] sm:$0xff] }
 0x610   :  { %v4795_v26 = vpack.c.bf16 %v4770_v48, %v4769_v7  ;;  %5986 = vmatprep.subr.bf16.mxu1 %v10111_v6  ;;  %10820 = vrcp.f32 %v4702_v49  ;;  %v4771_v46 = vmul.f32 %v10809_v58, %v15276_v60  ;;  %5768 = vmatprep.subr.bf16.mxu0 %v10132_v23  ;;  %v10141_v6 = vld [vmem:[#allocation11 + $0x14c] ss:$16 sps:$4 sm:$0xff]   ;;  %v15284_v7 = vld [vmem:[#allocation94_spill] sm:$0xff] }
 0x611   :  { %v10811_v53 = vpop.eup %10810  ;;  %v15283_v25 = vld [vmem:[#allocation107_spill] sm:$0xff]  ;;  %v10142_v48 = vld [vmem:[#allocation11 + $0x160] ss:$16 sps:$4 sm:$0xff]   ;;  %v10144_v58 = vld [vmem:[#allocation11 + $0x164] ss:$16 sps:$4 sm:$0xff]  }
 0x612   :  { %v4706_v63 = vpop.xlane.xlu0 %4705  ;;  %v4704_v2 = vpop.xlane.xlu1 %4703  ;;  %9719 = vmatprep.mubr.bf16.mxu1 %v4795_v26  ;;  %v4772_v21 = vmul.f32 %v10811_v53, %v13766_v9  ;;  %v10139_v26 = vld [vmem:[#allocation11 + $0x148] ss:$16 sps:$4 sm:$0xff]   ;;  %v10148_v60 = vld [vmem:[#allocation11 + $0x180] ss:$16 sps:$4 sm:$0xff]  }
 0x613   :  { %v10813_v8 = vpop.eup %10812  ;;  %10822 = vrcp.f32 %v4704_v2  ;;  %5987 = vmatpush1.bf16.msra.mxu1 %v10109_v44  ;;  %5769 = vmatpush1.bf16.msra.mxu0 %v10130_v57  ;;  %v10165_v57 = vld [vmem:[#allocation11 + $0x1cc] ss:$16 sps:$4 sm:$0xff]   ;;  %v10166_v23 = vld [vmem:[#allocation11 + $0x1e0] ss:$16 sps:$4 sm:$0xff]  }
 0x614   :  { %v4796_v4 = vpack.c.bf16 %v4772_v21, %v4771_v46  ;;  %5988 = vmatprep.subr.bf16.mxu1 %v10117_v22  ;;  %10824 = vrcp.f32 %v4706_v63  ;;  %v4773_v9 = vmul.f32 %v10813_v8, %v15277_v45  ;;  %5770 = vmatprep.subr.bf16.mxu0 %v10138_v62  ;;  %v10150_v22 = vld [vmem:[#allocation11 + $0x184] ss:$16 sps:$4 sm:$0xff]   ;;  %v10147_v63 = vld [vmem:[#allocation11 + $0x16c] ss:$16 sps:$4 sm:$0xff]  }
 0x615   :  { %v10815_v43 = vpop.eup %10814  ;;  %v15285_v46 = vld [vmem:[#allocation46_spill] sm:$0xff]  ;;  %v10171_v62 = vld [vmem:[#allocation11 + $0x1ec] ss:$16 sps:$4 sm:$0xff]  }
 0x616   :  { %v4710_v55 = vpop.xlane.xlu0 %4709  ;;  %v4708_v42 = vpop.xlane.xlu1 %4707  ;;  %9720 = vmatmul.mubr.bf16.gmra.mrb[108].mxu1 %v4796_v4  ;;  %v4774_v36 = vmul.f32 %v10815_v43, %v15278_v19  ;;  %v10153_v4 = vld [vmem:[#allocation11 + $0x18c] ss:$16 sps:$4 sm:$0xff]   ;;  %v10156_v19 = vld [vmem:[#allocation11 + $0x1a4] ss:$16 sps:$4 sm:$0xff]  }
 0x617   :  { %v10817_v38 = vpop.eup %10816  ;;  %10826 = vrcp.f32 %v4708_v42  ;;  %5989 = vmatpush1.bf16.msra.mxu1 %v10115_v24  ;;  %5771 = vmatpush1.bf16.msra.mxu0 %v10136_v33  ;;  %v10145_v24 = vld [vmem:[#allocation11 + $0x168] ss:$16 sps:$4 sm:$0xff]  }
 0x618   :  { %v4797_v30 = vpack.c.bf16 %v4774_v36, %v4773_v9  ;;  %5990 = vmatprep.subr.bf16.mxu1 %v10123_v18  ;;  %10828 = vrcp.f32 %v4710_v55  ;;  %v4775_v37 = vmul.f32 %v10817_v38, %v15279_v51  ;;  %5772 = vmatprep.subr.bf16.mxu0 %v10144_v58  ;;  %v15287_v55 = vld [vmem:[#allocation50_spill] sm:$0xff]  ;;  %v10151_v36 = vld [vmem:[#allocation11 + $0x188] ss:$16 sps:$4 sm:$0xff]  }
 0x619   :  { %v10819_v28 = vpop.eup %10818  ;;  %v10154_v9 = vld [vmem:[#allocation11 + $0x1a0] ss:$16 sps:$4 sm:$0xff]   ;;  %v10162_v38 = vld [vmem:[#allocation11 + $0x1c4] ss:$16 sps:$4 sm:$0xff]  }
 0x61a   :  { %v4714_v10 = vpop.xlane.xlu0 %4713  ;;  %v4712_v40 = vpop.xlane.xlu1 %4711  ;;  %9723 = vmatprep.mubr.bf16.mxu1 %v4797_v30  ;;  %v4776_v29 = vmul.f32 %v10819_v28, %v15280_v52  ;;  %v15289_v28 = vld [vmem:[#allocation97_spill] sm:$0xff] }
 0x61b   :  { %v10821_v39 = vpop.eup %10820  ;;  %10830 = vrcp.f32 %v4712_v40  ;;  %5991 = vmatpush1.bf16.msra.mxu1 %v10121_v12  ;;  %5773 = vmatpush1.bf16.msra.mxu0 %v10142_v48  ;;  %v15290_v40 = vld [vmem:[#allocation98_spill] sm:$0xff] }
 0x61c   :  { %v4798_v35 = vpack.c.bf16 %v4776_v29, %v4775_v37  ;;  %5992 = vmatprep.subr.bf16.mxu1 %v10129_v50  ;;  %10832 = vrcp.f32 %v4714_v10  ;;  %v4777_v11 = vmul.f32 %v10821_v39, %v15281_v41  ;;  %5774 = vmatprep.subr.bf16.mxu0 %v10150_v22  ;;  %v10159_v50 = vld [vmem:[#allocation11 + $0x1ac] ss:$16 sps:$4 sm:$0xff]   ;;  %v10160_v37 = vld [vmem:[#allocation11 + $0x1c0] ss:$16 sps:$4 sm:$0xff]   ;;  %v10157_v29 = vld [vmem:[#allocation11 + $0x1a8] ss:$16 sps:$4 sm:$0xff]  }
 0x61d   :  { %v10823_v17 = vpop.eup %10822  ;;  %v10168_v39 = vld [vmem:[#allocation11 + $0x1e4] ss:$16 sps:$4 sm:$0xff]  }
 0x61e   :  { %v4718_v3 = vpop.xlane.xlu0 %4717  ;;  %v4716_v14 = vpop.xlane.xlu1 %4715  ;;  %9724 = vmatmul.mubr.bf16.gmra.mrb[112].mxu1 %v4798_v35  ;;  %v4778_v13 = vmul.f32 %v10823_v17, %v15282_v47  ;;  %v10169_v35 = vld [vmem:[#allocation11 + $0x1e8] ss:$16 sps:$4 sm:$0xff]   ;;  %v10177_v17 = vld [vmem:[#allocation11 + $0x20c] ss:$16 sps:$4 sm:$0xff]  }
 0x61f   :  { %v10825_v31 = vpop.eup %10824  ;;  %10834 = vrcp.f32 %v4716_v14  ;;  %5993 = vmatpush1.bf16.msra.mxu1 %v10127_v56  ;;  %5775 = vmatpush1.bf16.msra.mxu0 %v10148_v60  ;;  %v10163_v56 = vld [vmem:[#allocation11 + $0x1c8] ss:$16 sps:$4 sm:$0xff]  }
 0x620   :  { %10836 = vrcp.f32 %v4718_v3  ;;  %v4799_v34 = vpack.c.bf16 %v4778_v13, %v4777_v11  ;;  %5994 = vmatprep.subr.bf16.mxu1 %v10135_v20  ;;  %v4779_v5 = vmul.f32 %v10825_v31, %v15283_v25  ;;  %5776 = vmatprep.subr.bf16.mxu0 %v10156_v19  ;;  %v10174_v20 = vld [vmem:[#allocation11 + $0x204] ss:$16 sps:$4 sm:$0xff]   ;;  %v10178_v19 = vld [vmem:[#allocation11 + $0x220] ss:$16 sps:$4 sm:$0xff]  }
 0x621   :  { %v10827_v59 = vpop.eup %10826 }
 0x622   :  { %v4720_v49 = vpop.xlane.xlu1 %4719  ;;  %9727 = vmatprep.mubr.bf16.mxu1 %v4799_v34  ;;  %v4780_v0 = vmul.f32 %v10827_v59, %v15284_v7  ;;  %v10829_v44 = vpop.eup %10828 }
 0x623   :  { %10838 = vrcp.f32 %v4720_v49  ;;  %5995 = vmatpush1.bf16.msra.mxu1 %v10133_v1  ;;  %v4781_v21 = vmul.f32 %v10829_v44, %v15285_v46  ;;  %5777 = vmatpush1.bf16.msra.mxu0 %v10154_v9 }
 0x624   :  { %v4800_v53 = vpack.c.bf16 %v4780_v0, %v4779_v5  ;;  %5996 = vmatprep.subr.bf16.mxu1 %v10141_v6  ;;  %5778 = vmatprep.subr.bf16.mxu0 %v10162_v38 }
 0x625   :  { %v10831_v2 = vpop.eup %10830 }
 0x626   :  { %9728 = vmatmul.mubr.bf16.gmra.mrb[116].mxu1 %v4800_v53  ;;  %v4782_v15 = vmul.f32 %v10831_v2, %v15286_v61  ;;  %v10833_v8 = vpop.eup %10832 }
 0x627   :  { %5997 = vmatpush1.bf16.msra.mxu1 %v10139_v26  ;;  %v4783_v42 = vmul.f32 %v10833_v8, %v15287_v55  ;;  %5779 = vmatpush1.bf16.msra.mxu0 %v10160_v37  ;;  %v10175_v55 = vld [vmem:[#allocation11 + $0x208] ss:$16 sps:$4 sm:$0xff]   ;;  %v10192_v37 = vld [vmem:[#allocation11 + $0x264] ss:$16 sps:$4 sm:$0xff]  }
 0x628   :  { %v4801_v16 = vpack.c.bf16 %v4782_v15, %v4781_v21  ;;  %5998 = vmatprep.subr.bf16.mxu1 %v10147_v63  ;;  %5780 = vmatprep.subr.bf16.mxu0 %v10168_v39  ;;  %v10193_v39 = vld [vmem:[#allocation11 + $0x268] ss:$16 sps:$4 sm:$0xff]  }
 0x629   :  { %v10835_v18 = vpop.eup %10834 }
 0x62a   :  { %v10837_v43 = vpop.eup %10836  ;;  %9731 = vmatprep.mubr.bf16.mxu1 %v4801_v16  ;;  %v4784_v45 = vmul.f32 %v10835_v18, %v15288_v54  ;;  %v10183_v54 = vld [vmem:[#allocation11 + $0x22c] ss:$16 sps:$4 sm:$0xff]  }
 0x62b   :  { %5999 = vmatpush1.bf16.msra.mxu1 %v10145_v24  ;;  %v4785_v10 = vmul.f32 %v10837_v43, %v15289_v28  ;;  %5781 = vmatpush1.bf16.msra.mxu0 %v10166_v23  ;;  %v10172_v43 = vld [vmem:[#allocation11 + $0x200] ss:$16 sps:$4 sm:$0xff]  }
 0x62c   :  { %v4802_v30 = vpack.c.bf16 %v4784_v45, %v4783_v42  ;;  %6000 = vmatprep.subr.bf16.mxu1 %v10153_v4  ;;  %5863 = vmatprep.subr.bf16.mxu0 %v10174_v20  ;;  %v10180_v42 = vld [vmem:[#allocation11 + $0x224] ss:$16 sps:$4 sm:$0xff]   ;;  %v10190_v23 = vld [vmem:[#allocation11 + $0x260] ss:$16 sps:$4 sm:$0xff]  }
 0x62d   :  { %v10839_v12 = vpop.eup %10838 }
 0x62e   :  { %v4786_v51 = vmul.f32 %v10839_v12, %v15290_v40  ;;  %9732 = vmatmul.mubr.bf16.gmra.mrb[120].mxu1 %v4802_v30  ;;  %v10186_v12 = vld [vmem:[#allocation11 + $0x244] ss:$16 sps:$4 sm:$0xff]   ;;  %v10189_v30 = vld [vmem:[#allocation11 + $0x24c] ss:$16 sps:$4 sm:$0xff]   ;;  %v10184_v40 = vld [vmem:[#allocation11 + $0x240] ss:$16 sps:$4 sm:$0xff]  }
 0x62f   :  { %6001 = vmatpush1.bf16.msra.mxu1 %v10151_v36  ;;  %v10181_v36 = vld [vmem:[#allocation11 + $0x228] ss:$16 sps:$4 sm:$0xff]  }
 0x630   :  { %v4803_v52 = vpack.c.bf16 %v4786_v51, %v4785_v10  ;;  %6002 = vmatprep.subr.bf16.mxu1 %v10159_v50  ;;  %v10187_v51 = vld [vmem:[#allocation11 + $0x248] ss:$16 sps:$4 sm:$0xff]  }
 0x632   :  { %9735 = vmatprep.mubr.bf16.mxu1 %v4803_v52  ;;  %v10195_v52 = vld [vmem:[#allocation11 + $0x26c] ss:$16 sps:$4 sm:$0xff]  }
 0x633   :  { %6003 = vmatpush1.bf16.msra.mxu1 %v10157_v29 }
 0x634   :  { %6004 = vmatprep.subr.bf16.mxu1 %v10165_v57 }
 0x637   :  { %6005 = vmatpush1.bf16.msra.mxu1 %v10163_v56 }
 0x638   :  { %6006 = vmatprep.subr.bf16.mxu1 %v10171_v62  ;;  %v10198_v62 = vld [vmem:[#allocation11 + $0x284] ss:$16 sps:$4 sm:$0xff]  }
 0x63b   :  { %6007 = vmatpush1.bf16.msra.mxu1 %v10169_v35  ;;  %v10201_v35 = vld [vmem:[#allocation11 + $0x28c] ss:$16 sps:$4 sm:$0xff]  }
 0x63c   :  { %6089 = vmatprep.subr.bf16.mxu1 %v10177_v17 }
 0x67f   :  { %v4722_v3 = vpop.xlane.xlu0 %4721 }
 0x680   :  { %10840 = vrcp.f32 %v4722_v3 }
 0x683   :  { %v4724_v14 = vpop.xlane.xlu1 %4723 }
 0x684   :  { %10842 = vrcp.f32 %v4724_v14  ;;  %v10196_v14 = vld [vmem:[#allocation11 + $0x280] ss:$16 sps:$4 sm:$0xff]  }
 0x68a   :  { %v10841_v33 = vpop.eup %10840 }
 0x68b   :  { %v4787_v47 = vmul.f32 %v10841_v33, %v13866_v27  ;;  %v10199_v33 = vld [vmem:[#allocation11 + $0x288] ss:$16 sps:$4 sm:$0xff]  }
 0x68e   :  { %v10843_v41 = vpop.eup %10842  ;;  %v9613_v11 = vpop.f32.mrb[64].mxu1 }
 0x68f   :  { %v4788_v13 = vmul.f32 %v10843_v41, %v13869_v32  ;;  %v3981_v31 = vpop.f32.mrb[65].mxu1  ;;  %v10204_v41 = vld [vmem:[#allocation11 + $0x2a4] ss:$16 sps:$4 sm:$0xff]  }
 0x690   :  { %v9614_v1 = vpop.f32.mrb[66].mxu1 }
 0x691   :  { %v4804_v34 = vpack.c.bf16 %v4788_v13, %v4787_v47  ;;  %v4109_v6 = vpack.c.bf16 %v9614_v1, %v9613_v11  ;;  %v3984_v59 = vpop.f32.mrb[67].mxu1  ;;  %v10207_v11 = vld [vmem:[#allocation11 + $0x2ac] ss:$16 sps:$4 sm:$0xff]   ;;  %v10205_v1 = vld [vmem:[#allocation11 + $0x2a8] ss:$16 sps:$4 sm:$0xff]  }
 0x692   :  { %v4108_v49 = vpack.c.bf16 %v3984_v59, %v3981_v31  ;;  %v10202_v31 = vld [vmem:[#allocation11 + $0x2a0] ss:$16 sps:$4 sm:$0xff]   ;;  %v10213_v59 = vld [vmem:[#allocation11 + $0x2cc] ss:$16 sps:$4 sm:$0xff]  }
 0x693   :  { %9736 = vmatmul.mubr.bf16.gmra.mrb[124].mxu1 %v4804_v34 }
 0x696   :  { %v9617_v25 = vpop.f32.mrb[68].mxu1 }
 0x697   :  { %v3997_v5 = vpop.f32.mrb[69].mxu1 }
 0x698   :  { %v9618_v7 = vpop.f32.mrb[70].mxu1 }
 0x699   :  { %v13904_v0 = vpack.c.bf16 %v9618_v7, %v9617_v25  ;;  %v4000_v48 = vpop.f32.mrb[71].mxu1  ;;  %v10208_v7 = vld [vmem:[#allocation11 + $0x2c0] ss:$16 sps:$4 sm:$0xff]  }
 0x69a   :  { %v13906_v58 = vpack.c.bf16 %v4000_v48, %v3997_v5  ;;  %v10211_v48 = vld [vmem:[#allocation11 + $0x2c8] ss:$16 sps:$4 sm:$0xff]  }
 0x69e   :  { %v9621_v44 = vpop.f32.mrb[72].mxu1 }
 0x69f   :  { %v4013_v26 = vpop.f32.mrb[73].mxu1 }
 0x6a0   :  { %v9622_v27 = vpop.f32.mrb[74].mxu1 }
 0x6a1   :  { %v13908_v22 = vpack.c.bf16 %v9622_v27, %v9621_v44  ;;  %v4016_v32 = vpop.f32.mrb[75].mxu1  ;;  %v10219_v44 = vld [vmem:[#allocation11 + $0x2ec] ss:$16 sps:$4 sm:$0xff]   ;;  %v10217_v27 = vld [vmem:[#allocation11 + $0x2e8] ss:$16 sps:$4 sm:$0xff]  }
 0x6a2   :  { %v13910_v53 = vpack.c.bf16 %v4016_v32, %v4013_v26  ;;  %v10214_v26 = vld [vmem:[#allocation11 + $0x2e0] ss:$16 sps:$4 sm:$0xff]   ;;  %v10222_v32 = vld [vmem:[#allocation11 + $0x304] ss:$16 sps:$4 sm:$0xff]  }
 0x6a6   :  { %v9625_v63 = vpop.f32.mrb[76].mxu1 }
 0x6a7   :  { %v4029_v2 = vpop.f32.mrb[77].mxu1 }
 0x6a8   :  { %v9626_v60 = vpop.f32.mrb[78].mxu1 }
 0x6a9   :  { %v13912_v46 = vpack.c.bf16 %v9626_v60, %v9625_v63  ;;  %v4032_v21 = vpop.f32.mrb[79].mxu1  ;;  %v10225_v63 = vld [vmem:[#allocation11 + $0x30c] ss:$16 sps:$4 sm:$0xff]  }
 0x6aa   :  { %v13914_v61 = vpack.c.bf16 %v4032_v21, %v4029_v2 }
 0x6ae   :  { %v9629_v15 = vpop.f32.mrb[80].mxu1 }
 0x6af   :  { %v4045_v8 = vpop.f32.mrb[81].mxu1 }
 0x6b0   :  { %v9630_v24 = vpop.f32.mrb[82].mxu1 }
 0x6b1   :  { %v4117_v16 = vpack.c.bf16 %v9630_v24, %v9629_v15  ;;  %v4048_v4 = vpop.f32.mrb[83].mxu1  ;;  %v10220_v15 = vld [vmem:[#allocation11 + $0x300] ss:$16 sps:$4 sm:$0xff]  }
 0x6b2   :  { %v4116_v18 = vpack.c.bf16 %v4048_v4, %v4045_v8  ;;  %v10223_v8 = vld [vmem:[#allocation11 + $0x308] ss:$16 sps:$4 sm:$0xff]   ;;  %v10231_v4 = vld [vmem:[#allocation11 + $0x32c] ss:$16 sps:$4 sm:$0xff]  }
 0x6b4   :  { %5782 = vmatprep.mubr.bf16.mxu0 %v4116_v18  ;;  %6008 = vmatprep.mubr.bf16.mxu1 %v4116_v18 }
 0x6b5   :  { %5783 = vmatmul.mubr.bf16.vlgmr.msra.gmra.mrb[128].mxu0 %v4108_v49  ;;  %6009 = vmatmul.mubr.bf16.vlgmr.msra.gmra.mrb[128].mxu1 %v4108_v49 }
 0x6b6   :  { %v9633_v45 = vpop.f32.mrb[84].mxu1  ;;  %5792 = vmatprep.mubr.bf16.mxu0 %v4117_v16  ;;  %6018 = vmatprep.mubr.bf16.mxu1 %v4117_v16  ;;  %v10228_v16 = vld [vmem:[#allocation11 + $0x324] ss:$16 sps:$4 sm:$0xff]  }
 0x6b7   :  { %v4061_v9 = vpop.f32.mrb[85].mxu1  ;;  %5864 = vmatpush1.bf16.msra.mxu0 %v10172_v43  ;;  %6090 = vmatpush1.bf16.msra.mxu1 %v10175_v55  ;;  %v10226_v43 = vld [vmem:[#allocation11 + $0x320] ss:$16 sps:$4 sm:$0xff]   ;;  %v10229_v55 = vld [vmem:[#allocation11 + $0x328] ss:$16 sps:$4 sm:$0xff]  }
 0x6b8   :  { %v9634_v38 = vpop.f32.mrb[86].mxu1  ;;  %5865 = vmatprep.subr.bf16.mxu0 %v10180_v42  ;;  %6091 = vmatprep.subr.bf16.mxu1 %v10183_v54  ;;  %v10234_v42 = vld [vmem:[#allocation11 + $0x344] ss:$16 sps:$4 sm:$0xff]   ;;  %v10237_v54 = vld [vmem:[#allocation11 + $0x34c] ss:$16 sps:$4 sm:$0xff]  }
 0x6b9   :  { %v4119_v50 = vpack.c.bf16 %v9634_v38, %v9633_v45  ;;  %v4064_v28 = vpop.f32.mrb[87].mxu1  ;;  %v10235_v38 = vld [vmem:[#allocation11 + $0x348] ss:$16 sps:$4 sm:$0xff]  }
 0x6ba   :  { %v4118_v10 = vpack.c.bf16 %v4064_v28, %v4061_v9 }
 0x6bb   :  { %5866 = vmatpush1.bf16.msra.mxu0 %v10178_v19  ;;  %6092 = vmatpush1.bf16.msra.mxu1 %v10181_v36  ;;  %v10232_v36 = vld [vmem:[#allocation11 + $0x340] ss:$16 sps:$4 sm:$0xff]  }
 0x6bc   :  { %5867 = vmatprep.subr.bf16.mxu0 %v10186_v12  ;;  %6093 = vmatprep.subr.bf16.mxu1 %v10189_v30  ;;  %v10240_v30 = vld [vmem:[#allocation11 + $0x364] ss:$16 sps:$4 sm:$0xff]  }
 0x6bd   :  { %5793 = vmatmul.mubr.bf16.gmra.mrb[132].mxu0 %v4109_v6  ;;  %6019 = vmatmul.mubr.bf16.gmra.mrb[132].mxu1 %v4109_v6  ;;  %v10210_v6 = vld [vmem:[#allocation11 + $0x2c4] ss:$16 sps:$4 sm:$0xff]  }
 0x6be   :  { %v9637_v29 = vpop.f32.mrb[88].mxu1  ;;  %5802 = vmatprep.mubr.bf16.mxu0 %v4118_v10  ;;  %6028 = vmatprep.mubr.bf16.mxu1 %v4118_v10  ;;  %v10238_v10 = vld [vmem:[#allocation11 + $0x360] ss:$16 sps:$4 sm:$0xff]  }
 0x6bf   :  { %v4077_v57 = vpop.f32.mrb[89].mxu1  ;;  %5868 = vmatpush1.bf16.msra.mxu0 %v10184_v40  ;;  %6094 = vmatpush1.bf16.msra.mxu1 %v10187_v51  ;;  %v10241_v40 = vld [vmem:[#allocation11 + $0x368] ss:$16 sps:$4 sm:$0xff]   ;;  %v10246_v51 = vld [vmem:[#allocation11 + $0x384] ss:$16 sps:$4 sm:$0xff]  }
 0x6c0   :  { %v9638_v56 = vpop.f32.mrb[90].mxu1  ;;  %5869 = vmatprep.subr.bf16.mxu0 %v10192_v37  ;;  %6095 = vmatprep.subr.bf16.mxu1 %v10195_v52  ;;  %v10249_v37 = vld [vmem:[#allocation11 + $0x38c] ss:$16 sps:$4 sm:$0xff]  }
 0x6c1   :  { %v13916_v20 = vpack.c.bf16 %v9638_v56, %v9637_v29  ;;  %v4080_v17 = vpop.f32.mrb[91].mxu1 }
 0x6c2   :  { %v4120_v3 = vpack.c.bf16 %v4080_v17, %v4077_v57  ;;  %v10250_v17 = vld [vmem:[#allocation11 + $0x3a0] ss:$16 sps:$4 sm:$0xff]  }
 0x6c3   :  { %5870 = vmatpush1.bf16.msra.mxu0 %v10190_v23  ;;  %6096 = vmatpush1.bf16.msra.mxu1 %v10193_v39  ;;  %v10244_v23 = vld [vmem:[#allocation11 + $0x380] ss:$16 sps:$4 sm:$0xff]   ;;  %v10247_v39 = vld [vmem:[#allocation11 + $0x388] ss:$16 sps:$4 sm:$0xff]  }
 0x6c4   :  { %5871 = vmatprep.subr.bf16.mxu0 %v10198_v62  ;;  %6097 = vmatprep.subr.bf16.mxu1 %v10201_v35  ;;  %v10252_v62 = vld [vmem:[#allocation11 + $0x3a4] ss:$16 sps:$4 sm:$0xff]   ;;  %v10255_v35 = vld [vmem:[#allocation11 + $0x3ac] ss:$16 sps:$4 sm:$0xff]  }
 0x6c5   :  { %5803 = vmatmul.mubr.bf16.gmra.mrb[136].mxu0 %v13906_v58  ;;  %6029 = vmatmul.mubr.bf16.gmra.mrb[136].mxu1 %v13906_v58  ;;  %v10216_v58 = vld [vmem:[#allocation11 + $0x2e4] ss:$16 sps:$4 sm:$0xff]  }
 0x6c6   :  { %v9641_v47 = vpop.f32.mrb[92].mxu1  ;;  %5812 = vmatprep.mubr.bf16.mxu0 %v4119_v50  ;;  %6038 = vmatprep.mubr.bf16.mxu1 %v4119_v50  ;;  %v10243_v50 = vld [vmem:[#allocation11 + $0x36c] ss:$16 sps:$4 sm:$0xff]  }
 0x6c7   :  { %v4093_v13 = vpop.f32.mrb[93].mxu1  ;;  %5872 = vmatpush1.bf16.msra.mxu0 %v10196_v14  ;;  %6098 = vmatpush1.bf16.msra.mxu1 %v10199_v33  ;;  %v10258_v14 = vld [vmem:[#allocation11 + $0x3c4] ss:$16 sps:$4 sm:$0xff]   ;;  %v10261_v33 = vld [vmem:[#allocation11 + $0x3cc] ss:$16 sps:$4 sm:$0xff]  }
 0x6c8   :  { %v9642_v34 = vpop.f32.mrb[94].mxu1  ;;  %5873 = vmatprep.subr.bf16.mxu0 %v10204_v41  ;;  %6099 = vmatprep.subr.bf16.mxu1 %v10207_v11 }
 0x6c9   :  { %v13920_v49 = vpack.c.bf16 %v9642_v34, %v9641_v47  ;;  %v4096_v25 = vpop.f32.mrb[95].mxu1  ;;  %v10264_v34 = vld [vmem:[#allocation11 + $0x3e4] ss:$16 sps:$4 sm:$0xff]  }
 0x6ca   :  { %v13922_v5 = vpack.c.bf16 %v4096_v25, %v4093_v13  ;;  %v10256_v13 = vld [vmem:[#allocation11 + $0x3c0] ss:$16 sps:$4 sm:$0xff]   ;;  %v10265_v25 = vld [vmem:[#allocation11 + $0x3e8] ss:$16 sps:$4 sm:$0xff]  }
 0x6cb   :  { %5874 = vmatpush1.bf16.msra.mxu0 %v10202_v31  ;;  %6100 = vmatpush1.bf16.msra.mxu1 %v10205_v1  ;;  %v10259_v31 = vld [vmem:[#allocation11 + $0x3c8] ss:$16 sps:$4 sm:$0xff]  }
 0x6cc   :  { %5875 = vmatprep.subr.bf16.mxu0 %v10210_v6  ;;  %6101 = vmatprep.subr.bf16.mxu1 %v10213_v59  ;;  %v10267_v6 = vld [vmem:[#allocation11 + $0x3ec] ss:$16 sps:$4 sm:$0xff]  }
 0x6cd   :  { %5813 = vmatmul.mubr.bf16.gmra.mrb[140].mxu0 %v13904_v0  ;;  %6039 = vmatmul.mubr.bf16.gmra.mrb[140].mxu1 %v13904_v0 }
 0x6ce   :  { %5822 = vmatprep.mubr.bf16.mxu0 %v4120_v3  ;;  %6048 = vmatprep.mubr.bf16.mxu1 %v4120_v3  ;;  %v10253_v3 = vld [vmem:[#allocation11 + $0x3a8] ss:$16 sps:$4 sm:$0xff]  }
 0x6cf   :  { %5876 = vmatpush1.bf16.msra.mxu0 %v10208_v7  ;;  %6102 = vmatpush1.bf16.msra.mxu1 %v10211_v48 }
 0x6d0   :  { %5877 = vmatprep.subr.bf16.mxu0 %v10216_v58  ;;  %6103 = vmatprep.subr.bf16.mxu1 %v10219_v44 }
 0x6d1   :  { %v9709_v2 = vpop.f32.mrb[96].mxu1 }
 0x6d2   :  { %v4839_v60 = vpop.f32.mrb[97].mxu1 }
 0x6d3   :  { %v9710_v21 = vpop.f32.mrb[98].mxu1  ;;  %5878 = vmatpush1.bf16.msra.mxu0 %v10214_v26  ;;  %6104 = vmatpush1.bf16.msra.mxu1 %v10217_v27 }
 0x6d4   :  { %v13926_v24 = vpack.c.bf16 %v9710_v21, %v9709_v2  ;;  %v4842_v0 = vpop.f32.mrb[99].mxu1  ;;  %5879 = vmatprep.subr.bf16.mxu0 %v10222_v32  ;;  %6105 = vmatprep.subr.bf16.mxu1 %v10225_v63 }
 0x6d5   :  { %v13928_v18 = vpack.c.bf16 %v4842_v0, %v4839_v60  ;;  %5823 = vmatmul.mubr.bf16.gmra.mrb[144].mxu0 %v13910_v53  ;;  %6049 = vmatmul.mubr.bf16.gmra.mrb[144].mxu1 %v13910_v53 }
 0x6d6   :  { %5832 = vmatprep.mubr.bf16.mxu0 %v13916_v20  ;;  %6058 = vmatprep.mubr.bf16.mxu1 %v13916_v20 }
 0x6d7   :  { %5880 = vmatpush1.bf16.msra.mxu0 %v10220_v15  ;;  %6106 = vmatpush1.bf16.msra.mxu1 %v10223_v8 }
 0x6d8   :  { %5881 = vmatprep.subr.bf16.mxu0 %v10228_v16  ;;  %6107 = vmatprep.subr.bf16.mxu1 %v10231_v4 }
 0x6d9   :  { %v9713_v45 = vpop.f32.mrb[100].mxu1 }
 0x6da   :  { %v4855_v9 = vpop.f32.mrb[101].mxu1 }
 0x6db   :  { %v9714_v19 = vpop.f32.mrb[102].mxu1  ;;  %5882 = vmatpush1.bf16.msra.mxu0 %v10226_v43  ;;  %6108 = vmatpush1.bf16.msra.mxu1 %v10229_v55 }
 0x6dc   :  { %v13934_v53 = vpack.c.bf16 %v9714_v19, %v9713_v45  ;;  %v4858_v12 = vpop.f32.mrb[103].mxu1  ;;  %5883 = vmatprep.subr.bf16.mxu0 %v10234_v42  ;;  %6109 = vmatprep.subr.bf16.mxu1 %v10237_v54  ;;  %v10268_v45 = vld [vmem:[#allocation13] ss:$16 sps:$4 sm:$0xff]   ;;  %v10271_v19 = vld [vmem:[#allocation13 + $0x8] ss:$16 sps:$4 sm:$0xff]  }
 0x6dd   :  { %v13936_v28 = vpack.c.bf16 %v4858_v12, %v4855_v9  ;;  %5833 = vmatmul.mubr.bf16.gmra.mrb[148].mxu0 %v13908_v22  ;;  %6059 = vmatmul.mubr.bf16.gmra.mrb[148].mxu1 %v13908_v22  ;;  %v10270_v9 = vld [vmem:[#allocation13 + $0x4] ss:$16 sps:$4 sm:$0xff]   ;;  %v10277_v12 = vld [vmem:[#allocation13 + $0x28] ss:$16 sps:$4 sm:$0xff]  }
 0x6de   :  { %5842 = vmatprep.mubr.bf16.mxu0 %v13922_v5  ;;  %6068 = vmatprep.mubr.bf16.mxu1 %v13922_v5 }
 0x6df   :  { %5884 = vmatpush1.bf16.msra.mxu0 %v10232_v36  ;;  %6110 = vmatpush1.bf16.msra.mxu1 %v10235_v38  ;;  %v10273_v36 = vld [vmem:[#allocation13 + $0xc] ss:$16 sps:$4 sm:$0xff]   ;;  %v10274_v38 = vld [vmem:[#allocation13 + $0x20] ss:$16 sps:$4 sm:$0xff]  }
 0x6e0   :  { %5885 = vmatprep.subr.bf16.mxu0 %v10240_v30  ;;  %6111 = vmatprep.subr.bf16.mxu1 %v10243_v50  ;;  %v10279_v30 = vld [vmem:[#allocation13 + $0x2c] ss:$16 sps:$4 sm:$0xff]   ;;  %v10282_v50 = vld [vmem:[#allocation13 + $0x44] ss:$16 sps:$4 sm:$0xff]  }
 0x6e1   :  { %v9717_v52 = vpop.f32.mrb[104].mxu1 }
 0x6e2   :  { %v4871_v29 = vpop.f32.mrb[105].mxu1 }
 0x6e3   :  { %v9718_v57 = vpop.f32.mrb[106].mxu1  ;;  %5886 = vmatpush1.bf16.msra.mxu0 %v10238_v10  ;;  %6112 = vmatpush1.bf16.msra.mxu1 %v10241_v40  ;;  %v10285_v10 = vld [vmem:[#allocation13 + $0x4c] ss:$16 sps:$4 sm:$0xff]   ;;  %v10283_v40 = vld [vmem:[#allocation13 + $0x48] ss:$16 sps:$4 sm:$0xff]  }
 0x6e4   :  { %v13942_v22 = vpack.c.bf16 %v9718_v57, %v9717_v52  ;;  %v4874_v56 = vpop.f32.mrb[107].mxu1  ;;  %5887 = vmatprep.subr.bf16.mxu0 %v10246_v51  ;;  %6113 = vmatprep.subr.bf16.mxu1 %v10249_v37  ;;  %v11068_v52 = vld [vmem:[#allocation2] sm:$0xff]  ;;  %v11069_v57 = vld [vmem:[#allocation2 + $0x10] sm:$0xff] }
 0x6e5   :  { %v13944_v20 = vpack.c.bf16 %v4874_v56, %v4871_v29  ;;  %5843 = vmatmul.mubr.bf16.gmra.mrb[152].mxu0 %v13914_v61  ;;  %6069 = vmatmul.mubr.bf16.gmra.mrb[152].mxu1 %v13914_v61  ;;  %v11070_v56 = vld [vmem:[#allocation2 + $0x8] sm:$0xff] }
 0x6e6   :  { %5852 = vmatprep.mubr.bf16.mxu0 %v13920_v49  ;;  %6078 = vmatprep.mubr.bf16.mxu1 %v13920_v49  ;;  %v10262_v49 = vld [vmem:[#allocation11 + $0x3e0] ss:$16 sps:$4 sm:$0xff]  }
 0x6e7   :  { %5888 = vmatpush1.bf16.msra.mxu0 %v10244_v23  ;;  %6114 = vmatpush1.bf16.msra.mxu1 %v10247_v39 }
 0x6e8   :  { %5889 = vmatprep.subr.bf16.mxu0 %v10252_v62  ;;  %6115 = vmatprep.subr.bf16.mxu1 %v10255_v35  ;;  %v11071_v35 = vld [vmem:[#allocation2 + $0x18] sm:$0xff] }
 0x6e9   :  { %v9721_v41 = vpop.f32.mrb[108].mxu1 }
 0x6ea   :  { %v4887_v11 = vpop.f32.mrb[109].mxu1 }
 0x6eb   :  { %v9722_v47 = vpop.f32.mrb[110].mxu1  ;;  %5890 = vmatpush1.bf16.msra.mxu0 %v10250_v17  ;;  %6116 = vmatpush1.bf16.msra.mxu1 %v10253_v3 }
 0x6ec   :  { %v13950_v61 = vpack.c.bf16 %v9722_v47, %v9721_v41  ;;  %v4890_v1 = vpop.f32.mrb[111].mxu1  ;;  %5891 = vmatprep.subr.bf16.mxu0 %v10258_v14  ;;  %6117 = vmatprep.subr.bf16.mxu1 %v10261_v33  ;;  %v10286_v14 = vld [vmem:[#allocation13 + $0x60] ss:$16 sps:$4 sm:$0xff]   ;;  %v10288_v33 = vld [vmem:[#allocation13 + $0x64] ss:$16 sps:$4 sm:$0xff]  }
 0x6ed   :  { %v4972_v59 = vpack.c.bf16 %v4890_v1, %v4887_v11  ;;  %5853 = vmatmul.mubr.bf16.gmra.mrb[156].mxu0 %v13912_v46  ;;  %6079 = vmatmul.mubr.bf16.gmra.mrb[156].mxu1 %v13912_v46  ;;  %v11072_v11 = vld [vmem:[#allocation2 + $0x20] sm:$0xff] }
 0x6ef   :  { %5892 = vmatpush1.bf16.msra.mxu0 %v10256_v13  ;;  %6118 = vmatpush1.bf16.msra.mxu1 %v10259_v31  ;;  %v11073_v13 = vld [vmem:[#allocation2 + $0x30] sm:$0xff] }
 0x6f0   :  { %5893 = vmatprep.subr.bf16.mxu0 %v10264_v34  ;;  %6119 = vmatprep.subr.bf16.mxu1 %v10267_v6  ;;  %v10289_v34 = vld [vmem:[#allocation13 + $0x68] ss:$16 sps:$4 sm:$0xff]   ;;  %v10291_v6 = vld [vmem:[#allocation13 + $0x6c] ss:$16 sps:$4 sm:$0xff]  }
 0x6f1   :  { %v9725_v5 = vpop.f32.mrb[112].mxu1 }
 0x6f2   :  { %v4903_v7 = vpop.f32.mrb[113].mxu1 }
 0x6f3   :  { %v9726_v48 = vpop.f32.mrb[114].mxu1  ;;  %5894 = vmatpush1.bf16.msra.mxu0 %v10262_v49  ;;  %6120 = vmatpush1.bf16.msra.mxu1 %v10265_v25  ;;  %v11074_v49 = vld [vmem:[#allocation2 + $0x28] sm:$0xff] }
 0x6f4   :  { %v4975_v58 = vpack.c.bf16 %v9726_v48, %v9725_v5  ;;  %v4906_v44 = vpop.f32.mrb[115].mxu1  ;;  %7408 = vmatprep.subr.bf16.mxu0 %v10270_v9  ;;  %7634 = vmatprep.subr.bf16.mxu1 %v10273_v36  ;;  %v11075_v5 = vld [vmem:[#allocation2 + $0x38] sm:$0xff]  ;;  %v11078_v9 = vld [vmem:[#allocation2 + $0x48] sm:$0xff] }
 0x6f5   :  { %v4974_v26 = vpack.c.bf16 %v4906_v44, %v4903_v7  ;;  %v10294_v48 = vld [vmem:[#allocation13 + $0x84] ss:$16 sps:$4 sm:$0xff]   ;;  %v10292_v44 = vld [vmem:[#allocation13 + $0x80] ss:$16 sps:$4 sm:$0xff]  }
 0x6f6   :  { %v11079_v36 = vld [vmem:[#allocation2 + $0x58] sm:$0xff] }
 0x6f7   :  { %5895 = vmatprep.mubr.bf16.mxu0 %v4974_v26  ;;  %6121 = vmatprep.mubr.bf16.mxu1 %v4974_v26  ;;  %v10297_v26 = vld [vmem:[#allocation13 + $0x8c] ss:$16 sps:$4 sm:$0xff]  }
 0x6f8   :  { %5896 = vmatmul.mubr.bf16.vlgmr.msra.gmra.mrb[128].mxu0 %v13928_v18  ;;  %6122 = vmatmul.mubr.bf16.vlgmr.msra.gmra.mrb[128].mxu1 %v13928_v18 }
 0x6f9   :  { %v9729_v46 = vpop.f32.mrb[116].mxu1  ;;  %5905 = vmatprep.mubr.bf16.mxu0 %v4975_v58  ;;  %6131 = vmatprep.mubr.bf16.mxu1 %v4975_v58 }
 0x6fa   :  { %v4919_v27 = vpop.f32.mrb[117].mxu1  ;;  %7409 = vmatpush1.bf16.msra.mxu0 %v10268_v45  ;;  %7635 = vmatpush1.bf16.msra.mxu1 %v10271_v19  ;;  %v10303_v45 = vld [vmem:[#allocation13 + $0xac] ss:$16 sps:$4 sm:$0xff]  }
 0x6fb   :  { %v9730_v32 = vpop.f32.mrb[118].mxu1  ;;  %7636 = vmatprep.subr.bf16.mxu1 %v10279_v30 }
 0x6fc   :  { %v4977_v63 = vpack.c.bf16 %v9730_v32, %v9729_v46  ;;  %v4922_v2 = vpop.f32.mrb[119].mxu1 }
 0x6fd   :  { %v4976_v60 = vpack.c.bf16 %v4922_v2, %v4919_v27  ;;  %v10300_v2 = vld [vmem:[#allocation13 + $0xa4] ss:$16 sps:$4 sm:$0xff]  }
 0x6fe   :  { %7637 = vmatpush1.bf16.msra.mxu1 %v10277_v12 }
 0x6ff   :  { %7638 = vmatprep.subr.bf16.mxu1 %v10285_v10  ;;  %v10306_v10 = vld [vmem:[#allocation13 + $0xc4] ss:$16 sps:$4 sm:$0xff]  }
 0x700   :  { %5906 = vmatmul.mubr.bf16.gmra.mrb[132].mxu0 %v13926_v24  ;;  %6132 = vmatmul.mubr.bf16.gmra.mrb[132].mxu1 %v13926_v24 }
 0x701   :  { %v9733_v21 = vpop.f32.mrb[120].mxu1  ;;  %5915 = vmatprep.mubr.bf16.mxu0 %v4976_v60  ;;  %6141 = vmatprep.mubr.bf16.mxu1 %v4976_v60 }
 0x702   :  { %v4935_v15 = vpop.f32.mrb[121].mxu1  ;;  %7639 = vmatpush1.bf16.msra.mxu1 %v10283_v40 }
 0x703   :  { %v9734_v8 = vpop.f32.mrb[122].mxu1  ;;  %7640 = vmatprep.subr.bf16.mxu1 %v10291_v6 }
 0x704   :  { %v4979_v0 = vpack.c.bf16 %v9734_v8, %v9733_v21  ;;  %v4938_v16 = vpop.f32.mrb[123].mxu1 }
 0x705   :  { %v4978_v4 = vpack.c.bf16 %v4938_v16, %v4935_v15 }
 0x706   :  { %7641 = vmatpush1.bf16.msra.mxu1 %v10289_v34 }
 0x707   :  { %7642 = vmatprep.subr.bf16.mxu1 %v10297_v26 }
 0x708   :  { %5916 = vmatmul.mubr.bf16.gmra.mrb[136].mxu0 %v13936_v28  ;;  %6142 = vmatmul.mubr.bf16.gmra.mrb[136].mxu1 %v13936_v28  ;;  %v10280_v28 = vld [vmem:[#allocation13 + $0x40] ss:$16 sps:$4 sm:$0xff]  }
 0x709   :  { %5925 = vmatprep.mubr.bf16.mxu0 %v4977_v63  ;;  %6151 = vmatprep.mubr.bf16.mxu1 %v4977_v63  ;;  %v10295_v63 = vld [vmem:[#allocation13 + $0x88] ss:$16 sps:$4 sm:$0xff]  }
 0x70a   :  { %7643 = vmatpush1.bf16.msra.mxu1 %v10295_v63  ;;  %v11085_v63 = vld [vmem:[#allocation2 + $0x90] sm:$0xff] }
 0x70b   :  { %7644 = vmatprep.subr.bf16.mxu1 %v10303_v45 }
 0x710   :  { %5926 = vmatmul.mubr.bf16.gmra.mrb[140].mxu0 %v13934_v53  ;;  %6152 = vmatmul.mubr.bf16.gmra.mrb[140].mxu1 %v13934_v53  ;;  %v10276_v53 = vld [vmem:[#allocation13 + $0x24] ss:$16 sps:$4 sm:$0xff]  }
 0x711   :  { %5935 = vmatprep.mubr.bf16.mxu0 %v4978_v4  ;;  %6161 = vmatprep.mubr.bf16.mxu1 %v4978_v4  ;;  %v11076_v4 = vld [vmem:[#allocation2 + $0x40] sm:$0xff] }
 0x712   :  { %7410 = vmatprep.subr.bf16.mxu0 %v10276_v53 }
 0x713   :  { %7411 = vmatpush1.bf16.msra.mxu0 %v10274_v38 }
 0x714   :  { %7412 = vmatprep.subr.bf16.mxu0 %v10282_v50 }
 0x717   :  { %7413 = vmatpush1.bf16.msra.mxu0 %v10280_v28  ;;  %v10301_v28 = vld [vmem:[#allocation13 + $0xa8] ss:$16 sps:$4 sm:$0xff]  }
 0x718   :  { %5936 = vmatmul.mubr.bf16.gmra.mrb[144].mxu0 %v13944_v20  ;;  %6162 = vmatmul.mubr.bf16.gmra.mrb[144].mxu1 %v13944_v20 }
 0x719   :  { %5945 = vmatprep.mubr.bf16.mxu0 %v4979_v0  ;;  %6171 = vmatprep.mubr.bf16.mxu1 %v4979_v0 }
 0x71a   :  { %7414 = vmatprep.subr.bf16.mxu0 %v10288_v33  ;;  %v11083_v33 = vld [vmem:[#allocation2 + $0x78] sm:$0xff]  ;;  %7645 = vmatpush1.bf16.msra.mxu1 %v10301_v28  ;;  %v11089_v28 = vld [vmem:[#allocation2 + $0xb0] sm:$0xff] }
 0x71b   :  { %7415 = vmatpush1.bf16.msra.mxu0 %v10286_v14 }
 0x71c   :  { %7416 = vmatprep.subr.bf16.mxu0 %v10294_v48 }
 0x71f   :  { %7417 = vmatpush1.bf16.msra.mxu0 %v10292_v44 }
 0x720   :  { %5946 = vmatmul.mubr.bf16.gmra.mrb[148].mxu0 %v13942_v22  ;;  %6172 = vmatmul.mubr.bf16.gmra.mrb[148].mxu1 %v13942_v22 }
 0x721   :  { %7418 = vmatprep.subr.bf16.mxu0 %v10300_v2 }
 0x766   :  { %v9737_v24 = vpop.f32.mrb[124].mxu1 }
 0x767   :  { %v4951_v18 = vpop.f32.mrb[125].mxu1 }
 0x768   :  { %v9738_v43 = vpop.f32.mrb[126].mxu1 }
 0x769   :  { %v4981_v55 = vpack.c.bf16 %v9738_v43, %v9737_v24  ;;  %v4954_v42 = vpop.f32.mrb[127].mxu1 }
 0x76a   :  { %v4980_v54 = vpack.c.bf16 %v4954_v42, %v4951_v18  ;;  %v11077_v18 = vld [vmem:[#allocation2 + $0x50] sm:$0xff] }
 0x76c   :  { %5955 = vmatprep.mubr.bf16.mxu0 %v4980_v54  ;;  %6181 = vmatprep.mubr.bf16.mxu1 %v4980_v54  ;;  %v10298_v54 = vld [vmem:[#allocation13 + $0xa0] ss:$16 sps:$4 sm:$0xff]  }
 0x76d   :  { %5956 = vmatmul.mubr.bf16.gmra.mrb[152].mxu0 %v4972_v59  ;;  %6182 = vmatmul.mubr.bf16.gmra.mrb[152].mxu1 %v4972_v59 }
 0x76e   :  { %5965 = vmatprep.mubr.bf16.mxu0 %v4981_v55  ;;  %6191 = vmatprep.mubr.bf16.mxu1 %v4981_v55 }
 0x76f   :  { %7419 = vmatpush1.bf16.msra.mxu0 %v10298_v54 }
 0x770   :  { %7420 = vmatprep.subr.bf16.mxu0 %v10306_v10 }
 0x775   :  { %5966 = vmatmul.mubr.bf16.gmra.mrb[156].mxu0 %v13950_v61  ;;  %6192 = vmatmul.mubr.bf16.gmra.mrb[156].mxu1 %v13950_v61 }
 0x7cb   :  { %v5897_v51 = vpop.f32.mrb[128].mxu0  ;;  %v6123_v37 = vpop.f32.mrb[128].mxu1 }
 0x7cc   :  { %v13968_v29 = vadd.f32 %v11068_v52, %v5897_v51  ;;  %v13970_v23 = vadd.f32 %v11069_v57, %v6123_v37  ;;  %v5899_v39 = vpop.f32.mrb[129].mxu0  ;;  %v6125_v22 = vpop.f32.mrb[129].mxu1  ;;  %v11080_v37 = vld [vmem:[#allocation2 + $0x60] sm:$0xff]  ;;  %v11081_v57 = vld [vmem:[#allocation2 + $0x70] sm:$0xff] }
 0x7cd   :  { %v13972_v62 = vadd.f32 %v11070_v56, %v5899_v39  ;;  %v13974_v20 = vadd.f32 %v11071_v35, %v6125_v22  ;;  %v5901_v17 = vpop.f32.mrb[130].mxu0  ;;  %v6127_v3 = vpop.f32.mrb[130].mxu1  ;;  %v10309_v35 = vld [vmem:[#allocation13 + $0xcc] ss:$16 sps:$4 sm:$0xff]  }
 0x7ce   :  { %6202 = vst [vmem:[#allocation17] sm:$0xff] %v13968_v29  ;;  %v6267_v41 = vmul.f32 %v13968_v29, %v13968_v29  ;;  %6204 = vst [vmem:[#allocation17 + $0x10] sm:$0xff] %v13970_v23  ;;  %v13980_v47 = vadd.f32 %v11072_v11, %v5901_v17  ;;  %v13982_v31 = vadd.f32 %v11073_v13, %v6127_v3  ;;  %v5903_v61 = vpop.f32.mrb[131].mxu0  ;;  %v6129_v1 = vpop.f32.mrb[131].mxu1  ;;  %v11082_v3 = vld [vmem:[#allocation2 + $0x68] sm:$0xff]  ;;  %7646 = vmatprep.subr.bf16.mxu1 %v10309_v35  ;;  %v11091_v35 = vld [vmem:[#allocation2 + $0xb8] sm:$0xff] }
 0x7cf   :  { %6203 = vst [vmem:[#allocation17 + $0x8] sm:$0xff] %v13972_v62  ;;  %v6268_v59 = vmul.f32 %v13972_v62, %v13972_v62  ;;  %6205 = vst [vmem:[#allocation17 + $0x18] sm:$0xff] %v13974_v20  ;;  %v13988_v25 = vadd.f32 %v11074_v49, %v5903_v61  ;;  %v13990_v7 = vadd.f32 %v11075_v5, %v6129_v1  ;;  %v10304_v61 = vld [vmem:[#allocation13 + $0xc0] ss:$16 sps:$4 sm:$0xff]   ;;  %v10312_v49 = vld [vmem:[#allocation13 + $0xe4] ss:$16 sps:$4 sm:$0xff]  }
 0x7d0   :  { %6206 = vst [vmem:[#allocation17 + $0x20] sm:$0xff] %v13980_v47  ;;  %v6271_v58 = vmul.f32 %v13980_v47, %v13980_v47  ;;  %6208 = vst [vmem:[#allocation17 + $0x30] sm:$0xff] %v13982_v31  ;;  %v6269_v46 = vmul.f32 %v13970_v23, %v13970_v23  ;;  %v6270_v60 = vmul.f32 %v13974_v20, %v13974_v20  ;;  %7421 = vmatpush1.bf16.msra.mxu0 %v10304_v61 }
 0x7d1   :  { %v6331_v27 = vadd.f32 %v6268_v59, %v6267_v41  ;;  %6207 = vst [vmem:[#allocation17 + $0x28] sm:$0xff] %v13988_v25  ;;  %v6272_v32 = vmul.f32 %v13988_v25, %v13988_v25  ;;  %6209 = vst [vmem:[#allocation17 + $0x38] sm:$0xff] %v13990_v7  ;;  %v6273_v21 = vmul.f32 %v13982_v31, %v13982_v31  ;;  %v10307_v59 = vld [vmem:[#allocation13 + $0xc8] ss:$16 sps:$4 sm:$0xff]   ;;  %7422 = vmatprep.subr.bf16.mxu0 %v10312_v49 }
 0x7d2   :  { %v6274_v40 = vmul.f32 %v13990_v7, %v13990_v7  ;;  %7647 = vmatpush1.bf16.msra.mxu1 %v10307_v59 }
 0x7d3   :  { %v6336_v15 = vadd.f32 %v6272_v32, %v6271_v58  ;;  %v5907_v8 = vpop.f32.mrb[132].mxu0  ;;  %v6133_v0 = vpop.f32.mrb[132].mxu1  ;;  %v6332_v16 = vadd.f32 %v6331_v27, %v6269_v46  ;;  %v11084_v27 = vld [vmem:[#allocation2 + $0x80] sm:$0xff] }
 0x7d4   :  { %v14006_v24 = vadd.f32 %v11076_v4, %v5907_v8  ;;  %v14008_v43 = vadd.f32 %v11077_v18, %v6133_v0  ;;  %v5909_v55 = vpop.f32.mrb[133].mxu0  ;;  %v6135_v42 = vpop.f32.mrb[133].mxu1  ;;  %v10315_v8 = vld [vmem:[#allocation13 + $0xec] ss:$16 sps:$4 sm:$0xff]   ;;  %v11086_v0 = vld [vmem:[#allocation2 + $0x88] sm:$0xff]  ;;  %v11087_v4 = vld [vmem:[#allocation2 + $0x98] sm:$0xff] }
 0x7d5   :  { %v14010_v19 = vadd.f32 %v11078_v9, %v5909_v55  ;;  %v14012_v38 = vadd.f32 %v11079_v36, %v6135_v42  ;;  %v5911_v53 = vpop.f32.mrb[134].mxu0  ;;  %v6137_v12 = vpop.f32.mrb[134].mxu1  ;;  %v6333_v30 = vadd.f32 %v6332_v16, %v6270_v60  ;;  %v6337_v50 = vadd.f32 %v6336_v15, %v6273_v21  ;;  %v10310_v15 = vld [vmem:[#allocation13 + $0xe0] ss:$16 sps:$4 sm:$0xff]   ;;  %v10313_v9 = vld [vmem:[#allocation13 + $0xe8] ss:$16 sps:$4 sm:$0xff]   ;;  %7648 = vmatprep.subr.bf16.mxu1 %v10315_v8 }
 0x7d6   :  { %6210 = vst [vmem:[#allocation17 + $0x40] sm:$0xff] %v14006_v24  ;;  %v6275_v51 = vmul.f32 %v14006_v24, %v14006_v24  ;;  %6212 = vst [vmem:[#allocation17 + $0x50] sm:$0xff] %v14008_v43  ;;  %v14020_v52 = vadd.f32 %v11080_v37, %v5911_v53  ;;  %v14022_v39 = vadd.f32 %v11081_v57, %v6137_v12  ;;  %v5913_v22 = vpop.f32.mrb[135].mxu0  ;;  %v6139_v56 = vpop.f32.mrb[135].mxu1  ;;  %v10318_v36 = vld [vmem:[#allocation13 + $0x104] ss:$16 sps:$4 sm:$0xff]   ;;  %7423 = vmatpush1.bf16.msra.mxu0 %v10310_v15 }
 0x7d7   :  { %6211 = vst [vmem:[#allocation17 + $0x48] sm:$0xff] %v14010_v19  ;;  %v6276_v17 = vmul.f32 %v14010_v19, %v14010_v19  ;;  %6213 = vst [vmem:[#allocation17 + $0x58] sm:$0xff] %v14012_v38  ;;  %v14028_v14 = vadd.f32 %v11082_v3, %v5913_v22  ;;  %v14030_v41 = vadd.f32 %v11083_v33, %v6139_v56  ;;  %6334 = vadd.xlane.f32.xlu0 %v6333_v30  ;;  %v11088_v30 = vld [vmem:[#allocation2 + $0xa0] sm:$0xff]  ;;  %v11090_v22 = vld [vmem:[#allocation2 + $0xa8] sm:$0xff] }
 0x7d8   :  { %6214 = vst [vmem:[#allocation17 + $0x60] sm:$0xff] %v14020_v52  ;;  %v6279_v11 = vmul.f32 %v14020_v52, %v14020_v52  ;;  %6216 = vst [vmem:[#allocation17 + $0x70] sm:$0xff] %v14022_v39  ;;  %v6338_v13 = vadd.f32 %v6337_v50, %v6274_v40  ;;  %v6277_v1 = vmul.f32 %v14008_v43, %v14008_v43  ;;  %v10321_v37 = vld [vmem:[#allocation13 + $0x10c] ss:$16 sps:$4 sm:$0xff]   ;;  %7649 = vmatpush1.bf16.msra.mxu1 %v10313_v9  ;;  %v10322_v15 = vld [vmem:[#allocation13 + $0x120] ss:$16 sps:$4 sm:$0xff]  }
 0x7d9   :  { %v6341_v34 = vadd.f32 %v6276_v17, %v6275_v51  ;;  %6215 = vst [vmem:[#allocation17 + $0x68] sm:$0xff] %v14028_v14  ;;  %v6280_v6 = vmul.f32 %v14028_v14, %v14028_v14  ;;  %6217 = vst [vmem:[#allocation17 + $0x78] sm:$0xff] %v14030_v41  ;;  %v6278_v5 = vmul.f32 %v14012_v38, %v14012_v38  ;;  %7424 = vmatprep.subr.bf16.mxu0 %v10318_v36  ;;  %v10327_v8 = vld [vmem:[#allocation13 + $0x12c] ss:$16 sps:$4 sm:$0xff]  }
 0x7da   :  { %6339 = vadd.xlane.f32.xlu1 %v6338_v13  ;;  %v6281_v48 = vmul.f32 %v14022_v39, %v14022_v39  ;;  %v6282_v53 = vmul.f32 %v14030_v41, %v14030_v41  ;;  %7650 = vmatprep.subr.bf16.mxu1 %v10321_v37 }
 0x7db   :  { %v6346_v58 = vadd.f32 %v6280_v6, %v6279_v11  ;;  %v5917_v44 = vpop.f32.mrb[136].mxu0  ;;  %v6143_v26 = vpop.f32.mrb[136].mxu1  ;;  %v6342_v46 = vadd.f32 %v6341_v34, %v6277_v1  ;;  %v10316_v11 = vld [vmem:[#allocation13 + $0x100] ss:$16 sps:$4 sm:$0xff]   ;;  %v10319_v34 = vld [vmem:[#allocation13 + $0x108] ss:$16 sps:$4 sm:$0xff]  }
 0x7dc   :  { %v14046_v32 = vadd.f32 %v11084_v27, %v5917_v44  ;;  %v14048_v2 = vadd.f32 %v11085_v63, %v6143_v26  ;;  %v5919_v60 = vpop.f32.mrb[137].mxu0  ;;  %v6145_v21 = vpop.f32.mrb[137].mxu1  ;;  %v10324_v6 = vld [vmem:[#allocation13 + $0x124] ss:$16 sps:$4 sm:$0xff]   ;;  %v11092_v26 = vld [vmem:[#allocation2 + $0xc0] sm:$0xff]  ;;  %v11093_v27 = vld [vmem:[#allocation2 + $0xd0] sm:$0xff]  ;;  %7425 = vmatpush1.bf16.msra.mxu0 %v10316_v11  ;;  %7651 = vmatpush1.bf16.msra.mxu1 %v10319_v34 }
 0x7dd   :  { %v14050_v16 = vadd.f32 %v11086_v0, %v5919_v60  ;;  %v14052_v18 = vadd.f32 %v11087_v4, %v6145_v21  ;;  %v5921_v55 = vpop.f32.mrb[138].mxu0  ;;  %v6147_v42 = vpop.f32.mrb[138].mxu1  ;;  %v6343_v54 = vadd.f32 %v6342_v46, %v6278_v5  ;;  %v6347_v45 = vadd.f32 %v6346_v58, %v6281_v48  ;;  %v11094_v0 = vld [vmem:[#allocation2 + $0xc8] sm:$0xff]  ;;  %7426 = vmatprep.subr.bf16.mxu0 %v10324_v6  ;;  %v11099_v11 = vld [vmem:[#allocation2 + $0xf8] sm:$0xff] }
 0x7de   :  { %6218 = vst [vmem:[#allocation17 + $0x80] sm:$0xff] %v14046_v32  ;;  %v6283_v12 = vmul.f32 %v14046_v32, %v14046_v32  ;;  %6220 = vst [vmem:[#allocation17 + $0x90] sm:$0xff] %v14048_v2  ;;  %v14060_v50 = vadd.f32 %v11088_v30, %v5921_v55  ;;  %v14062_v10 = vadd.f32 %v11089_v28, %v6147_v42  ;;  %v5923_v40 = vpop.f32.mrb[139].mxu0  ;;  %v6149_v51 = vpop.f32.mrb[139].mxu1  ;;  %v11095_v55 = vld [vmem:[#allocation2 + $0xd8] sm:$0xff]  ;;  %v11096_v28 = vld [vmem:[#allocation2 + $0xe0] sm:$0xff]  ;;  %7652 = vmatprep.subr.bf16.mxu1 %v10327_v8 }
 0x7df   :  { %6219 = vst [vmem:[#allocation17 + $0x88] sm:$0xff] %v14050_v16  ;;  %v6284_v57 = vmul.f32 %v14050_v16, %v14050_v16  ;;  %6221 = vst [vmem:[#allocation17 + $0x98] sm:$0xff] %v14052_v18  ;;  %v14068_v56 = vadd.f32 %v11090_v22, %v5923_v40  ;;  %v14070_v17 = vadd.f32 %v11091_v35, %v6149_v51  ;;  %6344 = vadd.xlane.f32.xlu0 %v6343_v54  ;;  %v11097_v51 = vld [vmem:[#allocation2 + $0xf0] sm:$0xff]  ;;  %v11100_v8 = vld [vmem:[#allocation2 + $0x100] sm:$0xff] }
 0x7e0   :  { %6222 = vst [vmem:[#allocation17 + $0xa0] sm:$0xff] %v14060_v50  ;;  %v6287_v3 = vmul.f32 %v14060_v50, %v14060_v50  ;;  %6224 = vst [vmem:[#allocation17 + $0xb0] sm:$0xff] %v14062_v10  ;;  %v6348_v33 = vadd.f32 %v6347_v45, %v6282_v53  ;;  %v6285_v13 = vmul.f32 %v14048_v2, %v14048_v2  ;;  %v10325_v53 = vld [vmem:[#allocation13 + $0x128] ss:$16 sps:$4 sm:$0xff]   ;;  %7427 = vmatpush1.bf16.msra.mxu0 %v10322_v15 }
 0x7e1   :  { %v6351_v61 = vadd.f32 %v6284_v57, %v6283_v12  ;;  %6223 = vst [vmem:[#allocation17 + $0xa8] sm:$0xff] %v14068_v56  ;;  %v6288_v1 = vmul.f32 %v14068_v56, %v14068_v56  ;;  %6225 = vst [vmem:[#allocation17 + $0xb8] sm:$0xff] %v14070_v17  ;;  %v6286_v59 = vmul.f32 %v14052_v18, %v14052_v18  ;;  %7653 = vmatpush1.bf16.msra.mxu1 %v10325_v53  ;;  %v10336_v53 = vld [vmem:[#allocation13 + $0x164] ss:$16 sps:$4 sm:$0xff]  }
 0x7e2   :  { %6349 = vadd.xlane.f32.xlu1 %v6348_v33  ;;  %v6289_v49 = vmul.f32 %v14062_v10, %v14062_v10  ;;  %v6290_v12 = vmul.f32 %v14070_v17, %v14070_v17 }
 0x7e3   :  { %v6356_v5 = vadd.f32 %v6288_v1, %v6287_v3  ;;  %v5927_v48 = vpop.f32.mrb[140].mxu0  ;;  %v6153_v58 = vpop.f32.mrb[140].mxu1  ;;  %v6352_v44 = vadd.f32 %v6351_v61, %v6285_v13  ;;  %v11098_v3 = vld [vmem:[#allocation2 + $0xe8] sm:$0xff] }
 0x7e4   :  { %v14086_v46 = vadd.f32 %v11092_v26, %v5927_v48  ;;  %v14088_v63 = vadd.f32 %v11093_v27, %v6153_v58  ;;  %v5929_v60 = vpop.f32.mrb[141].mxu0  ;;  %v6155_v21 = vpop.f32.mrb[141].mxu1  ;;  %v10331_v48 = vld [vmem:[#allocation13 + $0x148] ss:$16 sps:$4 sm:$0xff]   ;;  %v10333_v58 = vld [vmem:[#allocation13 + $0x14c] ss:$16 sps:$4 sm:$0xff]  }
 0x7e5   :  { %v14090_v4 = vadd.f32 %v11094_v0, %v5929_v60  ;;  %v14092_v42 = vadd.f32 %v11095_v55, %v6155_v21  ;;  %v5931_v54 = vpop.f32.mrb[142].mxu0  ;;  %v6157_v45 = vpop.f32.mrb[142].mxu1  ;;  %v6353_v9 = vadd.f32 %v6352_v44, %v6286_v59  ;;  %v6357_v36 = vadd.f32 %v6356_v5, %v6289_v49  ;;  %v10328_v49 = vld [vmem:[#allocation13 + $0x140] ss:$16 sps:$4 sm:$0xff]   ;;  %v10330_v5 = vld [vmem:[#allocation13 + $0x144] ss:$16 sps:$4 sm:$0xff]   ;;  %7654 = vmatprep.subr.bf16.mxu1 %v10333_v58 }
 0x7e6   :  { %6226 = vst [vmem:[#allocation17 + $0xc0] sm:$0xff] %v14086_v46  ;;  %v6291_v30 = vmul.f32 %v14086_v46, %v14086_v46  ;;  %6228 = vst [vmem:[#allocation17 + $0xd0] sm:$0xff] %v14088_v63  ;;  %v14100_v40 = vadd.f32 %v11096_v28, %v5931_v54  ;;  %v14102_v37 = vadd.f32 %v11097_v51, %v6157_v45  ;;  %v5933_v57 = vpop.f32.mrb[143].mxu0  ;;  %v6159_v22 = vpop.f32.mrb[143].mxu1  ;;  %7428 = vmatprep.subr.bf16.mxu0 %v10330_v5  ;;  %v11101_v55 = vld [vmem:[#allocation2 + $0x110] sm:$0xff]  ;;  %v11103_v28 = vld [vmem:[#allocation2 + $0x118] sm:$0xff] }
 0x7e7   :  { %6227 = vst [vmem:[#allocation17 + $0xc8] sm:$0xff] %v14090_v4  ;;  %v6292_v35 = vmul.f32 %v14090_v4, %v14090_v4  ;;  %6229 = vst [vmem:[#allocation17 + $0xd8] sm:$0xff] %v14092_v42  ;;  %v14108_v33 = vadd.f32 %v11098_v3, %v5933_v57  ;;  %v14110_v13 = vadd.f32 %v11099_v11, %v6159_v22  ;;  %6354 = vadd.xlane.f32.xlu0 %v6353_v9  ;;  %v10337_v11 = vld [vmem:[#allocation13 + $0x168] ss:$16 sps:$4 sm:$0xff]  }
 0x7e8   :  { %6230 = vst [vmem:[#allocation17 + $0xe0] sm:$0xff] %v14100_v40  ;;  %v6295_v61 = vmul.f32 %v14100_v40, %v14100_v40  ;;  %6232 = vst [vmem:[#allocation17 + $0xf0] sm:$0xff] %v14102_v37  ;;  %v6358_v1 = vadd.f32 %v6357_v36, %v6290_v12  ;;  %v6293_v34 = vmul.f32 %v14088_v63, %v14088_v63  ;;  %7429 = vmatpush1.bf16.msra.mxu0 %v10328_v49  ;;  %v10334_v36 = vld [vmem:[#allocation13 + $0x160] ss:$16 sps:$4 sm:$0xff]   ;;  %v11102_v12 = vld [vmem:[#allocation2 + $0x108] sm:$0xff] }
 0x7e9   :  { %v6361_v6 = vadd.f32 %v6292_v35, %v6291_v30  ;;  %6231 = vst [vmem:[#allocation17 + $0xe8] sm:$0xff] %v14108_v33  ;;  %v6296_v59 = vmul.f32 %v14108_v33, %v14108_v33  ;;  %6233 = vst [vmem:[#allocation17 + $0xf8] sm:$0xff] %v14110_v13  ;;  %v6294_v44 = vmul.f32 %v14092_v42, %v14092_v42  ;;  %7655 = vmatpush1.bf16.msra.mxu1 %v10331_v48  ;;  %v11105_v49 = vld [vmem:[#allocation2 + $0x130] sm:$0xff] }
 0x7ea   :  { %6359 = vadd.xlane.f32.xlu1 %v6358_v1  ;;  %v6297_v26 = vmul.f32 %v14102_v37, %v14102_v37  ;;  %v6298_v1 = vmul.f32 %v14110_v13, %v14110_v13  ;;  %7430 = vmatprep.subr.bf16.mxu0 %v10336_v53  ;;  %v10340_v53 = vld [vmem:[#allocation13 + $0x180] ss:$16 sps:$4 sm:$0xff]  }
 0x7eb   :  { %v6366_v27 = vadd.f32 %v6296_v59, %v6295_v61  ;;  %v5937_v60 = vpop.f32.mrb[144].mxu0  ;;  %v6163_v21 = vpop.f32.mrb[144].mxu1  ;;  %v6362_v15 = vadd.f32 %v6361_v6, %v6293_v34  ;;  %v10339_v61 = vld [vmem:[#allocation13 + $0x16c] ss:$16 sps:$4 sm:$0xff]  }
 0x7ec   :  { %v14126_v0 = vadd.f32 %v11100_v8, %v5937_v60  ;;  %v14128_v54 = vadd.f32 %v11101_v55, %v6163_v21  ;;  %v5939_v45 = vpop.f32.mrb[145].mxu0  ;;  %v6165_v9 = vpop.f32.mrb[145].mxu1  ;;  %v11104_v6 = vld [vmem:[#allocation2 + $0x120] sm:$0xff]  ;;  %v11107_v60 = vld [vmem:[#allocation2 + $0x138] sm:$0xff]  ;;  %7656 = vmatprep.subr.bf16.mxu1 %v10339_v61  ;;  %7431 = vmatpush1.bf16.msra.mxu0 %v10334_v36 }
 0x7ed   :  { %v14130_v30 = vadd.f32 %v11102_v12, %v5939_v45  ;;  %v14132_v51 = vadd.f32 %v11103_v28, %v6165_v9  ;;  %v5941_v57 = vpop.f32.mrb[146].mxu0  ;;  %v6167_v22 = vpop.f32.mrb[146].mxu1  ;;  %v6363_v35 = vadd.f32 %v6362_v15, %v6294_v44  ;;  %v6367_v3 = vadd.f32 %v6366_v27, %v6297_v26  ;;  %v11106_v26 = vld [vmem:[#allocation2 + $0x128] sm:$0xff]  ;;  %7657 = vmatpush1.bf16.msra.mxu1 %v10337_v11  ;;  %v11109_v11 = vld [vmem:[#allocation2 + $0x150] sm:$0xff] }
 0x7ee   :  { %6234 = vst [vmem:[#allocation17 + $0x100] sm:$0xff] %v14126_v0  ;;  %v6299_v34 = vmul.f32 %v14126_v0, %v14126_v0  ;;  %6236 = vst [vmem:[#allocation17 + $0x110] sm:$0xff] %v14128_v54  ;;  %v14140_v59 = vadd.f32 %v11104_v6, %v5941_v57  ;;  %v14142_v5 = vadd.f32 %v11105_v49, %v6167_v22  ;;  %v5943_v58 = vpop.f32.mrb[147].mxu0  ;;  %v6169_v48 = vpop.f32.mrb[147].mxu1  ;;  %v10342_v12 = vld [vmem:[#allocation13 + $0x184] ss:$16 sps:$4 sm:$0xff]  }
 0x7ef   :  { %6235 = vst [vmem:[#allocation17 + $0x108] sm:$0xff] %v14130_v30  ;;  %v6300_v44 = vmul.f32 %v14130_v30, %v14130_v30  ;;  %6237 = vst [vmem:[#allocation17 + $0x118] sm:$0xff] %v14132_v51  ;;  %v14148_v27 = vadd.f32 %v11106_v26, %v5943_v58  ;;  %v14150_v21 = vadd.f32 %v11107_v60, %v6169_v48  ;;  %6364 = vadd.xlane.f32.xlu0 %v6363_v35  ;;  %v10343_v28 = vld [vmem:[#allocation13 + $0x188] ss:$16 sps:$4 sm:$0xff]   ;;  %v10345_v57 = vld [vmem:[#allocation13 + $0x18c] ss:$16 sps:$4 sm:$0xff]  }
 0x7f0   :  { %6238 = vst [vmem:[#allocation17 + $0x120] sm:$0xff] %v14140_v59  ;;  %v6303_v15 = vmul.f32 %v14140_v59, %v14140_v59  ;;  %6240 = vst [vmem:[#allocation17 + $0x130] sm:$0xff] %v14142_v5  ;;  %v6368_v8 = vadd.f32 %v6367_v3, %v6298_v1  ;;  %v6301_v55 = vmul.f32 %v14128_v54, %v14128_v54  ;;  %7432 = vmatprep.subr.bf16.mxu0 %v10342_v12  ;;  %v10348_v26 = vld [vmem:[#allocation13 + $0x1a4] ss:$16 sps:$4 sm:$0xff]  }
 0x7f1   :  { %v6371_v45 = vadd.f32 %v6300_v44, %v6299_v34  ;;  %6239 = vst [vmem:[#allocation17 + $0x128] sm:$0xff] %v14148_v27  ;;  %v6304_v9 = vmul.f32 %v14148_v27, %v14148_v27  ;;  %6241 = vst [vmem:[#allocation17 + $0x138] sm:$0xff] %v14150_v21  ;;  %v6302_v36 = vmul.f32 %v14132_v51, %v14132_v51  ;;  %v11108_v34 = vld [vmem:[#allocation2 + $0x140] sm:$0xff]  ;;  %7658 = vmatprep.subr.bf16.mxu1 %v10345_v57  ;;  %v11110_v60 = vld [vmem:[#allocation2 + $0x148] sm:$0xff] }
 0x7f2   :  { %6369 = vadd.xlane.f32.xlu1 %v6368_v8  ;;  %v6305_v22 = vmul.f32 %v14142_v5, %v14142_v5  ;;  %7433 = vmatpush1.bf16.msra.mxu0 %v10340_v53  ;;  %v10346_v44 = vld [vmem:[#allocation13 + $0x1a0] ss:$16 sps:$4 sm:$0xff]  }
 0x7f3   :  { %v6376_v35 = vadd.f32 %v6304_v9, %v6303_v15  ;;  %v5947_v3 = vpop.f32.mrb[148].mxu0  ;;  %v6173_v61 = vpop.f32.mrb[148].mxu1  ;;  %v6372_v1 = vadd.f32 %v6371_v45, %v6301_v55  ;;  %v11111_v15 = vld [vmem:[#allocation2 + $0x158] sm:$0xff]  ;;  %7659 = vmatpush1.bf16.msra.mxu1 %v10343_v28  ;;  %v11112_v57 = vld [vmem:[#allocation2 + $0x160] sm:$0xff]  ;;  %7434 = vmatprep.subr.bf16.mxu0 %v10348_v26 }
 0x7f4   :  { %v14166_v6 = vadd.f32 %v11108_v34, %v5947_v3  ;;  %v14168_v49 = vadd.f32 %v11109_v11, %v6173_v61  ;;  %v5949_v58 = vpop.f32.mrb[149].mxu0  ;;  %v6175_v48 = vpop.f32.mrb[149].mxu1  ;;  %v10349_v34 = vld [vmem:[#allocation13 + $0x1a8] ss:$16 sps:$4 sm:$0xff]   ;;  %v10351_v61 = vld [vmem:[#allocation13 + $0x1ac] ss:$16 sps:$4 sm:$0xff]   ;;  %v6306_v11 = vmul.f32 %v14150_v21, %v14150_v21 }
 0x7f5   :  { %v14170_v8 = vadd.f32 %v11110_v60, %v5949_v58  ;;  %v14172_v9 = vadd.f32 %v11111_v15, %v6175_v48  ;;  %v5951_v55 = vpop.f32.mrb[150].mxu0  ;;  %v6177_v45 = vpop.f32.mrb[150].mxu1  ;;  %v6373_v12 = vadd.f32 %v6372_v1, %v6302_v36  ;;  %v6377_v3 = vadd.f32 %v6376_v35, %v6305_v22  ;;  %v11113_v48 = vld [vmem:[#allocation2 + $0x170] sm:$0xff]  ;;  %v11114_v35 = vld [vmem:[#allocation2 + $0x168] sm:$0xff]  ;;  %v11115_v15 = vld [vmem:[#allocation2 + $0x178] sm:$0xff]  ;;  %7660 = vmatprep.subr.bf16.mxu1 %v10351_v61 }
 0x7f6   :  { %15291 = vst [vmem:[#allocation61_spill] sm:$0xff] %v14166_v6  ;;  %15292 = vst [vmem:[#allocation64_spill] sm:$0xff] %v14168_v49  ;;  %v6307_v53 = vmul.f32 %v14166_v6, %v14166_v6  ;;  %v14180_v58 = vadd.f32 %v11112_v57, %v5951_v55  ;;  %v14182_v60 = vadd.f32 %v11113_v48, %v6177_v45  ;;  %v5953_v36 = vpop.f32.mrb[151].mxu0  ;;  %v6179_v28 = vpop.f32.mrb[151].mxu1  ;;  %7435 = vmatpush1.bf16.msra.mxu0 %v10346_v44 }
 0x7f7   :  { %15293 = vst [vmem:[#allocation67_spill] sm:$0xff] %v14172_v9  ;;  %6242 = vst [vmem:[#allocation17 + $0x140] sm:$0xff] %v14166_v6  ;;  %v6308_v22 = vmul.f32 %v14170_v8, %v14170_v8  ;;  %v14188_v1 = vadd.f32 %v11114_v35, %v5953_v36  ;;  %v14190_v6 = vadd.f32 %v11115_v15, %v6179_v28  ;;  %6374 = vadd.xlane.f32.xlu0 %v6373_v12  ;;  %v10352_v12 = vld [vmem:[#allocation13 + $0x1c0] ss:$16 sps:$4 sm:$0xff]   ;;  %v10354_v36 = vld [vmem:[#allocation13 + $0x1c4] ss:$16 sps:$4 sm:$0xff]  }
 0x7f8   :  { %6244 = vst [vmem:[#allocation17 + $0x150] sm:$0xff] %v14168_v49  ;;  %15294 = vst [vmem:[#allocation70_spill] sm:$0xff] %v14180_v58  ;;  %v6311_v55 = vmul.f32 %v14180_v58, %v14180_v58  ;;  %v6378_v26 = vadd.f32 %v6377_v3, %v6306_v11  ;;  %v6309_v45 = vmul.f32 %v14168_v49, %v14168_v49  ;;  %7661 = vmatpush1.bf16.msra.mxu1 %v10349_v34  ;;  %v10355_v28 = vld [vmem:[#allocation13 + $0x1c8] ss:$16 sps:$4 sm:$0xff]   ;;  %v10357_v35 = vld [vmem:[#allocation13 + $0x1cc] ss:$16 sps:$4 sm:$0xff]  }
 0x7f9   :  { %15295 = vst [vmem:[#allocation73_spill] sm:$0xff] %v14182_v60  ;;  %6243 = vst [vmem:[#allocation17 + $0x148] sm:$0xff] %v14170_v8  ;;  %v6381_v57 = vadd.f32 %v6308_v22, %v6307_v53  ;;  %v6312_v48 = vmul.f32 %v14188_v1, %v14188_v1  ;;  %v6310_v44 = vmul.f32 %v14172_v9, %v14172_v9  ;;  %7436 = vmatprep.subr.bf16.mxu0 %v10354_v36  ;;  %v10358_v53 = vld [vmem:[#allocation13 + $0x1e0] ss:$16 sps:$4 sm:$0xff]   ;;  %v10360_v22 = vld [vmem:[#allocation13 + $0x1e4] ss:$16 sps:$4 sm:$0xff]  }
 0x7fa   :  { %6245 = vst [vmem:[#allocation17 + $0x158] sm:$0xff] %v14172_v9  ;;  %15296 = vst [vmem:[#allocation76_spill] sm:$0xff] %v14188_v1  ;;  %6379 = vadd.xlane.f32.xlu1 %v6378_v26  ;;  %v6313_v3 = vmul.f32 %v14182_v60, %v14182_v60  ;;  %7662 = vmatprep.subr.bf16.mxu1 %v10357_v35  ;;  %v6314_v34 = vmul.f32 %v14190_v6, %v14190_v6  ;;  %v10361_v26 = vld [vmem:[#allocation13 + $0x1e8] ss:$16 sps:$4 sm:$0xff]   ;;  %v11117_v35 = vld [vmem:[#allocation2 + $0x190] sm:$0xff] }
 0x7fb   :  { %15297 = vst [vmem:[#allocation100_spill] sm:$0xff] %v14190_v6  ;;  %6246 = vst [vmem:[#allocation17 + $0x160] sm:$0xff] %v14180_v58  ;;  %v6386_v61 = vadd.f32 %v6312_v48, %v6311_v55  ;;  %v6382_v11 = vadd.f32 %v6381_v57, %v6309_v45  ;;  %7437 = vmatpush1.bf16.msra.mxu0 %v10352_v12  ;;  %v10366_v55 = vld [vmem:[#allocation13 + $0x204] ss:$16 sps:$4 sm:$0xff]   ;;  %v10369_v45 = vld [vmem:[#allocation13 + $0x20c] ss:$16 sps:$4 sm:$0xff]  }
 0x7fc   :  { %6248 = vst [vmem:[#allocation17 + $0x170] sm:$0xff] %v14182_v60  ;;  %6247 = vst [vmem:[#allocation17 + $0x168] sm:$0xff] %v14188_v1  ;;  %7663 = vmatpush1.bf16.msra.mxu1 %v10355_v28  ;;  %v10363_v1 = vld [vmem:[#allocation13 + $0x1ec] ss:$16 sps:$4 sm:$0xff]   ;;  %7438 = vmatprep.subr.bf16.mxu0 %v10360_v22 }
 0x7fd   :  { %6249 = vst [vmem:[#allocation17 + $0x178] sm:$0xff] %v14190_v6  ;;  %v6383_v15 = vadd.f32 %v6382_v11, %v6310_v44  ;;  %v6387_v58 = vadd.f32 %v6386_v61, %v6313_v3  ;;  %7664 = vmatprep.subr.bf16.mxu1 %v10363_v1  ;;  %v11116_v12 = vld [vmem:[#allocation2 + $0x180] sm:$0xff]  ;;  %v11118_v61 = vld [vmem:[#allocation2 + $0x188] sm:$0xff]  ;;  %v11119_v1 = vld [vmem:[#allocation2 + $0x198] sm:$0xff] }
 0x7fe   :  { %v11127_v6 = vld [vmem:[#allocation2 + $0x1d8] sm:$0xff] }
 0x7ff   :  { %6384 = vadd.xlane.f32.xlu0 %v6383_v15  ;;  %v6388_v49 = vadd.f32 %v6387_v58, %v6314_v34  ;;  %7439 = vmatpush1.bf16.msra.mxu0 %v10358_v53  ;;  %v11120_v34 = vld [vmem:[#allocation2 + $0x1a0] sm:$0xff] }
 0x800   :  { %7665 = vmatpush1.bf16.msra.mxu1 %v10361_v26  ;;  %7521 = vmatprep.subr.bf16.mxu0 %v10366_v55  ;;  %v11121_v26 = vld [vmem:[#allocation2 + $0x1b0] sm:$0xff] }
 0x801   :  { %6389 = vadd.xlane.f32.xlu1 %v6388_v49  ;;  %7747 = vmatprep.subr.bf16.mxu1 %v10369_v45 }
 0x840   :  { %v5957_v57 = vpop.f32.mrb[152].mxu0  ;;  %v6183_v48 = vpop.f32.mrb[152].mxu1 }
 0x841   :  { %v14208_v36 = vadd.f32 %v11116_v12, %v5957_v57  ;;  %v14210_v28 = vadd.f32 %v11117_v35, %v6183_v48  ;;  %v5959_v44 = vpop.f32.mrb[153].mxu0  ;;  %v6185_v3 = vpop.f32.mrb[153].mxu1  ;;  %v11122_v12 = vld [vmem:[#allocation2 + $0x1a8] sm:$0xff] }
 0x842   :  { %v14212_v58 = vadd.f32 %v11118_v61, %v5959_v44  ;;  %v14214_v49 = vadd.f32 %v11119_v1, %v6185_v3  ;;  %v5961_v11 = vpop.f32.mrb[154].mxu0  ;;  %v6187_v53 = vpop.f32.mrb[154].mxu1  ;;  %v11123_v44 = vld [vmem:[#allocation2 + $0x1b8] sm:$0xff] }
 0x843   :  { %15298 = vst [vmem:[#allocation101_spill] sm:$0xff] %v14208_v36  ;;  %15299 = vst [vmem:[#allocation27_spill] sm:$0xff] %v14210_v28  ;;  %v6315_v22 = vmul.f32 %v14208_v36, %v14208_v36  ;;  %v14220_v15 = vadd.f32 %v11120_v34, %v5961_v11  ;;  %v14222_v55 = vadd.f32 %v11121_v26, %v6187_v53  ;;  %v5963_v45 = vpop.f32.mrb[155].mxu0  ;;  %v6189_v57 = vpop.f32.mrb[155].mxu1 }
 0x844   :  { %15300 = vst [vmem:[#allocation29_spill] sm:$0xff] %v14212_v58  ;;  %15301 = vst [vmem:[#allocation31_spill] sm:$0xff] %v14214_v49  ;;  %v6316_v48 = vmul.f32 %v14212_v58, %v14212_v58  ;;  %v14228_v35 = vadd.f32 %v11122_v12, %v5963_v45  ;;  %v14230_v3 = vadd.f32 %v11123_v44, %v6189_v57 }
 0x845   :  { %6250 = vst [vmem:[#allocation17 + $0x180] sm:$0xff] %v14208_v36  ;;  %6252 = vst [vmem:[#allocation17 + $0x190] sm:$0xff] %v14210_v28  ;;  %v6319_v61 = vmul.f32 %v14220_v15, %v14220_v15  ;;  %v6317_v1 = vmul.f32 %v14210_v28, %v14210_v28  ;;  %v6318_v34 = vmul.f32 %v14214_v49, %v14214_v49 }
 0x846   :  { %15302 = vst [vmem:[#allocation34_spill] sm:$0xff] %v14220_v15  ;;  %15303 = vst [vmem:[#allocation37_spill] sm:$0xff] %v14222_v55  ;;  %v6391_v11 = vadd.f32 %v6316_v48, %v6315_v22  ;;  %v6320_v53 = vmul.f32 %v14228_v35, %v14228_v35  ;;  %v6321_v26 = vmul.f32 %v14222_v55, %v14222_v55  ;;  %v11125_v22 = vld [vmem:[#allocation2 + $0x1d0] sm:$0xff] }
 0x847   :  { %6251 = vst [vmem:[#allocation17 + $0x188] sm:$0xff] %v14212_v58  ;;  %6253 = vst [vmem:[#allocation17 + $0x198] sm:$0xff] %v14214_v49  ;;  %v11126_v58 = vld [vmem:[#allocation2 + $0x1c8] sm:$0xff] }
 0x848   :  { %15304 = vst [vmem:[#allocation40_spill] sm:$0xff] %v14228_v35  ;;  %6254 = vst [vmem:[#allocation17 + $0x1a0] sm:$0xff] %v14220_v15  ;;  %v6396_v45 = vadd.f32 %v6320_v53, %v6319_v61  ;;  %v5967_v57 = vpop.f32.mrb[156].mxu0  ;;  %v6193_v12 = vpop.f32.mrb[156].mxu1  ;;  %v6392_v44 = vadd.f32 %v6391_v11, %v6317_v1  ;;  %v11124_v15 = vld [vmem:[#allocation2 + $0x1c0] sm:$0xff]  ;;  %v6322_v1 = vmul.f32 %v14230_v3, %v14230_v3 }
 0x849   :  { %6256 = vst [vmem:[#allocation17 + $0x1b0] sm:$0xff] %v14222_v55  ;;  %6255 = vst [vmem:[#allocation17 + $0x1a8] sm:$0xff] %v14228_v35  ;;  %v14246_v28 = vadd.f32 %v11124_v15, %v5967_v57  ;;  %v14248_v48 = vadd.f32 %v11125_v22, %v6193_v12  ;;  %v5969_v36 = vpop.f32.mrb[157].mxu0  ;;  %v6195_v35 = vpop.f32.mrb[157].mxu1  ;;  %v11128_v11 = vld [vmem:[#allocation2 + $0x1e0] sm:$0xff]  ;;  %v11131_v12 = vld [vmem:[#allocation2 + $0x1f8] sm:$0xff] }
 0x84a   :  { %6257 = vst [vmem:[#allocation17 + $0x1b8] sm:$0xff] %v14230_v3  ;;  %v14250_v60 = vadd.f32 %v11126_v58, %v5969_v36  ;;  %v14252_v49 = vadd.f32 %v11127_v6, %v6195_v35  ;;  %v5971_v9 = vpop.f32.mrb[158].mxu0  ;;  %v6197_v55 = vpop.f32.mrb[158].mxu1  ;;  %v6393_v61 = vadd.f32 %v6392_v44, %v6318_v34  ;;  %v6397_v53 = vadd.f32 %v6396_v45, %v6321_v26  ;;  %v11129_v58 = vld [vmem:[#allocation2 + $0x1f0] sm:$0xff]  ;;  %v11130_v26 = vld [vmem:[#allocation2 + $0x1e8] sm:$0xff] }
 0x84b   :  { %15305 = vst [vmem:[#allocation45_spill] sm:$0xff] %v14246_v28  ;;  %15306 = vst [vmem:[#allocation49_spill] sm:$0xff] %v14248_v48  ;;  %v6323_v15 = vmul.f32 %v14246_v28, %v14246_v28  ;;  %v14260_v36 = vadd.f32 %v11128_v11, %v5971_v9  ;;  %v14262_v6 = vadd.f32 %v11129_v58, %v6197_v55  ;;  %v5973_v35 = vpop.f32.mrb[159].mxu0  ;;  %v6199_v57 = vpop.f32.mrb[159].mxu1 }
 0x84c   :  { %15307 = vst [vmem:[#allocation53_spill] sm:$0xff] %v14252_v49  ;;  %6258 = vst [vmem:[#allocation17 + $0x1c0] sm:$0xff] %v14246_v28  ;;  %v6324_v34 = vmul.f32 %v14250_v60, %v14250_v60  ;;  %v14268_v45 = vadd.f32 %v11130_v26, %v5973_v35  ;;  %v14270_v44 = vadd.f32 %v11131_v12, %v6199_v57  ;;  %6394 = vadd.xlane.f32.xlu0 %v6393_v61 }
 0x84d   :  { %6260 = vst [vmem:[#allocation17 + $0x1d0] sm:$0xff] %v14248_v48  ;;  %15308 = vst [vmem:[#allocation57_spill] sm:$0xff] %v14260_v36  ;;  %v6327_v9 = vmul.f32 %v14260_v36, %v14260_v36  ;;  %v6398_v55 = vadd.f32 %v6397_v53, %v6322_v1  ;;  %v6325_v22 = vmul.f32 %v14248_v48, %v14248_v48 }
 0x84e   :  { %15309 = vst [vmem:[#allocation60_spill] sm:$0xff] %v14262_v6  ;;  %6259 = vst [vmem:[#allocation17 + $0x1c8] sm:$0xff] %v14250_v60  ;;  %v6401_v11 = vadd.f32 %v6324_v34, %v6323_v15  ;;  %v6328_v58 = vmul.f32 %v14268_v45, %v14268_v45  ;;  %v6326_v61 = vmul.f32 %v14252_v49, %v14252_v49 }
 0x84f   :  { %6261 = vst [vmem:[#allocation17 + $0x1d8] sm:$0xff] %v14252_v49  ;;  %15310 = vst [vmem:[#allocation63_spill] sm:$0xff] %v14268_v45  ;;  %6399 = vadd.xlane.f32.xlu1 %v6398_v55  ;;  %v6329_v35 = vmul.f32 %v14262_v6, %v14262_v6  ;;  %v6330_v1 = vmul.f32 %v14270_v44, %v14270_v44 }
 0x850   :  { %6262 = vst [vmem:[#allocation17 + $0x1e0] sm:$0xff] %v14260_v36  ;;  %6264 = vst [vmem:[#allocation17 + $0x1f0] sm:$0xff] %v14262_v6  ;;  %v6406_v57 = vadd.f32 %v6328_v58, %v6327_v9  ;;  %v6402_v53 = vadd.f32 %v6401_v11, %v6325_v22  ;;  %v6266_v11 = vld [vmem:[%s14755_s2] sm:$0xf]  ;;  %s11381_s2 = smov [#allocation17]  }
 0x851   :  { %6263 = vst [vmem:[#allocation17 + $0x1e8] sm:$0xff] %v14268_v45  ;;  %6265 = vst [vmem:[#allocation17 + $0x1f8] sm:$0xff] %v14270_v44  ;;  %s8823_s27 = sshll.u32 %s11381_s2, 4  ;;  %s8824_s27 = int_to_ptr.vmem [resolvable:$true] %s8823_s27 }
 0x852   :  { %v6403_v15 = vadd.f32 %v6402_v53, %v6326_v61  ;;  %v6407_v34 = vadd.f32 %v6406_v57, %v6329_v35  ;;  %v15311_v35 = vld [vmem:[#allocation26_spill] sm:$0xff]  ;;  %s11308_s15 = scalar_lea.vmem %s8824_s27, 8192  ;;  %p11313_p9 = scmp.lt.s32.totalorder %s8824_s27, %s8824_s27 }
 0x853   :  { %v15312_v57 = vsub.s32 1, %v15311_v35  ;;  %p11309_p8 = scmp.ne.s32.totalorder %s8824_s27, %s11308_s15  ;;  %p11314_p10 = scmp.lt.s32.totalorder %s11308_s15, %s11308_s15 }
 0x854   :  { %6404 = vadd.xlane.f32.xlu0 %v6403_v15  ;;  %v6408_v26 = vadd.f32 %v6407_v34, %v6330_v1 }
 0x855   :  { %v14293_v53 = vrot.slane %v6266_v11, %v15312_v57  ;;  %p11315_p11 = por %p11314_p10, %p11313_p9 }
 0x856   :  { %6409 = vadd.xlane.f32.xlu1 %v6408_v26 }
 0x857   :  { %p11316_p12 = pnand %p11315_p11, %p11309_p8 }
 0x864   :  { %v6335_v12 = vpop.xlane.xlu0 %6334 }
 0x865   :  { %v6411_v36 = vmul.f32 0.001953125, %v6335_v12 }
 0x867   :  { %v6427_v45 = vadd.f32 1e-06, %v6411_v36  ;;  %v6340_v55 = vpop.xlane.xlu1 %6339  ;;  %v15313_v36 = vsub.s32 3, %v15311_v35 }
 0x868   :  { %v6412_v48 = vmul.f32 0.001953125, %v6340_v55 }
 0x869   :  { %10844 = vrsqrt.f32 %v6427_v45  ;;  %v14297_v45 = vrot.slane %v6266_v11, %v15313_v36 }
 0x86a   :  { %v6428_v49 = vadd.f32 1e-06, %v6412_v48 }
 0x86c   :  { %10846 = vrsqrt.f32 %v6428_v49  ;;  %v6345_v28 = vpop.xlane.xlu0 %6344 }
 0x86d   :  { %v6413_v6 = vmul.f32 0.001953125, %v6345_v28  ;;  %v15314_v28 = vsub.s32 0, %v15311_v35 }
 0x86f   :  { %v6429_v9 = vadd.f32 1e-06, %v6413_v6  ;;  %v6350_v22 = vpop.xlane.xlu1 %6349  ;;  %v14301_v48 = vrot.slane %v6266_v11, %v15314_v28  ;;  %v15315_v6 = vsub.s32 2, %v15311_v35 }
 0x870   :  { %v6414_v58 = vmul.f32 0.001953125, %v6350_v22 }
 0x871   :  { %10848 = vrsqrt.f32 %v6429_v9  ;;  %v14305_v1 = vrot.slane %v6266_v11, %v15315_v6 }
 0x872   :  { %v6430_v61 = vadd.f32 1e-06, %v6414_v58 }
 0x873   :  { %v10845_v49 = vpop.eup %10844 }
 0x874   :  { %10850 = vrsqrt.f32 %v6430_v61  ;;  %v6355_v15 = vpop.xlane.xlu0 %6354  ;;  %v6460_v34 = vmul.f32 %v10845_v49, %v13972_v62  ;;  %v6459_v26 = vmul.f32 %v10845_v49, %v13968_v29  ;;  %v6462_v12 = vmul.f32 %v10845_v49, %v13974_v20 }
 0x875   :  { %v6415_v55 = vmul.f32 0.001953125, %v6355_v15  ;;  %v6461_v9 = vmul.f32 %v10845_v49, %v13970_v23 }
 0x876   :  { %v10847_v22 = vpop.eup %10846  ;;  %v6545_v58 = vmul.f32 %v14293_v53, %v6460_v34  ;;  %v6547_v57 = vmul.f32 %v14297_v45, %v6462_v12  ;;  %v6544_v29 = vmul.f32 %v14301_v48, %v6459_v26 }
 0x877   :  { %v6431_v36 = vadd.f32 1e-06, %v6415_v55  ;;  %v6360_v35 = vpop.xlane.xlu1 %6359  ;;  %v6464_v11 = vmul.f32 %v10847_v22, %v13988_v25  ;;  %v6463_v61 = vmul.f32 %v10847_v22, %v13980_v47  ;;  %v6466_v62 = vmul.f32 %v10847_v22, %v13990_v7  ;;  %v10364_v55 = vld [vmem:[#allocation13 + $0x200] ss:$16 sps:$4 sm:$0xff]  }
 0x878   :  { %v6416_v28 = vmul.f32 0.001953125, %v6360_v35  ;;  %v6465_v20 = vmul.f32 %v10847_v22, %v13982_v31  ;;  %v6546_v23 = vmul.f32 %v14305_v1, %v6461_v9  ;;  %v10367_v35 = vld [vmem:[#allocation13 + $0x208] ss:$16 sps:$4 sm:$0xff]  }
 0x879   :  { %10852 = vrsqrt.f32 %v6431_v36  ;;  %v6549_v49 = vmul.f32 %v14293_v53, %v6464_v11  ;;  %v6548_v6 = vmul.f32 %v14301_v48, %v6463_v61  ;;  %v6551_v15 = vmul.f32 %v14297_v45, %v6466_v62  ;;  %v10372_v36 = vld [vmem:[#allocation13 + $0x224] ss:$16 sps:$4 sm:$0xff]   ;;  %v10375_v11 = vld [vmem:[#allocation13 + $0x22c] ss:$16 sps:$4 sm:$0xff]  }
 0x87a   :  { %v6432_v34 = vadd.f32 1e-06, %v6416_v28  ;;  %v6550_v25 = vmul.f32 %v14305_v1, %v6465_v20 }
 0x87b   :  { %v10849_v47 = vpop.eup %10848  ;;  %v6609_v12 = vpack.c.bf16 %v6549_v49, %v6545_v58  ;;  %v6608_v7 = vpack.c.bf16 %v6548_v6, %v6544_v29  ;;  %v14323_v26 = vpack.c.bf16 %v6551_v15, %v6547_v57  ;;  %v10370_v6 = vld [vmem:[#allocation13 + $0x220] ss:$16 sps:$4 sm:$0xff]   ;;  %v10373_v15 = vld [vmem:[#allocation13 + $0x228] ss:$16 sps:$4 sm:$0xff]  }
 0x87c   :  { %10854 = vrsqrt.f32 %v6432_v34  ;;  %v6365_v31 = vpop.xlane.xlu0 %6364  ;;  %v6468_v9 = vmul.f32 %v10849_v47, %v14010_v19  ;;  %v6467_v22 = vmul.f32 %v10849_v47, %v14006_v24  ;;  %v14327_v61 = vpack.c.bf16 %v6550_v25, %v6546_v23  ;;  %v10378_v34 = vld [vmem:[#allocation13 + $0x244] ss:$16 sps:$4 sm:$0xff]   ;;  %v10381_v25 = vld [vmem:[#allocation13 + $0x24c] ss:$16 sps:$4 sm:$0xff]  }
 0x87d   :  { %v6417_v62 = vmul.f32 0.001953125, %v6365_v31  ;;  %7440 = vmatprep.mubr.bf16.mxu0 %v6609_v12  ;;  %7666 = vmatprep.mubr.bf16.mxu1 %v6609_v12  ;;  %v6470_v58 = vmul.f32 %v10849_v47, %v14012_v38  ;;  %v6469_v28 = vmul.f32 %v10849_v47, %v14008_v43 }
 0x87e   :  { %v10851_v29 = vpop.eup %10850  ;;  %7441 = vmatmul.mubr.bf16.vlgmr.msra.gmra.mrb[160].mxu0 %v6608_v7  ;;  %7667 = vmatmul.mubr.bf16.vlgmr.msra.gmra.mrb[160].mxu1 %v6608_v7  ;;  %v6553_v57 = vmul.f32 %v14293_v53, %v6468_v9  ;;  %v6552_v19 = vmul.f32 %v14301_v48, %v6467_v22 }
 0x87f   :  { %v6433_v20 = vadd.f32 1e-06, %v6417_v62  ;;  %v6370_v24 = vpop.xlane.xlu1 %6369  ;;  %v6472_v49 = vmul.f32 %v10851_v29, %v14028_v14  ;;  %v6471_v23 = vmul.f32 %v10851_v29, %v14020_v52  ;;  %7522 = vmatpush1.bf16.msra.mxu0 %v10364_v55  ;;  %7748 = vmatpush1.bf16.msra.mxu1 %v10367_v35  ;;  %v6474_v38 = vmul.f32 %v10851_v29, %v14030_v41 }
 0x880   :  { %v6418_v43 = vmul.f32 0.001953125, %v6370_v24  ;;  %7523 = vmatprep.subr.bf16.mxu0 %v10372_v36  ;;  %7749 = vmatprep.subr.bf16.mxu1 %v10375_v11  ;;  %v6555_v47 = vmul.f32 %v14297_v45, %v6470_v58  ;;  %v6473_v12 = vmul.f32 %v10851_v29, %v14022_v39  ;;  %v6554_v7 = vmul.f32 %v14305_v1, %v6469_v28  ;;  %v10376_v36 = vld [vmem:[#allocation13 + $0x240] ss:$16 sps:$4 sm:$0xff]   ;;  %v10379_v11 = vld [vmem:[#allocation13 + $0x248] ss:$16 sps:$4 sm:$0xff]  }
 0x881   :  { %10856 = vrsqrt.f32 %v6433_v20  ;;  %v6557_v52 = vmul.f32 %v14293_v53, %v6472_v49  ;;  %v6556_v14 = vmul.f32 %v14301_v48, %v6471_v23  ;;  %v6559_v55 = vmul.f32 %v14297_v45, %v6474_v38  ;;  %v10384_v29 = vld [vmem:[#allocation13 + $0x264] ss:$16 sps:$4 sm:$0xff]   ;;  %v10387_v20 = vld [vmem:[#allocation13 + $0x26c] ss:$16 sps:$4 sm:$0xff]  }
 0x882   :  { %v6434_v35 = vadd.f32 1e-06, %v6418_v43  ;;  %v6558_v41 = vmul.f32 %v14305_v1, %v6473_v12  ;;  %v10393_v12 = vld [vmem:[#allocation13 + $0x28c] ss:$16 sps:$4 sm:$0xff]  }
 0x883   :  { %v10853_v31 = vpop.eup %10852  ;;  %v6613_v9 = vpack.c.bf16 %v6557_v52, %v6553_v57  ;;  %v6612_v22 = vpack.c.bf16 %v6556_v14, %v6552_v19  ;;  %7524 = vmatpush1.bf16.msra.mxu0 %v10370_v6  ;;  %7750 = vmatpush1.bf16.msra.mxu1 %v10373_v15  ;;  %v14343_v39 = vpack.c.bf16 %v6559_v55, %v6555_v47  ;;  %v10390_v47 = vld [vmem:[#allocation13 + $0x284] ss:$16 sps:$4 sm:$0xff]  }
 0x884   :  { %10858 = vrsqrt.f32 %v6434_v35  ;;  %v6375_v62 = vpop.xlane.xlu0 %6374  ;;  %v6476_v58 = vmul.f32 %v10853_v31, %v14050_v16  ;;  %v6475_v28 = vmul.f32 %v10853_v31, %v14046_v32  ;;  %7525 = vmatprep.subr.bf16.mxu0 %v10378_v34  ;;  %7751 = vmatprep.subr.bf16.mxu1 %v10381_v25  ;;  %v14347_v24 = vpack.c.bf16 %v6558_v41, %v6554_v7  ;;  %v10382_v34 = vld [vmem:[#allocation13 + $0x260] ss:$16 sps:$4 sm:$0xff]   ;;  %v10385_v25 = vld [vmem:[#allocation13 + $0x268] ss:$16 sps:$4 sm:$0xff]  }
 0x885   :  { %v6419_v57 = vmul.f32 0.001953125, %v6375_v62  ;;  %7450 = vmatprep.mubr.bf16.mxu0 %v6613_v9  ;;  %7676 = vmatprep.mubr.bf16.mxu1 %v6613_v9  ;;  %v6478_v19 = vmul.f32 %v10853_v31, %v14052_v18  ;;  %v6477_v49 = vmul.f32 %v10853_v31, %v14048_v2 }
 0x886   :  { %v10855_v23 = vpop.eup %10854  ;;  %7451 = vmatmul.mubr.bf16.gmra.mrb[164].mxu0 %v6612_v22  ;;  %7677 = vmatmul.mubr.bf16.gmra.mrb[164].mxu1 %v6612_v22  ;;  %v6561_v16 = vmul.f32 %v14293_v53, %v6476_v58  ;;  %v6560_v32 = vmul.f32 %v14301_v48, %v6475_v28  ;;  %v10388_v22 = vld [vmem:[#allocation13 + $0x280] ss:$16 sps:$4 sm:$0xff]   ;;  %v10396_v28 = vld [vmem:[#allocation13 + $0x2a4] ss:$16 sps:$4 sm:$0xff]  }
 0x887   :  { %v6435_v6 = vadd.f32 1e-06, %v6419_v57  ;;  %v6380_v15 = vpop.xlane.xlu1 %6379  ;;  %v6480_v38 = vmul.f32 %v10855_v23, %v14068_v56  ;;  %v6479_v43 = vmul.f32 %v10855_v23, %v14060_v50  ;;  %7526 = vmatpush1.bf16.msra.mxu0 %v10376_v36  ;;  %7752 = vmatpush1.bf16.msra.mxu1 %v10379_v11  ;;  %v6482_v18 = vmul.f32 %v10855_v23, %v14070_v17  ;;  %v10391_v36 = vld [vmem:[#allocation13 + $0x288] ss:$16 sps:$4 sm:$0xff]  }
 0x888   :  { %v6420_v2 = vmul.f32 0.001953125, %v6380_v15  ;;  %7527 = vmatprep.subr.bf16.mxu0 %v10384_v29  ;;  %7753 = vmatprep.subr.bf16.mxu1 %v10387_v20  ;;  %v6563_v7 = vmul.f32 %v14297_v45, %v6478_v19  ;;  %v6481_v52 = vmul.f32 %v10855_v23, %v14062_v10  ;;  %v6562_v14 = vmul.f32 %v14305_v1, %v6477_v49  ;;  %v10399_v29 = vld [vmem:[#allocation13 + $0x2ac] ss:$16 sps:$4 sm:$0xff]  }
 0x889   :  { %10860 = vrsqrt.f32 %v6435_v6  ;;  %v6565_v50 = vmul.f32 %v14293_v53, %v6480_v38  ;;  %v6564_v56 = vmul.f32 %v14301_v48, %v6479_v43  ;;  %v6567_v55 = vmul.f32 %v14297_v45, %v6482_v18 }
 0x88a   :  { %v6436_v35 = vadd.f32 1e-06, %v6420_v2  ;;  %v6566_v17 = vmul.f32 %v14305_v1, %v6481_v52 }
 0x88b   :  { %v10857_v41 = vpop.eup %10856  ;;  %v6617_v31 = vpack.c.bf16 %v6565_v50, %v6561_v16  ;;  %v6616_v9 = vpack.c.bf16 %v6564_v56, %v6560_v32  ;;  %7528 = vmatpush1.bf16.msra.mxu0 %v10382_v34  ;;  %7754 = vmatpush1.bf16.msra.mxu1 %v10385_v25  ;;  %v14363_v10 = vpack.c.bf16 %v6567_v55, %v6563_v7  ;;  %v10402_v34 = vld [vmem:[#allocation13 + $0x2c4] ss:$16 sps:$4 sm:$0xff]   ;;  %v10405_v25 = vld [vmem:[#allocation13 + $0x2cc] ss:$16 sps:$4 sm:$0xff]   ;;  %v10400_v56 = vld [vmem:[#allocation13 + $0x2c0] ss:$16 sps:$4 sm:$0xff]  }
 0x88c   :  { %10862 = vrsqrt.f32 %v6436_v35  ;;  %v6385_v11 = vpop.xlane.xlu0 %6384  ;;  %v6484_v62 = vmul.f32 %v10857_v41, %v14090_v4  ;;  %v6483_v58 = vmul.f32 %v10857_v41, %v14086_v46  ;;  %7529 = vmatprep.subr.bf16.mxu0 %v10390_v47  ;;  %7755 = vmatprep.subr.bf16.mxu1 %v10393_v12  ;;  %v14367_v20 = vpack.c.bf16 %v6566_v17, %v6562_v14  ;;  %v10394_v46 = vld [vmem:[#allocation13 + $0x2a0] ss:$16 sps:$4 sm:$0xff]   ;;  %v10408_v17 = vld [vmem:[#allocation13 + $0x2e4] ss:$16 sps:$4 sm:$0xff]  }
 0x88d   :  { %v6421_v57 = vmul.f32 0.001953125, %v6385_v11  ;;  %7460 = vmatprep.mubr.bf16.mxu0 %v6617_v31  ;;  %7686 = vmatprep.mubr.bf16.mxu1 %v6617_v31  ;;  %v6486_v19 = vmul.f32 %v10857_v41, %v14092_v42  ;;  %v6485_v32 = vmul.f32 %v10857_v41, %v14088_v63  ;;  %v10397_v42 = vld [vmem:[#allocation13 + $0x2a8] ss:$16 sps:$4 sm:$0xff]   ;;  %v10411_v41 = vld [vmem:[#allocation13 + $0x2ec] ss:$16 sps:$4 sm:$0xff]  }
 0x88e   :  { %v10859_v49 = vpop.eup %10858  ;;  %7461 = vmatmul.mubr.bf16.gmra.mrb[168].mxu0 %v6616_v9  ;;  %7687 = vmatmul.mubr.bf16.gmra.mrb[168].mxu1 %v6616_v9  ;;  %v6390_v23 = vpop.xlane.xlu1 %6389  ;;  %v6569_v16 = vmul.f32 %v14293_v53, %v6484_v62  ;;  %v6568_v4 = vmul.f32 %v14301_v48, %v6483_v58  ;;  %v10406_v58 = vld [vmem:[#allocation13 + $0x2e0] ss:$16 sps:$4 sm:$0xff]  }
 0x88f   :  { %v6437_v6 = vadd.f32 1e-06, %v6421_v57  ;;  %v6422_v15 = vmul.f32 0.001953125, %v6390_v23  ;;  %v6488_v38 = vmul.f32 %v10859_v49, %v14108_v33  ;;  %v6487_v43 = vmul.f32 %v10859_v49, %v14100_v40  ;;  %7530 = vmatpush1.bf16.msra.mxu0 %v10388_v22  ;;  %7756 = vmatpush1.bf16.msra.mxu1 %v10391_v36  ;;  %v10417_v57 = vld [vmem:[#allocation13 + $0x30c] ss:$16 sps:$4 sm:$0xff]  }
 0x890   :  { %7531 = vmatprep.subr.bf16.mxu0 %v10396_v28  ;;  %7757 = vmatprep.subr.bf16.mxu1 %v10399_v29  ;;  %v6490_v18 = vmul.f32 %v10859_v49, %v14110_v13  ;;  %v6571_v2 = vmul.f32 %v14297_v45, %v6486_v19  ;;  %v6489_v47 = vmul.f32 %v10859_v49, %v14102_v37  ;;  %v10403_v37 = vld [vmem:[#allocation13 + $0x2c8] ss:$16 sps:$4 sm:$0xff]  }
 0x891   :  { %10864 = vrsqrt.f32 %v6437_v6  ;;  %v6438_v63 = vadd.f32 1e-06, %v6422_v15  ;;  %v6573_v12 = vmul.f32 %v14293_v53, %v6488_v38  ;;  %v6572_v33 = vmul.f32 %v14301_v48, %v6487_v43  ;;  %v10409_v28 = vld [vmem:[#allocation13 + $0x2e8] ss:$16 sps:$4 sm:$0xff]   ;;  %v10412_v6 = vld [vmem:[#allocation13 + $0x300] ss:$16 sps:$4 sm:$0xff]  }
 0x892   :  { %v6575_v40 = vmul.f32 %v14297_v45, %v6490_v18  ;;  %v6570_v7 = vmul.f32 %v14305_v1, %v6485_v32  ;;  %v6574_v52 = vmul.f32 %v14305_v1, %v6489_v47  ;;  %v10415_v15 = vld [vmem:[#allocation13 + $0x308] ss:$16 sps:$4 sm:$0xff]  }
 0x893   :  { %v10861_v14 = vpop.eup %10860  ;;  %10866 = vrsqrt.f32 %v6438_v63  ;;  %v6621_v50 = vpack.c.bf16 %v6573_v12, %v6569_v16  ;;  %v6620_v13 = vpack.c.bf16 %v6572_v33, %v6568_v4  ;;  %7532 = vmatpush1.bf16.msra.mxu0 %v10394_v46  ;;  %7758 = vmatpush1.bf16.msra.mxu1 %v10397_v42  ;;  %v15316_v43 = vld [vmem:[#allocation61_spill] sm:$0xff]  ;;  %v15317_v47 = vld [vmem:[#allocation67_spill] sm:$0xff]  ;;  %v15318_v12 = vld [vmem:[#allocation64_spill] sm:$0xff] }
 0x894   :  { %v6492_v55 = vmul.f32 %v10861_v14, %v14130_v30  ;;  %v6491_v35 = vmul.f32 %v10861_v14, %v14126_v0  ;;  %7533 = vmatprep.subr.bf16.mxu0 %v10402_v34  ;;  %7759 = vmatprep.subr.bf16.mxu1 %v10405_v25  ;;  %v14385_v31 = vpack.c.bf16 %v6575_v40, %v6571_v2  ;;  %v10420_v34 = vld [vmem:[#allocation13 + $0x324] ss:$16 sps:$4 sm:$0xff]   ;;  %v10423_v25 = vld [vmem:[#allocation13 + $0x32c] ss:$16 sps:$4 sm:$0xff]  }
 0x895   :  { %7470 = vmatprep.mubr.bf16.mxu0 %v6621_v50  ;;  %7696 = vmatprep.mubr.bf16.mxu1 %v6621_v50  ;;  %v14387_v9 = vpack.c.bf16 %v6574_v52, %v6570_v7  ;;  %v6494_v22 = vmul.f32 %v10861_v14, %v14132_v51  ;;  %v6493_v36 = vmul.f32 %v10861_v14, %v14128_v54  ;;  %v10414_v51 = vld [vmem:[#allocation13 + $0x304] ss:$16 sps:$4 sm:$0xff]  }
 0x896   :  { %v10863_v11 = vpop.eup %10862  ;;  %7471 = vmatmul.mubr.bf16.gmra.mrb[172].mxu0 %v6620_v13  ;;  %7697 = vmatmul.mubr.bf16.gmra.mrb[172].mxu1 %v6620_v13  ;;  %v6577_v30 = vmul.f32 %v14293_v53, %v6492_v55  ;;  %v15319_v40 = vld [vmem:[#allocation76_spill] sm:$0xff]  ;;  %v15320_v52 = vld [vmem:[#allocation70_spill] sm:$0xff] }
 0x897   :  { %v6496_v0 = vmul.f32 %v10863_v11, %v14148_v27  ;;  %v6495_v62 = vmul.f32 %v10863_v11, %v14140_v59  ;;  %7534 = vmatpush1.bf16.msra.mxu0 %v10400_v56  ;;  %7760 = vmatpush1.bf16.msra.mxu1 %v10403_v37  ;;  %v6498_v29 = vmul.f32 %v10863_v11, %v14150_v21  ;;  %v10418_v13 = vld [vmem:[#allocation13 + $0x320] ss:$16 sps:$4 sm:$0xff]   ;;  %v10421_v56 = vld [vmem:[#allocation13 + $0x328] ss:$16 sps:$4 sm:$0xff]  }
 0x898   :  { %7535 = vmatprep.subr.bf16.mxu0 %v10408_v17  ;;  %7761 = vmatprep.subr.bf16.mxu1 %v10411_v41  ;;  %v6579_v54 = vmul.f32 %v14297_v45, %v6494_v22  ;;  %v6497_v19 = vmul.f32 %v10863_v11, %v14142_v5  ;;  %v6578_v49 = vmul.f32 %v14305_v1, %v6493_v36  ;;  %v15321_v37 = vld [vmem:[#allocation100_spill] sm:$0xff]  ;;  %v15322_v22 = vld [vmem:[#allocation73_spill] sm:$0xff] }
 0x899   :  { %v6581_v27 = vmul.f32 %v14293_v53, %v6496_v0  ;;  %v6576_v59 = vmul.f32 %v14301_v48, %v6491_v35  ;;  %v6580_v23 = vmul.f32 %v14301_v48, %v6495_v62  ;;  %v6583_v16 = vmul.f32 %v14297_v45, %v6498_v29  ;;  %v10426_v11 = vld [vmem:[#allocation13 + $0x344] ss:$16 sps:$4 sm:$0xff]  }
 0x89a   :  { %v6582_v21 = vmul.f32 %v14305_v1, %v6497_v19  ;;  %v10432_v19 = vld [vmem:[#allocation13 + $0x364] ss:$16 sps:$4 sm:$0xff]  }
 0x89b   :  { %v10865_v4 = vpop.eup %10864  ;;  %v6625_v46 = vpack.c.bf16 %v6581_v27, %v6577_v30  ;;  %v6624_v32 = vpack.c.bf16 %v6580_v23, %v6576_v59  ;;  %7536 = vmatpush1.bf16.msra.mxu0 %v10406_v58  ;;  %7762 = vmatpush1.bf16.msra.mxu1 %v10409_v28  ;;  %v14403_v5 = vpack.c.bf16 %v6583_v16, %v6579_v54  ;;  %v10429_v30 = vld [vmem:[#allocation13 + $0x34c] ss:$16 sps:$4 sm:$0xff]   ;;  %v10430_v59 = vld [vmem:[#allocation13 + $0x360] ss:$16 sps:$4 sm:$0xff]   ;;  %v10433_v23 = vld [vmem:[#allocation13 + $0x368] ss:$16 sps:$4 sm:$0xff]  }
 0x89c   :  { %v6500_v38 = vmul.f32 %v10865_v4, %v14170_v8  ;;  %v6499_v42 = vmul.f32 %v10865_v4, %v15316_v43  ;;  %7537 = vmatprep.subr.bf16.mxu0 %v10414_v51  ;;  %7763 = vmatprep.subr.bf16.mxu1 %v10417_v57  ;;  %v14407_v18 = vpack.c.bf16 %v6582_v21, %v6578_v49  ;;  %v10424_v51 = vld [vmem:[#allocation13 + $0x340] ss:$16 sps:$4 sm:$0xff]   ;;  %v10427_v57 = vld [vmem:[#allocation13 + $0x348] ss:$16 sps:$4 sm:$0xff]   ;;  %v10435_v49 = vld [vmem:[#allocation13 + $0x36c] ss:$16 sps:$4 sm:$0xff]  }
 0x89d   :  { %v10867_v2 = vpop.eup %10866  ;;  %7480 = vmatprep.mubr.bf16.mxu0 %v6625_v46  ;;  %7706 = vmatprep.mubr.bf16.mxu1 %v6625_v46  ;;  %v6502_v63 = vmul.f32 %v10865_v4, %v15317_v47  ;;  %v6501_v33 = vmul.f32 %v10865_v4, %v15318_v12  ;;  %v10438_v16 = vld [vmem:[#allocation13 + $0x384] ss:$16 sps:$4 sm:$0xff]   ;;  %v10441_v21 = vld [vmem:[#allocation13 + $0x38c] ss:$16 sps:$4 sm:$0xff]   ;;  %v10436_v4 = vld [vmem:[#allocation13 + $0x380] ss:$16 sps:$4 sm:$0xff]  }
 0x89e   :  { %7481 = vmatmul.mubr.bf16.gmra.mrb[176].mxu0 %v6624_v32  ;;  %7707 = vmatmul.mubr.bf16.gmra.mrb[176].mxu1 %v6624_v32  ;;  %v6504_v7 = vmul.f32 %v10867_v2, %v15319_v40  ;;  %v6585_v8 = vmul.f32 %v14293_v53, %v6500_v38  ;;  %v6503_v14 = vmul.f32 %v10867_v2, %v15320_v52  ;;  %v10439_v46 = vld [vmem:[#allocation13 + $0x388] ss:$16 sps:$4 sm:$0xff]   ;;  %v10444_v32 = vld [vmem:[#allocation13 + $0x3a4] ss:$16 sps:$4 sm:$0xff]   ;;  %v10459_v47 = vld [vmem:[#allocation13 + $0x3ec] ss:$16 sps:$4 sm:$0xff]  }
 0x89f   :  { %v6584_v50 = vmul.f32 %v14301_v48, %v6499_v42  ;;  %7538 = vmatpush1.bf16.msra.mxu0 %v10412_v6  ;;  %7764 = vmatpush1.bf16.msra.mxu1 %v10415_v15  ;;  %v6506_v55 = vmul.f32 %v10867_v2, %v15321_v37  ;;  %v6587_v35 = vmul.f32 %v14297_v45, %v6502_v63  ;;  %v10447_v6 = vld [vmem:[#allocation13 + $0x3ac] ss:$16 sps:$4 sm:$0xff]   ;;  %v10442_v15 = vld [vmem:[#allocation13 + $0x3a0] ss:$16 sps:$4 sm:$0xff]   ;;  %v10445_v38 = vld [vmem:[#allocation13 + $0x3a8] ss:$16 sps:$4 sm:$0xff]  }
 0x8a0   :  { %v6589_v17 = vmul.f32 %v14293_v53, %v6504_v7  ;;  %v6588_v41 = vmul.f32 %v14301_v48, %v6503_v14  ;;  %7539 = vmatprep.subr.bf16.mxu0 %v10420_v34  ;;  %7765 = vmatprep.subr.bf16.mxu1 %v10423_v25  ;;  %v6505_v36 = vmul.f32 %v10867_v2, %v15322_v22  ;;  %v10450_v43 = vld [vmem:[#allocation13 + $0x3c4] ss:$16 sps:$4 sm:$0xff]   ;;  %v10453_v42 = vld [vmem:[#allocation13 + $0x3cc] ss:$16 sps:$4 sm:$0xff]   ;;  %v10448_v34 = vld [vmem:[#allocation13 + $0x3c0] ss:$16 sps:$4 sm:$0xff]  }
 0x8a1   :  { %v6591_v0 = vmul.f32 %v14297_v45, %v6506_v55  ;;  %v6586_v62 = vmul.f32 %v14305_v1, %v6501_v33  ;;  %v10451_v25 = vld [vmem:[#allocation13 + $0x3c8] ss:$16 sps:$4 sm:$0xff]   ;;  %v10456_v2 = vld [vmem:[#allocation13 + $0x3e4] ss:$16 sps:$4 sm:$0xff]   ;;  %v10454_v63 = vld [vmem:[#allocation13 + $0x3e0] ss:$16 sps:$4 sm:$0xff]  }
 0x8a2   :  { %v6629_v58 = vpack.c.bf16 %v6589_v17, %v6585_v8  ;;  %v6628_v28 = vpack.c.bf16 %v6588_v41, %v6584_v50  ;;  %v6590_v29 = vmul.f32 %v14305_v1, %v6505_v36  ;;  %v10457_v12 = vld [vmem:[#allocation13 + $0x3e8] ss:$16 sps:$4 sm:$0xff]   ;;  %v10462_v33 = vld [vmem:[#allocation14 + $0x4] ss:$16 sps:$4 sm:$0xff]   ;;  %v10465_v40 = vld [vmem:[#allocation14 + $0xc] ss:$16 sps:$4 sm:$0xff]  }
 0x8a3   :  { %7540 = vmatpush1.bf16.msra.mxu0 %v10418_v13  ;;  %7766 = vmatpush1.bf16.msra.mxu1 %v10421_v56  ;;  %v14423_v54 = vpack.c.bf16 %v6591_v0, %v6587_v35  ;;  %v15323_v36 = vld [vmem:[#allocation29_spill] sm:$0xff] }
 0x8a4   :  { %7490 = vmatprep.mubr.bf16.mxu0 %v6629_v58  ;;  %7716 = vmatprep.mubr.bf16.mxu1 %v6629_v58  ;;  %v14425_v27 = vpack.c.bf16 %v6590_v29, %v6586_v62  ;;  %v15325_v62 = vld [vmem:[#allocation31_spill] sm:$0xff] }
 0x8a5   :  { %7541 = vmatprep.subr.bf16.mxu0 %v10426_v11  ;;  %7767 = vmatprep.subr.bf16.mxu1 %v10429_v30  ;;  %v15324_v30 = vld [vmem:[#allocation101_spill] sm:$0xff] }
 0x8a6   :  { %7491 = vmatmul.mubr.bf16.gmra.mrb[180].mxu0 %v6628_v28  ;;  %7717 = vmatmul.mubr.bf16.gmra.mrb[180].mxu1 %v6628_v28  ;;  %v15326_v28 = vld [vmem:[#allocation27_spill] sm:$0xff] }
 0x8a7   :  { %7542 = vmatpush1.bf16.msra.mxu0 %v10424_v51  ;;  %7768 = vmatpush1.bf16.msra.mxu1 %v10427_v57 }
 0x8a8   :  { %7543 = vmatprep.subr.bf16.mxu0 %v10432_v19  ;;  %7769 = vmatprep.subr.bf16.mxu1 %v10435_v49  ;;  %v15327_v49 = vld [vmem:[#allocation40_spill] sm:$0xff] }
 0x8ab   :  { %7544 = vmatpush1.bf16.msra.mxu0 %v10430_v59  ;;  %7770 = vmatpush1.bf16.msra.mxu1 %v10433_v23  ;;  %v15328_v23 = vld [vmem:[#allocation34_spill] sm:$0xff] }
 0x8ac   :  { %7545 = vmatprep.subr.bf16.mxu0 %v10438_v16  ;;  %7771 = vmatprep.subr.bf16.mxu1 %v10441_v21 }
 0x8af   :  { %7546 = vmatpush1.bf16.msra.mxu0 %v10436_v4  ;;  %7772 = vmatpush1.bf16.msra.mxu1 %v10439_v46  ;;  %v15329_v4 = vld [vmem:[#allocation37_spill] sm:$0xff] }
 0x8b0   :  { %7547 = vmatprep.subr.bf16.mxu0 %v10444_v32  ;;  %7773 = vmatprep.subr.bf16.mxu1 %v10447_v6 }
 0x8b3   :  { %7548 = vmatpush1.bf16.msra.mxu0 %v10442_v15  ;;  %7774 = vmatpush1.bf16.msra.mxu1 %v10445_v38 }
 0x8b4   :  { %7549 = vmatprep.subr.bf16.mxu0 %v10450_v43  ;;  %7775 = vmatprep.subr.bf16.mxu1 %v10453_v42 }
 0x8b7   :  { %7550 = vmatpush1.bf16.msra.mxu0 %v10448_v34  ;;  %7776 = vmatpush1.bf16.msra.mxu1 %v10451_v25 }
 0x8b8   :  { %7551 = vmatprep.subr.bf16.mxu0 %v10456_v2  ;;  %7777 = vmatprep.subr.bf16.mxu1 %v10459_v47 }
 0x8bb   :  { %7552 = vmatpush1.bf16.msra.mxu0 %v10454_v63  ;;  %7778 = vmatpush1.bf16.msra.mxu1 %v10457_v12  ;;  %v15330_v12 = vld [vmem:[#allocation45_spill] sm:$0xff] }
 0x8bc   :  { %8516 = vmatprep.subr.bf16.mxu0 %v10462_v33  ;;  %8629 = vmatprep.subr.bf16.mxu1 %v10465_v40  ;;  %v15331_v40 = vld [vmem:[#allocation53_spill] sm:$0xff] }
 0x8d9   :  { %v6395_v7 = vpop.xlane.xlu0 %6394 }
 0x8da   :  { %v6423_v8 = vmul.f32 0.001953125, %v6395_v7 }
 0x8dc   :  { %v6439_v52 = vadd.f32 1e-06, %v6423_v8  ;;  %v6400_v14 = vpop.xlane.xlu1 %6399  ;;  %v15332_v8 = vld [vmem:[#allocation49_spill] sm:$0xff] }
 0x8dd   :  { %v6424_v50 = vmul.f32 0.001953125, %v6400_v14 }
 0x8de   :  { %10868 = vrsqrt.f32 %v6439_v52 }
 0x8df   :  { %v6440_v13 = vadd.f32 1e-06, %v6424_v50  ;;  %v15333_v50 = vld [vmem:[#allocation63_spill] sm:$0xff] }
 0x8e1   :  { %10870 = vrsqrt.f32 %v6440_v13  ;;  %v6405_v56 = vpop.xlane.xlu0 %6404 }
 0x8e2   :  { %v6425_v37 = vmul.f32 0.001953125, %v6405_v56  ;;  %v15334_v56 = vld [vmem:[#allocation57_spill] sm:$0xff] }
 0x8e3   :  { %v6410_v55 = vpop.xlane.xlu1 %6409 }
 0x8e4   :  { %v6441_v35 = vadd.f32 1e-06, %v6425_v37  ;;  %v6426_v17 = vmul.f32 0.001953125, %v6410_v55 }
 0x8e6   :  { %10872 = vrsqrt.f32 %v6441_v35  ;;  %v6442_v41 = vadd.f32 1e-06, %v6426_v17  ;;  %v15335_v17 = vld [vmem:[#allocation60_spill] sm:$0xff] }
 0x8e8   :  { %v10869_v22 = vpop.eup %10868  ;;  %10874 = vrsqrt.f32 %v6442_v41 }
 0x8e9   :  { %v6508_v11 = vmul.f32 %v10869_v22, %v15323_v36  ;;  %v6507_v0 = vmul.f32 %v10869_v22, %v15324_v30  ;;  %v6510_v58 = vmul.f32 %v10869_v22, %v15325_v62  ;;  %v6509_v29 = vmul.f32 %v10869_v22, %v15326_v28 }
 0x8eb   :  { %v10871_v51 = vpop.eup %10870  ;;  %v6595_v57 = vmul.f32 %v14297_v45, %v6510_v58  ;;  %v6594_v19 = vmul.f32 %v14305_v1, %v6509_v29  ;;  %v6593_v32 = vmul.f32 %v14293_v53, %v6508_v11  ;;  %v6592_v6 = vmul.f32 %v14301_v48, %v6507_v0 }
 0x8ec   :  { %v6512_v59 = vmul.f32 %v10871_v51, %v15327_v49  ;;  %v6511_v16 = vmul.f32 %v10871_v51, %v15328_v23  ;;  %v6514_v21 = vmul.f32 %v10871_v51, %v14230_v3  ;;  %v6513_v46 = vmul.f32 %v10871_v51, %v15329_v4  ;;  %v10468_v51 = vld [vmem:[#allocation14 + $0x24] ss:$16 sps:$4 sm:$0xff]   ;;  %v10472_v49 = vld [vmem:[#allocation14 + $0x40] ss:$16 sps:$4 sm:$0xff]   ;;  %v10489_v4 = vld [vmem:[#allocation14 + $0x8c] ss:$16 sps:$4 sm:$0xff]  }
 0x8ed   :  { %v10480_v23 = vld [vmem:[#allocation14 + $0x64] ss:$16 sps:$4 sm:$0xff]  }
 0x8ee   :  { %v6597_v15 = vmul.f32 %v14293_v53, %v6512_v59  ;;  %v6596_v38 = vmul.f32 %v14301_v48, %v6511_v16  ;;  %v6599_v43 = vmul.f32 %v14297_v45, %v6514_v21  ;;  %v6598_v42 = vmul.f32 %v14305_v1, %v6513_v46  ;;  %v10475_v59 = vld [vmem:[#allocation14 + $0x48] ss:$16 sps:$4 sm:$0xff]   ;;  %v10486_v21 = vld [vmem:[#allocation14 + $0x84] ss:$16 sps:$4 sm:$0xff]   ;;  %v10484_v46 = vld [vmem:[#allocation14 + $0x80] ss:$16 sps:$4 sm:$0xff]  }
 0x8ef   :  { %v10481_v16 = vld [vmem:[#allocation14 + $0x68] ss:$16 sps:$4 sm:$0xff]  }
 0x8f0   :  { %v10873_v34 = vpop.eup %10872  ;;  %v6633_v25 = vpack.c.bf16 %v6597_v15, %v6593_v32  ;;  %v6632_v2 = vpack.c.bf16 %v6596_v38, %v6592_v6  ;;  %v14443_v47 = vpack.c.bf16 %v6599_v43, %v6595_v57  ;;  %v14445_v3 = vpack.c.bf16 %v6598_v42, %v6594_v19  ;;  %v10469_v57 = vld [vmem:[#allocation14 + $0x28] ss:$16 sps:$4 sm:$0xff]   ;;  %v10474_v19 = vld [vmem:[#allocation14 + $0x44] ss:$16 sps:$4 sm:$0xff]   ;;  %v10501_v43 = vld [vmem:[#allocation14 + $0xcc] ss:$16 sps:$4 sm:$0xff]  }
 0x8f1   :  { %v6516_v63 = vmul.f32 %v10873_v34, %v14250_v60  ;;  %v6515_v33 = vmul.f32 %v10873_v34, %v15330_v12  ;;  %v6518_v7 = vmul.f32 %v10873_v34, %v15331_v40  ;;  %v6517_v52 = vmul.f32 %v10873_v34, %v15332_v8  ;;  %v10487_v32 = vld [vmem:[#allocation14 + $0x88] ss:$16 sps:$4 sm:$0xff]   ;;  %v10492_v6 = vld [vmem:[#allocation14 + $0xa4] ss:$16 sps:$4 sm:$0xff]   ;;  %v10496_v42 = vld [vmem:[#allocation14 + $0xc0] ss:$16 sps:$4 sm:$0xff]  }
 0x8f2   :  { %v10875_v14 = vpop.eup %10874  ;;  %7500 = vmatprep.mubr.bf16.mxu0 %v6633_v25  ;;  %7726 = vmatprep.mubr.bf16.mxu1 %v6633_v25  ;;  %v10493_v15 = vld [vmem:[#allocation14 + $0xa8] ss:$16 sps:$4 sm:$0xff]   ;;  %v10498_v38 = vld [vmem:[#allocation14 + $0xc4] ss:$16 sps:$4 sm:$0xff]   ;;  %v10520_v40 = vld [vmem:[#allocation14 + $0x140] ss:$16 sps:$4 sm:$0xff]  }
 0x8f3   :  { %7501 = vmatmul.mubr.bf16.gmra.mrb[184].mxu0 %v6632_v2  ;;  %7727 = vmatmul.mubr.bf16.gmra.mrb[184].mxu1 %v6632_v2  ;;  %v6520_v13 = vmul.f32 %v10875_v14, %v15333_v50  ;;  %v6519_v37 = vmul.f32 %v10875_v14, %v15334_v56  ;;  %v6601_v55 = vmul.f32 %v14293_v53, %v6516_v63  ;;  %v10499_v34 = vld [vmem:[#allocation14 + $0xc8] ss:$16 sps:$4 sm:$0xff]   ;;  %v10516_v2 = vld [vmem:[#allocation14 + $0x124] ss:$16 sps:$4 sm:$0xff]   ;;  %v10537_v56 = vld [vmem:[#allocation14 + $0x18c] ss:$16 sps:$4 sm:$0xff]  }
 0x8f4   :  { %v6522_v35 = vmul.f32 %v10875_v14, %v14270_v44  ;;  %v6603_v60 = vmul.f32 %v14297_v45, %v6518_v7  ;;  %v6521_v41 = vmul.f32 %v10875_v14, %v15335_v17  ;;  %v6600_v36 = vmul.f32 %v14301_v48, %v6515_v33  ;;  %v10511_v25 = vld [vmem:[#allocation14 + $0x108] ss:$16 sps:$4 sm:$0xff]   ;;  %v10522_v12 = vld [vmem:[#allocation14 + $0x144] ss:$16 sps:$4 sm:$0xff]   ;;  %v10525_v33 = vld [vmem:[#allocation14 + $0x14c] ss:$16 sps:$4 sm:$0xff]  }
 0x8f5   :  { %v6605_v22 = vmul.f32 %v14293_v53, %v6520_v13  ;;  %v6604_v11 = vmul.f32 %v14301_v48, %v6519_v37  ;;  %v6602_v30 = vmul.f32 %v14305_v1, %v6517_v52  ;;  %v10460_v53 = vld [vmem:[#allocation14] ss:$16 sps:$4 sm:$0xff]   ;;  %v10463_v48 = vld [vmem:[#allocation14 + $0x8] ss:$16 sps:$4 sm:$0xff]   ;;  %v10528_v8 = vld [vmem:[#allocation14 + $0x164] ss:$16 sps:$4 sm:$0xff]  }
 0x8f6   :  { %v6607_v0 = vmul.f32 %v14297_v45, %v6522_v35  ;;  %v6606_v62 = vmul.f32 %v14305_v1, %v6521_v41  ;;  %v10471_v45 = vld [vmem:[#allocation14 + $0x2c] ss:$16 sps:$4 sm:$0xff]   ;;  %v10466_v1 = vld [vmem:[#allocation14 + $0x20] ss:$16 sps:$4 sm:$0xff]   ;;  %v10517_v63 = vld [vmem:[#allocation14 + $0x128] ss:$16 sps:$4 sm:$0xff]  }
 0x8f7   :  { %v6637_v58 = vpack.c.bf16 %v6605_v22, %v6601_v55  ;;  %v6636_v28 = vpack.c.bf16 %v6604_v11, %v6600_v36  ;;  %v10523_v7 = vld [vmem:[#allocation14 + $0x148] ss:$16 sps:$4 sm:$0xff]   ;;  %v10531_v52 = vld [vmem:[#allocation14 + $0x16c] ss:$16 sps:$4 sm:$0xff]   ;;  %v10526_v14 = vld [vmem:[#allocation14 + $0x160] ss:$16 sps:$4 sm:$0xff]  }
 0x8f8   :  { %v14463_v29 = vpack.c.bf16 %v6607_v0, %v6603_v60  ;;  %v14465_v44 = vpack.c.bf16 %v6606_v62, %v6602_v30  ;;  %v10529_v50 = vld [vmem:[#allocation14 + $0x168] ss:$16 sps:$4 sm:$0xff]   ;;  %v10534_v13 = vld [vmem:[#allocation14 + $0x184] ss:$16 sps:$4 sm:$0xff]   ;;  %v10532_v37 = vld [vmem:[#allocation14 + $0x180] ss:$16 sps:$4 sm:$0xff]  }
 0x8f9   :  { %7510 = vmatprep.mubr.bf16.mxu0 %v6637_v58  ;;  %7736 = vmatprep.mubr.bf16.mxu1 %v6637_v58  ;;  %v10535_v55 = vld [vmem:[#allocation14 + $0x188] ss:$16 sps:$4 sm:$0xff]   ;;  %v10540_v35 = vld [vmem:[#allocation14 + $0x1a4] ss:$16 sps:$4 sm:$0xff]   ;;  %v10543_v60 = vld [vmem:[#allocation14 + $0x1ac] ss:$16 sps:$4 sm:$0xff]  }
 0x8fa   :  { %v10538_v17 = vld [vmem:[#allocation14 + $0x1a0] ss:$16 sps:$4 sm:$0xff]   ;;  %v10541_v41 = vld [vmem:[#allocation14 + $0x1a8] ss:$16 sps:$4 sm:$0xff]   ;;  %v10546_v22 = vld [vmem:[#allocation14 + $0x1c4] ss:$16 sps:$4 sm:$0xff]  }
 0x8fb   :  { %7511 = vmatmul.mubr.bf16.gmra.mrb[188].mxu0 %v6636_v28  ;;  %7737 = vmatmul.mubr.bf16.gmra.mrb[188].mxu1 %v6636_v28  ;;  %v10549_v36 = vld [vmem:[#allocation14 + $0x1cc] ss:$16 sps:$4 sm:$0xff]   ;;  %v10544_v11 = vld [vmem:[#allocation14 + $0x1c0] ss:$16 sps:$4 sm:$0xff]   ;;  %v10547_v30 = vld [vmem:[#allocation14 + $0x1c8] ss:$16 sps:$4 sm:$0xff]  }
 0x8fc   :  { %7553 = vmatprep.mubr.bf16.mxu0 %v14323_v26  ;;  %7779 = vmatprep.mubr.bf16.mxu1 %v14323_v26  ;;  %v10477_v26 = vld [vmem:[#allocation14 + $0x4c] ss:$16 sps:$4 sm:$0xff]   ;;  %v10552_v0 = vld [vmem:[#allocation14 + $0x1e4] ss:$16 sps:$4 sm:$0xff]   ;;  %v10550_v58 = vld [vmem:[#allocation14 + $0x1e0] ss:$16 sps:$4 sm:$0xff]  }
 0x8fd   :  { %v10555_v62 = vld [vmem:[#allocation14 + $0x1ec] ss:$16 sps:$4 sm:$0xff]   ;;  %v10553_v28 = vld [vmem:[#allocation14 + $0x1e8] ss:$16 sps:$4 sm:$0xff]  }
 0x903   :  { %7554 = vmatmul.mubr.bf16.vlgmr.msra.gmra.mrb[160].mxu0 %v14327_v61  ;;  %7780 = vmatmul.mubr.bf16.vlgmr.msra.gmra.mrb[160].mxu1 %v14327_v61  ;;  %v10483_v61 = vld [vmem:[#allocation14 + $0x6c] ss:$16 sps:$4 sm:$0xff]  }
 0x904   :  { %7563 = vmatprep.mubr.bf16.mxu0 %v14343_v39  ;;  %7789 = vmatprep.mubr.bf16.mxu1 %v14343_v39  ;;  %v10478_v39 = vld [vmem:[#allocation14 + $0x60] ss:$16 sps:$4 sm:$0xff]  }
 0x905   :  { %8517 = vmatpush1.bf16.msra.mxu0 %v10460_v53  ;;  %8630 = vmatpush1.bf16.msra.mxu1 %v10463_v48 }
 0x906   :  { %8518 = vmatprep.subr.bf16.mxu0 %v10468_v51  ;;  %8631 = vmatprep.subr.bf16.mxu1 %v10471_v45 }
 0x909   :  { %8519 = vmatpush1.bf16.msra.mxu0 %v10466_v1  ;;  %8632 = vmatpush1.bf16.msra.mxu1 %v10469_v57 }
 0x90a   :  { %8520 = vmatprep.subr.bf16.mxu0 %v10474_v19  ;;  %8633 = vmatprep.subr.bf16.mxu1 %v10477_v26 }
 0x90b   :  { %7564 = vmatmul.mubr.bf16.gmra.mrb[164].mxu0 %v14347_v24  ;;  %7790 = vmatmul.mubr.bf16.gmra.mrb[164].mxu1 %v14347_v24  ;;  %v10495_v24 = vld [vmem:[#allocation14 + $0xac] ss:$16 sps:$4 sm:$0xff]  }
 0x90c   :  { %7573 = vmatprep.mubr.bf16.mxu0 %v14363_v10  ;;  %7799 = vmatprep.mubr.bf16.mxu1 %v14363_v10  ;;  %v10490_v10 = vld [vmem:[#allocation14 + $0xa0] ss:$16 sps:$4 sm:$0xff]  }
 0x90d   :  { %8521 = vmatpush1.bf16.msra.mxu0 %v10472_v49  ;;  %8634 = vmatpush1.bf16.msra.mxu1 %v10475_v59 }
 0x90e   :  { %8522 = vmatprep.subr.bf16.mxu0 %v10480_v23  ;;  %8635 = vmatprep.subr.bf16.mxu1 %v10483_v61 }
 0x911   :  { %8523 = vmatpush1.bf16.msra.mxu0 %v10478_v39  ;;  %8636 = vmatpush1.bf16.msra.mxu1 %v10481_v16 }
 0x912   :  { %8524 = vmatprep.subr.bf16.mxu0 %v10486_v21  ;;  %8637 = vmatprep.subr.bf16.mxu1 %v10489_v4 }
 0x913   :  { %7574 = vmatmul.mubr.bf16.gmra.mrb[168].mxu0 %v14367_v20  ;;  %7800 = vmatmul.mubr.bf16.gmra.mrb[168].mxu1 %v14367_v20  ;;  %v10504_v20 = vld [vmem:[#allocation14 + $0xe4] ss:$16 sps:$4 sm:$0xff]  }
 0x914   :  { %7583 = vmatprep.mubr.bf16.mxu0 %v14385_v31  ;;  %7809 = vmatprep.mubr.bf16.mxu1 %v14385_v31  ;;  %v10507_v31 = vld [vmem:[#allocation14 + $0xec] ss:$16 sps:$4 sm:$0xff]  }
 0x915   :  { %8525 = vmatpush1.bf16.msra.mxu0 %v10484_v46  ;;  %8638 = vmatpush1.bf16.msra.mxu1 %v10487_v32 }
 0x916   :  { %8526 = vmatprep.subr.bf16.mxu0 %v10492_v6  ;;  %8639 = vmatprep.subr.bf16.mxu1 %v10495_v24 }
 0x919   :  { %8527 = vmatpush1.bf16.msra.mxu0 %v10490_v10  ;;  %8640 = vmatpush1.bf16.msra.mxu1 %v10493_v15 }
 0x91a   :  { %8528 = vmatprep.subr.bf16.mxu0 %v10498_v38  ;;  %8641 = vmatprep.subr.bf16.mxu1 %v10501_v43 }
 0x91b   :  { %7584 = vmatmul.mubr.bf16.gmra.mrb[172].mxu0 %v14387_v9  ;;  %7810 = vmatmul.mubr.bf16.gmra.mrb[172].mxu1 %v14387_v9  ;;  %v10502_v9 = vld [vmem:[#allocation14 + $0xe0] ss:$16 sps:$4 sm:$0xff]  }
 0x91c   :  { %7593 = vmatprep.mubr.bf16.mxu0 %v14403_v5  ;;  %7819 = vmatprep.mubr.bf16.mxu1 %v14403_v5  ;;  %v10505_v5 = vld [vmem:[#allocation14 + $0xe8] ss:$16 sps:$4 sm:$0xff]  }
 0x91d   :  { %8529 = vmatpush1.bf16.msra.mxu0 %v10496_v42  ;;  %8642 = vmatpush1.bf16.msra.mxu1 %v10499_v34 }
 0x91e   :  { %8530 = vmatprep.subr.bf16.mxu0 %v10504_v20  ;;  %8643 = vmatprep.subr.bf16.mxu1 %v10507_v31 }
 0x921   :  { %8531 = vmatpush1.bf16.msra.mxu0 %v10502_v9  ;;  %8644 = vmatpush1.bf16.msra.mxu1 %v10505_v5 }
 0x923   :  { %7594 = vmatmul.mubr.bf16.gmra.mrb[176].mxu0 %v14407_v18  ;;  %7820 = vmatmul.mubr.bf16.gmra.mrb[176].mxu1 %v14407_v18  ;;  %v10510_v18 = vld [vmem:[#allocation14 + $0x104] ss:$16 sps:$4 sm:$0xff]  }
 0x924   :  { %7603 = vmatprep.mubr.bf16.mxu0 %v14423_v54  ;;  %7829 = vmatprep.mubr.bf16.mxu1 %v14423_v54  ;;  %v10513_v54 = vld [vmem:[#allocation14 + $0x10c] ss:$16 sps:$4 sm:$0xff]  }
 0x925   :  { %8532 = vmatprep.subr.bf16.mxu0 %v10510_v18  ;;  %8645 = vmatprep.subr.bf16.mxu1 %v10513_v54 }
 0x926   :  { %8646 = vmatpush1.bf16.msra.mxu1 %v10511_v25 }
 0x92b   :  { %7604 = vmatmul.mubr.bf16.gmra.mrb[180].mxu0 %v14425_v27  ;;  %7830 = vmatmul.mubr.bf16.gmra.mrb[180].mxu1 %v14425_v27  ;;  %v10508_v27 = vld [vmem:[#allocation14 + $0x100] ss:$16 sps:$4 sm:$0xff]  }
 0x92c   :  { %7613 = vmatprep.mubr.bf16.mxu0 %v14443_v47  ;;  %7839 = vmatprep.mubr.bf16.mxu1 %v14443_v47  ;;  %v10519_v47 = vld [vmem:[#allocation14 + $0x12c] ss:$16 sps:$4 sm:$0xff]  }
 0x92d   :  { %8533 = vmatpush1.bf16.msra.mxu0 %v10508_v27  ;;  %8647 = vmatprep.subr.bf16.mxu1 %v10519_v47 }
 0x92e   :  { %8534 = vmatprep.subr.bf16.mxu0 %v10516_v2  ;;  %8648 = vmatpush1.bf16.msra.mxu1 %v10517_v63 }
 0x92f   :  { %8649 = vmatprep.subr.bf16.mxu1 %v10525_v33 }
 0x932   :  { %8650 = vmatpush1.bf16.msra.mxu1 %v10523_v7 }
 0x933   :  { %7614 = vmatmul.mubr.bf16.gmra.mrb[184].mxu0 %v14445_v3  ;;  %7840 = vmatmul.mubr.bf16.gmra.mrb[184].mxu1 %v14445_v3  ;;  %v10514_v3 = vld [vmem:[#allocation14 + $0x120] ss:$16 sps:$4 sm:$0xff]  }
 0x934   :  { %7623 = vmatprep.mubr.bf16.mxu0 %v14463_v29  ;;  %7849 = vmatprep.mubr.bf16.mxu1 %v14463_v29 }
 0x935   :  { %8535 = vmatpush1.bf16.msra.mxu0 %v10514_v3  ;;  %8651 = vmatprep.subr.bf16.mxu1 %v10531_v52 }
 0x936   :  { %8536 = vmatprep.subr.bf16.mxu0 %v10522_v12  ;;  %8652 = vmatpush1.bf16.msra.mxu1 %v10529_v50 }
 0x937   :  { %8653 = vmatprep.subr.bf16.mxu1 %v10537_v56 }
 0x939   :  { %8537 = vmatpush1.bf16.msra.mxu0 %v10520_v40 }
 0x93a   :  { %8538 = vmatprep.subr.bf16.mxu0 %v10528_v8  ;;  %8654 = vmatpush1.bf16.msra.mxu1 %v10535_v55 }
 0x93b   :  { %7624 = vmatmul.mubr.bf16.gmra.mrb[188].mxu0 %v14465_v44  ;;  %7850 = vmatmul.mubr.bf16.gmra.mrb[188].mxu1 %v14465_v44 }
 0x93c   :  { %8655 = vmatprep.subr.bf16.mxu1 %v10543_v60 }
 0x93d   :  { %8539 = vmatpush1.bf16.msra.mxu0 %v10526_v14 }
 0x93e   :  { %8540 = vmatprep.subr.bf16.mxu0 %v10534_v13  ;;  %8656 = vmatpush1.bf16.msra.mxu1 %v10541_v41 }
 0x93f   :  { %8657 = vmatprep.subr.bf16.mxu1 %v10549_v36 }
 0x941   :  { %8541 = vmatpush1.bf16.msra.mxu0 %v10532_v37 }
 0x942   :  { %8542 = vmatprep.subr.bf16.mxu0 %v10540_v35  ;;  %8658 = vmatpush1.bf16.msra.mxu1 %v10547_v30 }
 0x943   :  { %8659 = vmatprep.subr.bf16.mxu1 %v10555_v62 }
 0x945   :  { %8543 = vmatpush1.bf16.msra.mxu0 %v10538_v17 }
 0x946   :  { %8544 = vmatprep.subr.bf16.mxu0 %v10546_v22  ;;  %8660 = vmatpush1.bf16.msra.mxu1 %v10553_v28 }
 0x949   :  { %8545 = vmatpush1.bf16.msra.mxu0 %v10544_v11 }
 0x94a   :  { %8546 = vmatprep.subr.bf16.mxu0 %v10552_v0 }
 0x94d   :  { %8547 = vmatpush1.bf16.msra.mxu0 %v10550_v58 }
 0x9d6   :  { %v14499_v29 = vpop.f32.mrb[160].mxu0  ;;  %v14501_v44 = vpop.f32.mrb[160].mxu1 }
 0x9d7   :  { %v9355_v53 = vmul.f32 -1.442695, %v14499_v29  ;;  %v14504_v48 = vpop.f32.mrb[161].mxu0  ;;  %v14506_v51 = vpop.f32.mrb[161].mxu1 }
 0x9d8   :  { %v9356_v45 = vmul.f32 -1.442695, %v14504_v48  ;;  %v14509_v1 = vpop.f32.mrb[162].mxu0  ;;  %v14511_v57 = vpop.f32.mrb[162].mxu1 }
 0x9d9   :  { %10876 = vpow2.f32 %v9355_v53  ;;  %v9357_v19 = vmul.f32 -1.442695, %v14509_v1  ;;  %v14514_v26 = vpop.f32.mrb[163].mxu0  ;;  %v14516_v49 = vpop.f32.mrb[163].mxu1 }
 0x9da   :  { %10878 = vpow2.f32 %v9356_v45  ;;  %v9358_v59 = vmul.f32 -1.442695, %v14514_v26 }
 0x9db   :  { %10880 = vpow2.f32 %v9357_v19 }
 0x9dc   :  { %10882 = vpow2.f32 %v9358_v59 }
 0x9de   :  { %v14519_v23 = vpop.f32.mrb[164].mxu0  ;;  %v14521_v61 = vpop.f32.mrb[164].mxu1 }
 0x9df   :  { %v9359_v39 = vmul.f32 -1.442695, %v14519_v23  ;;  %v14524_v16 = vpop.f32.mrb[165].mxu0  ;;  %v14526_v21 = vpop.f32.mrb[165].mxu1 }
 0x9e0   :  { %v9360_v4 = vmul.f32 -1.442695, %v14524_v16  ;;  %v14529_v46 = vpop.f32.mrb[166].mxu0  ;;  %v14531_v32 = vpop.f32.mrb[166].mxu1 }
 0x9e1   :  { %10884 = vpow2.f32 %v9359_v39  ;;  %v9361_v6 = vmul.f32 -1.442695, %v14529_v46  ;;  %v14534_v24 = vpop.f32.mrb[167].mxu0  ;;  %v14536_v10 = vpop.f32.mrb[167].mxu1 }
 0x9e2   :  { %10886 = vpow2.f32 %v9360_v4  ;;  %v9362_v15 = vmul.f32 -1.442695, %v14534_v24 }
 0x9e3   :  { %v10877_v38 = vpop.eup %10876  ;;  %10888 = vpow2.f32 %v9361_v6 }
 0x9e4   :  { %v10879_v43 = vpop.eup %10878  ;;  %v7956_v42 = vadd.f32 1.0, %v10877_v38  ;;  %10890 = vpow2.f32 %v9362_v15 }
 0x9e5   :  { %v10881_v34 = vpop.eup %10880  ;;  %v7957_v20 = vadd.f32 1.0, %v10879_v43 }
 0x9e6   :  { %v10883_v31 = vpop.eup %10882  ;;  %10892 = vrcp.f32 %v7956_v42  ;;  %v7958_v9 = vadd.f32 1.0, %v10881_v34  ;;  %v14539_v5 = vpop.f32.mrb[168].mxu0 }
 0x9e7   :  { %v14541_v18 = vpop.f32.mrb[168].mxu1  ;;  %10894 = vrcp.f32 %v7957_v20  ;;  %v7959_v54 = vadd.f32 1.0, %v10883_v31  ;;  %v9363_v27 = vmul.f32 -1.442695, %v14539_v5  ;;  %v14544_v25 = vpop.f32.mrb[169].mxu0 }
 0x9e8   :  { %v14546_v2 = vpop.f32.mrb[169].mxu1  ;;  %10896 = vrcp.f32 %v7958_v9  ;;  %v9364_v47 = vmul.f32 -1.442695, %v14544_v25  ;;  %v14549_v3 = vpop.f32.mrb[170].mxu0 }
 0x9e9   :  { %v14551_v63 = vpop.f32.mrb[170].mxu1  ;;  %10898 = vrcp.f32 %v7959_v54  ;;  %v9365_v12 = vmul.f32 -1.442695, %v14549_v3  ;;  %v14554_v33 = vpop.f32.mrb[171].mxu0 }
 0x9ea   :  { %v14556_v40 = vpop.f32.mrb[171].mxu1  ;;  %10900 = vpow2.f32 %v9363_v27  ;;  %v9366_v7 = vmul.f32 -1.442695, %v14554_v33 }
 0x9eb   :  { %v10885_v8 = vpop.eup %10884  ;;  %10902 = vpow2.f32 %v9364_v47 }
 0x9ec   :  { %v10887_v52 = vpop.eup %10886  ;;  %v7960_v14 = vadd.f32 1.0, %v10885_v8  ;;  %10904 = vpow2.f32 %v9365_v12 }
 0x9ed   :  { %v10889_v50 = vpop.eup %10888  ;;  %v7961_v13 = vadd.f32 1.0, %v10887_v52  ;;  %10906 = vpow2.f32 %v9366_v7 }
 0x9ee   :  { %v10891_v56 = vpop.eup %10890  ;;  %10908 = vrcp.f32 %v7960_v14  ;;  %v7962_v37 = vadd.f32 1.0, %v10889_v50  ;;  %v14559_v55 = vpop.f32.mrb[172].mxu0 }
 0x9ef   :  { %v14561_v35 = vpop.f32.mrb[172].mxu1  ;;  %10910 = vrcp.f32 %v7961_v13  ;;  %v7963_v60 = vadd.f32 1.0, %v10891_v56  ;;  %v9367_v17 = vmul.f32 -1.442695, %v14559_v55  ;;  %v14564_v41 = vpop.f32.mrb[173].mxu0 }
 0x9f0   :  { %v14566_v22 = vpop.f32.mrb[173].mxu1  ;;  %v10893_v36 = vpop.eup %10892  ;;  %10912 = vrcp.f32 %v7962_v37  ;;  %v9368_v11 = vmul.f32 -1.442695, %v14564_v41 }
 0x9f1   :  { %v14569_v30 = vpop.f32.mrb[174].mxu0  ;;  %v14571_v0 = vpop.f32.mrb[174].mxu1  ;;  %v8052_v58 = vmul.f32 %v10893_v36, %v14499_v29  ;;  %10914 = vrcp.f32 %v7963_v60 }
 0x9f2   :  { %v10895_v62 = vpop.eup %10894  ;;  %v9369_v28 = vmul.f32 -1.442695, %v14569_v30  ;;  %v14575_v53 = vpop.f32.mrb[175].mxu0  ;;  %10916 = vpow2.f32 %v9367_v17 }
 0x9f3   :  { %v14577_v45 = vpop.f32.mrb[175].mxu1  ;;  %v10897_v19 = vpop.eup %10896  ;;  %v8053_v59 = vmul.f32 %v10895_v62, %v14504_v48  ;;  %v9370_v39 = vmul.f32 -1.442695, %v14575_v53  ;;  %v8084_v6 = vmul.f32 %v8052_v58, %v14501_v44  ;;  %10918 = vpow2.f32 %v9368_v11 }
 0x9f4   :  { %v10899_v4 = vpop.eup %10898  ;;  %v8054_v15 = vmul.f32 %v10897_v19, %v14509_v1  ;;  %10920 = vpow2.f32 %v9369_v28 }
 0x9f5   :  { %v10901_v29 = vpop.eup %10900  ;;  %v8085_v38 = vmul.f32 %v8053_v59, %v14506_v51  ;;  %v8055_v43 = vmul.f32 %v10899_v4, %v14514_v26  ;;  %10922 = vpow2.f32 %v9370_v39 }
 0x9f6   :  { %v10903_v42 = vpop.eup %10902  ;;  %v8086_v34 = vmul.f32 %v8054_v15, %v14511_v57  ;;  %v7964_v20 = vadd.f32 1.0, %v10901_v29  ;;  %v14587_v54 = vpop.f32.mrb[176].mxu0 }
 0x9f7   :  { %v10905_v48 = vpop.eup %10904  ;;  %v8087_v31 = vmul.f32 %v8055_v43, %v14516_v49  ;;  %v7965_v9 = vadd.f32 1.0, %v10903_v42  ;;  %v14589_v44 = vpop.f32.mrb[176].mxu1  ;;  %v9371_v26 = vmul.f32 -1.442695, %v14587_v54 }
 0x9f8   :  { %v10907_v1 = vpop.eup %10906  ;;  %v8116_v27 = vpack.c.bf16 %v8086_v34, %v8084_v6  ;;  %10924 = vrcp.f32 %v7964_v20  ;;  %v7966_v51 = vadd.f32 1.0, %v10905_v48  ;;  %v14592_v47 = vpop.f32.mrb[177].mxu0 }
 0x9f9   :  { %v14594_v12 = vpop.f32.mrb[177].mxu1  ;;  %v10909_v57 = vpop.eup %10908  ;;  %v8117_v7 = vpack.c.bf16 %v8087_v31, %v8085_v38  ;;  %10926 = vrcp.f32 %v7965_v9  ;;  %v7967_v8 = vadd.f32 1.0, %v10907_v1  ;;  %v9372_v49 = vmul.f32 -1.442695, %v14592_v47 }
 0x9fa   :  { %v14597_v52 = vpop.f32.mrb[178].mxu0  ;;  %v14599_v14 = vpop.f32.mrb[178].mxu1  ;;  %v8056_v13 = vmul.f32 %v10909_v57, %v14519_v23  ;;  %10928 = vrcp.f32 %v7966_v51 }
 0x9fb   :  { %v10911_v50 = vpop.eup %10910  ;;  %v9373_v56 = vmul.f32 -1.442695, %v14597_v52  ;;  %v14603_v37 = vpop.f32.mrb[179].mxu0  ;;  %10930 = vrcp.f32 %v7967_v8  ;;  %8548 = vmatprep.mubr.bf16.mxu0 %v8117_v7  ;;  %8661 = vmatprep.mubr.bf16.mxu1 %v8117_v7 }
 0x9fc   :  { %v14605_v60 = vpop.f32.mrb[179].mxu1  ;;  %v10913_v17 = vpop.eup %10912  ;;  %v8057_v36 = vmul.f32 %v10911_v50, %v14524_v16  ;;  %v9374_v11 = vmul.f32 -1.442695, %v14603_v37  ;;  %v8088_v58 = vmul.f32 %v8056_v13, %v14521_v61  ;;  %10932 = vpow2.f32 %v9371_v26  ;;  %8549 = vmatmul.mubr.bf16.vlgmr.msra.gmra.mrb[192].mxu0 %v8116_v27  ;;  %8662 = vmatmul.mubr.bf16.vlgmr.msra.gmra.mrb[192].mxu1 %v8116_v27 }
 0x9fd   :  { %v10915_v62 = vpop.eup %10914  ;;  %v8058_v23 = vmul.f32 %v10913_v17, %v14529_v46  ;;  %10934 = vpow2.f32 %v9372_v49 }
 0x9fe   :  { %v10917_v28 = vpop.eup %10916  ;;  %v8089_v19 = vmul.f32 %v8057_v36, %v14526_v21  ;;  %v8059_v59 = vmul.f32 %v10915_v62, %v14534_v24  ;;  %10936 = vpow2.f32 %v9373_v56  ;;  %v14615_v46 = vpop.f32.mrb[180].mxu0 }
 0x9ff   :  { %v10919_v16 = vpop.eup %10918  ;;  %v8090_v39 = vmul.f32 %v8058_v23, %v14531_v32  ;;  %v7968_v4 = vadd.f32 1.0, %v10917_v28  ;;  %10938 = vpow2.f32 %v9374_v11  ;;  %v14617_v29 = vpop.f32.mrb[180].mxu1  ;;  %v9375_v24 = vmul.f32 -1.442695, %v14615_v46 }
 0xa00   :  { %v10921_v6 = vpop.eup %10920  ;;  %v8091_v15 = vmul.f32 %v8059_v59, %v14536_v10  ;;  %v7969_v61 = vadd.f32 1.0, %v10919_v16  ;;  %v14620_v42 = vpop.f32.mrb[181].mxu0 }
 0xa01   :  { %v10923_v38 = vpop.eup %10922  ;;  %v8118_v43 = vpack.c.bf16 %v8090_v39, %v8088_v58  ;;  %10940 = vrcp.f32 %v7968_v4  ;;  %v7970_v21 = vadd.f32 1.0, %v10921_v6  ;;  %v14622_v32 = vpop.f32.mrb[181].mxu1  ;;  %v9376_v10 = vmul.f32 -1.442695, %v14620_v42 }
 0xa02   :  { %v8119_v34 = vpack.c.bf16 %v8091_v15, %v8089_v19  ;;  %10942 = vrcp.f32 %v7969_v61  ;;  %v7971_v20 = vadd.f32 1.0, %v10923_v38  ;;  %v14625_v48 = vpop.f32.mrb[182].mxu0  ;;  %v14627_v31 = vpop.f32.mrb[182].mxu1 }
 0xa03   :  { %v10925_v9 = vpop.eup %10924  ;;  %10944 = vrcp.f32 %v7970_v21  ;;  %v9377_v1 = vmul.f32 -1.442695, %v14625_v48  ;;  %v14630_v27 = vpop.f32.mrb[183].mxu0 }
 0xa04   :  { %v14632_v51 = vpop.f32.mrb[183].mxu1  ;;  %v10927_v26 = vpop.eup %10926  ;;  %v8060_v57 = vmul.f32 %v10925_v9, %v14539_v5  ;;  %10946 = vrcp.f32 %v7971_v20  ;;  %v9378_v7 = vmul.f32 -1.442695, %v14630_v27  ;;  %8558 = vmatprep.mubr.bf16.mxu0 %v8119_v34  ;;  %8671 = vmatprep.mubr.bf16.mxu1 %v8119_v34 }
 0xa05   :  { %v10929_v8 = vpop.eup %10928  ;;  %v8061_v49 = vmul.f32 %v10927_v26, %v14544_v25  ;;  %10948 = vpow2.f32 %v9375_v24  ;;  %8559 = vmatmul.mubr.bf16.gmra.mrb[196].mxu0 %v8118_v43  ;;  %8672 = vmatmul.mubr.bf16.gmra.mrb[196].mxu1 %v8118_v43 }
 0xa06   :  { %v10931_v50 = vpop.eup %10930  ;;  %v8092_v13 = vmul.f32 %v8060_v57, %v14541_v18  ;;  %v8062_v56 = vmul.f32 %v10929_v8, %v14549_v3  ;;  %10950 = vpow2.f32 %v9376_v10  ;;  %v14642_v25 = vpop.f32.mrb[184].mxu0 }
 0xa07   :  { %v10933_v17 = vpop.eup %10932  ;;  %v8093_v5 = vmul.f32 %v8061_v49, %v14546_v2  ;;  %v8063_v36 = vmul.f32 %v10931_v50, %v14554_v33  ;;  %10952 = vpow2.f32 %v9377_v1  ;;  %v14644_v23 = vpop.f32.mrb[184].mxu1 }
 0xa08   :  { %v10935_v11 = vpop.eup %10934  ;;  %v8094_v62 = vmul.f32 %v8062_v56, %v14551_v63  ;;  %v7972_v58 = vadd.f32 1.0, %v10933_v17  ;;  %10954 = vpow2.f32 %v9378_v7  ;;  %v14647_v19 = vpop.f32.mrb[185].mxu0  ;;  %v9379_v63 = vmul.f32 -1.442695, %v14642_v25 }
 0xa09   :  { %v10937_v28 = vpop.eup %10936  ;;  %v8095_v18 = vmul.f32 %v8063_v36, %v14556_v40  ;;  %v7973_v3 = vadd.f32 1.0, %v10935_v11  ;;  %v14649_v59 = vpop.f32.mrb[185].mxu1  ;;  %v9380_v40 = vmul.f32 -1.442695, %v14647_v19 }
 0xa0a   :  { %v10939_v2 = vpop.eup %10938  ;;  %v8120_v33 = vpack.c.bf16 %v8094_v62, %v8092_v13  ;;  %10956 = vrcp.f32 %v7972_v58  ;;  %v7974_v16 = vadd.f32 1.0, %v10937_v28  ;;  %v14652_v39 = vpop.f32.mrb[186].mxu0 }
 0xa0b   :  { %v14654_v4 = vpop.f32.mrb[186].mxu1  ;;  %v10941_v6 = vpop.eup %10940  ;;  %v8121_v15 = vpack.c.bf16 %v8095_v18, %v8093_v5  ;;  %10958 = vrcp.f32 %v7973_v3  ;;  %v7975_v61 = vadd.f32 1.0, %v10939_v2  ;;  %v9381_v34 = vmul.f32 -1.442695, %v14652_v39 }
 0xa0c   :  { %v14657_v38 = vpop.f32.mrb[187].mxu0  ;;  %v14659_v43 = vpop.f32.mrb[187].mxu1  ;;  %v8064_v24 = vmul.f32 %v10941_v6, %v14559_v55  ;;  %10960 = vrcp.f32 %v7974_v16 }
 0xa0d   :  { %v10943_v21 = vpop.eup %10942  ;;  %10962 = vrcp.f32 %v7975_v61  ;;  %v9382_v9 = vmul.f32 -1.442695, %v14657_v38  ;;  %8568 = vmatprep.mubr.bf16.mxu0 %v8121_v15  ;;  %8681 = vmatprep.mubr.bf16.mxu1 %v8121_v15 }
 0xa0e   :  { %v10945_v20 = vpop.eup %10944  ;;  %v8065_v10 = vmul.f32 %v10943_v21, %v14564_v41  ;;  %v8096_v26 = vmul.f32 %v8064_v24, %v14561_v35  ;;  %10964 = vpow2.f32 %v9379_v63  ;;  %8569 = vmatmul.mubr.bf16.gmra.mrb[200].mxu0 %v8120_v33  ;;  %8682 = vmatmul.mubr.bf16.gmra.mrb[200].mxu1 %v8120_v33  ;;  %v14670_v13 = vpop.f32.mrb[188].mxu0 }
 0xa0f   :  { %v10947_v1 = vpop.eup %10946  ;;  %v8066_v57 = vmul.f32 %v10945_v20, %v14569_v30  ;;  %10966 = vpow2.f32 %v9380_v40  ;;  %v14672_v56 = vpop.f32.mrb[188].mxu1 }
 0xa10   :  { %v10949_v55 = vpop.eup %10948  ;;  %v8097_v7 = vmul.f32 %v8065_v10, %v14566_v22  ;;  %v8067_v8 = vmul.f32 %v10947_v1, %v14575_v53  ;;  %10968 = vpow2.f32 %v9381_v34  ;;  %v14675_v5 = vpop.f32.mrb[189].mxu0 }
 0xa11   :  { %v10951_v41 = vpop.eup %10950  ;;  %v8098_v49 = vmul.f32 %v8066_v57, %v14571_v0  ;;  %v7976_v50 = vadd.f32 1.0, %v10949_v55  ;;  %10970 = vpow2.f32 %v9382_v9  ;;  %v14677_v22 = vpop.f32.mrb[189].mxu1  ;;  %v9383_v0 = vmul.f32 -1.442695, %v14670_v13 }
 0xa12   :  { %v10953_v35 = vpop.eup %10952  ;;  %v8099_v30 = vmul.f32 %v8067_v8, %v14577_v45  ;;  %v7977_v17 = vadd.f32 1.0, %v10951_v41  ;;  %v14680_v62 = vpop.f32.mrb[190].mxu0  ;;  %v9384_v45 = vmul.f32 -1.442695, %v14675_v5 }
 0xa13   :  { %v10955_v53 = vpop.eup %10954  ;;  %v8122_v36 = vpack.c.bf16 %v8098_v49, %v8096_v26  ;;  %10972 = vrcp.f32 %v7976_v50  ;;  %v7978_v11 = vadd.f32 1.0, %v10953_v35  ;;  %v14682_v58 = vpop.f32.mrb[190].mxu1  ;;  %v9385_v16 = vmul.f32 -1.442695, %v14680_v62 }
 0xa14   :  { %v8123_v28 = vpack.c.bf16 %v8099_v30, %v8097_v7  ;;  %10974 = vrcp.f32 %v7977_v17  ;;  %v7979_v18 = vadd.f32 1.0, %v10955_v53  ;;  %v14685_v3 = vpop.f32.mrb[191].mxu0  ;;  %v14687_v2 = vpop.f32.mrb[191].mxu1 }
 0xa15   :  { %v10957_v33 = vpop.eup %10956  ;;  %10976 = vrcp.f32 %v7978_v11  ;;  %v9386_v15 = vmul.f32 -1.442695, %v14685_v3 }
 0xa16   :  { %v10959_v63 = vpop.eup %10958  ;;  %v8068_v6 = vmul.f32 %v10957_v33, %v14587_v54  ;;  %10978 = vrcp.f32 %v7979_v18  ;;  %8578 = vmatprep.mubr.bf16.mxu0 %v8123_v28  ;;  %8691 = vmatprep.mubr.bf16.mxu1 %v8123_v28 }
 0xa17   :  { %v10961_v61 = vpop.eup %10960  ;;  %v8069_v40 = vmul.f32 %v10959_v63, %v14592_v47  ;;  %10980 = vpow2.f32 %v9383_v0  ;;  %8579 = vmatmul.mubr.bf16.gmra.mrb[204].mxu0 %v8122_v36  ;;  %8692 = vmatmul.mubr.bf16.gmra.mrb[204].mxu1 %v8122_v36 }
 0xa18   :  { %v10963_v21 = vpop.eup %10962  ;;  %v8100_v24 = vmul.f32 %v8068_v6, %v14589_v44  ;;  %v8070_v34 = vmul.f32 %v10961_v61, %v14597_v52  ;;  %10982 = vpow2.f32 %v9384_v45 }
 0xa19   :  { %v10965_v20 = vpop.eup %10964  ;;  %v8101_v54 = vmul.f32 %v8069_v40, %v14594_v12  ;;  %v8071_v10 = vmul.f32 %v10963_v21, %v14603_v37  ;;  %10984 = vpow2.f32 %v9385_v16 }
 0xa1a   :  { %v10967_v9 = vpop.eup %10966  ;;  %v8102_v1 = vmul.f32 %v8070_v34, %v14599_v14  ;;  %v7980_v26 = vadd.f32 1.0, %v10965_v20  ;;  %10986 = vpow2.f32 %v9386_v15 }
 0xa1b   :  { %v10969_v47 = vpop.eup %10968  ;;  %v8103_v57 = vmul.f32 %v8071_v10, %v14605_v60  ;;  %v7981_v55 = vadd.f32 1.0, %v10967_v9 }
 0xa1c   :  { %v10971_v7 = vpop.eup %10970  ;;  %v8124_v44 = vpack.c.bf16 %v8102_v1, %v8100_v24  ;;  %10988 = vrcp.f32 %v7980_v26  ;;  %v7982_v52 = vadd.f32 1.0, %v10969_v47 }
 0xa1d   :  { %v10973_v8 = vpop.eup %10972  ;;  %v8125_v41 = vpack.c.bf16 %v8103_v57, %v8101_v54  ;;  %10990 = vrcp.f32 %v7981_v55  ;;  %v7983_v12 = vadd.f32 1.0, %v10971_v7 }
 0xa1e   :  { %v10975_v49 = vpop.eup %10974  ;;  %v8072_v37 = vmul.f32 %v10973_v8, %v14615_v46  ;;  %10992 = vrcp.f32 %v7982_v52 }
 0xa1f   :  { %v10977_v50 = vpop.eup %10976  ;;  %v8073_v14 = vmul.f32 %v10975_v49, %v14620_v42  ;;  %10994 = vrcp.f32 %v7983_v12  ;;  %8588 = vmatprep.mubr.bf16.mxu0 %v8125_v41  ;;  %8701 = vmatprep.mubr.bf16.mxu1 %v8125_v41 }
 0xa20   :  { %v10979_v60 = vpop.eup %10978  ;;  %v8104_v35 = vmul.f32 %v8072_v37, %v14617_v29  ;;  %v8074_v30 = vmul.f32 %v10977_v50, %v14625_v48  ;;  %8589 = vmatmul.mubr.bf16.gmra.mrb[208].mxu0 %v8124_v44  ;;  %8702 = vmatmul.mubr.bf16.gmra.mrb[208].mxu1 %v8124_v44 }
 0xa21   :  { %v10981_v17 = vpop.eup %10980  ;;  %v8105_v53 = vmul.f32 %v8073_v14, %v14622_v32  ;;  %v8075_v36 = vmul.f32 %v10979_v60, %v14630_v27 }
 0xa22   :  { %v10983_v46 = vpop.eup %10982  ;;  %v8106_v11 = vmul.f32 %v8074_v30, %v14627_v31  ;;  %v7984_v0 = vadd.f32 1.0, %v10981_v17 }
 0xa23   :  { %v10985_v42 = vpop.eup %10984  ;;  %v8107_v28 = vmul.f32 %v8075_v36, %v14632_v51  ;;  %v7985_v18 = vadd.f32 1.0, %v10983_v46 }
 0xa24   :  { %v10987_v45 = vpop.eup %10986  ;;  %v8126_v33 = vpack.c.bf16 %v8106_v11, %v8104_v35  ;;  %10996 = vrcp.f32 %v7984_v0  ;;  %v7986_v29 = vadd.f32 1.0, %v10985_v42 }
 0xa25   :  { %v8127_v48 = vpack.c.bf16 %v8107_v28, %v8105_v53  ;;  %10998 = vrcp.f32 %v7985_v18  ;;  %v7987_v16 = vadd.f32 1.0, %v10987_v45 }
 0xa26   :  { %v10989_v63 = vpop.eup %10988  ;;  %11000 = vrcp.f32 %v7986_v29 }
 0xa27   :  { %v10991_v32 = vpop.eup %10990  ;;  %v8076_v27 = vmul.f32 %v10989_v63, %v14642_v25  ;;  %11002 = vrcp.f32 %v7987_v16  ;;  %8598 = vmatprep.mubr.bf16.mxu0 %v8127_v48  ;;  %8711 = vmatprep.mubr.bf16.mxu1 %v8127_v48 }
 0xa28   :  { %v10993_v31 = vpop.eup %10992  ;;  %v8077_v6 = vmul.f32 %v10991_v32, %v14647_v19  ;;  %8599 = vmatmul.mubr.bf16.gmra.mrb[212].mxu0 %v8126_v33  ;;  %8712 = vmatmul.mubr.bf16.gmra.mrb[212].mxu1 %v8126_v33 }
 0xa29   :  { %v10995_v51 = vpop.eup %10994  ;;  %v8108_v15 = vmul.f32 %v8076_v27, %v14644_v23  ;;  %v8078_v61 = vmul.f32 %v10993_v31, %v14652_v39 }
 0xa2a   :  { %v8109_v40 = vmul.f32 %v8077_v6, %v14649_v59  ;;  %v8079_v21 = vmul.f32 %v10995_v51, %v14657_v38 }
 0xa2b   :  { %v8110_v24 = vmul.f32 %v8078_v61, %v14654_v4 }
 0xa2c   :  { %v8111_v25 = vmul.f32 %v8079_v21, %v14659_v43 }
 0xa2d   :  { %v8128_v34 = vpack.c.bf16 %v8110_v24, %v8108_v15 }
 0xa2e   :  { %v10997_v20 = vpop.eup %10996  ;;  %v8129_v54 = vpack.c.bf16 %v8111_v25, %v8109_v40 }
 0xa2f   :  { %v10999_v10 = vpop.eup %10998  ;;  %v8080_v19 = vmul.f32 %v10997_v20, %v14670_v13 }
 0xa30   :  { %v11001_v9 = vpop.eup %11000  ;;  %v8081_v1 = vmul.f32 %v10999_v10, %v14675_v5  ;;  %8608 = vmatprep.mubr.bf16.mxu0 %v8129_v54  ;;  %8721 = vmatprep.mubr.bf16.mxu1 %v8129_v54 }
 0xa31   :  { %v11003_v23 = vpop.eup %11002  ;;  %v8112_v59 = vmul.f32 %v8080_v19, %v14672_v56  ;;  %v8082_v39 = vmul.f32 %v11001_v9, %v14680_v62  ;;  %8609 = vmatmul.mubr.bf16.gmra.mrb[216].mxu0 %v8128_v34  ;;  %8722 = vmatmul.mubr.bf16.gmra.mrb[216].mxu1 %v8128_v34 }
 0xa32   :  { %v8113_v4 = vmul.f32 %v8081_v1, %v14677_v22  ;;  %v8083_v38 = vmul.f32 %v11003_v23, %v14685_v3 }
 0xa33   :  { %v8114_v43 = vmul.f32 %v8082_v39, %v14682_v58 }
 0xa34   :  { %v8115_v13 = vmul.f32 %v8083_v38, %v14687_v2 }
 0xa35   :  { %v8130_v26 = vpack.c.bf16 %v8114_v43, %v8112_v59 }
 0xa36   :  { %v8131_v47 = vpack.c.bf16 %v8115_v13, %v8113_v4 }
 0xa38   :  { %8618 = vmatprep.mubr.bf16.mxu0 %v8131_v47  ;;  %8731 = vmatprep.mubr.bf16.mxu1 %v8131_v47 }
 0xa39   :  { %8619 = vmatmul.mubr.bf16.gmra.mrb[220].mxu0 %v8130_v26  ;;  %8732 = vmatmul.mubr.bf16.gmra.mrb[220].mxu1 %v8130_v26 }
 0xa3a   :  { %11319 = shalt.err (!%p11316_p12)
}
 0xa3b   :  { %s11320_s18 = scalar_lea.hbm %s14763_s10, 8192 }
 0xa3c   :  { %p11321_p13 = scmp.ne.s32.totalorder %s14763_s10, %s11320_s18  ;;  %p11324_p0 = scmp.lt.u32.totalorder %s11320_s18, %s14763_s10 }
 0xa3e   :  { %p11326_p1 = pnand %p11324_p0, %p11321_p13 }
 0xa40   :  { %11329 = shalt.err (!%p11326_p1)
}
 0xa41   :  { %8829 = dma.vmem_to_hbm [thread:$0]  %s8824_s27, 8192, %s14763_s10, [#allocation18], %s11374_s6, %s11374_s6, %s11375_s28  }
 0xa42   :  { %s11382_s10 = smov [#allocation16]  }
 0xa43   :  { %s8811_s30 = sshll.u32 %s11382_s10, 4  ;;  %s8812_s30 = int_to_ptr.vmem [resolvable:$true] %s8811_s30 }
 0xa44   :  { %s11330_s22 = scalar_lea.vmem %s8812_s30, 8192  ;;  %p11335_p3 = scmp.lt.s32.totalorder %s8812_s30, %s8812_s30 }
 0xa45   :  { %p11331_p2 = scmp.ne.s32.totalorder %s8812_s30, %s11330_s22  ;;  %p11336_p4 = scmp.lt.s32.totalorder %s11330_s22, %s11330_s22 }
 0xa47   :  { %p11337_p5 = por %p11336_p4, %p11335_p3 }
 0xa49   :  { %p11338_p6 = pnand %p11337_p5, %p11331_p2 }
 0xacf   :  { %v8550_v56 = vpop.f32.mrb[192].mxu0  ;;  %v8663_v5 = vpop.f32.mrb[192].mxu1 }
 0xad0   :  { %8742 = vst [vmem:[#allocation16] sm:$0xff] %v8550_v56  ;;  %8744 = vst [vmem:[#allocation16 + $0x10] sm:$0xff] %v8663_v5  ;;  %v8552_v22 = vpop.f32.mrb[193].mxu0  ;;  %v8665_v62 = vpop.f32.mrb[193].mxu1 }
 0xad1   :  { %8743 = vst [vmem:[#allocation16 + $0x8] sm:$0xff] %v8552_v22  ;;  %8745 = vst [vmem:[#allocation16 + $0x18] sm:$0xff] %v8665_v62  ;;  %v8554_v58 = vpop.f32.mrb[194].mxu0  ;;  %v8667_v3 = vpop.f32.mrb[194].mxu1 }
 0xad2   :  { %8746 = vst [vmem:[#allocation16 + $0x20] sm:$0xff] %v8554_v58  ;;  %8748 = vst [vmem:[#allocation16 + $0x30] sm:$0xff] %v8667_v3  ;;  %v8556_v2 = vpop.f32.mrb[195].mxu0  ;;  %v8669_v57 = vpop.f32.mrb[195].mxu1 }
 0xad3   :  { %8747 = vst [vmem:[#allocation16 + $0x28] sm:$0xff] %v8556_v2  ;;  %8749 = vst [vmem:[#allocation16 + $0x38] sm:$0xff] %v8669_v57 }
 0xad8   :  { %v8560_v55 = vpop.f32.mrb[196].mxu0  ;;  %v8673_v7 = vpop.f32.mrb[196].mxu1 }
 0xad9   :  { %8750 = vst [vmem:[#allocation16 + $0x40] sm:$0xff] %v8560_v55  ;;  %8752 = vst [vmem:[#allocation16 + $0x50] sm:$0xff] %v8673_v7  ;;  %v8562_v44 = vpop.f32.mrb[197].mxu0  ;;  %v8675_v52 = vpop.f32.mrb[197].mxu1 }
 0xada   :  { %8751 = vst [vmem:[#allocation16 + $0x48] sm:$0xff] %v8562_v44  ;;  %8753 = vst [vmem:[#allocation16 + $0x58] sm:$0xff] %v8675_v52  ;;  %v8564_v8 = vpop.f32.mrb[198].mxu0  ;;  %v8677_v41 = vpop.f32.mrb[198].mxu1 }
 0xadb   :  { %8754 = vst [vmem:[#allocation16 + $0x60] sm:$0xff] %v8564_v8  ;;  %8756 = vst [vmem:[#allocation16 + $0x70] sm:$0xff] %v8677_v41  ;;  %v8566_v12 = vpop.f32.mrb[199].mxu0  ;;  %v8679_v49 = vpop.f32.mrb[199].mxu1 }
 0xadc   :  { %8755 = vst [vmem:[#allocation16 + $0x68] sm:$0xff] %v8566_v12  ;;  %8757 = vst [vmem:[#allocation16 + $0x78] sm:$0xff] %v8679_v49 }
 0xae1   :  { %v8570_v37 = vpop.f32.mrb[200].mxu0  ;;  %v8683_v50 = vpop.f32.mrb[200].mxu1 }
 0xae2   :  { %8758 = vst [vmem:[#allocation16 + $0x80] sm:$0xff] %v8570_v37  ;;  %8760 = vst [vmem:[#allocation16 + $0x90] sm:$0xff] %v8683_v50  ;;  %v8572_v14 = vpop.f32.mrb[201].mxu0  ;;  %v8685_v60 = vpop.f32.mrb[201].mxu1 }
 0xae3   :  { %8759 = vst [vmem:[#allocation16 + $0x88] sm:$0xff] %v8572_v14  ;;  %8761 = vst [vmem:[#allocation16 + $0x98] sm:$0xff] %v8685_v60  ;;  %v8574_v35 = vpop.f32.mrb[202].mxu0  ;;  %v8687_v30 = vpop.f32.mrb[202].mxu1 }
 0xae4   :  { %8762 = vst [vmem:[#allocation16 + $0xa0] sm:$0xff] %v8574_v35  ;;  %8764 = vst [vmem:[#allocation16 + $0xb0] sm:$0xff] %v8687_v30  ;;  %v8576_v17 = vpop.f32.mrb[203].mxu0  ;;  %v8689_v53 = vpop.f32.mrb[203].mxu1 }
 0xae5   :  { %8763 = vst [vmem:[#allocation16 + $0xa8] sm:$0xff] %v8576_v17  ;;  %8765 = vst [vmem:[#allocation16 + $0xb8] sm:$0xff] %v8689_v53 }
 0xaea   :  { %v8580_v36 = vpop.f32.mrb[204].mxu0  ;;  %v8693_v46 = vpop.f32.mrb[204].mxu1 }
 0xaeb   :  { %8766 = vst [vmem:[#allocation16 + $0xc0] sm:$0xff] %v8580_v36  ;;  %8768 = vst [vmem:[#allocation16 + $0xd0] sm:$0xff] %v8693_v46  ;;  %v8582_v11 = vpop.f32.mrb[205].mxu0  ;;  %v8695_v0 = vpop.f32.mrb[205].mxu1 }
 0xaec   :  { %8767 = vst [vmem:[#allocation16 + $0xc8] sm:$0xff] %v8582_v11  ;;  %8769 = vst [vmem:[#allocation16 + $0xd8] sm:$0xff] %v8695_v0  ;;  %v8584_v42 = vpop.f32.mrb[206].mxu0  ;;  %v8697_v28 = vpop.f32.mrb[206].mxu1 }
 0xaed   :  { %8770 = vst [vmem:[#allocation16 + $0xe0] sm:$0xff] %v8584_v42  ;;  %8772 = vst [vmem:[#allocation16 + $0xf0] sm:$0xff] %v8697_v28  ;;  %v8586_v18 = vpop.f32.mrb[207].mxu0  ;;  %v8699_v45 = vpop.f32.mrb[207].mxu1 }
 0xaee   :  { %8771 = vst [vmem:[#allocation16 + $0xe8] sm:$0xff] %v8586_v18  ;;  %8773 = vst [vmem:[#allocation16 + $0xf8] sm:$0xff] %v8699_v45 }
 0xaf3   :  { %v8590_v33 = vpop.f32.mrb[208].mxu0  ;;  %v8703_v29 = vpop.f32.mrb[208].mxu1 }
 0xaf4   :  { %8774 = vst [vmem:[#allocation16 + $0x100] sm:$0xff] %v8590_v33  ;;  %8776 = vst [vmem:[#allocation16 + $0x110] sm:$0xff] %v8703_v29  ;;  %v8592_v48 = vpop.f32.mrb[209].mxu0  ;;  %v8705_v16 = vpop.f32.mrb[209].mxu1 }
 0xaf5   :  { %8775 = vst [vmem:[#allocation16 + $0x108] sm:$0xff] %v8592_v48  ;;  %8777 = vst [vmem:[#allocation16 + $0x118] sm:$0xff] %v8705_v16  ;;  %v8594_v63 = vpop.f32.mrb[210].mxu0  ;;  %v8707_v32 = vpop.f32.mrb[210].mxu1 }
 0xaf6   :  { %8778 = vst [vmem:[#allocation16 + $0x120] sm:$0xff] %v8594_v63  ;;  %8780 = vst [vmem:[#allocation16 + $0x130] sm:$0xff] %v8707_v32  ;;  %v8596_v27 = vpop.f32.mrb[211].mxu0  ;;  %v8709_v31 = vpop.f32.mrb[211].mxu1 }
 0xaf7   :  { %8779 = vst [vmem:[#allocation16 + $0x128] sm:$0xff] %v8596_v27  ;;  %8781 = vst [vmem:[#allocation16 + $0x138] sm:$0xff] %v8709_v31 }
 0xafb   :  { %v8600_v6 = vpop.f32.mrb[212].mxu0  ;;  %v8713_v51 = vpop.f32.mrb[212].mxu1 }
 0xafc   :  { %8782 = vst [vmem:[#allocation16 + $0x140] sm:$0xff] %v8600_v6  ;;  %8784 = vst [vmem:[#allocation16 + $0x150] sm:$0xff] %v8713_v51  ;;  %v8602_v15 = vpop.f32.mrb[213].mxu0  ;;  %v8715_v61 = vpop.f32.mrb[213].mxu1 }
 0xafd   :  { %8783 = vst [vmem:[#allocation16 + $0x148] sm:$0xff] %v8602_v15  ;;  %8785 = vst [vmem:[#allocation16 + $0x158] sm:$0xff] %v8715_v61  ;;  %v8604_v40 = vpop.f32.mrb[214].mxu0  ;;  %v8717_v21 = vpop.f32.mrb[214].mxu1 }
 0xafe   :  { %8786 = vst [vmem:[#allocation16 + $0x160] sm:$0xff] %v8604_v40  ;;  %8788 = vst [vmem:[#allocation16 + $0x170] sm:$0xff] %v8717_v21  ;;  %v8606_v24 = vpop.f32.mrb[215].mxu0  ;;  %v8719_v25 = vpop.f32.mrb[215].mxu1 }
 0xaff   :  { %8787 = vst [vmem:[#allocation16 + $0x168] sm:$0xff] %v8606_v24  ;;  %8789 = vst [vmem:[#allocation16 + $0x178] sm:$0xff] %v8719_v25 }
 0xb04   :  { %v8610_v34 = vpop.f32.mrb[216].mxu0  ;;  %v8723_v20 = vpop.f32.mrb[216].mxu1 }
 0xb05   :  { %8790 = vst [vmem:[#allocation16 + $0x180] sm:$0xff] %v8610_v34  ;;  %8792 = vst [vmem:[#allocation16 + $0x190] sm:$0xff] %v8723_v20  ;;  %v8612_v54 = vpop.f32.mrb[217].mxu0  ;;  %v8725_v10 = vpop.f32.mrb[217].mxu1 }
 0xb06   :  { %8791 = vst [vmem:[#allocation16 + $0x188] sm:$0xff] %v8612_v54  ;;  %8793 = vst [vmem:[#allocation16 + $0x198] sm:$0xff] %v8725_v10  ;;  %v8614_v19 = vpop.f32.mrb[218].mxu0  ;;  %v8727_v9 = vpop.f32.mrb[218].mxu1 }
 0xb07   :  { %8794 = vst [vmem:[#allocation16 + $0x1a0] sm:$0xff] %v8614_v19  ;;  %8796 = vst [vmem:[#allocation16 + $0x1b0] sm:$0xff] %v8727_v9  ;;  %v8616_v1 = vpop.f32.mrb[219].mxu0  ;;  %v8729_v23 = vpop.f32.mrb[219].mxu1 }
 0xb08   :  { %8795 = vst [vmem:[#allocation16 + $0x1a8] sm:$0xff] %v8616_v1  ;;  %8797 = vst [vmem:[#allocation16 + $0x1b8] sm:$0xff] %v8729_v23 }
 0xb0c   :  { %v8620_v59 = vpop.f32.mrb[220].mxu0  ;;  %v8733_v39 = vpop.f32.mrb[220].mxu1 }
 0xb0d   :  { %8798 = vst [vmem:[#allocation16 + $0x1c0] sm:$0xff] %v8620_v59  ;;  %8800 = vst [vmem:[#allocation16 + $0x1d0] sm:$0xff] %v8733_v39  ;;  %v8622_v4 = vpop.f32.mrb[221].mxu0  ;;  %v8735_v38 = vpop.f32.mrb[221].mxu1 }
 0xb0e   :  { %8799 = vst [vmem:[#allocation16 + $0x1c8] sm:$0xff] %v8622_v4  ;;  %8801 = vst [vmem:[#allocation16 + $0x1d8] sm:$0xff] %v8735_v38  ;;  %v8624_v43 = vpop.f32.mrb[222].mxu0  ;;  %v8737_v13 = vpop.f32.mrb[222].mxu1 }
 0xb0f   :  { %8802 = vst [vmem:[#allocation16 + $0x1e0] sm:$0xff] %v8624_v43  ;;  %8804 = vst [vmem:[#allocation16 + $0x1f0] sm:$0xff] %v8737_v13  ;;  %v8626_v26 = vpop.f32.mrb[223].mxu0  ;;  %v8739_v47 = vpop.f32.mrb[223].mxu1 }
 0xb10   :  { %8803 = vst [vmem:[#allocation16 + $0x1e8] sm:$0xff] %v8626_v26  ;;  %8805 = vst [vmem:[#allocation16 + $0x1f8] sm:$0xff] %v8739_v47 }
 0xb11   :  { %11341 = shalt.err (!%p11338_p6)
}
 0xb12   :  { %s11342_s25 = scalar_lea.hbm %s14762_s9, 8192 }
 0xb13   :  { %p11343_p7 = scmp.ne.s32.totalorder %s14762_s9, %s11342_s25  ;;  %p11346_p8 = scmp.lt.u32.totalorder %s11342_s25, %s14762_s9 }
 0xb15   :  { %p11348_p9 = pnand %p11346_p8, %p11343_p7 }
 0xb17   :  { %11351 = shalt.err (!%p11348_p9)
}
 0xb18   :  { %8817 = dma.vmem_to_hbm [thread:$0]  %s8812_s30, 8192, %s14762_s9, [#allocation4], %s11374_s6, %s11374_s6, %s11375_s28  }
 0xb19   :  { %11362 = dma.done.wait [#allocation4], 8192  }
 0xb1a   :  { %11363 = vsyncadd [#allocation4], 4294959104 }
 0xb1b   :  { %11364 = dma.done.wait [#allocation18], 8192  }
 0xb1c   :  { %11365 = vsyncadd [#allocation18], 4294959104 }
 0xb1d   :  { %8836 = vsyncpa [#allocation3], 1 }
 0xb1e   :  { %8837 = vsyncpa [#allocation6], 1 }
 0xb1f   :  { %8838 = vsyncpa [#allocation9], 1 }
 0xb20   :  { %8839 = vsyncpa [#allocation12], 1 }
 0xb21   :  { %8840 = vsyncpa [#allocation15], 1 }
 0xb22   :  { %8841 = vsyncpa [#allocation4], 1 }
 0xb23   :  { %8842 = vsyncpa [#allocation18], 1 }

</bundles_post_ra>
